<compile_context>
chip_gen: v5e
topology: v5e:2x2
jax: 0.10.0
libtpu: 0.0.40
codegen_flags: <defaults>
</compile_context>

<pallas_src>
import jax
import jax.numpy as jnp
import numpy as np
from jax.experimental import pallas as pl
from jax.experimental.pallas import tpu as pltpu


def _round_up(a: int, b: int) -> int:
    return ((a + b - 1) // b) * b


def _halfpool1d_kernel(x_ref, o_ref):
    # x_ref block: (BN, TC_IN, L) ; o_ref block: (BN, TC_OUT, L//2 + 1), TC_OUT <= TC_IN.
    bn, co, _ = o_ref.shape
    L = x_ref.shape[2]
    half = L // 2
    # BN is small (<= 16): static unroll keeps every vector op rank-2.
    for b in range(bn):
        x = x_ref[b, :co, :]                                   # (co, L), lane-dense
        # Dense roll+max: z[:, i] = max(x[:, i], x[:, i-1])  (lane roll = XLU slot,
        # max = VPU; no lane-minor reshape before the max).
        z = jnp.maximum(x, pltpu.roll(x, shift=1, axis=1))
        # Single even-lane extraction: core[:, j] = z[:, 2j] = max(x[:, 2j-1], x[:, 2j]).
        core = z.reshape(co, half, 2)[:, :, 0]                 # (co, half)
        o_ref[b, :, :half] = core                              # lane-dense main store
        o_ref[b, :, 0:1] = x[:, 0:1]                           # y[:, 0]    = x[:, 0]   (fixes roll wrap)
        o_ref[b, :, half:] = x[:, L - 1:]                      # y[:, L//2] = x[:, L-1]


def half_pool_1d(x: jax.Array) -> jax.Array:
    """x: (N, C, L) with even L  ->  (N, C-1, L//2 + 1)."""
    N, C, L = x.shape
    assert L % 2 == 0, "HalfPool1D kernel assumes an even input length"
    assert C >= 2, "need at least 2 channels (one is dropped)"
    half = L // 2
    l_out = half + 1
    c_out = C - 1
    itemsize = x.dtype.itemsize

    # Sublane packing for the dtype: 8 rows (f32), 16 (bf16), 32 (int8/fp8).
    sub = max(8, 32 // itemsize)

    # Generation-aware budgets (v7x only has 64 MiB VMEM per TensorCore).
    try:
        vmem_cap = int(pltpu.get_tpu_info().vmem_capacity_bytes)
    except Exception:
        vmem_cap = 64 * 1024 * 1024
    if vmem_cap >= 96 * 1024 * 1024:          # v5e / v6e (128 MiB VMEM)
        block_target = 8 * 1024 * 1024        # ~8 MiB of input per block
        vmem_limit_cap = 64 * 1024 * 1024
    else:                                     # v7x (64 MiB) or unknown
        block_target = 4 * 1024 * 1024
        vmem_limit_cap = 48 * 1024 * 1024

    # Channel tiling (multiples of the sublane packing, sized by bytes).
    if c_out >= sub:
        rows_budget = max(sub, (block_target // max(1, L * itemsize)) // sub * sub)
        tc_in = tc_out = min(_round_up(c_out, sub), rows_budget)
        # TODO(synk): for extreme L where even `sub` rows exceed the VMEM budget, add an
        # L-tile grid axis with a 1-column left halo instead of relying on this row floor.
    else:
        tc_in, tc_out = C, c_out              # tiny channel count: one block, write first C-1 rows
    num_ct = pl.cdiv(c_out, tc_out)

    # Batch tiling when one batch's channel block is small (amortize per-step overhead).
    bn = 1
    if num_ct == 1 and N > 1:
        per_batch_in = tc_in * L * itemsize
        bn = int(min(N, max(1, block_target // max(1, per_batch_in)), 16))
    num_bt = pl.cdiv(N, bn)

    # v7x has 2 TensorCores sharing HBM: make sure tiny problems give both cores work.
    if num_bt * num_ct < 2:
        if bn > 1:
            bn = max(1, bn // 2)
            num_bt = pl.cdiv(N, bn)
        elif c_out >= 2 * sub:
            tc_in = tc_out = _round_up(pl.cdiv(c_out, 2), sub)
            num_ct = pl.cdiv(c_out, tc_out)

    # Scoped-VMEM request: double-buffered in/out blocks (lane/sublane padded)
    # plus headroom for in-kernel temporaries (x, roll, max, extraction).
    lane = lambda n: _round_up(n, 128)
    blk_in = bn * _round_up(tc_in, 8) * lane(L) * itemsize
    blk_out = bn * _round_up(tc_out, 8) * lane(l_out) * itemsize
    vmem_need = 2 * (blk_in + blk_out) + 3 * blk_in + (1 << 20)
    vmem_limit = int(min(vmem_limit_cap, max(32 * 1024 * 1024, vmem_need)))

    return pl.pallas_call(
        _halfpool1d_kernel,
        out_shape=jax.ShapeDtypeStruct((N, c_out, l_out), x.dtype),
        grid=(num_bt, num_ct),
        in_specs=[pl.BlockSpec((bn, tc_in, L), lambda nb, cb: (nb, cb, 0))],
        out_specs=pl.BlockSpec((bn, tc_out, l_out), lambda nb, cb: (nb, cb, 0)),
        compiler_params=pltpu.CompilerParams(
            dimension_semantics=("parallel", "parallel"),
            vmem_limit_bytes=vmem_limit,
        ),
    )(x)


def _reference(x: np.ndarray) -> np.ndarray:
    # numpy reference for MaxPool1d(k=2, s=2, p=1) followed by [:, :-1]
    N, C, L = x.shape
    xp = np.pad(x, ((0, 0), (0, 0), (1, 1)), constant_values=-np.inf)
    pooled = xp.reshape(N, C, L // 2 + 1, 2).max(axis=-1)
    return pooled[:, :-1]


if __name__ == "__main__":
    key = jax.random.PRNGKey(0)
    N, C, L = 2, 16, 256
    x = jax.random.normal(key, (N, C, L), dtype=jnp.float32)

    y = jax.block_until_ready(half_pool_1d(x))

    y_ref = _reference(np.asarray(x))
    assert y.shape == (N, C - 1, L // 2 + 1), y.shape
    np.testing.assert_allclose(np.asarray(y), y_ref, rtol=0, atol=0)
    print("KERNEL_OK")
</pallas_src>

<mosaic_0001>
module attributes {stable_mosaic.version = 11 : i64} {
  func.func @_halfpool1d_kernel(%arg0: i32, %arg1: i32, %arg2: memref<1x16x256xf32, #tpu.memory_space<vmem>>, %arg3: memref<1x16x129xf32, #tpu.memory_space<vmem>>) attributes {dimension_semantics = [#tpu.dimension_semantics<parallel>, #tpu.dimension_semantics<parallel>], iteration_bounds = array<i64: 2, 1>, scalar_prefetch = 0 : i64, scratch_operands = 0 : i64, tpu.core_type = #tpu.core_type<tc>, window_params = [{transform_indices = @transform_0, window_bounds = array<i64: 1, 16, 256>}, {transform_indices = @transform_1, window_bounds = array<i64: 1, 16, 129>}]} {
    %c0 = arith.constant 0 : index
    %c0_0 = arith.constant 0 : index
    %c0_1 = arith.constant 0 : index
    %0 = vector.load %arg2[%c0, %c0_0, %c0_1] : memref<1x16x256xf32, #tpu.memory_space<vmem>>, vector<1x16x256xf32>
    %1 = vector.shape_cast %0 : vector<1x16x256xf32> to vector<16x256xf32>
    %c1_i32 = arith.constant 1 : i32
    %2 = tpu.dynamic_rotate %1 by %c1_i32 dim 1 : vector<16x256xf32>, i32 -> vector<16x256xf32>
    %3 = arith.maximumf %1, %2 : vector<16x256xf32>
    %4 = vector.shape_cast %3 : vector<16x256xf32> to vector<16x128x2xf32>
    %5 = vector.extract_strided_slice %4 {offsets = [0, 0, 0], sizes = [16, 128, 1], strides = [1, 1, 1]} : vector<16x128x2xf32> to vector<16x128x1xf32>
    %6 = vector.shape_cast %5 : vector<16x128x1xf32> to vector<16x128xf32>
    %c0_2 = arith.constant 0 : index
    %c0_3 = arith.constant 0 : index
    %c0_4 = arith.constant 0 : index
    %7 = vector.load %arg3[%c0_2, %c0_3, %c0_4] : memref<1x16x129xf32, #tpu.memory_space<vmem>>, vector<1x16x128xf32>
    %8 = vector.shape_cast %7 : vector<1x16x128xf32> to vector<16x128xf32>
    %9 = vector.shape_cast %6 : vector<16x128xf32> to vector<1x16x128xf32>
    tpu.vector_store %arg3[%c0_2, %c0_3, %c0_4], %9 {strides = array<i32>} : memref<1x16x129xf32, #tpu.memory_space<vmem>>, vector<1x16x128xf32>,
    %10 = vector.extract_strided_slice %1 {offsets = [0, 0], sizes = [16, 1], strides = [1, 1]} : vector<16x256xf32> to vector<16x1xf32>
    %c0_5 = arith.constant 0 : index
    %c0_6 = arith.constant 0 : index
    %c0_7 = arith.constant 0 : index
    %11 = vector.load %arg3[%c0_5, %c0_6, %c0_7] : memref<1x16x129xf32, #tpu.memory_space<vmem>>, vector<1x16x1xf32>
    %12 = vector.shape_cast %11 : vector<1x16x1xf32> to vector<16x1xf32>
    %13 = vector.shape_cast %10 : vector<16x1xf32> to vector<1x16x1xf32>
    tpu.vector_store %arg3[%c0_5, %c0_6, %c0_7], %13 {strides = array<i32>} : memref<1x16x129xf32, #tpu.memory_space<vmem>>, vector<1x16x1xf32>,
    %14 = vector.extract_strided_slice %1 {offsets = [0, 255], sizes = [16, 1], strides = [1, 1]} : vector<16x256xf32> to vector<16x1xf32>
    %c0_8 = arith.constant 0 : index
    %c0_9 = arith.constant 0 : index
    %c128 = arith.constant 128 : index
    %15 = vector.load %arg3[%c0_8, %c0_9, %c128] : memref<1x16x129xf32, #tpu.memory_space<vmem>>, vector<1x16x1xf32>
    %16 = vector.shape_cast %15 : vector<1x16x1xf32> to vector<16x1xf32>
    %17 = vector.shape_cast %14 : vector<16x1xf32> to vector<1x16x1xf32>
    tpu.vector_store %arg3[%c0_8, %c0_9, %c128], %17 {strides = array<i32>} : memref<1x16x129xf32, #tpu.memory_space<vmem>>, vector<1x16x1xf32>,
    return
  }
  func.func @transform_0(%arg0: i32, %arg1: i32) -> (i32, i32, i32) {
    %c0_i32 = arith.constant 0 : i32
    %c0_i32_0 = arith.constant 0 : i32
    return %arg0, %arg1, %c0_i32 : i32, i32, i32
  }
  func.func @transform_1(%arg0: i32, %arg1: i32) -> (i32, i32, i32) {
    %c0_i32 = arith.constant 0 : i32
    %c0_i32_0 = arith.constant 0 : i32
    return %arg0, %arg1, %c0_i32 : i32, i32, i32
  }
}

</mosaic_0001>

<bundles_post_ra>
// kernel: tpu_custom_call.1
= control target key start
LH: loop header
LB: loop body
LE: loop exit
PB: predicated region body
PF: predicated region fallthrough
CT: control target
= control target key end

     0   :  { %6 = vsyncpa [#allocation3], 0  ;;  %s11494_s0 = inlined_call_operand.hbm [shape: f32[2,16,256], index: 0, kind: input, shape index: {}]   ;;  %s11495_s1 = inlined_call_operand.vmem [shape: f32[2,15,129], index: 1, kind: output, shape index: {}]  }
   0x1   :  { %8 = vsyncpa [#allocation3 + $0x1], 0  ;;  %s6534_s6 = smov 0   ;;  %s6536_s7 = smov 0  }
   0x2   :  { %s6538_s8 = smov 0   ;;  %s6540_s9 = smov 0  }
   0x3   :  { %s6542_s10 = smov 0   ;;  %s6544_s11 = smov 0  }
   0x4 LB: > { %s6227_s12 = sadd.s32 4294967295, %s6453_s11   ;;  %s26_s13 = sadd.s32 1, %s6449_s10  ;;  %s6453_s11 = sphi %s6544_s11, %s14_s11   ;;  %s6449_s10 = sphi %s6542_s10, %s12627_s10   ;;  %s6445_s9 = sphi %s6540_s9, %s12626_s9   ;;  %s6441_s8 = sphi %s6538_s8, %s12625_s8   ;;  %s6437_s7 = sphi %s6536_s7, %s12624_s7   ;;  %s6433_s6 = sphi %s6534_s6, %s12623_s6  }
   0x5   : > { %p28_p0 = scmp.ge.s32.totalorder %s26_s13, 2  ;;  %s35_s14 = sadd.s32 1, %s6441_s8 }
   0x6   : > { %p42_p1 = scmp.ne.s32.totalorder %s6441_s8, %s6437_s7  ;;  %p43_p2 = scmp.eq.s32.totalorder %s6453_s11, 0 }
   0x7   : > { %s12629_s13 = smov (%p28_p0, %s26_s13), 0  ;;  %p48_p4 = scmp.ne.s32.totalorder %s6437_s7, %s6433_s6 }
   0x8   : > { %p6570_p3 = por %p43_p2, %p42_p1  ;;  %s30_s16 = ssub.s32 %s6449_s10, %s12629_s13 }
   0x9   : > { %p49_p5 = scmp.eq.s32.totalorder %s6227_s12, 0  ;;  %p33_p6 = scmp.eq.s32.totalorder %s30_s16, 0 }
   0xa   : > { %p6248_p8 = scmp.lt.s32.totalorder %s6453_s11, 2  ;;  %s100_s19 = sand.u32 1, %s6441_s8  }
   0xb   : > { %p6577_p7 = por %p49_p5, %p48_p4  ;;  %s6240_s20 = sshll.u32 %s6449_s10, 5 }
   0xc   : > { %s6583_s18 = scalar_select %p33_p6, %s6441_s8, %s35_s14  }
   0xd   : > { %s6231_s21 = sshll.u32 %s100_s19, 5  ;;  %s112_s24 = scalar_lea.hbm %s11494_s0, %s6240_s20 }
   0xe   : > { %s113_s25 = sshll.u32 %s112_s24, 4  ;;  %s104_s26 = scalar_lea.vmem [#allocation2], %s6231_s21  ;;  %s114_s25 = int_to_ptr.hbm [resolvable:$true] %s113_s25 }
   0xf   : > { %s115_s27 = sshll.u32 %s104_s26, 4  ;;  %p6245_p9 = pnand %p6248_p8, %p6570_p3  ;;  %s116_s27 = int_to_ptr.vmem [resolvable:$true] %s115_s27 }
  0x10   : > { %p6234_p10 = scmp.ge.s32.totalorder %s6453_s11, 1  ;;  %p123_p11 = scmp.lt.s32.totalorder %s6453_s11, 3 }
  0x11   : > { %s101_s28 = scalar_lea.sflag [#allocation3], %s100_s19  ;;  %s6455_s29 = smov 256  }
  0x12   : > { %s6456_s30 = smov 16   ;;  %p124_p12 = pnand %p6234_p10, %p123_p11 }
  0x13   : > { %6247 = dma.hbm_to_vmem [thread:$0]  (!%p6245_p9), %s114_s25, 512, %s116_s27, %s101_s28, %s6455_s29, %s6455_s29, %s6456_s30  }
  0x14   : > { %127 = sbr.rel (%p124_p12) target bundleno = 1668 (0x684), region = 24 }
  0x19   : > { %s129_s2 = sand.u32 1, %s6437_s7  }
  0x1a   : > { %s6235_s3 = sshll.u32 %s129_s2, 5  ;;  %s130_s4 = scalar_lea.sflag [#allocation3], %s129_s2 }
  0x1b   : > { %s6595_s5 = scalar_lea.vmem [#allocation2], %s6235_s3 }
  0x1c   : > { %6428 = dma.done.wait (%p6577_p7), %s130_s4, 512  }
  0x1d   : > { %6430 = vsyncadd (%p6577_p7), %s130_s4, 4294966784  ;;  %v171_v0 = vld [vmem:[%s6595_s5 + $0x8] sm:$0xff]  ;;  %v6603_v1 = vld [vmem:[%s6595_s5] sm:$0xff]  ;;  %s11496_s6 = smov 1   ;;  %v182_v4 = vlaneseq  ;;  %s6458_s12 = smov 124   ;;  %vm954_vm1 = vcmask 1047556  }
  0x1e   : > { %11779 = vst [vmem:[#allocation5_spill] sm:$0xff] %v6603_v1  ;;  %178 = vrot.lane.b32.xlu1 %v171_v0, %s11496_s6  ;;  %174 = vrot.lane.b32.xlu0 %v6603_v1, %s11496_s6  ;;  %v173_v2 = vld [vmem:[%s6595_s5 + $0x18] sm:$0xff]  ;;  %v6610_v3 = vld [vmem:[%s6595_s5 + $0x10] sm:$0xff]  ;;  %s6459_s14 = smov 126   ;;  %s6460_s15 = smov 122   ;;  %vm5565_vm2 = vcmask 130112  }
  0x1f   : > { %11780 = vst [vmem:[#allocation6_spill] sm:$0xff] %v6610_v3  ;;  %v6615_v5 = vand.u32 127, %v182_v4  ;;  %s6461_s16 = smov 118   ;;  %s6462_s17 = smov 120   ;;  %v6479_v17 = vmov 1983009808  }
  0x20   : > { %s6463_s19 = smov 116   ;;  %s6464_s20 = smov 112   ;;  %v959_v18 = vunpack.c.l.s4 %v6479_v17  ;;  %v6485_v55 = vmov 1934713408   ;;  %vm5569_vm3 = vcmask 195712   ;;  %vm5573_vm4 = vcmask 261312  }
  0x21   : > { %11781 = vst [vmem:[#allocation7_spill] sm:$0xff] %v6615_v5  ;;  %vm184_vm0 = vcmp.lt.s32.totalorder %v6615_v5, 1  ;;  %s6465_s21 = smov 114   ;;  %s6466_s22 = smov 110   ;;  %v1007_v56 = vunpack.c.l.s4 %v6485_v55  ;;  %vm5577_vm5 = vcmask 326912   ;;  %vm5581_vm6 = vcmask 392512  }
  0x22   : > { %s6467_s23 = smov 106   ;;  %s6468_s24 = smov 108   ;;  %v6731_v22 = vunpack.c.0.s8 %v959_v18  ;;  %vm11767_vm7 = vcmask 458112   ;;  %vm11772_vm8 = vcmask 523712   ;;  %vm11768_vm9 = vcmask 589312  }
  0x23   : > { %s6469_s25 = smov 104   ;;  %s6470_s26 = smov 100   ;;  %vm11771_vm10 = vcmask 654912   ;;  %vm11770_vm11 = vcmask 720512   ;;  %vm11769_vm12 = vcmask 786112   ;;  %vm5609_vm13 = vcmask 851712  }
  0x24   : > { %s6471_s27 = smov 102   ;;  %s6472_s28 = smov 98   ;;  %vm5613_vm14 = vcmask 917312   ;;  %vm5617_vm15 = vcmask 982912  }
  0x25   : > { %s11498_s29 = smov 94   ;;  %s6474_s30 = smov 96  }
  0x26   : > { %180 = vrot.lane.b32.xlu1 %v173_v2, %s11496_s6  ;;  %176 = vrot.lane.b32.xlu0 %v6610_v3, %s11496_s6  ;;  %s11500_s2 = smov 92   ;;  %s11508_s3 = smov 88   ;;  %v6797_v2 = vunpack.c.0.s8 %v1007_v56 }
  0x27   : > { %s6477_s4 = smov 90   ;;  %s11502_s6 = smov 86  }
  0x28   : > { %11785 = vst [vmem:[#allocation11_spill] sm:$0xff] %v6797_v2  ;;  %p160_p13 = scmp.lt.s32.totalorder %s6445_s9, 1 }
  0x2a   : > { %s12631_s9 = smov (!%p160_p13, %s6445_s9), 1 }
  0x90   : > { %v6618_v6 = vpop.permute.xlu1 %178  ;;  %v6620_v7 = vpop.permute.xlu0 %174 }
  0x91   : > { %v187_v8 = vsel %vm184_vm0, %v6618_v6, %v6620_v7 }
  0x92   : > { %v6627_v9 = vmax.f32 %v6603_v1, %v187_v8 }
  0x94   : > { %201 = vrot.lane.b32.xlu0 %v6627_v9, %s6458_s12  ;;  %195 = vrot.lane.b32.xlu2 %v6627_v9, %s6459_s14  ;;  %v956_v21 = vrot.slane %v6627_v9, 4 }
  0x98   : > { %v6633_v10 = vpop.permute.xlu1 %180  ;;  %v6635_v11 = vpop.permute.xlu0 %176 }
  0x99   : > { %v188_v12 = vsel %vm184_vm0, %v6633_v10, %v6635_v11 }
  0x9a   : > { %v6642_v13 = vmax.f32 %v6610_v3, %v188_v12 }
  0x9c   : > { %209 = vrot.lane.b32.xlu0 %v6642_v13, %s6460_s15  ;;  %203 = vrot.lane.b32.xlu1 %v6642_v13, %s6458_s12  ;;  %v2748_v51 = vrot.slane %v6642_v13, 4 }
  0x9d   : > { %197 = vrot.lane.b32.xlu2 %v6642_v13, %s6459_s14 }
  0xa4   : > { %219 = vrot.lane.b32.xlu0 %v6627_v9, %s6461_s16  ;;  %213 = vrot.lane.b32.xlu1 %v6627_v9, %s6462_s17 }
  0xa5   : > { %207 = vrot.lane.b32.xlu2 %v6627_v9, %s6460_s15 }
  0xac   : > { %227 = vrot.lane.b32.xlu0 %v6642_v13, %s6463_s19  ;;  %221 = vrot.lane.b32.xlu1 %v6642_v13, %s6461_s16 }
  0xad   : > { %215 = vrot.lane.b32.xlu2 %v6642_v13, %s6462_s17 }
  0xb4   : > { %237 = vrot.lane.b32.xlu0 %v6627_v9, %s6464_s20  ;;  %231 = vrot.lane.b32.xlu1 %v6627_v9, %s6465_s21 }
  0xb5   : > { %225 = vrot.lane.b32.xlu2 %v6627_v9, %s6463_s19 }
  0xbc   : > { %245 = vrot.lane.b32.xlu0 %v6642_v13, %s6466_s22  ;;  %239 = vrot.lane.b32.xlu1 %v6642_v13, %s6464_s20 }
  0xbd   : > { %233 = vrot.lane.b32.xlu2 %v6642_v13, %s6465_s21 }
  0xc4   : > { %255 = vrot.lane.b32.xlu0 %v6627_v9, %s6467_s23  ;;  %249 = vrot.lane.b32.xlu1 %v6627_v9, %s6468_s24 }
  0xc5   : > { %243 = vrot.lane.b32.xlu2 %v6627_v9, %s6466_s22 }
  0xcc   : > { %263 = vrot.lane.b32.xlu0 %v6642_v13, %s6469_s25  ;;  %257 = vrot.lane.b32.xlu1 %v6642_v13, %s6467_s23 }
  0xcd   : > { %251 = vrot.lane.b32.xlu2 %v6642_v13, %s6468_s24 }
  0xd4   : > { %273 = vrot.lane.b32.xlu0 %v6627_v9, %s6470_s26  ;;  %267 = vrot.lane.b32.xlu1 %v6627_v9, %s6471_s27 }
  0xd5   : > { %261 = vrot.lane.b32.xlu2 %v6627_v9, %s6469_s25 }
  0xdc   : > { %281 = vrot.lane.b32.xlu0 %v6642_v13, %s6472_s28  ;;  %275 = vrot.lane.b32.xlu1 %v6642_v13, %s6470_s26 }
  0xdd   : > { %269 = vrot.lane.b32.xlu2 %v6642_v13, %s6471_s27 }
  0xe4   : > { %291 = vrot.lane.b32.xlu0 %v6627_v9, %s11498_s29  ;;  %285 = vrot.lane.b32.xlu1 %v6627_v9, %s6474_s30 }
  0xe5   : > { %279 = vrot.lane.b32.xlu2 %v6627_v9, %s6472_s28 }
  0xec   : > { %299 = vrot.lane.b32.xlu0 %v6642_v13, %s11500_s2  ;;  %293 = vrot.lane.b32.xlu1 %v6642_v13, %s11498_s29  ;;  %s11504_s29 = smov 82  }
  0xed   : > { %287 = vrot.lane.b32.xlu2 %v6642_v13, %s6474_s30 }
  0xee   : > { %v196_v14 = vpop.permute.xlu2 %195 }
  0xef   : > { %v968_v19 = vrot.slane %v196_v14, 4 }
  0xf4   : > { %309 = vrot.lane.b32.xlu0 %v6627_v9, %s11508_s3  ;;  %303 = vrot.lane.b32.xlu1 %v6627_v9, %s6477_s4 }
  0xf5   : > { %297 = vrot.lane.b32.xlu2 %v6627_v9, %s11500_s2  ;;  %s11506_s2 = smov 84  }
  0xf7   : > { %v6716_v15 = vpop.permute.xlu2 %197 }
  0xf8   : > { %v2760_v57 = vrot.slane %v6716_v15, 4 }
  0xfc   : > { %317 = vrot.lane.b32.xlu0 %v6642_v13, %s11502_s6  ;;  %311 = vrot.lane.b32.xlu1 %v6642_v13, %s11508_s3  ;;  %s11514_s3 = smov 74  }
  0xfd   : > { %305 = vrot.lane.b32.xlu2 %v6642_v13, %s6477_s4 }
  0xff   : > { %v208_v16 = vpop.permute.xlu2 %207 }
 0x100   : > { %v966_v20 = vrot.slane %v208_v16, 4  ;;  %v969_v24 = vsel %vm954_vm1, %v208_v16, %v968_v19 }
 0x101   : > { %v6744_v31 = vperm.slane %v969_v24, %v6731_v22 }
 0x102   : > { %v967_v29 = vsel %vm954_vm1, %v966_v20, %v196_v14 }
 0x103   : > { %11783 = vst [vmem:[#allocation9_spill] sm:$0xff] %v6744_v31  ;;  %v6751_v34 = vperm.slane %v967_v29, %v6731_v22 }
 0x104   : > { %327 = vrot.lane.b32.xlu0 %v6627_v9, %s11504_s29  ;;  %321 = vrot.lane.b32.xlu1 %v6627_v9, %s11506_s2 }
 0x105   : > { %315 = vrot.lane.b32.xlu2 %v6627_v9, %s11502_s6  ;;  %s11550_s6 = smov 80  }
 0x106   : > { %v202_v23 = vpop.permute.xlu0 %201 }
 0x107   : > { %v6734_v25 = vpop.permute.xlu2 %215  ;;  %v953_v26 = vrot.slane %v202_v23, 4  ;;  %v957_v27 = vsel %vm954_vm1, %v202_v23, %v956_v21 }
 0x108   : > { %v6738_v28 = vperm.slane %v957_v27, %v6731_v22  ;;  %v2772_v59 = vrot.slane %v6734_v25, 4 }
 0x109   : > { %v955_v30 = vsel %vm954_vm1, %v953_v26, %v6627_v9 }
 0x10a   : > { %11782 = vst [vmem:[#allocation8_spill] sm:$0xff] %v6738_v28  ;;  %v6747_v32 = vperm.slane %v955_v30, %v6731_v22  ;;  %v1016_v33 = vrot.slane %v6738_v28, 4 }
 0x10c   : > { %v1004_v35 = vrot.slane %v6747_v32, 4  ;;  %335 = vrot.lane.b32.xlu0 %v6642_v13, %s11550_s6  ;;  %329 = vrot.lane.b32.xlu1 %v6642_v13, %s11504_s29  ;;  %v6760_v36 = vsel %vm954_vm1, %v6744_v31, %v1016_v33  ;;  %s11510_s29 = smov 76  }
 0x10d   : > { %323 = vrot.lane.b32.xlu2 %v6642_v13, %s11506_s2  ;;  %s11512_s2 = smov 78  }
 0x10e   : > { %v204_v37 = vpop.permute.xlu1 %203  ;;  %v210_v38 = vpop.permute.xlu0 %209  ;;  %v6766_v39 = vsel %vm954_vm1, %v6751_v34, %v1004_v35 }
 0x10f   : > { %v2746_v40 = vrot.slane %v204_v37, 4  ;;  %v226_v41 = vpop.permute.xlu2 %225  ;;  %v2758_v42 = vrot.slane %v210_v38, 4  ;;  %v2749_v53 = vsel %vm954_vm1, %v204_v37, %v2748_v51  ;;  %v2761_v62 = vsel %vm954_vm1, %v210_v38, %v2760_v57 }
 0x110   : > { %v6787_v58 = vperm.slane %v2749_v53, %v6731_v22  ;;  %v978_v18 = vrot.slane %v226_v41, 4  ;;  %v6810_v21 = vperm.slane %v2761_v62, %v6731_v22 }
 0x111   : > { %v2747_v43 = vsel %vm954_vm1, %v2746_v40, %v6642_v13  ;;  %v2759_v44 = vsel %vm954_vm1, %v2758_v42, %v6716_v15 }
 0x112   : > { %v2753_v45 = vperm.slane %v2747_v43, %v6731_v22  ;;  %v2765_v47 = vperm.slane %v2759_v44, %v6731_v22  ;;  %11784 = vst [vmem:[#allocation10_spill] sm:$0xff] %v6787_v58  ;;  %v2808_v17 = vrot.slane %v6787_v58, 4 }
 0x113   : > { %11787 = vst [vmem:[#allocation13_spill] sm:$0xff] %v6810_v21 }
 0x114   : > { %v2796_v46 = vrot.slane %v2753_v45, 4  ;;  %345 = vrot.lane.b32.xlu0 %v6627_v9, %s11510_s29  ;;  %339 = vrot.lane.b32.xlu1 %v6627_v9, %s11512_s2  ;;  %v2794_v54 = vrot.slane %v2765_v47, 4 }
 0x115   : > { %333 = vrot.lane.b32.xlu2 %v6627_v9, %s11550_s6  ;;  %s11566_s6 = smov 44  }
 0x116   : > { %v214_v48 = vpop.permute.xlu1 %213  ;;  %v6780_v49 = vpop.permute.xlu0 %219  ;;  %v2797_v50 = vsel %vm954_vm1, %v2765_v47, %v2796_v46  ;;  %v2795_v4 = vsel %vm954_vm1, %v2794_v54, %v2753_v45 }
 0x117   : > { %v234_v52 = vpop.permute.xlu2 %233  ;;  %v980_v60 = vrot.slane %v214_v48, 4  ;;  %v979_v27 = vsel %vm954_vm1, %v978_v18, %v214_v48  ;;  %v6819_v33 = vperm.slane %v2795_v4, %v6797_v2  ;;  %v992_v43 = vrot.slane %v6780_v49, 4 }
 0x118   : > { %v2782_v61 = vrot.slane %v234_v52, 4  ;;  %v6836_v42 = vperm.slane %v979_v27, %v6731_v22  ;;  %v2805_v45 = vperm.slane %v2797_v50, %v6797_v2  ;;  %v1025_v48 = vperm.slane %v6760_v36, %v6797_v2 }
 0x119   : > { %v981_v23 = vsel %vm954_vm1, %v226_v41, %v980_v60  ;;  %11788 = vst [vmem:[#allocation14_spill] sm:$0xff] %v6819_v33  ;;  %v2809_v41 = vsel %vm954_vm1, %v6810_v21, %v2808_v17 }
 0x11a   : > { %v6826_v38 = vperm.slane %v981_v23, %v6731_v22  ;;  %v6853_v56 = vperm.slane %v2809_v41, %v6797_v2  ;;  %v1064_v17 = vrot.slane %v1025_v48, 4 }
 0x11c   : > { %353 = vrot.lane.b32.xlu0 %v6642_v13, %s11514_s3  ;;  %347 = vrot.lane.b32.xlu1 %v6642_v13, %s11510_s29  ;;  %11790 = vst [vmem:[#allocation16_spill] sm:$0xff] %v6826_v38  ;;  %s11516_s29 = smov 70   ;;  %v1040_v57 = vrot.slane %v6826_v38, 4 }
 0x11d   : > { %341 = vrot.lane.b32.xlu2 %v6642_v13, %s11512_s2  ;;  %s11518_s2 = smov 72   ;;  %11792 = vst [vmem:[#allocation18_spill] sm:$0xff] %v6853_v56 }
 0x11e   : > { %v222_v63 = vpop.permute.xlu1 %221  ;;  %v228_v0 = vpop.permute.xlu0 %227 }
 0x11f   : > { %v2783_v8 = vsel %vm954_vm1, %v2782_v61, %v222_v63  ;;  %v2784_v12 = vrot.slane %v222_v63, 4  ;;  %v6801_v14 = vpop.permute.xlu2 %243  ;;  %v2770_v15 = vrot.slane %v228_v0, 4  ;;  %v2773_v16 = vsel %vm954_vm1, %v228_v0, %v2772_v59 }
 0x120   : > { %v2789_v19 = vperm.slane %v2783_v8, %v6731_v22  ;;  %v6807_v20 = vperm.slane %v2773_v16, %v6731_v22  ;;  %v1028_v61 = vrot.slane %v6836_v42, 4  ;;  %v2848_v63 = vrot.slane %v2805_v45, 4 }
 0x121   : > { %v2785_v24 = vsel %vm954_vm1, %v234_v52, %v2784_v12  ;;  %v2771_v26 = vsel %vm954_vm1, %v2770_v15, %v6734_v25  ;;  %v2844_v52 = vrot.slane %v6819_v33, 4  ;;  %v1013_v15 = vperm.slane %v6766_v39, %v6797_v2 }
 0x122   : > { %11786 = vst [vmem:[#allocation12_spill] sm:$0xff] %v6807_v20  ;;  %v2818_v29 = vrot.slane %v2789_v19, 4  ;;  %v2777_v30 = vperm.slane %v2771_v26, %v6731_v22  ;;  %v6822_v35 = vperm.slane %v2785_v24, %v6731_v22  ;;  %v2832_v37 = vrot.slane %v6807_v20, 4 }
 0x123   : > { %v2856_v39 = vrot.slane %v6853_v56, 4 }
 0x124   : > { %11789 = vst [vmem:[#allocation15_spill] sm:$0xff] %v6822_v35  ;;  %v2820_v40 = vrot.slane %v2777_v30, 4  ;;  %363 = vrot.lane.b32.xlu0 %v6627_v9, %s11516_s29  ;;  %357 = vrot.lane.b32.xlu1 %v6627_v9, %s11518_s2  ;;  %v2819_v25 = vsel %vm954_vm1, %v2818_v29, %v2777_v30  ;;  %v2833_v50 = vsel %vm954_vm1, %v6822_v35, %v2832_v37  ;;  %v1056_v37 = vrot.slane %v1013_v15, 4 }
 0x125   : > { %351 = vrot.lane.b32.xlu2 %v6627_v9, %s11514_s3  ;;  %v6842_v44 = vperm.slane %v2819_v25, %v6797_v2  ;;  %v6875_v12 = vperm.slane %v2833_v50, %v6797_v2  ;;  %s11520_s3 = smov 68  }
 0x126   : > { %v232_v46 = vpop.permute.xlu1 %231  ;;  %v238_v47 = vpop.permute.xlu0 %237  ;;  %v2821_v51 = vsel %vm954_vm1, %v2789_v19, %v2820_v40 }
 0x127   : > { %11791 = vst [vmem:[#allocation17_spill] sm:$0xff] %v6842_v44  ;;  %v990_v53 = vrot.slane %v232_v46, 4  ;;  %v993_v54 = vsel %vm954_vm1, %v232_v46, %v992_v43  ;;  %v6850_v55 = vpop.permute.xlu2 %251  ;;  %v2829_v36 = vperm.slane %v2821_v51, %v6797_v2  ;;  %v6864_v60 = vsel %vm954_vm1, %v6842_v44, %v2844_v52 }
 0x128   : > { %v6859_v59 = vperm.slane %v993_v54, %v6731_v22  ;;  %11794 = vst [vmem:[#allocation20_spill] sm:$0xff] %v6864_v60  ;;  %v6903_v29 = vsel %vm954_vm1, %v6875_v12, %v2856_v39  ;;  %v1080_v46 = vrot.slane %v6801_v14, 4  ;;  %v1068_v51 = vrot.slane %v238_v47, 4 }
 0x129   : > { %v991_v62 = vsel %vm954_vm1, %v990_v53, %v6780_v49  ;;  %v2846_v8 = vrot.slane %v2829_v36, 4  ;;  %11795 = vst [vmem:[#allocation21_spill] sm:$0xff] %v6875_v12  ;;  %v6881_v18 = vsel %vm954_vm1, %v2829_v36, %v2848_v63 }
 0x12a   : > { %11793 = vst [vmem:[#allocation19_spill] sm:$0xff] %v6859_v59  ;;  %v6870_v0 = vperm.slane %v991_v62, %v6731_v22  ;;  %v1041_v4 = vsel %vm954_vm1, %v6859_v59, %v1040_v57 }
 0x12b   : > { %v1049_v16 = vperm.slane %v1041_v4, %v6797_v2  ;;  %11796 = vst [vmem:[#allocation22_spill] sm:$0xff] %v6881_v18  ;;  %v6890_v19 = vsel %vm954_vm1, %v2846_v8, %v2805_v45 }
 0x12c   : > { %371 = vrot.lane.b32.xlu0 %v6642_v13, %s11520_s3  ;;  %365 = vrot.lane.b32.xlu1 %v6642_v13, %s11516_s29  ;;  %v1029_v49 = vsel %vm954_vm1, %v6870_v0, %v1028_v61  ;;  %11797 = vst [vmem:[#allocation23_spill] sm:$0xff] %v6890_v19  ;;  %s11522_s29 = smov 64  }
 0x12d   : > { %359 = vrot.lane.b32.xlu2 %v6642_v13, %s11518_s2  ;;  %v1037_v23 = vperm.slane %v1029_v49, %v6797_v2  ;;  %v6897_v24 = vsel %vm954_vm1, %v1049_v16, %v1064_v17  ;;  %11799 = vst [vmem:[#allocation25_spill] sm:$0xff] %v6903_v29  ;;  %v1062_v40 = vrot.slane %v1049_v16, 4  ;;  %s11524_s2 = smov 66  }
 0x12e   : > { %11798 = vst [vmem:[#allocation24_spill] sm:$0xff] %v6897_v24  ;;  %v240_v26 = vpop.permute.xlu1 %239  ;;  %v6899_v27 = vpop.permute.xlu0 %245 }
 0x12f   : > { %v6905_v30 = vpop.permute.xlu2 %261  ;;  %v1054_v25 = vrot.slane %v1037_v23, 4  ;;  %v6908_v41 = vsel %vm954_vm1, %v1037_v23, %v1056_v37  ;;  %v6914_v45 = vsel %vm954_vm1, %v1062_v40, %v1025_v48  ;;  %v2860_v52 = vrot.slane %v240_v26, 4 }
 0x130   : > { %11800 = vst [vmem:[#allocation26_spill] sm:$0xff] %v6908_v41 }
 0x131   : > { %v6911_v43 = vsel %vm954_vm1, %v1054_v25, %v1013_v15  ;;  %11802 = vst [vmem:[#allocation28_spill] sm:$0xff] %v6914_v45  ;;  %v2861_v63 = vsel %vm954_vm1, %v6850_v55, %v2860_v52 }
 0x132   : > { %11801 = vst [vmem:[#allocation27_spill] sm:$0xff] %v6911_v43  ;;  %v6936_v49 = vperm.slane %v2861_v63, %v6731_v22 }
 0x134   : > { %381 = vrot.lane.b32.xlu0 %v6627_v9, %s11522_s29  ;;  %375 = vrot.lane.b32.xlu1 %v6627_v9, %s11524_s2  ;;  %11803 = vst [vmem:[#allocation29_spill] sm:$0xff] %v6936_v49  ;;  %v2920_v52 = vrot.slane %v6936_v49, 4 }
 0x135   : > { %369 = vrot.lane.b32.xlu2 %v6627_v9, %s11520_s3  ;;  %s11528_s3 = smov 62  }
 0x136   : > { %v250_v53 = vpop.permute.xlu1 %249  ;;  %v256_v54 = vpop.permute.xlu0 %255 }
 0x137   : > { %v1066_v50 = vrot.slane %v250_v53, 4  ;;  %v1069_v48 = vsel %vm954_vm1, %v250_v53, %v1068_v51  ;;  %v6924_v57 = vpop.permute.xlu2 %269  ;;  %v1078_v36 = vrot.slane %v256_v54, 4  ;;  %v1081_v61 = vsel %vm954_vm1, %v256_v54, %v1080_v46 }
 0x138   : > { %v1077_v62 = vperm.slane %v1069_v48, %v6731_v22  ;;  %v1089_v17 = vperm.slane %v1081_v61, %v6731_v22 }
 0x139   : > { %v1067_v4 = vsel %vm954_vm1, %v1066_v50, %v238_v47  ;;  %v1079_v8 = vsel %vm954_vm1, %v1078_v36, %v6801_v14  ;;  %v2872_v47 = vrot.slane %v6899_v27, 4  ;;  %v2858_v50 = vrot.slane %v6850_v55, 4 }
 0x13a   : > { %v1073_v15 = vperm.slane %v1067_v4, %v6731_v22  ;;  %v1128_v16 = vrot.slane %v1077_v62, 4  ;;  %v1085_v23 = vperm.slane %v1079_v8, %v6731_v22  ;;  %v1092_v36 = vrot.slane %v6905_v30, 4 }
 0x13b   : > { %v2859_v63 = vsel %vm954_vm1, %v2858_v50, %v240_v26  ;;  %v1126_v4 = vrot.slane %v1089_v17, 4 }
 0x13c   : > { %v1116_v39 = vrot.slane %v1073_v15, 4  ;;  %389 = vrot.lane.b32.xlu0 %v6642_v13, %s11528_s3  ;;  %383 = vrot.lane.b32.xlu1 %v6642_v13, %s11522_s29  ;;  %v1129_v14 = vsel %vm954_vm1, %v1089_v17, %v1128_v16  ;;  %v1114_v48 = vrot.slane %v1085_v23, 4  ;;  %s11532_s29 = smov 58   ;;  %v6976_v26 = vperm.slane %v2859_v63, %v6731_v22 }
 0x13d   : > { %377 = vrot.lane.b32.xlu2 %v6642_v13, %s11524_s2  ;;  %s11534_s2 = smov 60  }
 0x13e   : > { %v258_v37 = vpop.permute.xlu1 %257  ;;  %v6947_v40 = vpop.permute.xlu0 %263  ;;  %v1117_v25 = vsel %vm954_vm1, %v1085_v23, %v1116_v39  ;;  %v1115_v29 = vsel %vm954_vm1, %v1114_v48, %v1073_v15  ;;  %11805 = vst [vmem:[#allocation31_spill] sm:$0xff] %v6976_v26  ;;  %v1127_v48 = vsel %vm954_vm1, %v1126_v4, %v1077_v62 }
 0x13f   : > { %v2873_v46 = vsel %vm954_vm1, %v258_v37, %v2872_v47  ;;  %v280_v51 = vpop.permute.xlu2 %279  ;;  %v2870_v8 = vrot.slane %v258_v37, 4  ;;  %v1125_v15 = vperm.slane %v1117_v25, %v6797_v2  ;;  %v2884_v25 = vrot.slane %v6947_v40, 4 }
 0x140   : > { %v6953_v53 = vperm.slane %v2873_v46, %v6731_v22  ;;  %v1102_v61 = vrot.slane %v280_v51, 4 }
 0x141   : > { %v1168_v12 = vrot.slane %v1125_v15, 4 }
 0x142   : > { %11804 = vst [vmem:[#allocation30_spill] sm:$0xff] %v6953_v53  ;;  %v6957_v54 = vsel %vm954_vm1, %v6953_v53, %v2920_v52 }
 0x144   : > { %399 = vrot.lane.b32.xlu0 %v6627_v9, %s11532_s29  ;;  %393 = vrot.lane.b32.xlu1 %v6627_v9, %s11534_s2 }
 0x145   : > { %387 = vrot.lane.b32.xlu2 %v6627_v9, %s11528_s3  ;;  %s11537_s3 = smov 56  }
 0x146   : > { %v268_v55 = vpop.permute.xlu1 %267  ;;  %v274_v16 = vpop.permute.xlu0 %273 }
 0x147   : > { %v1103_v39 = vsel %vm954_vm1, %v1102_v61, %v268_v55  ;;  %v1104_v23 = vrot.slane %v268_v55, 4  ;;  %v6969_v47 = vpop.permute.xlu2 %287  ;;  %v1090_v46 = vrot.slane %v274_v16, 4  ;;  %v1093_v52 = vsel %vm954_vm1, %v274_v16, %v1092_v36 }
 0x148   : > { %v1109_v3 = vperm.slane %v1103_v39, %v6731_v22  ;;  %v1101_v1 = vperm.slane %v1093_v52, %v6731_v22  ;;  %v2871_v16 = vsel %vm954_vm1, %v2870_v8, %v6899_v27  ;;  %v6986_v39 = vperm.slane %v1115_v29, %v6797_v2 }
 0x149   : > { %v1105_v17 = vsel %vm954_vm1, %v280_v51, %v1104_v23  ;;  %v1091_v37 = vsel %vm954_vm1, %v1090_v46, %v6905_v30  ;;  %v2908_v29 = vrot.slane %v6976_v26, 4  ;;  %v2896_v8 = vrot.slane %v6924_v57, 4 }
 0x14a   : > { %v1113_v50 = vperm.slane %v1105_v17, %v6731_v22  ;;  %v1138_v61 = vrot.slane %v1109_v3, 4  ;;  %v1097_v55 = vperm.slane %v1091_v37, %v6731_v22  ;;  %v1152_v36 = vrot.slane %v1101_v1, 4 }
 0x14b   : > { %v7005_v4 = vperm.slane %v2871_v16, %v6731_v22  ;;  %v7009_v17 = vperm.slane %v1127_v48, %v6797_v2  ;;  %v1137_v37 = vperm.slane %v1129_v14, %v6797_v2 }
 0x14c   : > { %v1150_v51 = vrot.slane %v1113_v50, 4  ;;  %v1140_v63 = vrot.slane %v1097_v55, 4  ;;  %407 = vrot.lane.b32.xlu0 %v6642_v13, %s11537_s3  ;;  %401 = vrot.lane.b32.xlu1 %v6642_v13, %s11532_s29  ;;  %v1139_v30 = vsel %vm954_vm1, %v1138_v61, %v1097_v55  ;;  %v1153_v27 = vsel %vm954_vm1, %v1113_v50, %v1152_v36  ;;  %s11546_s29 = smov 52  }
 0x14d   : > { %395 = vrot.lane.b32.xlu2 %v6642_v13, %s11534_s2  ;;  %v7002_v62 = vperm.slane %v1139_v30, %v6797_v2  ;;  %11806 = vst [vmem:[#allocation32_spill] sm:$0xff] %v7005_v4  ;;  %v1164_v30 = vrot.slane %v6986_v39, 4  ;;  %s11548_s2 = smov 54  }
 0x14e   : > { %v276_v23 = vpop.permute.xlu1 %275  ;;  %v282_v46 = vpop.permute.xlu0 %281  ;;  %v1141_v52 = vsel %vm954_vm1, %v1109_v3, %v1140_v63  ;;  %11807 = vst [vmem:[#allocation33_spill] sm:$0xff] %v7009_v17  ;;  %v1151_v16 = vsel %vm954_vm1, %v1150_v51, %v1101_v1  ;;  %v1161_v3 = vperm.slane %v1153_v27, %v6797_v2  ;;  %v1172_v51 = vrot.slane %v7009_v17, 4 }
 0x14f   : > { %v2882_v50 = vrot.slane %v276_v23, 4  ;;  %v2885_v61 = vsel %vm954_vm1, %v276_v23, %v2884_v25  ;;  %v7013_v55 = vpop.permute.xlu2 %297  ;;  %v2894_v36 = vrot.slane %v282_v46, 4  ;;  %v7027_v63 = vsel %vm954_vm1, %v7002_v62, %v1164_v30 }
 0x150   : > { %v7018_v56 = vperm.slane %v2885_v61, %v6731_v22  ;;  %11809 = vst [vmem:[#allocation35_spill] sm:$0xff] %v7027_v63  ;;  %v1149_v25 = vperm.slane %v1141_v52, %v6797_v2  ;;  %v1176_v23 = vrot.slane %v1137_v37, 4  ;;  %v2909_v27 = vsel %vm954_vm1, %v7005_v4, %v2908_v29 }
 0x151   : > { %v2883_v48 = vsel %vm954_vm1, %v2882_v50, %v6947_v40  ;;  %v2895_v14 = vsel %vm954_vm1, %v2894_v36, %v6924_v57  ;;  %v2897_v40 = vsel %vm954_vm1, %v282_v46, %v2896_v8  ;;  %v7041_v61 = vperm.slane %v1151_v16, %v6797_v2 }
 0x152   : > { %11808 = vst [vmem:[#allocation34_spill] sm:$0xff] %v7018_v56  ;;  %v7031_v1 = vperm.slane %v2883_v48, %v6731_v22  ;;  %v7038_v50 = vsel %vm954_vm1, %v1149_v25, %v1168_v12  ;;  %v1166_v57 = vrot.slane %v1149_v25, 4  ;;  %v7045_v36 = vperm.slane %v2895_v14, %v6731_v22 }
 0x153   : > { %11811 = vst [vmem:[#allocation37_spill] sm:$0xff] %v7038_v50  ;;  %v1174_v29 = vrot.slane %v1161_v3, 4  ;;  %v7052_v12 = vsel %vm954_vm1, %v1161_v3, %v1176_v23  ;;  %v2944_v8 = vrot.slane %v7018_v56, 4  ;;  %v7062_v30 = vsel %vm954_vm1, %v7041_v61, %v1172_v51 }
 0x154   : > { %11810 = vst [vmem:[#allocation36_spill] sm:$0xff] %v7031_v1  ;;  %v2932_v52 = vrot.slane %v7031_v1, 4  ;;  %417 = vrot.lane.b32.xlu0 %v6627_v9, %s11546_s29  ;;  %411 = vrot.lane.b32.xlu1 %v6627_v9, %s11548_s2  ;;  %v7058_v46 = vsel %vm954_vm1, %v1166_v57, %v1125_v15  ;;  %v7065_v16 = vperm.slane %v2909_v27, %v6797_v2  ;;  %v1178_v56 = vrot.slane %v7013_v55, 4 }
 0x155   : > { %11812 = vst [vmem:[#allocation38_spill] sm:$0xff] %v7041_v61  ;;  %405 = vrot.lane.b32.xlu2 %v6627_v9, %s11537_s3  ;;  %v7072_v3 = vsel %vm954_vm1, %v1174_v29, %v1137_v37  ;;  %v7077_v15 = vperm.slane %v2897_v40, %v6731_v22  ;;  %v2929_v51 = vperm.slane %v6957_v54, %v6797_v2  ;;  %s6498_s3 = smov 50   ;;  %v2972_v54 = vrot.slane %v6969_v47, 4 }
 0x156   : > { %11813 = vst [vmem:[#allocation39_spill] sm:$0xff] %v7045_v36  ;;  %v7067_v48 = vpop.permute.xlu1 %285  ;;  %v7069_v14 = vpop.permute.xlu0 %291  ;;  %v2933_v25 = vsel %vm954_vm1, %v7045_v36, %v2932_v52  ;;  %v2960_v57 = vrot.slane %v7065_v16, 4 }
 0x157   : > { %11814 = vst [vmem:[#allocation40_spill] sm:$0xff] %v7052_v12  ;;  %v306_v23 = vpop.permute.xlu2 %305  ;;  %v7082_v27 = vperm.slane %v2933_v25, %v6797_v2  ;;  %v2945_v20 = vsel %vm954_vm1, %v7077_v15, %v2944_v8  ;;  %v2968_v40 = vrot.slane %v2929_v51, 4  ;;  %v1192_v18 = vrot.slane %v7069_v14, 4 }
 0x158   : > { %11815 = vst [vmem:[#allocation41_spill] sm:$0xff] %v7058_v46  ;;  %v2953_v52 = vperm.slane %v2945_v20, %v6797_v2  ;;  %v2982_v20 = vrot.slane %v306_v23, 4 }
 0x159   : > { %11816 = vst [vmem:[#allocation42_spill] sm:$0xff] %v7062_v30  ;;  %v7089_v37 = vsel %vm954_vm1, %v7082_v27, %v2960_v57 }
 0x15a   : > { %11817 = vst [vmem:[#allocation43_spill] sm:$0xff] %v7065_v16  ;;  %v7100_v29 = vsel %vm954_vm1, %v2953_v52, %v2968_v40  ;;  %v2966_v8 = vrot.slane %v2953_v52, 4 }
 0x15b   : > { %11818 = vst [vmem:[#allocation44_spill] sm:$0xff] %v7072_v3 }
 0x15c   : > { %11819 = vst [vmem:[#allocation45_spill] sm:$0xff] %v7077_v15  ;;  %425 = vrot.lane.b32.xlu0 %v6642_v13, %s6498_s3  ;;  %419 = vrot.lane.b32.xlu1 %v6642_v13, %s11546_s29  ;;  %v7109_v53 = vsel %vm954_vm1, %v2966_v8, %v2929_v51  ;;  %v1179_v51 = vsel %vm954_vm1, %v1178_v56, %v7067_v48  ;;  %s11552_s29 = smov 46  }
 0x15d   : > { %11820 = vst [vmem:[#allocation46_spill] sm:$0xff] %v7082_v27  ;;  %413 = vrot.lane.b32.xlu2 %v6642_v13, %s11548_s2  ;;  %s11554_s2 = smov 48  }
 0x15e   : > { %11821 = vst [vmem:[#allocation47_spill] sm:$0xff] %v7089_v37  ;;  %v294_v25 = vpop.permute.xlu1 %293  ;;  %v300_v57 = vpop.permute.xlu0 %299 }
 0x15f   : > { %11822 = vst [vmem:[#allocation48_spill] sm:$0xff] %v7100_v29  ;;  %v2984_v58 = vrot.slane %v294_v25, 4  ;;  %v7102_v35 = vpop.permute.xlu2 %315  ;;  %v2970_v21 = vrot.slane %v300_v57, 4  ;;  %v2973_v37 = vsel %vm954_vm1, %v300_v57, %v2972_v54  ;;  %v2983_v40 = vsel %vm954_vm1, %v2982_v20, %v294_v25 }
 0x160   : > { %v7106_v49 = vperm.slane %v2973_v37, %v6731_v22  ;;  %11823 = vst [vmem:[#allocation49_spill] sm:$0xff] %v7109_v53  ;;  %v7126_v8 = vperm.slane %v2983_v40, %v6731_v22 }
 0x161   : > { %v2985_v52 = vsel %vm954_vm1, %v306_v23, %v2984_v58  ;;  %v2971_v29 = vsel %vm954_vm1, %v2970_v21, %v6969_v47  ;;  %v1185_v21 = vperm.slane %v1179_v51, %v6731_v22  ;;  %v1180_v51 = vrot.slane %v7067_v48, 4 }
 0x162   : > { %v7117_v15 = vperm.slane %v2985_v52, %v6731_v22  ;;  %v7120_v54 = vperm.slane %v2971_v29, %v6731_v22  ;;  %v3032_v37 = vrot.slane %v7106_v49, 4  ;;  %11825 = vst [vmem:[#allocation51_spill] sm:$0xff] %v7126_v8 }
 0x163   : > { %v1228_v40 = vrot.slane %v1185_v21, 4 }
 0x164   : > { %11824 = vst [vmem:[#allocation50_spill] sm:$0xff] %v7120_v54  ;;  %v3020_v25 = vrot.slane %v7120_v54, 4  ;;  %435 = vrot.lane.b32.xlu0 %v6627_v9, %s11552_s29  ;;  %429 = vrot.lane.b32.xlu1 %v6627_v9, %s11554_s2  ;;  %v7135_v58 = vsel %vm954_vm1, %v7117_v15, %v3032_v37 }
 0x165   : > { %423 = vrot.lane.b32.xlu2 %v6627_v9, %s6498_s3 }
 0x166   : > { %v304_v56 = vpop.permute.xlu1 %303  ;;  %v310_v47 = vpop.permute.xlu0 %309  ;;  %v7142_v23 = vsel %vm954_vm1, %v7126_v8, %v3020_v25 }
 0x167   : > { %v1190_v29 = vrot.slane %v304_v56, 4  ;;  %v324_v57 = vpop.permute.xlu2 %323  ;;  %v1193_v60 = vsel %vm954_vm1, %v304_v56, %v1192_v18  ;;  %v1204_v48 = vrot.slane %v310_v47, 4 }
 0x168   : > { %v7174_v18 = vperm.slane %v1193_v60, %v6731_v22  ;;  %v2994_v33 = vrot.slane %v324_v57, 4 }
 0x169   : > { %v1191_v20 = vsel %vm954_vm1, %v1190_v29, %v7069_v14 }
 0x16a   : > { %v1197_v52 = vperm.slane %v1191_v20, %v6731_v22  ;;  %v1181_v20 = vsel %vm954_vm1, %v7013_v55, %v1180_v51  ;;  %v1216_v55 = vrot.slane %v7102_v35, 4  ;;  %11827 = vst [vmem:[#allocation53_spill] sm:$0xff] %v7174_v18 }
 0x16b   : > { %v7164_v19 = vperm.slane %v1181_v20, %v6731_v22 }
 0x16c   : > { %443 = vrot.lane.b32.xlu0 %v6642_v13, %s11566_s6  ;;  %437 = vrot.lane.b32.xlu1 %v6642_v13, %s11552_s29  ;;  %v1229_v37 = vsel %vm954_vm1, %v1197_v52, %v1228_v40  ;;  %v1226_v40 = vrot.slane %v1197_v52, 4  ;;  %s11568_s29 = smov 40  }
 0x16d   : > { %431 = vrot.lane.b32.xlu2 %v6642_v13, %s11554_s2  ;;  %11826 = vst [vmem:[#allocation52_spill] sm:$0xff] %v7164_v19  ;;  %s11570_s2 = smov 42   ;;  %v1240_v1 = vrot.slane %v7164_v19, 4 }
 0x16e   : > { %v312_v25 = vpop.permute.xlu1 %311  ;;  %v7155_v53 = vpop.permute.xlu0 %317  ;;  %v1227_v4 = vsel %vm954_vm1, %v1226_v40, %v1185_v21 }
 0x16f   : > { %v7157_v29 = vpop.permute.xlu2 %333  ;;  %v2996_v16 = vrot.slane %v312_v25, 4 }
 0x171   : > { %v2997_v60 = vsel %vm954_vm1, %v324_v57, %v2996_v16  ;;  %v7199_v16 = vperm.slane %v1227_v4, %v6797_v2  ;;  %v1237_v4 = vperm.slane %v1229_v37, %v6797_v2 }
 0x174   : > { %453 = vrot.lane.b32.xlu0 %v6627_v9, %s11568_s29  ;;  %447 = vrot.lane.b32.xlu1 %v6627_v9, %s11570_s2 }
 0x175   : > { %441 = vrot.lane.b32.xlu2 %v6627_v9, %s11566_s6  ;;  %s11576_s6 = smov 38  }
 0x176   : > { %v322_v14 = vpop.permute.xlu1 %321  ;;  %v328_v56 = vpop.permute.xlu0 %327 }
 0x177   : > { %v1202_v52 = vrot.slane %v322_v14, 4  ;;  %v1205_v51 = vsel %vm954_vm1, %v322_v14, %v1204_v48  ;;  %v7177_v20 = vpop.permute.xlu2 %341  ;;  %v1214_v27 = vrot.slane %v328_v56, 4  ;;  %v1217_v36 = vsel %vm954_vm1, %v328_v56, %v1216_v55 }
 0x178   : > { %v7181_v26 = vperm.slane %v1205_v51, %v6731_v22  ;;  %v1241_v51 = vsel %vm954_vm1, %v7174_v18, %v1240_v1  ;;  %v2995_v55 = vsel %vm954_vm1, %v2994_v33, %v312_v25  ;;  %v7196_v21 = vperm.slane %v1217_v36, %v6731_v22 }
 0x179   : > { %v1203_v44 = vsel %vm954_vm1, %v1202_v52, %v310_v47  ;;  %v1215_v48 = vsel %vm954_vm1, %v1214_v27, %v7102_v35  ;;  %v3030_v47 = vrot.slane %v7117_v15, 4  ;;  %v3005_v35 = vperm.slane %v2997_v60, %v6731_v22 }
 0x17a   : > { %11828 = vst [vmem:[#allocation54_spill] sm:$0xff] %v7181_v26  ;;  %v1209_v14 = vperm.slane %v1203_v44, %v6731_v22  ;;  %v1264_v54 = vrot.slane %v7181_v26, 4  ;;  %v1221_v8 = vperm.slane %v1215_v48, %v6731_v22  ;;  %v3008_v33 = vrot.slane %v7155_v53, 4 }
 0x17b   : > { %11829 = vst [vmem:[#allocation55_spill] sm:$0xff] %v7196_v21  ;;  %v7214_v36 = vperm.slane %v1241_v51, %v6797_v2  ;;  %v7217_v15 = vperm.slane %v2995_v55, %v6731_v22  ;;  %v1276_v51 = vrot.slane %v7199_v16, 4  ;;  %v3056_v55 = vrot.slane %v3005_v35, 4 }
 0x17c   : > { %v1252_v44 = vrot.slane %v1209_v14, 4  ;;  %v1250_v27 = vrot.slane %v1221_v8, 4  ;;  %461 = vrot.lane.b32.xlu0 %v6642_v13, %s11576_s6  ;;  %455 = vrot.lane.b32.xlu1 %v6642_v13, %s11568_s29  ;;  %v1265_v1 = vsel %vm954_vm1, %v7196_v21, %v1264_v54  ;;  %v3029_v54 = vperm.slane %v7142_v23, %v6797_v2  ;;  %s11579_s29 = smov 34  }
 0x17d   : > { %449 = vrot.lane.b32.xlu2 %v6642_v13, %s11570_s2  ;;  %11830 = vst [vmem:[#allocation56_spill] sm:$0xff] %v7214_v36  ;;  %s11581_s2 = smov 36  }
 0x17e   : > { %11831 = vst [vmem:[#allocation57_spill] sm:$0xff] %v7217_v15  ;;  %v330_v57 = vpop.permute.xlu1 %329  ;;  %v7219_v25 = vpop.permute.xlu0 %335  ;;  %v1251_v40 = vsel %vm954_vm1, %v1250_v27, %v1209_v14  ;;  %v1253_v56 = vsel %vm954_vm1, %v1221_v8, %v1252_v44  ;;  %v7233_v14 = vperm.slane %v1265_v1, %v6797_v2  ;;  %v1280_v44 = vrot.slane %v1237_v4, 4 }
 0x17f   : > { %v3006_v52 = vrot.slane %v330_v57, 4  ;;  %v3009_v60 = vsel %vm954_vm1, %v330_v57, %v3008_v33  ;;  %v352_v37 = vpop.permute.xlu2 %351  ;;  %v7227_v48 = vperm.slane %v1251_v40, %v6797_v2  ;;  %v1261_v45 = vperm.slane %v1253_v56, %v6797_v2 }
 0x180   : > { %v3017_v12 = vperm.slane %v3009_v60, %v6731_v22  ;;  %11832 = vst [vmem:[#allocation58_spill] sm:$0xff] %v7233_v14  ;;  %v1288_v27 = vrot.slane %v7214_v36, 4  ;;  %v3044_v33 = vrot.slane %v7217_v15, 4 }
 0x181   : > { %v3007_v8 = vsel %vm954_vm1, %v3006_v52, %v7155_v53  ;;  %v7239_v23 = vsel %vm954_vm1, %v7227_v48, %v1276_v51  ;;  %v1278_v56 = vrot.slane %v1261_v45, 4  ;;  %v7248_v60 = vsel %vm954_vm1, %v1261_v45, %v1280_v44 }
 0x182   : > { %11833 = vst [vmem:[#allocation59_spill] sm:$0xff] %v7239_v23  ;;  %v7244_v57 = vperm.slane %v3007_v8, %v6731_v22  ;;  %v3057_v40 = vsel %vm954_vm1, %v3017_v12, %v3056_v55  ;;  %v3054_v1 = vrot.slane %v3017_v12, 4  ;;  %v7259_v52 = vsel %vm954_vm1, %v7233_v14, %v1288_v27 }
 0x183   : > { %11835 = vst [vmem:[#allocation61_spill] sm:$0xff] %v7248_v60  ;;  %v7255_v53 = vsel %vm954_vm1, %v1278_v56, %v1237_v4  ;;  %v1292_v45 = vrot.slane %v7157_v29, 4  ;;  %v3031_v55 = vsel %vm954_vm1, %v3030_v47, %v7106_v49  ;;  %v1302_v8 = vrot.slane %v352_v37, 4 }
 0x184   : > { %11834 = vst [vmem:[#allocation60_spill] sm:$0xff] %v7244_v57  ;;  %471 = vrot.lane.b32.xlu0 %v6627_v9, %s11579_s29  ;;  %465 = vrot.lane.b32.xlu1 %v6627_v9, %s11581_s2  ;;  %v3045_v12 = vsel %vm954_vm1, %v7244_v57, %v3044_v33  ;;  %v3072_v56 = vrot.slane %v3029_v54, 4  ;;  %v3055_v57 = vsel %vm954_vm1, %v3054_v1, %v3005_v35 }
 0x185   : > { %11836 = vst [vmem:[#allocation62_spill] sm:$0xff] %v7255_v53  ;;  %459 = vrot.lane.b32.xlu2 %v6627_v9, %s11576_s6  ;;  %v3053_v51 = vperm.slane %v3045_v12, %v6797_v2  ;;  %v7278_v12 = vperm.slane %v3031_v55, %v6797_v2  ;;  %v7294_v55 = vperm.slane %v3055_v57, %v6797_v2  ;;  %s11584_s6 = smov 32  }
 0x186   : > { %11837 = vst [vmem:[#allocation63_spill] sm:$0xff] %v7259_v52  ;;  %v340_v4 = vpop.permute.xlu1 %339  ;;  %v346_v44 = vpop.permute.xlu0 %345 }
 0x187   : > { %v1304_v15 = vrot.slane %v340_v4, 4  ;;  %v7269_v27 = vpop.permute.xlu2 %359  ;;  %v1290_v52 = vrot.slane %v346_v44, 4  ;;  %v1293_v33 = vsel %vm954_vm1, %v346_v44, %v1292_v45  ;;  %v1303_v24 = vsel %vm954_vm1, %v1302_v8, %v340_v4  ;;  %11839 = vst [vmem:[#allocation65_spill] sm:$0xff] %v7278_v12 }
 0x188   : > { %v7275_v36 = vperm.slane %v1293_v33, %v6731_v22  ;;  %v7284_v14 = vsel %vm954_vm1, %v3053_v51, %v3072_v56  ;;  %v3070_v30 = vrot.slane %v3053_v51, 4  ;;  %11842 = vst [vmem:[#allocation68_spill] sm:$0xff] %v7294_v55  ;;  %v3041_v56 = vperm.slane %v7135_v58, %v6797_v2 }
 0x189   : > { %v1305_v49 = vsel %vm954_vm1, %v352_v37, %v1304_v15  ;;  %v1291_v47 = vsel %vm954_vm1, %v1290_v52, %v7157_v29  ;;  %11840 = vst [vmem:[#allocation66_spill] sm:$0xff] %v7284_v14  ;;  %v3065_v29 = vperm.slane %v3057_v40, %v6797_v2  ;;  %v7301_v37 = vperm.slane %v1303_v24, %v6731_v22 }
 0x18a   : > { %11838 = vst [vmem:[#allocation64_spill] sm:$0xff] %v7275_v36  ;;  %v7287_v45 = vperm.slane %v1305_v49, %v6731_v22  ;;  %v7290_v35 = vperm.slane %v1291_v47, %v6731_v22  ;;  %v1352_v1 = vrot.slane %v7275_v36, 4  ;;  %v7297_v15 = vsel %vm954_vm1, %v3070_v30, %v3029_v54 }
 0x18b   : > { %11843 = vst [vmem:[#allocation69_spill] sm:$0xff] %v7297_v15  ;;  %v3076_v30 = vrot.slane %v7278_v12, 4  ;;  %v3078_v33 = vrot.slane %v3065_v29, 4 }
 0x18c   : > { %11841 = vst [vmem:[#allocation67_spill] sm:$0xff] %v7287_v45  ;;  %v1340_v52 = vrot.slane %v7290_v35, 4  ;;  %479 = vrot.lane.b32.xlu0 %v6642_v13, %s11584_s6  ;;  %473 = vrot.lane.b32.xlu1 %v6642_v13, %s11579_s29  ;;  %v7310_v57 = vsel %vm954_vm1, %v7287_v45, %v1352_v1  ;;  %s11590_s29 = smov 28  }
 0x18d   : > { %467 = vrot.lane.b32.xlu2 %v6642_v13, %s11581_s2  ;;  %v7321_v51 = vsel %vm954_vm1, %v7294_v55, %v3076_v30  ;;  %v3080_v30 = vrot.slane %v3041_v56, 4  ;;  %s11592_s2 = smov 30   ;;  %v3096_v55 = vrot.slane %v7177_v20, 4 }
 0x18e   : > { %v348_v24 = vpop.permute.xlu1 %347  ;;  %v354_v54 = vpop.permute.xlu0 %353  ;;  %v7317_v40 = vsel %vm954_vm1, %v7301_v37, %v1340_v52  ;;  %11844 = vst [vmem:[#allocation70_spill] sm:$0xff] %v7321_v51  ;;  %v7331_v52 = vsel %vm954_vm1, %v3078_v33, %v3041_v56  ;;  %v3084_v33 = vrot.slane %v7219_v25, 4 }
 0x18f   : > { %v3082_v8 = vrot.slane %v348_v24, 4  ;;  %v370_v4 = vpop.permute.xlu2 %369  ;;  %v3094_v44 = vrot.slane %v354_v54, 4  ;;  %11845 = vst [vmem:[#allocation71_spill] sm:$0xff] %v7331_v52  ;;  %v7341_v58 = vsel %vm954_vm1, %v3065_v29, %v3080_v30  ;;  %v3108_v29 = vrot.slane %v7269_v27, 4 }
 0x190   : > { %11846 = vst [vmem:[#allocation72_spill] sm:$0xff] %v7341_v58  ;;  %v1314_v19 = vrot.slane %v370_v4, 4 }
 0x191   : > { %v3083_v49 = vsel %vm954_vm1, %v3082_v8, %v7219_v25  ;;  %v3095_v47 = vsel %vm954_vm1, %v3094_v44, %v7177_v20 }
 0x192   : > { %v3089_v1 = vperm.slane %v3083_v49, %v6731_v22  ;;  %v3101_v12 = vperm.slane %v3095_v47, %v6731_v22  ;;  %v3085_v47 = vsel %vm954_vm1, %v348_v24, %v3084_v33 }
 0x193   : > { %v7350_v15 = vperm.slane %v3085_v47, %v6731_v22 }
 0x194   : > { %v3132_v51 = vrot.slane %v3089_v1, 4  ;;  %489 = vrot.lane.b32.xlu0 %v6627_v9, %s11590_s29  ;;  %483 = vrot.lane.b32.xlu1 %v6627_v9, %s11592_s2  ;;  %v3130_v52 = vrot.slane %v3101_v12, 4 }
 0x195   : > { %477 = vrot.lane.b32.xlu2 %v6627_v9, %s11584_s6  ;;  %11847 = vst [vmem:[#allocation73_spill] sm:$0xff] %v7350_v15  ;;  %s11598_s6 = smov 26   ;;  %v3144_v26 = vrot.slane %v7350_v15, 4 }
 0x196   : > { %v358_v8 = vpop.permute.xlu1 %357  ;;  %v7343_v44 = vpop.permute.xlu0 %363  ;;  %v3133_v56 = vsel %vm954_vm1, %v3101_v12, %v3132_v51  ;;  %v3097_v12 = vsel %vm954_vm1, %v354_v54, %v3096_v55  ;;  %v3131_v30 = vsel %vm954_vm1, %v3130_v52, %v3089_v1 }
 0x197   : > { %v378_v49 = vpop.permute.xlu2 %377  ;;  %v1316_v51 = vrot.slane %v358_v8, 4  ;;  %v7371_v55 = vperm.slane %v3097_v12, %v6731_v22 }
 0x198   : > { %v3118_v25 = vrot.slane %v378_v49, 4 }
 0x199   : > { %11849 = vst [vmem:[#allocation75_spill] sm:$0xff] %v7371_v55  ;;  %v1317_v54 = vsel %vm954_vm1, %v370_v4, %v1316_v51 }
 0x19a   : > { %v7387_v4 = vperm.slane %v1317_v54, %v6731_v22  ;;  %v1361_v54 = vperm.slane %v7310_v57, %v6797_v2 }
 0x19c   : > { %497 = vrot.lane.b32.xlu0 %v6642_v13, %s11598_s6  ;;  %491 = vrot.lane.b32.xlu1 %v6642_v13, %s11590_s29  ;;  %11852 = vst [vmem:[#allocation78_spill] sm:$0xff] %v7387_v4  ;;  %s11601_s29 = smov 22  }
 0x19d   : > { %485 = vrot.lane.b32.xlu2 %v6642_v13, %s11592_s2  ;;  %s11603_s2 = smov 24  }
 0x19e   : > { %v366_v20 = vpop.permute.xlu1 %365  ;;  %v372_v24 = vpop.permute.xlu0 %371 }
 0x19f   : > { %v3119_v33 = vsel %vm954_vm1, %v3118_v25, %v366_v20  ;;  %v3120_v47 = vrot.slane %v366_v20, 4  ;;  %v7362_v58 = vpop.permute.xlu2 %387  ;;  %v3106_v14 = vrot.slane %v372_v24, 4  ;;  %v3109_v3 = vsel %vm954_vm1, %v372_v24, %v3108_v29 }
 0x1a0   : > { %v3125_v21 = vperm.slane %v3119_v33, %v6731_v22  ;;  %v7368_v18 = vperm.slane %v3109_v3, %v6731_v22  ;;  %v1315_v29 = vsel %vm954_vm1, %v1314_v19, %v358_v8  ;;  %v7380_v24 = vperm.slane %v3131_v30, %v6797_v2 }
 0x1a1   : > { %v3121_v1 = vsel %vm954_vm1, %v378_v49, %v3120_v47  ;;  %v3107_v52 = vsel %vm954_vm1, %v3106_v14, %v7269_v27  ;;  %v3145_v14 = vsel %vm954_vm1, %v7371_v55, %v3144_v26  ;;  %v7397_v27 = vperm.slane %v1315_v29, %v6731_v22 }
 0x1a2   : > { %11848 = vst [vmem:[#allocation74_spill] sm:$0xff] %v7368_v18  ;;  %v3154_v25 = vrot.slane %v3125_v21, 4  ;;  %v3113_v20 = vperm.slane %v3107_v52, %v6731_v22  ;;  %v7383_v3 = vperm.slane %v3121_v1, %v6731_v22  ;;  %v3168_v12 = vrot.slane %v7368_v18, 4 }
 0x1a3   : > { %11850 = vst [vmem:[#allocation76_spill] sm:$0xff] %v7380_v24  ;;  %v1328_v8 = vrot.slane %v7343_v44, 4  ;;  %v3141_v30 = vperm.slane %v3133_v56, %v6797_v2  ;;  %v3180_v1 = vrot.slane %v7380_v24, 4 }
 0x1a4   : > { %11851 = vst [vmem:[#allocation77_spill] sm:$0xff] %v7383_v3  ;;  %v3156_v49 = vrot.slane %v3113_v20, 4  ;;  %507 = vrot.lane.b32.xlu0 %v6627_v9, %s11601_s29  ;;  %501 = vrot.lane.b32.xlu1 %v6627_v9, %s11603_s2  ;;  %v3155_v19 = vsel %vm954_vm1, %v3154_v25, %v3113_v20  ;;  %v7414_v20 = vperm.slane %v3145_v14, %v6797_v2 }
 0x1a5   : > { %495 = vrot.lane.b32.xlu2 %v6627_v9, %s11598_s6  ;;  %v7403_v51 = vperm.slane %v3155_v19, %v6797_v2  ;;  %v3169_v56 = vsel %vm954_vm1, %v7383_v3, %v3168_v12  ;;  %v1376_v19 = vrot.slane %v7387_v4, 4  ;;  %v1400_v3 = vrot.slane %v1361_v54, 4  ;;  %s11608_s6 = smov 20  }
 0x1a6   : > { %v376_v33 = vpop.permute.xlu1 %375  ;;  %v382_v47 = vpop.permute.xlu0 %381  ;;  %v3157_v26 = vsel %vm954_vm1, %v3125_v21, %v3156_v49  ;;  %11854 = vst [vmem:[#allocation80_spill] sm:$0xff] %v7414_v20  ;;  %v1364_v49 = vrot.slane %v7397_v27, 4  ;;  %v7436_v15 = vperm.slane %v3169_v56, %v6797_v2 }
 0x1a7   : > { %11853 = vst [vmem:[#allocation79_spill] sm:$0xff] %v7403_v51  ;;  %v1326_v52 = vrot.slane %v376_v33, 4  ;;  %v1329_v29 = vsel %vm954_vm1, %v376_v33, %v1328_v8  ;;  %v7411_v25 = vpop.permute.xlu2 %395  ;;  %v3165_v21 = vperm.slane %v3157_v26, %v6797_v2  ;;  %v7425_v57 = vsel %vm954_vm1, %v7403_v51, %v3180_v1 }
 0x1a8   : > { %v7420_v18 = vperm.slane %v1329_v29, %v6731_v22  ;;  %11856 = vst [vmem:[#allocation82_spill] sm:$0xff] %v7425_v57  ;;  %v3184_v8 = vrot.slane %v3141_v30, 4  ;;  %v1349_v26 = vperm.slane %v7317_v40, %v6797_v2  ;;  %v3192_v40 = vrot.slane %v7414_v20, 4 }
 0x1a9   : > { %v1327_v14 = vsel %vm954_vm1, %v1326_v52, %v7343_v44  ;;  %v3182_v29 = vrot.slane %v3165_v21, 4  ;;  %11857 = vst [vmem:[#allocation83_spill] sm:$0xff] %v7436_v15 }
 0x1aa   : > { %11855 = vst [vmem:[#allocation81_spill] sm:$0xff] %v7420_v18  ;;  %v7431_v33 = vperm.slane %v1327_v14, %v6731_v22  ;;  %v1377_v12 = vsel %vm954_vm1, %v7420_v18, %v1376_v19  ;;  %v7442_v55 = vsel %vm954_vm1, %v3165_v21, %v3184_v8  ;;  %v7464_v8 = vsel %vm954_vm1, %v7436_v15, %v3192_v40 }
 0x1ab   : > { %v1385_v1 = vperm.slane %v1377_v12, %v6797_v2  ;;  %11858 = vst [vmem:[#allocation84_spill] sm:$0xff] %v7442_v55  ;;  %v7451_v52 = vsel %vm954_vm1, %v3182_v29, %v3141_v30  ;;  %v1392_v30 = vrot.slane %v1349_v26, 4  ;;  %v1404_v40 = vrot.slane %v382_v47, 4 }
 0x1ac   : > { %515 = vrot.lane.b32.xlu0 %v6642_v13, %s11608_s6  ;;  %509 = vrot.lane.b32.xlu1 %v6642_v13, %s11601_s29  ;;  %v1365_v44 = vsel %vm954_vm1, %v7431_v33, %v1364_v49  ;;  %11859 = vst [vmem:[#allocation85_spill] sm:$0xff] %v7451_v52  ;;  %s11610_s29 = smov 16  }
 0x1ad   : > { %503 = vrot.lane.b32.xlu2 %v6642_v13, %s11603_s2  ;;  %v1373_v56 = vperm.slane %v1365_v44, %v6797_v2  ;;  %v7458_v19 = vsel %vm954_vm1, %v1385_v1, %v1400_v3  ;;  %11861 = vst [vmem:[#allocation87_spill] sm:$0xff] %v7464_v8  ;;  %v1398_v12 = vrot.slane %v1385_v1, 4  ;;  %s11612_s2 = smov 18   ;;  %v1416_v1 = vrot.slane %v7362_v58, 4 }
 0x1ae   : > { %11860 = vst [vmem:[#allocation86_spill] sm:$0xff] %v7458_v19  ;;  %v384_v21 = vpop.permute.xlu1 %383  ;;  %v7460_v14 = vpop.permute.xlu0 %389 }
 0x1af   : > { %v7466_v49 = vpop.permute.xlu2 %405  ;;  %v1390_v29 = vrot.slane %v1373_v56, 4  ;;  %v7469_v20 = vsel %vm954_vm1, %v1373_v56, %v1392_v30  ;;  %v7475_v3 = vsel %vm954_vm1, %v1398_v12, %v1361_v54  ;;  %v3196_v8 = vrot.slane %v384_v21, 4 }
 0x1b0   : > { %11862 = vst [vmem:[#allocation88_spill] sm:$0xff] %v7469_v20 }
 0x1b1   : > { %v7472_v44 = vsel %vm954_vm1, %v1390_v29, %v1349_v26  ;;  %11864 = vst [vmem:[#allocation90_spill] sm:$0xff] %v7475_v3  ;;  %v3197_v57 = vsel %vm954_vm1, %v7411_v25, %v3196_v8 }
 0x1b2   : > { %11863 = vst [vmem:[#allocation89_spill] sm:$0xff] %v7472_v44 }
 0x1b4   : > { %525 = vrot.lane.b32.xlu0 %v6627_v9, %s11610_s29  ;;  %519 = vrot.lane.b32.xlu1 %v6627_v9, %s11612_s2 }
 0x1b5   : > { %513 = vrot.lane.b32.xlu2 %v6627_v9, %s11608_s6  ;;  %s11621_s6 = smov 14  }
 0x1b6   : > { %v394_v26 = vpop.permute.xlu1 %393  ;;  %v400_v56 = vpop.permute.xlu0 %399 }
 0x1b7   : > { %v1402_v30 = vrot.slane %v394_v26, 4  ;;  %v1405_v54 = vsel %vm954_vm1, %v394_v26, %v1404_v40  ;;  %v7485_v12 = vpop.permute.xlu2 %413  ;;  %v1414_v29 = vrot.slane %v400_v56, 4  ;;  %v1417_v15 = vsel %vm954_vm1, %v400_v56, %v1416_v1 }
 0x1b8   : > { %v1413_v55 = vperm.slane %v1405_v54, %v6731_v22  ;;  %v1425_v40 = vperm.slane %v1417_v15, %v6731_v22  ;;  %v7497_v26 = vperm.slane %v3197_v57, %v6731_v22  ;;  %v3194_v54 = vrot.slane %v7411_v25, 4 }
 0x1b9   : > { %v1403_v52 = vsel %vm954_vm1, %v1402_v30, %v382_v47  ;;  %v1415_v24 = vsel %vm954_vm1, %v1414_v29, %v7362_v58  ;;  %v3208_v47 = vrot.slane %v7460_v14, 4 }
 0x1ba   : > { %v1409_v51 = vperm.slane %v1403_v52, %v6731_v22  ;;  %v1464_v3 = vrot.slane %v1413_v55, 4  ;;  %11865 = vst [vmem:[#allocation91_spill] sm:$0xff] %v7497_v26  ;;  %v1421_v1 = vperm.slane %v1415_v24, %v6731_v22  ;;  %v3256_v56 = vrot.slane %v7497_v26, 4 }
 0x1bc   : > { %v1452_v19 = vrot.slane %v1409_v51, 4  ;;  %533 = vrot.lane.b32.xlu0 %v6642_v13, %s11621_s6  ;;  %527 = vrot.lane.b32.xlu1 %v6642_v13, %s11610_s29  ;;  %v1465_v58 = vsel %vm954_vm1, %v1425_v40, %v1464_v3  ;;  %v1450_v29 = vrot.slane %v1421_v1, 4  ;;  %s11625_s29 = smov 10  }
 0x1bd   : > { %521 = vrot.lane.b32.xlu2 %v6642_v13, %s11612_s2  ;;  %s11627_s2 = smov 12  }
 0x1be   : > { %v402_v15 = vpop.permute.xlu1 %401  ;;  %v7508_v57 = vpop.permute.xlu0 %407  ;;  %v1453_v52 = vsel %vm954_vm1, %v1421_v1, %v1452_v19  ;;  %v1428_v19 = vrot.slane %v7466_v49, 4  ;;  %v1451_v4 = vsel %vm954_vm1, %v1450_v29, %v1409_v51 }
 0x1bf   : > { %v3209_v24 = vsel %vm954_vm1, %v402_v15, %v3208_v47  ;;  %v424_v8 = vpop.permute.xlu2 %423  ;;  %v3206_v26 = vrot.slane %v402_v15, 4  ;;  %v1461_v51 = vperm.slane %v1453_v52, %v6797_v2 }
 0x1c0   : > { %v7514_v30 = vperm.slane %v3209_v24, %v6731_v22  ;;  %v1438_v47 = vrot.slane %v424_v8, 4  ;;  %v3195_v24 = vsel %vm954_vm1, %v3194_v54, %v384_v21 }
 0x1c1   : > { %v7537_v21 = vperm.slane %v3195_v24, %v6731_v22  ;;  %v1504_v28 = vrot.slane %v1461_v51, 4 }
 0x1c2   : > { %11866 = vst [vmem:[#allocation92_spill] sm:$0xff] %v7514_v30  ;;  %v7518_v3 = vsel %vm954_vm1, %v7514_v30, %v3256_v56  ;;  %v1462_v56 = vrot.slane %v1425_v40, 4 }
 0x1c3   : > { %11867 = vst [vmem:[#allocation93_spill] sm:$0xff] %v7537_v21 }
 0x1c4   : > { %543 = vrot.lane.b32.xlu0 %v6627_v9, %s11625_s29  ;;  %537 = vrot.lane.b32.xlu1 %v6627_v9, %s11627_s2  ;;  %v1463_v29 = vsel %vm954_vm1, %v1462_v56, %v1413_v55 }
 0x1c5   : > { %531 = vrot.lane.b32.xlu2 %v6627_v9, %s11621_s6  ;;  %s11630_s6 = smov 8  }
 0x1c6   : > { %v412_v25 = vpop.permute.xlu1 %411  ;;  %v418_v1 = vpop.permute.xlu0 %417 }
 0x1c7   : > { %v1439_v30 = vsel %vm954_vm1, %v1438_v47, %v412_v25  ;;  %v1440_v17 = vrot.slane %v412_v25, 4  ;;  %v7530_v61 = vpop.permute.xlu2 %431  ;;  %v1426_v20 = vrot.slane %v418_v1, 4  ;;  %v1429_v41 = vsel %vm954_vm1, %v418_v1, %v1428_v19 }
 0x1c8   : > { %v1445_v36 = vperm.slane %v1439_v30, %v6731_v22  ;;  %v1437_v45 = vperm.slane %v1429_v41, %v6731_v22  ;;  %v3207_v30 = vsel %vm954_vm1, %v3206_v26, %v7460_v14  ;;  %v7547_v41 = vperm.slane %v1451_v4, %v6797_v2 }
 0x1c9   : > { %v1441_v40 = vsel %vm954_vm1, %v424_v8, %v1440_v17  ;;  %v1427_v15 = vsel %vm954_vm1, %v1426_v20, %v7466_v49  ;;  %v3244_v4 = vrot.slane %v7537_v21, 4  ;;  %v3232_v49 = vrot.slane %v7485_v12, 4 }
 0x1ca   : > { %v1449_v54 = vperm.slane %v1441_v40, %v6731_v22  ;;  %v1474_v47 = vrot.slane %v1445_v36, 4  ;;  %v1433_v25 = vperm.slane %v1427_v15, %v6731_v22  ;;  %v1488_v19 = vrot.slane %v1437_v45, 4 }
 0x1cb   : > { %v3220_v26 = vrot.slane %v7508_v57, 4  ;;  %v7566_v52 = vperm.slane %v3207_v30, %v6731_v22  ;;  %v7570_v40 = vperm.slane %v1463_v29, %v6797_v2  ;;  %v1473_v15 = vperm.slane %v1465_v58, %v6797_v2 }
 0x1cc   : > { %v1486_v17 = vrot.slane %v1449_v54, 4  ;;  %v1476_v8 = vrot.slane %v1433_v25, 4  ;;  %551 = vrot.lane.b32.xlu0 %v6642_v13, %s11630_s6  ;;  %545 = vrot.lane.b32.xlu1 %v6642_v13, %s11625_s29  ;;  %v1475_v20 = vsel %vm954_vm1, %v1474_v47, %v1433_v25  ;;  %v1489_v14 = vsel %vm954_vm1, %v1449_v54, %v1488_v19  ;;  %s6520_s29 = smov 4  }
 0x1cd   : > { %539 = vrot.lane.b32.xlu2 %v6642_v13, %s11627_s2  ;;  %v7563_v55 = vperm.slane %v1475_v20, %v6797_v2  ;;  %11868 = vst [vmem:[#allocation94_spill] sm:$0xff] %v7566_v52  ;;  %v1500_v20 = vrot.slane %v7547_v41, 4  ;;  %s6521_s2 = smov 6  }
 0x1ce   : > { %v420_v24 = vpop.permute.xlu1 %419  ;;  %v426_v56 = vpop.permute.xlu0 %425  ;;  %v1477_v1 = vsel %vm954_vm1, %v1445_v36, %v1476_v8  ;;  %11869 = vst [vmem:[#allocation95_spill] sm:$0xff] %v7570_v40  ;;  %v1487_v30 = vsel %vm954_vm1, %v1486_v17, %v1437_v45  ;;  %v1497_v36 = vperm.slane %v1489_v14, %v6797_v2  ;;  %v1508_v17 = vrot.slane %v7570_v40, 4 }
 0x1cf   : > { %v3218_v54 = vrot.slane %v420_v24, 4  ;;  %v3221_v47 = vsel %vm954_vm1, %v420_v24, %v3220_v26  ;;  %v7574_v25 = vpop.permute.xlu2 %441  ;;  %v3230_v19 = vrot.slane %v426_v56, 4  ;;  %v7588_v8 = vsel %vm954_vm1, %v7563_v55, %v1500_v20 }
 0x1d0   : > { %v7579_v21 = vperm.slane %v3221_v47, %v6731_v22  ;;  %11871 = vst [vmem:[#allocation97_spill] sm:$0xff] %v7588_v8  ;;  %v1485_v26 = vperm.slane %v1477_v1, %v6797_v2  ;;  %v1512_v24 = vrot.slane %v1473_v15, 4  ;;  %v3245_v14 = vsel %vm954_vm1, %v7566_v52, %v3244_v4 }
 0x1d1   : > { %v3219_v29 = vsel %vm954_vm1, %v3218_v54, %v7508_v57  ;;  %v3231_v58 = vsel %vm954_vm1, %v3230_v19, %v7485_v12  ;;  %v3233_v57 = vsel %vm954_vm1, %v426_v56, %v3232_v49  ;;  %v7602_v47 = vperm.slane %v1487_v30, %v6797_v2 }
 0x1d2   : > { %11870 = vst [vmem:[#allocation96_spill] sm:$0xff] %v7579_v21  ;;  %v7592_v45 = vperm.slane %v3219_v29, %v6731_v22  ;;  %v7599_v54 = vsel %vm954_vm1, %v1485_v26, %v1504_v28  ;;  %v1502_v12 = vrot.slane %v1485_v26, 4  ;;  %v7606_v19 = vperm.slane %v3231_v58, %v6731_v22 }
 0x1d3   : > { %11873 = vst [vmem:[#allocation99_spill] sm:$0xff] %v7599_v54  ;;  %v1510_v4 = vrot.slane %v1497_v36, 4  ;;  %v7613_v28 = vsel %vm954_vm1, %v1497_v36, %v1512_v24  ;;  %v3280_v49 = vrot.slane %v7579_v21, 4  ;;  %v7623_v20 = vsel %vm954_vm1, %v7602_v47, %v1508_v17 }
 0x1d4   : > { %11872 = vst [vmem:[#allocation98_spill] sm:$0xff] %v7592_v45  ;;  %v3268_v1 = vrot.slane %v7592_v45, 4  ;;  %561 = vrot.lane.b32.xlu0 %v6627_v9, %s6520_s29  ;;  %555 = vrot.lane.b32.xlu1 %v6627_v9, %s6521_s2  ;;  %v7619_v56 = vsel %vm954_vm1, %v1502_v12, %v1461_v51  ;;  %v7626_v30 = vperm.slane %v3245_v14, %v6797_v2 }
 0x1d5   : > { %11874 = vst [vmem:[#allocation100_spill] sm:$0xff] %v7602_v47  ;;  %549 = vrot.lane.b32.xlu2 %v6627_v9, %s11630_s6  ;;  %v7633_v36 = vsel %vm954_vm1, %v1510_v4, %v1473_v15  ;;  %v7638_v51 = vperm.slane %v3233_v57, %v6731_v22  ;;  %v3265_v17 = vperm.slane %v7518_v3, %v6797_v2  ;;  %s6522_s6 = smov 2   ;;  %v3308_v3 = vrot.slane %v7530_v61, 4 }
 0x1d6   : > { %11875 = vst [vmem:[#allocation101_spill] sm:$0xff] %v7606_v19  ;;  %v7628_v29 = vpop.permute.xlu1 %429  ;;  %v7630_v58 = vpop.permute.xlu0 %435  ;;  %v3269_v26 = vsel %vm954_vm1, %v7606_v19, %v3268_v1  ;;  %v3296_v12 = vrot.slane %v7626_v30, 4  ;;  %v6369_v19 = vld [vmem:[%s6595_s5 + $0x8] sm:$0xff] }
 0x1d7   : > { %11876 = vst [vmem:[#allocation102_spill] sm:$0xff] %v7613_v28  ;;  %v450_v24 = vpop.permute.xlu2 %449  ;;  %v7643_v14 = vperm.slane %v3269_v26, %v6797_v2  ;;  %v3281_v21 = vsel %vm954_vm1, %v7638_v51, %v3280_v49  ;;  %v3304_v57 = vrot.slane %v3265_v17, 4 }
 0x1d8   : > { %11877 = vst [vmem:[#allocation103_spill] sm:$0xff] %v7619_v56  ;;  %v3289_v1 = vperm.slane %v3281_v21, %v6797_v2  ;;  %v185_v21 = vsel %vm184_vm0, %v6620_v7, %v6618_v6 }
 0x1d9   : > { %11878 = vst [vmem:[#allocation104_spill] sm:$0xff] %v7623_v20  ;;  %v7650_v15 = vsel %vm954_vm1, %v7643_v14, %v3296_v12  ;;  %v7682_v52 = vmax.f32 %v6369_v19, %v185_v21  ;;  %v186_v21 = vsel %vm184_vm0, %v6635_v11, %v6633_v10  ;;  %v1516_v10 = vrot.slane %v7628_v29, 4 }
 0x1da   : > { %11879 = vst [vmem:[#allocation105_spill] sm:$0xff] %v7626_v30  ;;  %v7661_v4 = vsel %vm954_vm1, %v3289_v1, %v3304_v57  ;;  %v3302_v49 = vrot.slane %v3289_v1, 4  ;;  %v1514_v1 = vrot.slane %v7574_v25, 4  ;;  %vm5621_vm0 = vcmask 1048512  }
 0x1db   : > { %11880 = vst [vmem:[#allocation106_spill] sm:$0xff] %v7633_v36 }
 0x1dc   : > { %11881 = vst [vmem:[#allocation107_spill] sm:$0xff] %v7638_v51  ;;  %569 = vrot.lane.b32.xlu0 %v6642_v13, %s6522_s6  ;;  %563 = vrot.lane.b32.xlu1 %v6642_v13, %s6520_s29  ;;  %v7674_v57 = vsel %vm954_vm1, %v3302_v49, %v3265_v17 }
 0x1dd   : > { %11882 = vst [vmem:[#allocation108_spill] sm:$0xff] %v7643_v14  ;;  %557 = vrot.lane.b32.xlu2 %v6642_v13, %s6521_s2 }
 0x1de   : > { %11883 = vst [vmem:[#allocation109_spill] sm:$0xff] %v7650_v15  ;;  %v438_v26 = vpop.permute.xlu1 %437  ;;  %v444_v12 = vpop.permute.xlu0 %443  ;;  %v3318_v15 = vrot.slane %v450_v24, 4 }
 0x1df   : > { %11884 = vst [vmem:[#allocation110_spill] sm:$0xff] %v7661_v4  ;;  %v3320_v51 = vrot.slane %v438_v26, 4  ;;  %v7667_v30 = vpop.permute.xlu2 %459  ;;  %v3306_v14 = vrot.slane %v444_v12, 4  ;;  %v3309_v45 = vsel %vm954_vm1, %v444_v12, %v3308_v3 }
 0x1e0   : > { %v7671_v13 = vperm.slane %v3309_v45, %v6731_v22  ;;  %11885 = vst [vmem:[#allocation111_spill] sm:$0xff] %v7674_v57  ;;  %v3319_v4 = vsel %vm954_vm1, %v3318_v15, %v438_v26  ;;  %v1515_v15 = vsel %vm954_vm1, %v1514_v1, %v7628_v29 }
 0x1e1   : > { %v3321_v6 = vsel %vm954_vm1, %v450_v24, %v3320_v51  ;;  %v3307_v7 = vsel %vm954_vm1, %v3306_v14, %v7530_v61  ;;  %v7694_v51 = vperm.slane %v3319_v4, %v6731_v22  ;;  %v1521_v24 = vperm.slane %v1515_v15, %v6731_v22 }
 0x1e2   : > { %v7685_v3 = vperm.slane %v3321_v6, %v6731_v22  ;;  %v7688_v45 = vperm.slane %v3307_v7, %v6731_v22  ;;  %v3368_v17 = vrot.slane %v7671_v13, 4  ;;  %v6370_v6 = vld [vmem:[%s6595_s5 + $0x18] sm:$0xff] }
 0x1e3   : > { %11887 = vst [vmem:[#allocation113_spill] sm:$0xff] %v7694_v51  ;;  %v1564_v7 = vrot.slane %v1521_v24, 4 }
 0x1e4   : > { %11886 = vst [vmem:[#allocation112_spill] sm:$0xff] %v7688_v45  ;;  %v3356_v61 = vrot.slane %v7688_v45, 4  ;;  %581 = vrot.lane.b32.xlu0 %v7682_v52, %s6458_s12  ;;  %575 = vrot.lane.b32.xlu1 %v7682_v52, %s6459_s14  ;;  %v7703_v19 = vsel %vm954_vm1, %v7685_v3, %v3368_v17 }
 0x1e5   : > { %567 = vrot.lane.b32.xlu2 %v6627_v9, %s6522_s6  ;;  %v7719_v9 = vmax.f32 %v6370_v6, %v186_v21 }
 0x1e6   : > { %v448_v14 = vpop.permute.xlu1 %447  ;;  %v454_v4 = vpop.permute.xlu0 %453  ;;  %v7710_v49 = vsel %vm954_vm1, %v7694_v51, %v3356_v61 }
 0x1e7   : > { %v1526_v26 = vrot.slane %v448_v14, 4  ;;  %v468_v12 = vpop.permute.xlu2 %467  ;;  %v1540_v29 = vrot.slane %v454_v4, 4 }
 0x1e8   : > { %v3330_v40 = vrot.slane %v468_v12, 4 }
 0x1e9   : > { %v1527_v1 = vsel %vm954_vm1, %v1526_v26, %v7630_v58  ;;  %v1517_v26 = vsel %vm954_vm1, %v7574_v25, %v1516_v10  ;;  %v1552_v25 = vrot.slane %v7667_v30, 4 }
 0x1ea   : > { %v1533_v17 = vperm.slane %v1527_v1, %v6731_v22  ;;  %v1528_v1 = vrot.slane %v7630_v58, 4  ;;  %v7737_v57 = vperm.slane %v1517_v26, %v6731_v22 }
 0x1ec   : > { %589 = vrot.lane.b32.xlu0 %v7719_v9, %s6460_s15  ;;  %583 = vrot.lane.b32.xlu1 %v7719_v9, %s6458_s12  ;;  %v1565_v15 = vsel %vm954_vm1, %v1533_v17, %v1564_v7  ;;  %v1529_v6 = vsel %vm954_vm1, %v448_v14, %v1528_v1  ;;  %11888 = vst [vmem:[#allocation114_spill] sm:$0xff] %v7737_v57  ;;  %v1562_v7 = vrot.slane %v1533_v17, 4  ;;  %v1576_v51 = vrot.slane %v7737_v57, 4  ;;  %s11927_s12 = smov 94  }
 0x1ed   : > { %577 = vrot.lane.b32.xlu2 %v7719_v9, %s6459_s14  ;;  %v7747_v58 = vperm.slane %v1529_v6, %v6731_v22  ;;  %s11929_s14 = smov 92  }
 0x1ee   : > { %v456_v11 = vpop.permute.xlu1 %455  ;;  %v462_v61 = vpop.permute.xlu0 %461  ;;  %v1563_v36 = vsel %vm954_vm1, %v1562_v7, %v1521_v24 }
 0x1ef   : > { %v7730_v21 = vpop.permute.xlu2 %477  ;;  %v3332_v5 = vrot.slane %v456_v11, 4  ;;  %11889 = vst [vmem:[#allocation115_spill] sm:$0xff] %v7747_v58 }
 0x1f1   : > { %v3333_v6 = vsel %vm954_vm1, %v468_v12, %v3332_v5  ;;  %v7772_v5 = vperm.slane %v1563_v36, %v6797_v2 }
 0x1f4   : > { %599 = vrot.lane.b32.xlu0 %v7682_v52, %s6461_s16  ;;  %593 = vrot.lane.b32.xlu1 %v7682_v52, %s6462_s17 }
 0x1f5   : > { %587 = vrot.lane.b32.xlu2 %v7682_v52, %s6460_s15  ;;  %s11931_s15 = smov 88  }
 0x1f6   : > { %v466_v14 = vpop.permute.xlu1 %465  ;;  %v472_v10 = vpop.permute.xlu0 %471 }
 0x1f7   : > { %v1538_v26 = vrot.slane %v466_v14, 4  ;;  %v1541_v17 = vsel %vm954_vm1, %v466_v14, %v1540_v29  ;;  %v7750_v1 = vpop.permute.xlu2 %485  ;;  %v1550_v45 = vrot.slane %v472_v10, 4  ;;  %v1553_v20 = vsel %vm954_vm1, %v472_v10, %v1552_v25 }
 0x1f8   : > { %v7754_v28 = vperm.slane %v1541_v17, %v6731_v22  ;;  %v1577_v17 = vsel %vm954_vm1, %v7747_v58, %v1576_v51  ;;  %v3331_v25 = vsel %vm954_vm1, %v3330_v40, %v456_v11  ;;  %v7769_v24 = vperm.slane %v1553_v20, %v6731_v22 }
 0x1f9   : > { %v1539_v47 = vsel %vm954_vm1, %v1538_v26, %v454_v4  ;;  %v1551_v29 = vsel %vm954_vm1, %v1550_v45, %v7667_v30  ;;  %v3366_v4 = vrot.slane %v7685_v3, 4  ;;  %v3341_v30 = vperm.slane %v3333_v6, %v6731_v22 }
 0x1fa   : > { %11890 = vst [vmem:[#allocation116_spill] sm:$0xff] %v7754_v28  ;;  %v1545_v14 = vperm.slane %v1539_v47, %v6731_v22  ;;  %v1600_v18 = vrot.slane %v7754_v28, 4  ;;  %v1557_v57 = vperm.slane %v1551_v29, %v6731_v22  ;;  %v3344_v51 = vrot.slane %v462_v61, 4 }
 0x1fb   : > { %11891 = vst [vmem:[#allocation117_spill] sm:$0xff] %v7769_v24  ;;  %v1573_v20 = vperm.slane %v1565_v15, %v6797_v2  ;;  %v7786_v36 = vperm.slane %v1577_v17, %v6797_v2  ;;  %v7789_v3 = vperm.slane %v3331_v25, %v6731_v22  ;;  %v1612_v17 = vrot.slane %v7772_v5, 4 }
 0x1fc   : > { %v1588_v47 = vrot.slane %v1545_v14, 4  ;;  %v1586_v45 = vrot.slane %v1557_v57, 4  ;;  %607 = vrot.lane.b32.xlu0 %v7719_v9, %s6463_s19  ;;  %601 = vrot.lane.b32.xlu1 %v7719_v9, %s6461_s16  ;;  %v1601_v40 = vsel %vm954_vm1, %v7769_v24, %v1600_v18  ;;  %v3365_v18 = vperm.slane %v7710_v49, %v6797_v2  ;;  %s11932_s16 = smov 86  }
 0x1fd   : > { %595 = vrot.lane.b32.xlu2 %v7719_v9, %s6462_s17  ;;  %11892 = vst [vmem:[#allocation118_spill] sm:$0xff] %v7786_v36  ;;  %v3392_v25 = vrot.slane %v3341_v30, 4  ;;  %s11940_s17 = smov 84  }
 0x1fe   : > { %11893 = vst [vmem:[#allocation119_spill] sm:$0xff] %v7789_v3  ;;  %v474_v12 = vpop.permute.xlu1 %473  ;;  %v7791_v11 = vpop.permute.xlu0 %479  ;;  %v1587_v7 = vsel %vm954_vm1, %v1586_v45, %v1545_v14  ;;  %v1589_v10 = vsel %vm954_vm1, %v1557_v57, %v1588_v47  ;;  %v7805_v14 = vperm.slane %v1601_v40, %v6797_v2  ;;  %v1616_v47 = vrot.slane %v1573_v20, 4 }
 0x1ff   : > { %v3342_v26 = vrot.slane %v474_v12, 4  ;;  %v3345_v6 = vsel %vm954_vm1, %v474_v12, %v3344_v51  ;;  %v496_v15 = vpop.permute.xlu2 %495  ;;  %v7799_v29 = vperm.slane %v1587_v7, %v6797_v2  ;;  %v1597_v24 = vperm.slane %v1589_v10, %v6797_v2 }
 0x200   : > { %v3353_v28 = vperm.slane %v3345_v6, %v6731_v22  ;;  %11894 = vst [vmem:[#allocation120_spill] sm:$0xff] %v7805_v14  ;;  %v1624_v45 = vrot.slane %v7786_v36, 4  ;;  %v3380_v51 = vrot.slane %v7789_v3, 4 }
 0x201   : > { %v3343_v57 = vsel %vm954_vm1, %v3342_v26, %v462_v61  ;;  %v7810_v49 = vsel %vm954_vm1, %v7799_v29, %v1612_v17  ;;  %v1614_v10 = vrot.slane %v1597_v24, 4  ;;  %v7819_v40 = vsel %vm954_vm1, %v1597_v24, %v1616_v47 }
 0x202   : > { %11895 = vst [vmem:[#allocation121_spill] sm:$0xff] %v7810_v49  ;;  %v7815_v12 = vperm.slane %v3343_v57, %v6731_v22  ;;  %v3393_v7 = vsel %vm954_vm1, %v3353_v28, %v3392_v25  ;;  %v3390_v6 = vrot.slane %v3353_v28, 4  ;;  %v7830_v26 = vsel %vm954_vm1, %v7805_v14, %v1624_v45 }
 0x203   : > { %11897 = vst [vmem:[#allocation123_spill] sm:$0xff] %v7819_v40  ;;  %v7826_v61 = vsel %vm954_vm1, %v1614_v10, %v1573_v20  ;;  %v1628_v28 = vrot.slane %v7730_v21, 4  ;;  %v3367_v25 = vsel %vm954_vm1, %v3366_v4, %v7671_v13  ;;  %v1638_v57 = vrot.slane %v496_v15, 4 }
 0x204   : > { %11896 = vst [vmem:[#allocation122_spill] sm:$0xff] %v7815_v12  ;;  %617 = vrot.lane.b32.xlu0 %v7682_v52, %s6464_s20  ;;  %611 = vrot.lane.b32.xlu1 %v7682_v52, %s6465_s21  ;;  %v3381_v17 = vsel %vm954_vm1, %v7815_v12, %v3380_v51  ;;  %v3408_v10 = vrot.slane %v3365_v18, 4  ;;  %v3391_v12 = vsel %vm954_vm1, %v3390_v6, %v3341_v30 }
 0x205   : > { %11898 = vst [vmem:[#allocation124_spill] sm:$0xff] %v7826_v61  ;;  %605 = vrot.lane.b32.xlu2 %v7682_v52, %s6463_s19  ;;  %v3389_v24 = vperm.slane %v3381_v17, %v6797_v2  ;;  %v7849_v17 = vperm.slane %v3367_v25, %v6797_v2  ;;  %v7865_v25 = vperm.slane %v3391_v12, %v6797_v2  ;;  %s11941_s19 = smov 82  }
 0x206   : > { %11899 = vst [vmem:[#allocation125_spill] sm:$0xff] %v7830_v26  ;;  %v484_v20 = vpop.permute.xlu1 %483  ;;  %v490_v47 = vpop.permute.xlu0 %489 }
 0x207   : > { %v1640_v3 = vrot.slane %v484_v20, 4  ;;  %v7840_v45 = vpop.permute.xlu2 %503  ;;  %v1626_v26 = vrot.slane %v490_v47, 4  ;;  %v1629_v51 = vsel %vm954_vm1, %v490_v47, %v1628_v28  ;;  %v1639_v36 = vsel %vm954_vm1, %v1638_v57, %v484_v20  ;;  %11901 = vst [vmem:[#allocation127_spill] sm:$0xff] %v7849_v17 }
 0x208   : > { %v7846_v14 = vperm.slane %v1629_v51, %v6731_v22  ;;  %v7855_v58 = vsel %vm954_vm1, %v3389_v24, %v3408_v10  ;;  %v3406_v31 = vrot.slane %v3389_v24, 4  ;;  %11904 = vst [vmem:[#allocation130_spill] sm:$0xff] %v7865_v25  ;;  %v3377_v10 = vperm.slane %v7703_v19, %v6797_v2 }
 0x209   : > { %v1641_v13 = vsel %vm954_vm1, %v496_v15, %v1640_v3  ;;  %v1627_v4 = vsel %vm954_vm1, %v1626_v26, %v7730_v21  ;;  %11902 = vst [vmem:[#allocation128_spill] sm:$0xff] %v7855_v58  ;;  %v3401_v21 = vperm.slane %v3393_v7, %v6797_v2  ;;  %v7872_v15 = vperm.slane %v1639_v36, %v6731_v22 }
 0x20a   : > { %11900 = vst [vmem:[#allocation126_spill] sm:$0xff] %v7846_v14  ;;  %v7858_v28 = vperm.slane %v1641_v13, %v6731_v22  ;;  %v7861_v30 = vperm.slane %v1627_v4, %v6731_v22  ;;  %v1688_v6 = vrot.slane %v7846_v14, 4  ;;  %v7868_v3 = vsel %vm954_vm1, %v3406_v31, %v3365_v18 }
 0x20b   : > { %11905 = vst [vmem:[#allocation131_spill] sm:$0xff] %v7868_v3  ;;  %v3412_v31 = vrot.slane %v7849_v17, 4  ;;  %v3414_v51 = vrot.slane %v3401_v21, 4 }
 0x20c   : > { %11903 = vst [vmem:[#allocation129_spill] sm:$0xff] %v7858_v28  ;;  %v1676_v26 = vrot.slane %v7861_v30, 4  ;;  %625 = vrot.lane.b32.xlu0 %v7719_v9, %s6466_s22  ;;  %619 = vrot.lane.b32.xlu1 %v7719_v9, %s6464_s20  ;;  %v7881_v12 = vsel %vm954_vm1, %v7858_v28, %v1688_v6  ;;  %s11949_s20 = smov 80  }
 0x20d   : > { %613 = vrot.lane.b32.xlu2 %v7719_v9, %s6465_s21  ;;  %v7892_v24 = vsel %vm954_vm1, %v7865_v25, %v3412_v31  ;;  %v3416_v31 = vrot.slane %v3377_v10, 4  ;;  %v3432_v25 = vrot.slane %v7750_v1, 4  ;;  %s11955_s21 = smov 78  }
 0x20e   : > { %v492_v18 = vpop.permute.xlu1 %491  ;;  %v498_v36 = vpop.permute.xlu0 %497  ;;  %v7888_v7 = vsel %vm954_vm1, %v7872_v15, %v1676_v26  ;;  %11906 = vst [vmem:[#allocation132_spill] sm:$0xff] %v7892_v24  ;;  %v7902_v26 = vsel %vm954_vm1, %v3414_v51, %v3377_v10  ;;  %v3420_v51 = vrot.slane %v7791_v11, 4 }
 0x20f   : > { %v3418_v57 = vrot.slane %v492_v18, 4  ;;  %v514_v20 = vpop.permute.xlu2 %513  ;;  %v3430_v47 = vrot.slane %v498_v36, 4  ;;  %11907 = vst [vmem:[#allocation133_spill] sm:$0xff] %v7902_v26  ;;  %v7912_v19 = vsel %vm954_vm1, %v3401_v21, %v3416_v31  ;;  %v3444_v21 = vrot.slane %v7840_v45, 4 }
 0x210   : > { %11908 = vst [vmem:[#allocation134_spill] sm:$0xff] %v7912_v19  ;;  %v1650_v38 = vrot.slane %v514_v20, 4 }
 0x211   : > { %v3419_v13 = vsel %vm954_vm1, %v3418_v57, %v7791_v11  ;;  %v3431_v4 = vsel %vm954_vm1, %v3430_v47, %v7750_v1  ;;  %v3433_v11 = vsel %vm954_vm1, %v498_v36, %v3432_v25 }
 0x212   : > { %v3425_v6 = vperm.slane %v3419_v13, %v6731_v22  ;;  %v3437_v17 = vperm.slane %v3431_v4, %v6731_v22  ;;  %v3421_v4 = vsel %vm954_vm1, %v492_v18, %v3420_v51  ;;  %v7942_v25 = vperm.slane %v3433_v11, %v6731_v22 }
 0x213   : > { %v7921_v3 = vperm.slane %v3421_v4, %v6731_v22 }
 0x214   : > { %v3468_v24 = vrot.slane %v3425_v6, 4  ;;  %635 = vrot.lane.b32.xlu0 %v7682_v52, %s6467_s23  ;;  %629 = vrot.lane.b32.xlu1 %v7682_v52, %s6468_s24  ;;  %v3466_v26 = vrot.slane %v3437_v17, 4  ;;  %11911 = vst [vmem:[#allocation137_spill] sm:$0xff] %v7942_v25 }
 0x215   : > { %623 = vrot.lane.b32.xlu2 %v7682_v52, %s6466_s22  ;;  %11909 = vst [vmem:[#allocation135_spill] sm:$0xff] %v7921_v3  ;;  %v3480_v28 = vrot.slane %v7921_v3, 4  ;;  %s11956_s22 = smov 76  }
 0x216   : > { %v502_v57 = vpop.permute.xlu1 %501  ;;  %v7914_v47 = vpop.permute.xlu0 %507  ;;  %v3469_v10 = vsel %vm954_vm1, %v3437_v17, %v3468_v24  ;;  %v3467_v18 = vsel %vm954_vm1, %v3466_v26, %v3425_v6 }
 0x217   : > { %v522_v13 = vpop.permute.xlu2 %521  ;;  %v1652_v24 = vrot.slane %v502_v57, 4 }
 0x218   : > { %v3454_v31 = vrot.slane %v522_v13, 4 }
 0x219   : > { %v1653_v36 = vsel %vm954_vm1, %v514_v20, %v1652_v24 }
 0x21a   : > { %v7958_v20 = vperm.slane %v1653_v36, %v6731_v22  ;;  %v1697_v36 = vperm.slane %v7881_v12, %v6797_v2 }
 0x21c   : > { %637 = vrot.lane.b32.xlu1 %v7719_v9, %s6467_s23  ;;  %643 = vrot.lane.b32.xlu0 %v7719_v9, %s6469_s25  ;;  %11914 = vst [vmem:[#allocation140_spill] sm:$0xff] %v7958_v20  ;;  %s11960_s23 = smov 74  }
 0x21d   : > { %631 = vrot.lane.b32.xlu2 %v7719_v9, %s6468_s24  ;;  %s11965_s24 = smov 72  }
 0x21e   : > { %v510_v17 = vpop.permute.xlu1 %509  ;;  %v516_v1 = vpop.permute.xlu0 %515 }
 0x21f   : > { %v3455_v51 = vsel %vm954_vm1, %v3454_v31, %v510_v17  ;;  %v3456_v4 = vrot.slane %v510_v17, 4  ;;  %v7933_v19 = vpop.permute.xlu2 %531  ;;  %v3442_v58 = vrot.slane %v516_v1, 4  ;;  %v3445_v14 = vsel %vm954_vm1, %v516_v1, %v3444_v21 }
 0x220   : > { %v3461_v40 = vperm.slane %v3455_v51, %v6731_v22  ;;  %v7939_v59 = vperm.slane %v3445_v14, %v6731_v22  ;;  %v1651_v21 = vsel %vm954_vm1, %v1650_v38, %v502_v57  ;;  %v7951_v1 = vperm.slane %v3467_v18, %v6797_v2 }
 0x221   : > { %v3457_v6 = vsel %vm954_vm1, %v522_v13, %v3456_v4  ;;  %v3443_v26 = vsel %vm954_vm1, %v3442_v58, %v7840_v45  ;;  %v3481_v58 = vsel %vm954_vm1, %v7942_v25, %v3480_v28  ;;  %v7968_v45 = vperm.slane %v1651_v21, %v6731_v22 }
 0x222   : > { %11910 = vst [vmem:[#allocation136_spill] sm:$0xff] %v7939_v59  ;;  %v3490_v31 = vrot.slane %v3461_v40, 4  ;;  %v3449_v17 = vperm.slane %v3443_v26, %v6731_v22  ;;  %v7954_v14 = vperm.slane %v3457_v6, %v6731_v22  ;;  %v3504_v11 = vrot.slane %v7939_v59, 4 }
 0x223   : > { %11912 = vst [vmem:[#allocation138_spill] sm:$0xff] %v7951_v1  ;;  %v1664_v57 = vrot.slane %v7914_v47, 4  ;;  %v3477_v18 = vperm.slane %v3469_v10, %v6797_v2  ;;  %v3516_v6 = vrot.slane %v7951_v1, 4 }
 0x224   : > { %11913 = vst [vmem:[#allocation139_spill] sm:$0xff] %v7954_v14  ;;  %v3492_v13 = vrot.slane %v3449_v17, 4  ;;  %647 = vrot.lane.b32.xlu1 %v7682_v52, %s6471_s27  ;;  %653 = vrot.lane.b32.xlu0 %v7682_v52, %s6470_s26  ;;  %v3491_v38 = vsel %vm954_vm1, %v3490_v31, %v3449_v17  ;;  %v7985_v17 = vperm.slane %v3481_v58, %v6797_v2 }
 0x225   : > { %641 = vrot.lane.b32.xlu2 %v7682_v52, %s6469_s25  ;;  %v7974_v24 = vperm.slane %v3491_v38, %v6797_v2  ;;  %v3505_v10 = vsel %vm954_vm1, %v7954_v14, %v3504_v11  ;;  %v1712_v38 = vrot.slane %v7958_v20, 4  ;;  %v1736_v14 = vrot.slane %v1697_v36, 4  ;;  %s11966_s25 = smov 70  }
 0x226   : > { %v520_v51 = vpop.permute.xlu1 %519  ;;  %v526_v4 = vpop.permute.xlu0 %525  ;;  %v3493_v28 = vsel %vm954_vm1, %v3461_v40, %v3492_v13  ;;  %11916 = vst [vmem:[#allocation142_spill] sm:$0xff] %v7985_v17  ;;  %v1700_v13 = vrot.slane %v7968_v45, 4  ;;  %v8007_v3 = vperm.slane %v3505_v10, %v6797_v2 }
 0x227   : > { %11915 = vst [vmem:[#allocation141_spill] sm:$0xff] %v7974_v24  ;;  %v1662_v26 = vrot.slane %v520_v51, 4  ;;  %v1665_v21 = vsel %vm954_vm1, %v520_v51, %v1664_v57  ;;  %v7982_v31 = vpop.permute.xlu2 %539  ;;  %v3501_v40 = vperm.slane %v3493_v28, %v6797_v2  ;;  %v7996_v12 = vsel %vm954_vm1, %v7974_v24, %v3516_v6 }
 0x228   : > { %v7991_v59 = vperm.slane %v1665_v21, %v6731_v22  ;;  %11918 = vst [vmem:[#allocation144_spill] sm:$0xff] %v7996_v12  ;;  %v3520_v57 = vrot.slane %v3477_v18, 4  ;;  %v1685_v28 = vperm.slane %v7888_v7, %v6797_v2  ;;  %v3528_v7 = vrot.slane %v7985_v17, 4 }
 0x229   : > { %v1663_v58 = vsel %vm954_vm1, %v1662_v26, %v7914_v47  ;;  %v3518_v21 = vrot.slane %v3501_v40, 4  ;;  %11919 = vst [vmem:[#allocation145_spill] sm:$0xff] %v8007_v3  ;;  %v3530_v54 = vrot.slane %v7982_v31, 4 }
 0x22a   : > { %11917 = vst [vmem:[#allocation143_spill] sm:$0xff] %v7991_v59  ;;  %v8002_v51 = vperm.slane %v1663_v58, %v6731_v22  ;;  %v1713_v11 = vsel %vm954_vm1, %v7991_v59, %v1712_v38  ;;  %v8013_v25 = vsel %vm954_vm1, %v3501_v40, %v3520_v57  ;;  %v1728_v57 = vrot.slane %v1685_v28, 4 }
 0x22b   : > { %v1721_v6 = vperm.slane %v1713_v11, %v6797_v2  ;;  %11920 = vst [vmem:[#allocation146_spill] sm:$0xff] %v8013_v25  ;;  %v8022_v26 = vsel %vm954_vm1, %v3518_v21, %v3477_v18 }
 0x22c   : > { %655 = vrot.lane.b32.xlu1 %v7719_v9, %s6470_s26  ;;  %661 = vrot.lane.b32.xlu0 %v7719_v9, %s6472_s28  ;;  %v1701_v47 = vsel %vm954_vm1, %v8002_v51, %v1700_v13  ;;  %11921 = vst [vmem:[#allocation147_spill] sm:$0xff] %v8022_v26  ;;  %v8037_v13 = vsel %vm954_vm1, %v8007_v3, %v3528_v7  ;;  %v1752_v7 = vrot.slane %v7933_v19, 4  ;;  %s11975_s26 = smov 68  }
 0x22d   : > { %649 = vrot.lane.b32.xlu2 %v7719_v9, %s6471_s27  ;;  %v1709_v10 = vperm.slane %v1701_v47, %v6797_v2  ;;  %v8029_v38 = vsel %vm954_vm1, %v1721_v6, %v1736_v14  ;;  %11923 = vst [vmem:[#allocation149_spill] sm:$0xff] %v8037_v13  ;;  %v1734_v11 = vrot.slane %v1721_v6, 4  ;;  %v1740_v13 = vrot.slane %v526_v4, 4  ;;  %s11983_s27 = smov 66  }
 0x22e   : > { %11922 = vst [vmem:[#allocation148_spill] sm:$0xff] %v8029_v38  ;;  %v8031_v40 = vpop.permute.xlu1 %527  ;;  %v8033_v58 = vpop.permute.xlu0 %533 }
 0x22f   : > { %v8039_v18 = vpop.permute.xlu2 %549  ;;  %v1726_v21 = vrot.slane %v1709_v10, 4  ;;  %v8042_v17 = vsel %vm954_vm1, %v1709_v10, %v1728_v57  ;;  %v8048_v14 = vsel %vm954_vm1, %v1734_v11, %v1697_v36  ;;  %v3532_v6 = vrot.slane %v8031_v40, 4 }
 0x230   : > { %11924 = vst [vmem:[#allocation150_spill] sm:$0xff] %v8042_v17 }
 0x231   : > { %v8045_v47 = vsel %vm954_vm1, %v1726_v21, %v1685_v28  ;;  %11926 = vst [vmem:[#allocation152_spill] sm:$0xff] %v8048_v14  ;;  %v3533_v12 = vsel %vm954_vm1, %v7982_v31, %v3532_v6 }
 0x232   : > { %11925 = vst [vmem:[#allocation151_spill] sm:$0xff] %v8045_v47 }
 0x234   : > { %665 = vrot.lane.b32.xlu1 %v7682_v52, %s6474_s30  ;;  %671 = vrot.lane.b32.xlu0 %v7682_v52, %s11927_s12 }
 0x235   : > { %659 = vrot.lane.b32.xlu2 %v7682_v52, %s6472_s28  ;;  %s11984_s28 = smov 64  }
 0x236   : > { %v538_v10 = vpop.permute.xlu1 %537  ;;  %v544_v28 = vpop.permute.xlu0 %543 }
 0x237   : > { %v1738_v57 = vrot.slane %v538_v10, 4  ;;  %v1741_v36 = vsel %vm954_vm1, %v538_v10, %v1740_v13  ;;  %v8059_v11 = vpop.permute.xlu2 %557  ;;  %v1750_v21 = vrot.slane %v544_v28, 4  ;;  %v1753_v3 = vsel %vm954_vm1, %v544_v28, %v1752_v7 }
 0x238   : > { %v1749_v25 = vperm.slane %v1741_v36, %v6731_v22  ;;  %v1761_v13 = vperm.slane %v1753_v3, %v6731_v22  ;;  %v8071_v10 = vperm.slane %v3533_v12, %v6731_v22 }
 0x239   : > { %v1739_v26 = vsel %vm954_vm1, %v1738_v57, %v526_v4  ;;  %v1751_v1 = vsel %vm954_vm1, %v1750_v21, %v7933_v19  ;;  %v3544_v19 = vrot.slane %v8033_v58, 4 }
 0x23a   : > { %v1745_v24 = vperm.slane %v1739_v26, %v6731_v22  ;;  %v1800_v14 = vrot.slane %v1749_v25, 4  ;;  %11928 = vst [vmem:[#allocation153_spill] sm:$0xff] %v8071_v10  ;;  %v1757_v7 = vperm.slane %v1751_v1, %v6731_v22  ;;  %v3592_v28 = vrot.slane %v8071_v10, 4 }
 0x23c   : > { %v1788_v38 = vrot.slane %v1745_v24, 4  ;;  %673 = vrot.lane.b32.xlu1 %v7719_v9, %s11927_s12  ;;  %679 = vrot.lane.b32.xlu0 %v7719_v9, %s11929_s14  ;;  %v1801_v4 = vsel %vm954_vm1, %v1761_v13, %v1800_v14  ;;  %v1786_v36 = vrot.slane %v1757_v7, 4  ;;  %s11989_s12 = smov 58  }
 0x23d   : > { %667 = vrot.lane.b32.xlu2 %v7719_v9, %s6474_s30  ;;  %s11987_s30 = smov 62  }
 0x23e   : > { %v546_v3 = vpop.permute.xlu1 %545  ;;  %v8082_v26 = vpop.permute.xlu0 %551  ;;  %v1789_v12 = vsel %vm954_vm1, %v1757_v7, %v1788_v38  ;;  %v1764_v38 = vrot.slane %v8039_v18, 4  ;;  %v1787_v56 = vsel %vm954_vm1, %v1786_v36, %v1745_v24 }
 0x23f   : > { %v3545_v1 = vsel %vm954_vm1, %v546_v3, %v3544_v19  ;;  %v568_v6 = vpop.permute.xlu2 %567  ;;  %v1798_v19 = vrot.slane %v1761_v13, 4  ;;  %v3542_v46 = vrot.slane %v546_v3, 4 }
 0x240   : > { %v8088_v57 = vperm.slane %v3545_v1, %v6731_v22  ;;  %v1774_v21 = vrot.slane %v568_v6, 4 }
 0x241   : > { %v1799_v24 = vsel %vm954_vm1, %v1798_v19, %v1749_v25  ;;  %v1797_v25 = vperm.slane %v1789_v12, %v6797_v2 }
 0x242   : > { %11930 = vst [vmem:[#allocation154_spill] sm:$0xff] %v8088_v57  ;;  %v8092_v14 = vsel %vm954_vm1, %v8088_v57, %v3592_v28 }
 0x244   : > { %683 = vrot.lane.b32.xlu1 %v7682_v52, %s6477_s4  ;;  %689 = vrot.lane.b32.xlu0 %v7682_v52, %s11931_s15 }
 0x245   : > { %677 = vrot.lane.b32.xlu2 %v7682_v52, %s11929_s14  ;;  %s11993_s14 = smov 56  }
 0x246   : > { %v556_v1 = vpop.permute.xlu1 %555  ;;  %v562_v10 = vpop.permute.xlu0 %561 }
 0x247   : > { %v1775_v17 = vsel %vm954_vm1, %v1774_v21, %v556_v1  ;;  %v1776_v28 = vrot.slane %v556_v1, 4  ;;  %v8102_v57 = vpop.permute.xlu2 %577  ;;  %v1762_v7 = vrot.slane %v562_v10, 4  ;;  %v1765_v20 = vsel %vm954_vm1, %v562_v10, %v1764_v38 }
 0x248   : > { %v1781_v59 = vperm.slane %v1775_v17, %v6731_v22  ;;  %v1773_v60 = vperm.slane %v1765_v20, %v6731_v22  ;;  %v3531_v17 = vsel %vm954_vm1, %v3530_v54, %v8031_v40  ;;  %v8117_v20 = vperm.slane %v1787_v56, %v6797_v2 }
 0x249   : > { %v1777_v13 = vsel %vm954_vm1, %v568_v6, %v1776_v28  ;;  %v1763_v21 = vsel %vm954_vm1, %v1762_v7, %v8039_v18  ;;  %v3543_v54 = vsel %vm954_vm1, %v3542_v46, %v8033_v58  ;;  %v8135_v40 = vperm.slane %v3531_v17, %v6731_v22 }
 0x24a   : > { %v1785_v1 = vperm.slane %v1777_v13, %v6731_v22  ;;  %v1810_v50 = vrot.slane %v1781_v59, 4  ;;  %v1769_v47 = vperm.slane %v1763_v21, %v6731_v22  ;;  %v1824_v10 = vrot.slane %v1773_v60, 4 }
 0x24b   : > { %11933 = vst [vmem:[#allocation155_spill] sm:$0xff] %v8135_v40  ;;  %v1836_v28 = vrot.slane %v8117_v20, 4  ;;  %v8146_v7 = vperm.slane %v1799_v24, %v6797_v2  ;;  %v8149_v12 = vperm.slane %v3543_v54, %v6731_v22  ;;  %v3580_v17 = vrot.slane %v8135_v40, 4 }
 0x24c   : > { %v1822_v31 = vrot.slane %v1785_v1, 4  ;;  %v1812_v3 = vrot.slane %v1769_v47, 4  ;;  %691 = vrot.lane.b32.xlu1 %v7719_v9, %s11931_s15  ;;  %697 = vrot.lane.b32.xlu0 %v7719_v9, %s11932_s16  ;;  %v1811_v18 = vsel %vm954_vm1, %v1810_v50, %v1769_v47  ;;  %v1825_v6 = vsel %vm954_vm1, %v1785_v1, %v1824_v10  ;;  %s11998_s15 = smov 54  }
 0x24d   : > { %685 = vrot.lane.b32.xlu2 %v7719_v9, %s6477_s4  ;;  %v8131_v56 = vperm.slane %v1811_v18, %v6797_v2  ;;  %v1809_v47 = vperm.slane %v1801_v4, %v6797_v2  ;;  %11934 = vst [vmem:[#allocation156_spill] sm:$0xff] %v8146_v7  ;;  %v1833_v21 = vperm.slane %v1825_v6, %v6797_v2  ;;  %v1840_v10 = vrot.slane %v1797_v25, 4  ;;  %s11988_s4 = smov 60  }
 0x24e   : > { %v564_v36 = vpop.permute.xlu1 %563  ;;  %v8137_v38 = vpop.permute.xlu0 %569  ;;  %v1813_v50 = vsel %vm954_vm1, %v1781_v59, %v1812_v3  ;;  %11935 = vst [vmem:[#allocation157_spill] sm:$0xff] %v8149_v12  ;;  %v1823_v13 = vsel %vm954_vm1, %v1822_v31, %v1773_v60  ;;  %v1844_v54 = vrot.slane %v8146_v7, 4 }
 0x24f   : > { %v3554_v19 = vrot.slane %v564_v36, 4  ;;  %v8141_v46 = vpop.permute.xlu2 %587  ;;  %v3566_v58 = vrot.slane %v8137_v38, 4  ;;  %v8157_v4 = vsel %vm954_vm1, %v8131_v56, %v1836_v28  ;;  %v1821_v1 = vperm.slane %v1813_v50, %v6797_v2 }
 0x250   : > { %11936 = vst [vmem:[#allocation158_spill] sm:$0xff] %v8157_v4  ;;  %v1848_v31 = vrot.slane %v1809_v47, 4  ;;  %v8170_v6 = vperm.slane %v1823_v13, %v6797_v2 }
 0x251   : > { %v3555_v59 = vsel %vm954_vm1, %v3554_v19, %v8082_v26  ;;  %v3567_v60 = vsel %vm954_vm1, %v3566_v58, %v8059_v11  ;;  %v8167_v3 = vsel %vm954_vm1, %v1821_v1, %v1840_v10  ;;  %v1838_v18 = vrot.slane %v1821_v1, 4 }
 0x252   : > { %v8162_v24 = vperm.slane %v3555_v59, %v6731_v22  ;;  %11938 = vst [vmem:[#allocation160_spill] sm:$0xff] %v8167_v3  ;;  %v1846_v19 = vrot.slane %v1833_v21, 4  ;;  %v8179_v58 = vsel %vm954_vm1, %v1833_v21, %v1848_v31  ;;  %v8182_v28 = vperm.slane %v3567_v60, %v6731_v22 }
 0x253   : > { %11939 = vst [vmem:[#allocation161_spill] sm:$0xff] %v8170_v6  ;;  %v8187_v13 = vsel %vm954_vm1, %v1838_v18, %v1797_v25  ;;  %v8191_v59 = vsel %vm954_vm1, %v8170_v6, %v1844_v54  ;;  %v3581_v1 = vsel %vm954_vm1, %v8149_v12, %v3580_v17  ;;  %v1862_v60 = vrot.slane %v8141_v46, 4 }
 0x254   : > { %11937 = vst [vmem:[#allocation159_spill] sm:$0xff] %v8162_v24  ;;  %v3604_v50 = vrot.slane %v8162_v24, 4  ;;  %701 = vrot.lane.b32.xlu1 %v7682_v52, %s11940_s17  ;;  %707 = vrot.lane.b32.xlu0 %v7682_v52, %s11941_s19  ;;  %v8198_v31 = vsel %vm954_vm1, %v1846_v19, %v1809_v47  ;;  %v3556_v18 = vrot.slane %v8082_v26, 4  ;;  %v8207_v54 = vperm.slane %v3581_v1, %v6797_v2 }
 0x255   : > { %11942 = vst [vmem:[#allocation162_spill] sm:$0xff] %v8179_v58  ;;  %695 = vrot.lane.b32.xlu2 %v7682_v52, %s11932_s16  ;;  %s11999_s16 = smov 52  }
 0x256   : > { %11943 = vst [vmem:[#allocation163_spill] sm:$0xff] %v8182_v28  ;;  %v8195_v10 = vpop.permute.xlu1 %575  ;;  %v582_v21 = vpop.permute.xlu0 %581  ;;  %v3605_v25 = vsel %vm954_vm1, %v8182_v28, %v3604_v50  ;;  %v3557_v19 = vsel %vm954_vm1, %v564_v36, %v3556_v18  ;;  %v3656_v36 = vrot.slane %v8102_v57, 4 }
 0x257   : > { %11944 = vst [vmem:[#allocation164_spill] sm:$0xff] %v8187_v13  ;;  %v8201_v24 = vpop.permute.xlu2 %595  ;;  %v1850_v40 = vrot.slane %v582_v21, 4  ;;  %v1863_v17 = vsel %vm954_vm1, %v1862_v60, %v8195_v10  ;;  %v8218_v58 = vperm.slane %v3605_v25, %v6797_v2  ;;  %v8231_v1 = vperm.slane %v3557_v19, %v6731_v22 }
 0x258   : > { %11945 = vst [vmem:[#allocation165_spill] sm:$0xff] %v8191_v59  ;;  %v8221_v50 = vperm.slane %v1863_v17, %v6731_v22  ;;  %v3644_v60 = vrot.slane %v7719_v9, 4  ;;  %v3568_v25 = vrot.slane %v8059_v11, 4 }
 0x259   : > { %11946 = vst [vmem:[#allocation166_spill] sm:$0xff] %v8198_v31  ;;  %v1851_v47 = vsel %vm954_vm1, %v1850_v40, %v7682_v52  ;;  %v3632_v40 = vrot.slane %v8207_v54, 4 }
 0x25a   : > { %11947 = vst [vmem:[#allocation167_spill] sm:$0xff] %v8207_v54  ;;  %v8215_v12 = vperm.slane %v1851_v47, %v6731_v22  ;;  %v3569_v11 = vsel %vm954_vm1, %v8137_v38, %v3568_v25  ;;  %v3601_v38 = vperm.slane %v8092_v14, %v6797_v2 }
 0x25b   : > { %11948 = vst [vmem:[#allocation168_spill] sm:$0xff] %v8218_v58  ;;  %v8243_v54 = vsel %vm954_vm1, %v8218_v58, %v3632_v40 }
 0x25c   : > { %v1900_v26 = vrot.slane %v8215_v12, 4  ;;  %709 = vrot.lane.b32.xlu1 %v7719_v9, %s11941_s19  ;;  %715 = vrot.lane.b32.xlu0 %v7719_v9, %s11949_s20  ;;  %11950 = vst [vmem:[#allocation169_spill] sm:$0xff] %v8231_v1  ;;  %s12014_s19 = smov 46  }
 0x25d   : > { %703 = vrot.lane.b32.xlu2 %v7719_v9, %s11940_s17  ;;  %11951 = vst [vmem:[#allocation170_spill] sm:$0xff] %v8243_v54  ;;  %s12013_s17 = smov 48  }
 0x25e   : > { %v584_v18 = vpop.permute.xlu1 %583  ;;  %v590_v17 = vpop.permute.xlu0 %589  ;;  %v8239_v47 = vsel %vm954_vm1, %v8221_v50, %v1900_v26  ;;  %v3616_v26 = vrot.slane %v8231_v1, 4  ;;  %v3640_v1 = vrot.slane %v3601_v38, 4 }
 0x25f   : > { %v3642_v28 = vrot.slane %v584_v18, 4  ;;  %v3645_v19 = vsel %vm954_vm1, %v584_v18, %v3644_v60  ;;  %v8246_v59 = vpop.permute.xlu2 %605  ;;  %v3654_v31 = vrot.slane %v590_v17, 4  ;;  %v3657_v7 = vsel %vm954_vm1, %v590_v17, %v3656_v36 }
 0x260   : > { %v3653_v6 = vperm.slane %v3645_v19, %v6731_v22  ;;  %v3665_v54 = vperm.slane %v3657_v7, %v6731_v22  ;;  %v8262_v36 = vperm.slane %v3569_v11, %v6731_v22  ;;  %v1852_v7 = vrot.slane %v7682_v52, 4 }
 0x261   : > { %v3643_v13 = vsel %vm954_vm1, %v3642_v28, %v7719_v9  ;;  %v3655_v40 = vsel %vm954_vm1, %v3654_v31, %v8102_v57  ;;  %v1864_v11 = vrot.slane %v8195_v10, 4 }
 0x262   : > { %v8258_v60 = vperm.slane %v3643_v13, %v6731_v22  ;;  %v3704_v18 = vrot.slane %v3653_v6, 4  ;;  %11953 = vst [vmem:[#allocation172_spill] sm:$0xff] %v8262_v36  ;;  %v8268_v17 = vperm.slane %v3655_v40, %v6731_v22  ;;  %v3617_v14 = vsel %vm954_vm1, %v8262_v36, %v3616_v26 }
 0x263   : > { %v3625_v19 = vperm.slane %v3617_v14, %v6797_v2  ;;  %v1853_v40 = vsel %vm954_vm1, %v582_v21, %v1852_v7  ;;  %v1865_v36 = vsel %vm954_vm1, %v8141_v46, %v1864_v11  ;;  %v1898_v14 = vrot.slane %v8221_v50, 4 }
 0x264   : > { %11952 = vst [vmem:[#allocation171_spill] sm:$0xff] %v8258_v60  ;;  %v3692_v25 = vrot.slane %v8258_v60, 4  ;;  %719 = vrot.lane.b32.xlu1 %v7682_v52, %s11955_s21  ;;  %725 = vrot.lane.b32.xlu0 %v7682_v52, %s11956_s22  ;;  %v8275_v57 = vsel %vm954_vm1, %v3665_v54, %v3704_v18  ;;  %v8293_v26 = vperm.slane %v1853_v40, %v6731_v22  ;;  %v3668_v21 = vrot.slane %v8201_v24, 4 }
 0x265   : > { %11954 = vst [vmem:[#allocation173_spill] sm:$0xff] %v8268_v17  ;;  %713 = vrot.lane.b32.xlu2 %v7682_v52, %s11949_s20  ;;  %v8290_v58 = vsel %vm954_vm1, %v3625_v19, %v3640_v1  ;;  %v3638_v60 = vrot.slane %v3625_v19, 4  ;;  %v8309_v1 = vperm.slane %v1865_v36, %v6731_v22  ;;  %v1899_v36 = vsel %vm954_vm1, %v1898_v14, %v8215_v12  ;;  %s12016_s20 = smov 42  }
 0x266   : > { %v594_v28 = vpop.permute.xlu1 %593  ;;  %v8282_v13 = vpop.permute.xlu0 %599  ;;  %v3693_v31 = vsel %vm954_vm1, %v8268_v17, %v3692_v25  ;;  %11957 = vst [vmem:[#allocation174_spill] sm:$0xff] %v8290_v58  ;;  %v1912_v46 = vrot.slane %v8293_v26, 4 }
 0x267   : > { %v614_v18 = vpop.permute.xlu2 %613  ;;  %11958 = vst [vmem:[#allocation175_spill] sm:$0xff] %v8293_v26  ;;  %v8298_v25 = vsel %vm954_vm1, %v3638_v60, %v3601_v38  ;;  %v1876_v10 = vrot.slane %v594_v28, 4  ;;  %v3702_v60 = vrot.slane %v3665_v54, 4  ;;  %v1874_v26 = vrot.slane %v8246_v59, 4 }
 0x268   : > { %11959 = vst [vmem:[#allocation176_spill] sm:$0xff] %v8298_v25  ;;  %v3678_v7 = vrot.slane %v614_v18, 4 }
 0x269   : > { %11961 = vst [vmem:[#allocation177_spill] sm:$0xff] %v8309_v1  ;;  %v1877_v58 = vsel %vm954_vm1, %v8246_v59, %v1876_v10  ;;  %v1913_v59 = vsel %vm954_vm1, %v8309_v1, %v1912_v46 }
 0x26a   : > { %v8332_v12 = vperm.slane %v1877_v58, %v6731_v22  ;;  %v1888_v58 = vrot.slane %v8282_v13, 4 }
 0x26c   : > { %727 = vrot.lane.b32.xlu1 %v7719_v9, %s11956_s22  ;;  %733 = vrot.lane.b32.xlu0 %v7719_v9, %s11960_s23  ;;  %11963 = vst [vmem:[#allocation179_spill] sm:$0xff] %v8332_v12  ;;  %s12022_s22 = smov 38  }
 0x26d   : > { %721 = vrot.lane.b32.xlu2 %v7719_v9, %s11955_s21  ;;  %s12017_s21 = smov 40  }
 0x26e   : > { %v602_v38 = vpop.permute.xlu1 %601  ;;  %v608_v50 = vpop.permute.xlu0 %607 }
 0x26f   : > { %v3680_v19 = vrot.slane %v602_v38, 4  ;;  %v8312_v11 = vpop.permute.xlu2 %623  ;;  %v3666_v40 = vrot.slane %v608_v50, 4  ;;  %v3669_v25 = vsel %vm954_vm1, %v608_v50, %v3668_v21  ;;  %v3679_v54 = vsel %vm954_vm1, %v3678_v7, %v602_v38 }
 0x270   : > { %v3677_v17 = vperm.slane %v3669_v25, %v6731_v22  ;;  %v3703_v25 = vsel %vm954_vm1, %v3702_v60, %v3653_v6  ;;  %v1875_v50 = vsel %vm954_vm1, %v1874_v26, %v594_v28  ;;  %v8350_v28 = vperm.slane %v1899_v36, %v6797_v2 }
 0x271   : > { %v3681_v3 = vsel %vm954_vm1, %v614_v18, %v3680_v19  ;;  %v3667_v44 = vsel %vm954_vm1, %v3666_v40, %v8201_v24  ;;  %v3701_v18 = vperm.slane %v3693_v31, %v6797_v2  ;;  %v8338_v24 = vperm.slane %v3679_v54, %v6731_v22 }
 0x272   : > { %v3689_v43 = vperm.slane %v3681_v3, %v6731_v22  ;;  %v8327_v21 = vperm.slane %v3667_v44, %v6731_v22  ;;  %v3728_v10 = vrot.slane %v3677_v17, 4  ;;  %11967 = vst [vmem:[#allocation181_spill] sm:$0xff] %v8350_v28  ;;  %v8353_v31 = vperm.slane %v3703_v25, %v6797_v2 }
 0x273   : > { %11964 = vst [vmem:[#allocation180_spill] sm:$0xff] %v8338_v24  ;;  %v1881_v14 = vperm.slane %v1875_v50, %v6731_v22  ;;  %v1909_v54 = vperm.slane %v8239_v47, %v6797_v2 }
 0x274   : > { %11962 = vst [vmem:[#allocation178_spill] sm:$0xff] %v8327_v21  ;;  %v3726_v3 = vrot.slane %v3689_v43, 4  ;;  %v3716_v44 = vrot.slane %v8327_v21, 4  ;;  %737 = vrot.lane.b32.xlu1 %v7682_v52, %s11965_s24  ;;  %743 = vrot.lane.b32.xlu0 %v7682_v52, %s11966_s25  ;;  %v3729_v6 = vsel %vm954_vm1, %v3689_v43, %v3728_v10  ;;  %v8359_v43 = vperm.slane %v1913_v59, %v6797_v2 }
 0x275   : > { %731 = vrot.lane.b32.xlu2 %v7682_v52, %s11960_s23  ;;  %11968 = vst [vmem:[#allocation182_spill] sm:$0xff] %v8353_v31  ;;  %v3737_v26 = vperm.slane %v3729_v6, %v6797_v2  ;;  %v3713_v10 = vperm.slane %v8275_v57, %v6797_v2  ;;  %v3744_v59 = vrot.slane %v3701_v18, 4  ;;  %v3748_v47 = vrot.slane %v8353_v31, 4  ;;  %s12032_s23 = smov 36  }
 0x276   : > { %v3727_v46 = vsel %vm954_vm1, %v3726_v3, %v3677_v17  ;;  %v612_v60 = vpop.permute.xlu1 %611  ;;  %v618_v38 = vpop.permute.xlu0 %617  ;;  %11969 = vst [vmem:[#allocation183_spill] sm:$0xff] %v8359_v43  ;;  %v3717_v7 = vsel %vm954_vm1, %v8338_v24, %v3716_v44  ;;  %v1936_v17 = vrot.slane %v8332_v12, 4 }
 0x277   : > { %v1886_v19 = vrot.slane %v612_v60, 4  ;;  %v1889_v40 = vsel %vm954_vm1, %v612_v60, %v1888_v58  ;;  %v8364_v36 = vpop.permute.xlu2 %631  ;;  %v3725_v50 = vperm.slane %v3717_v7, %v6797_v2  ;;  %v8378_v44 = vperm.slane %v3727_v46, %v6797_v2 }
 0x278   : > { %v8372_v25 = vperm.slane %v1889_v40, %v6731_v22  ;;  %v3750_v6 = vrot.slane %v3737_v26, 4  ;;  %v1924_v58 = vrot.slane %v1881_v14, 4 }
 0x279   : > { %v1887_v3 = vsel %vm954_vm1, %v1886_v19, %v8282_v13  ;;  %11971 = vst [vmem:[#allocation185_spill] sm:$0xff] %v8378_v44  ;;  %v8385_v40 = vsel %vm954_vm1, %v3725_v50, %v3744_v59  ;;  %v1960_v13 = vrot.slane %v8359_v43, 4  ;;  %v3742_v19 = vrot.slane %v3725_v50, 4 }
 0x27a   : > { %11970 = vst [vmem:[#allocation184_spill] sm:$0xff] %v8372_v25  ;;  %v1893_v57 = vperm.slane %v1887_v3, %v6731_v22  ;;  %v1937_v60 = vsel %vm954_vm1, %v8372_v25, %v1936_v17  ;;  %v8392_v46 = vsel %vm954_vm1, %v3750_v6, %v3713_v10  ;;  %v8401_v59 = vsel %vm954_vm1, %v8378_v44, %v3748_v47 }
 0x27b   : > { %11972 = vst [vmem:[#allocation186_spill] sm:$0xff] %v8385_v40  ;;  %v8388_v7 = vperm.slane %v1937_v60, %v6797_v2  ;;  %v3752_v3 = vrot.slane %v3713_v10, 4 }
 0x27c   : > { %11974 = vst [vmem:[#allocation188_spill] sm:$0xff] %v8392_v46  ;;  %v1922_v21 = vrot.slane %v1893_v57, 4  ;;  %745 = vrot.lane.b32.xlu1 %v7719_v9, %s11966_s25  ;;  %751 = vrot.lane.b32.xlu0 %v7719_v9, %s11975_s26  ;;  %v1925_v17 = vsel %vm954_vm1, %v1893_v57, %v1924_v58  ;;  %v1952_v58 = vrot.slane %v1909_v54, 4  ;;  %v8414_v57 = vsel %vm954_vm1, %v3742_v19, %v3701_v18  ;;  %s12038_s25 = smov 32  }
 0x27d   : > { %11973 = vst [vmem:[#allocation187_spill] sm:$0xff] %v8388_v7  ;;  %739 = vrot.lane.b32.xlu2 %v7719_v9, %s11965_s24  ;;  %v1933_v50 = vperm.slane %v1925_v17, %v6797_v2  ;;  %v8408_v6 = vsel %vm954_vm1, %v8388_v7, %v1960_v13  ;;  %v8417_v10 = vsel %vm954_vm1, %v3737_v26, %v3752_v3  ;;  %v1948_v17 = vrot.slane %v8350_v28, 4  ;;  %s12033_s24 = smov 34  }
 0x27e   : > { %11976 = vst [vmem:[#allocation189_spill] sm:$0xff] %v8401_v59  ;;  %v620_v60 = vpop.permute.xlu1 %619  ;;  %v8410_v46 = vpop.permute.xlu0 %625  ;;  %v1923_v31 = vsel %vm954_vm1, %v1922_v21, %v1881_v14  ;;  %v1964_v26 = vrot.slane %v618_v38, 4 }
 0x27f   : > { %11977 = vst [vmem:[#allocation190_spill] sm:$0xff] %v8408_v6  ;;  %v642_v47 = vpop.permute.xlu2 %641  ;;  %v8420_v59 = vperm.slane %v1923_v31, %v6797_v2  ;;  %v1950_v13 = vrot.slane %v1933_v50, 4  ;;  %v8424_v44 = vsel %vm954_vm1, %v1933_v50, %v1952_v58  ;;  %v1976_v31 = vrot.slane %v8312_v11, 4 }
 0x280   : > { %11978 = vst [vmem:[#allocation191_spill] sm:$0xff] %v8414_v57  ;;  %v1988_v7 = vrot.slane %v642_v47, 4 }
 0x281   : > { %11979 = vst [vmem:[#allocation192_spill] sm:$0xff] %v8417_v10  ;;  %v8428_v21 = vsel %vm954_vm1, %v8420_v59, %v1948_v17  ;;  %v8431_v18 = vsel %vm954_vm1, %v1950_v13, %v1909_v54  ;;  %v3754_v10 = vrot.slane %v8364_v36, 4 }
 0x282   : > { %11980 = vst [vmem:[#allocation193_spill] sm:$0xff] %v8424_v44 }
 0x283   : > { %11981 = vst [vmem:[#allocation194_spill] sm:$0xff] %v8428_v21 }
 0x284   : > { %11982 = vst [vmem:[#allocation195_spill] sm:$0xff] %v8431_v18  ;;  %755 = vrot.lane.b32.xlu1 %v7682_v52, %s11983_s27  ;;  %761 = vrot.lane.b32.xlu0 %v7682_v52, %s11984_s28 }
 0x285   : > { %749 = vrot.lane.b32.xlu2 %v7682_v52, %s11975_s26  ;;  %s12043_s26 = smov 30  }
 0x286   : > { %v630_v14 = vpop.permute.xlu1 %629  ;;  %v636_v19 = vpop.permute.xlu0 %635 }
 0x287   : > { %v1962_v3 = vrot.slane %v630_v14, 4  ;;  %v1965_v50 = vsel %vm954_vm1, %v630_v14, %v1964_v26  ;;  %v8441_v58 = vpop.permute.xlu2 %649  ;;  %v1974_v54 = vrot.slane %v636_v19, 4  ;;  %v1977_v17 = vsel %vm954_vm1, %v636_v19, %v1976_v31 }
 0x288   : > { %v8445_v13 = vperm.slane %v1965_v50, %v6731_v22  ;;  %v8456_v14 = vperm.slane %v1977_v17, %v6731_v22  ;;  %v3755_v31 = vsel %vm954_vm1, %v3754_v10, %v620_v60 }
 0x289   : > { %v1963_v57 = vsel %vm954_vm1, %v1962_v3, %v618_v38  ;;  %v1975_v40 = vsel %vm954_vm1, %v1974_v54, %v8312_v11  ;;  %v3761_v11 = vperm.slane %v3755_v31, %v6731_v22 }
 0x28a   : > { %11985 = vst [vmem:[#allocation196_spill] sm:$0xff] %v8445_v13  ;;  %v8452_v6 = vperm.slane %v1963_v57, %v6731_v22  ;;  %v2024_v26 = vrot.slane %v8445_v13, 4  ;;  %v8461_v50 = vperm.slane %v1975_v40, %v6731_v22 }
 0x28b   : > { %11986 = vst [vmem:[#allocation197_spill] sm:$0xff] %v8456_v14  ;;  %v3804_v24 = vrot.slane %v3761_v11, 4 }
 0x28c   : > { %v2012_v19 = vrot.slane %v8452_v6, 4  ;;  %v2025_v38 = vsel %vm954_vm1, %v8456_v14, %v2024_v26  ;;  %763 = vrot.lane.b32.xlu1 %v7719_v9, %s11984_s28  ;;  %769 = vrot.lane.b32.xlu0 %v7719_v9, %s11987_s30  ;;  %v3756_v26 = vrot.slane %v620_v60, 4  ;;  %s12047_s28 = smov 26  }
 0x28d   : > { %757 = vrot.lane.b32.xlu2 %v7719_v9, %s11983_s27  ;;  %s12044_s27 = smov 28  }
 0x28e   : > { %v638_v57 = vpop.permute.xlu1 %637  ;;  %v644_v10 = vpop.permute.xlu0 %643  ;;  %v2013_v40 = vsel %vm954_vm1, %v8461_v50, %v2012_v19  ;;  %v3757_v19 = vsel %vm954_vm1, %v8364_v36, %v3756_v26 }
 0x28f   : > { %v3766_v3 = vrot.slane %v638_v57, 4  ;;  %v660_v54 = vpop.permute.xlu2 %659  ;;  %v8499_v26 = vperm.slane %v3757_v19, %v6731_v22 }
 0x290   : > { %v1998_v12 = vrot.slane %v660_v54, 4 }
 0x291   : > { %v3767_v17 = vsel %vm954_vm1, %v3766_v3, %v8410_v46  ;;  %11991 = vst [vmem:[#allocation199_spill] sm:$0xff] %v8499_v26 }
 0x292   : > { %v3773_v43 = vperm.slane %v3767_v17, %v6731_v22 }
 0x294   : > { %773 = vrot.lane.b32.xlu1 %v7682_v52, %s11988_s4  ;;  %779 = vrot.lane.b32.xlu0 %v7682_v52, %s11989_s12  ;;  %v8482_v31 = vsel %vm954_vm1, %v3773_v43, %v3804_v24  ;;  %v3768_v24 = vrot.slane %v8410_v46, 4 }
 0x295   : > { %767 = vrot.lane.b32.xlu2 %v7682_v52, %s11987_s30  ;;  %s12052_s30 = smov 24  }
 0x296   : > { %v648_v60 = vpop.permute.xlu1 %647  ;;  %v654_v3 = vpop.permute.xlu0 %653 }
 0x297   : > { %v2000_v17 = vrot.slane %v648_v60, 4  ;;  %v8488_v25 = vpop.permute.xlu2 %667  ;;  %v1986_v1 = vrot.slane %v654_v3, 4  ;;  %v1989_v13 = vsel %vm954_vm1, %v654_v3, %v1988_v7  ;;  %v1999_v44 = vsel %vm954_vm1, %v1998_v12, %v648_v60 }
 0x298   : > { %v8492_v14 = vperm.slane %v1989_v13, %v6731_v22  ;;  %v3769_v13 = vsel %vm954_vm1, %v638_v57, %v3768_v24  ;;  %v8510_v46 = vperm.slane %v1999_v44, %v6731_v22  ;;  %v3816_v44 = vrot.slane %v8499_v26, 4 }
 0x299   : > { %v2001_v21 = vsel %vm954_vm1, %v660_v54, %v2000_v17  ;;  %v1987_v36 = vsel %vm954_vm1, %v1986_v1, %v642_v47  ;;  %v2021_v1 = vperm.slane %v2013_v40, %v6797_v2  ;;  %v3780_v54 = vrot.slane %v644_v10, 4 }
 0x29a   : > { %11990 = vst [vmem:[#allocation198_spill] sm:$0xff] %v8492_v14  ;;  %v8502_v18 = vperm.slane %v2001_v21, %v6731_v22  ;;  %v8505_v49 = vperm.slane %v1987_v36, %v6731_v22  ;;  %v2048_v7 = vrot.slane %v8492_v14, 4  ;;  %v3802_v21 = vrot.slane %v3773_v43, 4 }
 0x29b   : > { %v3792_v57 = vrot.slane %v8441_v58, 4  ;;  %v2033_v17 = vperm.slane %v2025_v38, %v6797_v2  ;;  %v8528_v40 = vperm.slane %v3769_v13, %v6731_v22 }
 0x29c   : > { %11992 = vst [vmem:[#allocation200_spill] sm:$0xff] %v8502_v18  ;;  %v2036_v12 = vrot.slane %v8505_v49, 4  ;;  %781 = vrot.lane.b32.xlu1 %v7719_v9, %s11989_s12  ;;  %787 = vrot.lane.b32.xlu0 %v7719_v9, %s11993_s14  ;;  %v2049_v47 = vsel %vm954_vm1, %v8502_v18, %v2048_v7  ;;  %v2064_v18 = vrot.slane %v2021_v1, 4  ;;  %s12062_s12 = smov 20  }
 0x29d   : > { %775 = vrot.lane.b32.xlu2 %v7719_v9, %s11988_s4  ;;  %11994 = vst [vmem:[#allocation201_spill] sm:$0xff] %v8528_v40  ;;  %v2057_v61 = vperm.slane %v2049_v47, %v6797_v2  ;;  %v2072_v53 = vrot.slane %v2033_v17, 4  ;;  %s12053_s4 = smov 22  }
 0x29e   : > { %v656_v19 = vpop.permute.xlu1 %655  ;;  %v662_v60 = vpop.permute.xlu0 %661  ;;  %v2037_v3 = vsel %vm954_vm1, %v8510_v46, %v2036_v12 }
 0x29f   : > { %v3778_v24 = vrot.slane %v656_v19, 4  ;;  %v3781_v43 = vsel %vm954_vm1, %v656_v19, %v3780_v54  ;;  %v8531_v36 = vpop.permute.xlu2 %677  ;;  %v3790_v7 = vrot.slane %v662_v60, 4  ;;  %v3793_v14 = vsel %vm954_vm1, %v662_v60, %v3792_v57 }
 0x2a0   : > { %v8534_v26 = vperm.slane %v3781_v43, %v6731_v22  ;;  %v2045_v13 = vperm.slane %v2037_v3, %v6797_v2  ;;  %v3803_v54 = vsel %vm954_vm1, %v3802_v21, %v3761_v11  ;;  %v8547_v57 = vperm.slane %v3793_v14, %v6731_v22 }
 0x2a1   : > { %v3779_v12 = vsel %vm954_vm1, %v3778_v24, %v644_v10  ;;  %v3791_v38 = vsel %vm954_vm1, %v3790_v7, %v8441_v58  ;;  %v3817_v58 = vsel %vm954_vm1, %v8528_v40, %v3816_v44  ;;  %v8559_v11 = vsel %vm954_vm1, %v2057_v61, %v2072_v53 }
 0x2a2   : > { %11995 = vst [vmem:[#allocation202_spill] sm:$0xff] %v8534_v26  ;;  %v3785_v19 = vperm.slane %v3779_v12, %v6731_v22  ;;  %v3840_v23 = vrot.slane %v8534_v26, 4  ;;  %v3797_v43 = vperm.slane %v3791_v38, %v6731_v22  ;;  %v2062_v47 = vrot.slane %v2045_v13, 4 }
 0x2a3   : > { %11996 = vst [vmem:[#allocation203_spill] sm:$0xff] %v8547_v57  ;;  %v8550_v10 = vsel %vm954_vm1, %v2045_v13, %v2064_v18  ;;  %v8562_v14 = vperm.slane %v3803_v54, %v6797_v2  ;;  %v2070_v44 = vrot.slane %v2057_v61, 4  ;;  %v3813_v24 = vperm.slane %v8482_v31, %v6797_v2 }
 0x2a4   : > { %11997 = vst [vmem:[#allocation204_spill] sm:$0xff] %v8550_v10  ;;  %v3828_v60 = vrot.slane %v3785_v19, 4  ;;  %v3826_v3 = vrot.slane %v3797_v43, 4  ;;  %791 = vrot.lane.b32.xlu1 %v7682_v52, %s11998_s15  ;;  %797 = vrot.lane.b32.xlu0 %v7682_v52, %s11999_s16  ;;  %v3841_v18 = vsel %vm954_vm1, %v8547_v57, %v3840_v23  ;;  %v8569_v21 = vsel %vm954_vm1, %v2062_v47, %v2021_v1 }
 0x2a5   : > { %12000 = vst [vmem:[#allocation205_spill] sm:$0xff] %v8559_v11  ;;  %785 = vrot.lane.b32.xlu2 %v7682_v52, %s11993_s14  ;;  %v8576_v13 = vperm.slane %v3817_v58, %v6797_v2  ;;  %v8581_v54 = vsel %vm954_vm1, %v2070_v44, %v2033_v17  ;;  %v3852_v61 = vrot.slane %v8562_v14, 4  ;;  %v8588_v31 = vperm.slane %v3841_v18, %v6797_v2  ;;  %s12070_s14 = smov 18  }
 0x2a6   : > { %12001 = vst [vmem:[#allocation206_spill] sm:$0xff] %v8562_v14  ;;  %v666_v7 = vpop.permute.xlu1 %665  ;;  %v672_v12 = vpop.permute.xlu0 %671  ;;  %v3827_v53 = vsel %vm954_vm1, %v3826_v3, %v3785_v19  ;;  %v3829_v38 = vsel %vm954_vm1, %v3797_v43, %v3828_v60  ;;  %v3856_v47 = vrot.slane %v3813_v24, 4  ;;  %v3868_v18 = vrot.slane %v8488_v25, 4 }
 0x2a7   : > { %12002 = vst [vmem:[#allocation207_spill] sm:$0xff] %v8569_v21  ;;  %v8578_v23 = vpop.permute.xlu2 %685  ;;  %v8584_v1 = vperm.slane %v3827_v53, %v6797_v2  ;;  %v3837_v19 = vperm.slane %v3829_v38, %v6797_v2  ;;  %v3864_v58 = vrot.slane %v8576_v13, 4  ;;  %v2076_v44 = vrot.slane %v666_v7, 4 }
 0x2a8   : > { %12003 = vst [vmem:[#allocation208_spill] sm:$0xff] %v8576_v13 }
 0x2a9   : > { %12004 = vst [vmem:[#allocation209_spill] sm:$0xff] %v8581_v54  ;;  %v8593_v43 = vsel %vm954_vm1, %v8584_v1, %v3852_v61  ;;  %v3854_v60 = vrot.slane %v3837_v19, 4  ;;  %v8597_v17 = vsel %vm954_vm1, %v3837_v19, %v3856_v47  ;;  %v8605_v3 = vsel %vm954_vm1, %v8588_v31, %v3864_v58 }
 0x2aa   : > { %12005 = vst [vmem:[#allocation210_spill] sm:$0xff] %v8584_v1  ;;  %v2074_v58 = vrot.slane %v8531_v36, 4 }
 0x2ab   : > { %12006 = vst [vmem:[#allocation211_spill] sm:$0xff] %v8588_v31  ;;  %v8611_v53 = vsel %vm954_vm1, %v3854_v60, %v3813_v24 }
 0x2ac   : > { %12007 = vst [vmem:[#allocation212_spill] sm:$0xff] %v8593_v43  ;;  %799 = vrot.lane.b32.xlu1 %v7719_v9, %s11999_s16  ;;  %805 = vrot.lane.b32.xlu0 %v7719_v9, %s6498_s3  ;;  %v2075_v57 = vsel %vm954_vm1, %v2074_v58, %v666_v7  ;;  %s12075_s16 = smov 14  }
 0x2ad   : > { %12008 = vst [vmem:[#allocation213_spill] sm:$0xff] %v8597_v17  ;;  %793 = vrot.lane.b32.xlu2 %v7719_v9, %s11998_s15  ;;  %s12071_s15 = smov 16  }
 0x2ae   : > { %12009 = vst [vmem:[#allocation214_spill] sm:$0xff] %v8605_v3  ;;  %v674_v38 = vpop.permute.xlu1 %673  ;;  %v680_v61 = vpop.permute.xlu0 %679  ;;  %v2077_v3 = vsel %vm954_vm1, %v8531_v36, %v2076_v44 }
 0x2af   : > { %12010 = vst [vmem:[#allocation215_spill] sm:$0xff] %v8611_v53  ;;  %v3880_v19 = vrot.slane %v674_v38, 4  ;;  %v696_v47 = vpop.permute.xlu2 %695  ;;  %v3869_v13 = vsel %vm954_vm1, %v680_v61, %v3868_v18  ;;  %v2085_v18 = vperm.slane %v2077_v3, %v6731_v22 }
 0x2b0   : > { %v8615_v26 = vperm.slane %v3869_v13, %v6731_v22  ;;  %v2088_v13 = vrot.slane %v672_v12, 4 }
 0x2b1   : > { %v3881_v31 = vsel %vm954_vm1, %v8578_v23, %v3880_v19  ;;  %v2136_v40 = vrot.slane %v2085_v18, 4 }
 0x2b2   : > { %12011 = vst [vmem:[#allocation216_spill] sm:$0xff] %v8615_v26  ;;  %v8623_v24 = vperm.slane %v3881_v31, %v6731_v22  ;;  %v3928_v60 = vrot.slane %v8615_v26, 4  ;;  %v2081_v31 = vperm.slane %v2075_v57, %v6731_v22 }
 0x2b4   : > { %12012 = vst [vmem:[#allocation217_spill] sm:$0xff] %v8623_v24  ;;  %809 = vrot.lane.b32.xlu1 %v7682_v52, %s12013_s17  ;;  %815 = vrot.lane.b32.xlu0 %v7682_v52, %s12014_s19  ;;  %v8634_v36 = vsel %vm954_vm1, %v8623_v24, %v3928_v60  ;;  %v2124_v43 = vrot.slane %v2081_v31, 4 }
 0x2b5   : > { %803 = vrot.lane.b32.xlu2 %v7682_v52, %s6498_s3  ;;  %s12015_s3 = smov 44  }
 0x2b6   : > { %v684_v44 = vpop.permute.xlu1 %683  ;;  %v690_v7 = vpop.permute.xlu0 %689 }
 0x2b7   : > { %v2086_v19 = vrot.slane %v684_v44, 4  ;;  %v2089_v3 = vsel %vm954_vm1, %v684_v44, %v2088_v13  ;;  %v704_v58 = vpop.permute.xlu2 %703  ;;  %v3866_v13 = vrot.slane %v680_v61, 4  ;;  %v2112_v61 = vrot.slane %v696_v47, 4 }
 0x2b8   : > { %v2097_v26 = vperm.slane %v2089_v3, %v6731_v22  ;;  %v2100_v1 = vrot.slane %v690_v7, 4 }
 0x2b9   : > { %v2087_v17 = vsel %vm954_vm1, %v2086_v19, %v672_v12  ;;  %v3878_v19 = vrot.slane %v8578_v23, 4 }
 0x2ba   : > { %v2093_v60 = vperm.slane %v2087_v17, %v6731_v22  ;;  %v2137_v24 = vsel %vm954_vm1, %v2097_v26, %v2136_v40  ;;  %v3867_v40 = vsel %vm954_vm1, %v3866_v13, %v8488_v25  ;;  %v2134_v53 = vrot.slane %v2097_v26, 4 }
 0x2bb   : > { %v8664_v14 = vperm.slane %v3867_v40, %v6731_v22 }
 0x2bc   : > { %817 = vrot.lane.b32.xlu1 %v7719_v9, %s12014_s19  ;;  %823 = vrot.lane.b32.xlu0 %v7719_v9, %s12015_s3  ;;  %v2125_v57 = vsel %vm954_vm1, %v2093_v60, %v2124_v43  ;;  %v2122_v17 = vrot.slane %v2093_v60, 4  ;;  %v3879_v43 = vsel %vm954_vm1, %v3878_v19, %v674_v38  ;;  %v2135_v4 = vsel %vm954_vm1, %v2134_v53, %v2085_v18  ;;  %s12077_s19 = smov 10  }
 0x2bd   : > { %811 = vrot.lane.b32.xlu2 %v7719_v9, %s12013_s17  ;;  %12018 = vst [vmem:[#allocation218_spill] sm:$0xff] %v8664_v14  ;;  %v8674_v40 = vperm.slane %v3879_v43, %v6731_v22  ;;  %v3916_v8 = vrot.slane %v8664_v14, 4  ;;  %v2133_v53 = vperm.slane %v2125_v57, %v6797_v2  ;;  %v8690_v18 = vperm.slane %v2135_v4, %v6797_v2  ;;  %s12076_s17 = smov 12  }
 0x2be   : > { %v692_v44 = vpop.permute.xlu1 %691  ;;  %v8651_v3 = vpop.permute.xlu0 %697  ;;  %v2123_v26 = vsel %vm954_vm1, %v2122_v17, %v2081_v31  ;;  %v2145_v4 = vperm.slane %v2137_v24, %v6797_v2 }
 0x2bf   : > { %v8653_v12 = vpop.permute.xlu2 %713  ;;  %v3892_v25 = vrot.slane %v692_v44, 4  ;;  %12019 = vst [vmem:[#allocation219_spill] sm:$0xff] %v8674_v40  ;;  %v8683_v17 = vperm.slane %v2123_v26, %v6797_v2  ;;  %v2180_v14 = vrot.slane %v8690_v18, 4 }
 0x2c0   : > { %12021 = vst [vmem:[#allocation221_spill] sm:$0xff] %v8690_v18 }
 0x2c1   : > { %12020 = vst [vmem:[#allocation220_spill] sm:$0xff] %v8683_v17 }
 0x2c4   : > { %827 = vrot.lane.b32.xlu1 %v7682_v52, %s12016_s20  ;;  %833 = vrot.lane.b32.xlu0 %v7682_v52, %s12017_s21 }
 0x2c5   : > { %821 = vrot.lane.b32.xlu2 %v7682_v52, %s12015_s3  ;;  %s12081_s3 = smov 8  }
 0x2c6   : > { %v702_v60 = vpop.permute.xlu1 %701  ;;  %v708_v23 = vpop.permute.xlu0 %707 }
 0x2c7   : > { %v2098_v13 = vrot.slane %v702_v60, 4  ;;  %v2101_v54 = vsel %vm954_vm1, %v702_v60, %v2100_v1  ;;  %v8670_v11 = vpop.permute.xlu2 %721  ;;  %v2110_v10 = vrot.slane %v708_v23, 4  ;;  %v2113_v38 = vsel %vm954_vm1, %v708_v23, %v2112_v61 }
 0x2c8   : > { %v2109_v19 = vperm.slane %v2101_v54, %v6731_v22  ;;  %v2121_v21 = vperm.slane %v2113_v38, %v6731_v22  ;;  %v3890_v54 = vrot.slane %v704_v58, 4  ;;  %v3893_v38 = vsel %vm954_vm1, %v704_v58, %v3892_v25 }
 0x2c9   : > { %v2099_v31 = vsel %vm954_vm1, %v2098_v13, %v690_v7  ;;  %v2111_v1 = vsel %vm954_vm1, %v2110_v10, %v696_v47  ;;  %v3904_v58 = vrot.slane %v8651_v3, 4 }
 0x2ca   : > { %v2105_v61 = vperm.slane %v2099_v31, %v6731_v22  ;;  %v2160_v60 = vrot.slane %v2109_v19, 4  ;;  %v2117_v43 = vperm.slane %v2111_v1, %v6731_v22  ;;  %v2158_v23 = vrot.slane %v2121_v21, 4 }
 0x2cb   : > { %v3891_v26 = vsel %vm954_vm1, %v3890_v54, %v692_v44 }
 0x2cc   : > { %v2148_v7 = vrot.slane %v2105_v61, 4  ;;  %v2146_v13 = vrot.slane %v2117_v43, 4  ;;  %v2161_v10 = vsel %vm954_vm1, %v2121_v21, %v2160_v60  ;;  %835 = vrot.lane.b32.xlu1 %v7719_v9, %s12017_s21  ;;  %841 = vrot.lane.b32.xlu0 %v7719_v9, %s12022_s22  ;;  %v2159_v47 = vsel %vm954_vm1, %v2158_v23, %v2109_v19 }
 0x2cd   : > { %829 = vrot.lane.b32.xlu2 %v7719_v9, %s12016_s20  ;;  %v2169_v57 = vperm.slane %v2161_v10, %v6797_v2  ;;  %v8705_v21 = vperm.slane %v3893_v38, %v6731_v22  ;;  %v2172_v19 = vrot.slane %v8683_v17, 4  ;;  %v8719_v38 = vperm.slane %v2159_v47, %v6797_v2  ;;  %s12597_s20 = smov 1  }
 0x2ce   : > { %v710_v25 = vpop.permute.xlu1 %709  ;;  %v8707_v31 = vpop.permute.xlu0 %715  ;;  %v2147_v1 = vsel %vm954_vm1, %v2146_v13, %v2105_v61  ;;  %v2149_v44 = vsel %vm954_vm1, %v2117_v43, %v2148_v7  ;;  %v8722_v10 = vperm.slane %v3891_v26, %v6731_v22  ;;  %v2176_v13 = vrot.slane %v2133_v53, 4 }
 0x2cf   : > { %12023 = vst [vmem:[#allocation222_spill] sm:$0xff] %v8705_v21  ;;  %v3902_v60 = vrot.slane %v710_v25, 4  ;;  %v3905_v23 = vsel %vm954_vm1, %v710_v25, %v3904_v58  ;;  %v8713_v54 = vpop.permute.xlu2 %731  ;;  %v8716_v24 = vperm.slane %v2147_v1, %v6797_v2  ;;  %v2157_v61 = vperm.slane %v2149_v44, %v6797_v2 }
 0x2d0   : > { %12024 = vst [vmem:[#allocation223_spill] sm:$0xff] %v8719_v38  ;;  %v8729_v7 = vperm.slane %v3905_v23, %v6731_v22  ;;  %v2182_v47 = vrot.slane %v2169_v57, 4  ;;  %v2184_v44 = vrot.slane %v2145_v4, 4  ;;  %v3952_v18 = vrot.slane %v8705_v21, 4 }
 0x2d1   : > { %12025 = vst [vmem:[#allocation224_spill] sm:$0xff] %v8722_v10  ;;  %v3903_v43 = vsel %vm954_vm1, %v3902_v60, %v8651_v3  ;;  %v8733_v58 = vsel %vm954_vm1, %v8716_v24, %v2172_v19  ;;  %v8739_v26 = vsel %vm954_vm1, %v2157_v61, %v2176_v13  ;;  %v2174_v1 = vrot.slane %v2157_v61, 4 }
 0x2d2   : > { %12026 = vst [vmem:[#allocation225_spill] sm:$0xff] %v8729_v7  ;;  %v8736_v25 = vperm.slane %v3903_v43, %v6731_v22  ;;  %v8743_v3 = vsel %vm954_vm1, %v2182_v47, %v2145_v4  ;;  %v8747_v60 = vsel %vm954_vm1, %v8719_v38, %v2180_v14  ;;  %v3940_v19 = vrot.slane %v8722_v10, 4 }
 0x2d3   : > { %12027 = vst [vmem:[#allocation226_spill] sm:$0xff] %v8733_v58  ;;  %v8755_v23 = vsel %vm954_vm1, %v2174_v1, %v2133_v53  ;;  %v8758_v61 = vsel %vm954_vm1, %v2169_v57, %v2184_v44  ;;  %v3917_v4 = vsel %vm954_vm1, %v8674_v40, %v3916_v8  ;;  %v3953_v14 = vsel %vm954_vm1, %v8729_v7, %v3952_v18 }
 0x2d4   : > { %12028 = vst [vmem:[#allocation227_spill] sm:$0xff] %v8736_v25  ;;  %845 = vrot.lane.b32.xlu1 %v7682_v52, %s12032_s23  ;;  %851 = vrot.lane.b32.xlu0 %v7682_v52, %s12033_s24  ;;  %v3941_v47 = vsel %vm954_vm1, %v8736_v25, %v3940_v19  ;;  %v2198_v53 = vrot.slane %v8713_v54, 4  ;;  %v8772_v44 = vperm.slane %v3917_v4, %v6797_v2 }
 0x2d5   : > { %12029 = vst [vmem:[#allocation228_spill] sm:$0xff] %v8739_v26  ;;  %839 = vrot.lane.b32.xlu2 %v7682_v52, %s12022_s22  ;;  %v3937_v8 = vperm.slane %v8634_v36, %v6797_v2  ;;  %v8780_v7 = vperm.slane %v3941_v47, %v6797_v2  ;;  %v3961_v10 = vperm.slane %v3953_v14, %v6797_v2  ;;  %v3992_v47 = vrot.slane %v8670_v11, 4 }
 0x2d6   : > { %12030 = vst [vmem:[#allocation229_spill] sm:$0xff] %v8743_v3  ;;  %v720_v13 = vpop.permute.xlu1 %719  ;;  %v726_v43 = vpop.permute.xlu0 %725  ;;  %v3968_v25 = vrot.slane %v8772_v44, 4 }
 0x2d7   : > { %12031 = vst [vmem:[#allocation230_spill] sm:$0xff] %v8747_v60  ;;  %v8769_v1 = vpop.permute.xlu2 %739  ;;  %v2186_v57 = vrot.slane %v726_v43, 4  ;;  %v2199_v21 = vsel %vm954_vm1, %v2198_v53, %v720_v13  ;;  %v3976_v36 = vrot.slane %v3937_v8, 4  ;;  %v3980_v53 = vrot.slane %v8707_v31, 4 }
 0x2d8   : > { %12034 = vst [vmem:[#allocation231_spill] sm:$0xff] %v8755_v23  ;;  %v2205_v4 = vperm.slane %v2199_v21, %v6731_v22  ;;  %v8799_v14 = vsel %vm954_vm1, %v8780_v7, %v3968_v25 }
 0x2d9   : > { %12035 = vst [vmem:[#allocation232_spill] sm:$0xff] %v8758_v61  ;;  %v2187_v18 = vsel %vm954_vm1, %v2186_v57, %v8653_v12 }
 0x2da   : > { %12036 = vst [vmem:[#allocation233_spill] sm:$0xff] %v8772_v44  ;;  %v8783_v19 = vperm.slane %v2187_v18, %v6731_v22  ;;  %v8805_v44 = vsel %vm954_vm1, %v3961_v10, %v3976_v36 }
 0x2db   : > { %12037 = vst [vmem:[#allocation234_spill] sm:$0xff] %v8780_v7  ;;  %v3974_v7 = vrot.slane %v3961_v10, 4 }
 0x2dc   : > { %v2236_v40 = vrot.slane %v8783_v19, 4  ;;  %853 = vrot.lane.b32.xlu1 %v7719_v9, %s12033_s24  ;;  %859 = vrot.lane.b32.xlu0 %v7719_v9, %s12038_s25  ;;  %12039 = vst [vmem:[#allocation235_spill] sm:$0xff] %v8799_v14 }
 0x2dd   : > { %847 = vrot.lane.b32.xlu2 %v7719_v9, %s12032_s23  ;;  %12040 = vst [vmem:[#allocation236_spill] sm:$0xff] %v8805_v44 }
 0x2de   : > { %v728_v21 = vpop.permute.xlu1 %727  ;;  %v734_v57 = vpop.permute.xlu0 %733  ;;  %v8802_v18 = vsel %vm954_vm1, %v2205_v4, %v2236_v40 }
 0x2df   : > { %v3978_v61 = vrot.slane %v728_v21, 4  ;;  %v3981_v60 = vsel %vm954_vm1, %v728_v21, %v3980_v53  ;;  %v750_v3 = vpop.permute.xlu2 %749  ;;  %v3990_v38 = vrot.slane %v734_v57, 4  ;;  %v3993_v23 = vsel %vm954_vm1, %v734_v57, %v3992_v47 }
 0x2e0   : > { %v3989_v26 = vperm.slane %v3981_v60, %v6731_v22  ;;  %v4001_v44 = vperm.slane %v3993_v23, %v6731_v22  ;;  %v2210_v58 = vrot.slane %v750_v3, 4 }
 0x2e1   : > { %v3979_v25 = vsel %vm954_vm1, %v3978_v61, %v8707_v31  ;;  %v3991_v14 = vsel %vm954_vm1, %v3990_v38, %v8670_v11  ;;  %v2188_v31 = vrot.slane %v8653_v12, 4  ;;  %v8833_v38 = vsel %vm954_vm1, %v3974_v7, %v3937_v8 }
 0x2e2   : > { %v8815_v40 = vperm.slane %v3979_v25, %v6731_v22  ;;  %v4040_v36 = vrot.slane %v3989_v26, 4  ;;  %v8820_v21 = vperm.slane %v3991_v14, %v6731_v22  ;;  %12045 = vst [vmem:[#allocation239_spill] sm:$0xff] %v8833_v38  ;;  %v2200_v61 = vrot.slane %v720_v13, 4 }
 0x2e3   : > { %v2189_v47 = vsel %vm954_vm1, %v726_v43, %v2188_v31  ;;  %v2234_v25 = vrot.slane %v2205_v4, 4  ;;  %v4004_v7 = vrot.slane %v8769_v1, 4  ;;  %v4038_v8 = vrot.slane %v4001_v44, 4 }
 0x2e4   : > { %12041 = vst [vmem:[#allocation237_spill] sm:$0xff] %v8815_v40  ;;  %v4028_v53 = vrot.slane %v8815_v40, 4  ;;  %863 = vrot.lane.b32.xlu1 %v7682_v52, %s12043_s26  ;;  %869 = vrot.lane.b32.xlu0 %v7682_v52, %s12044_s27  ;;  %v8827_v11 = vsel %vm954_vm1, %v4001_v44, %v4040_v36  ;;  %v8841_v57 = vperm.slane %v2189_v47, %v6731_v22 }
 0x2e5   : > { %12042 = vst [vmem:[#allocation238_spill] sm:$0xff] %v8820_v21  ;;  %857 = vrot.lane.b32.xlu2 %v7682_v52, %s12038_s25  ;;  %v2201_v12 = vsel %vm954_vm1, %v8713_v54, %v2200_v61 }
 0x2e6   : > { %v738_v10 = vpop.permute.xlu1 %737  ;;  %v8835_v60 = vpop.permute.xlu0 %743  ;;  %v4029_v23 = vsel %vm954_vm1, %v8820_v21, %v4028_v53  ;;  %12046 = vst [vmem:[#allocation240_spill] sm:$0xff] %v8841_v57  ;;  %v8853_v13 = vperm.slane %v2201_v12, %v6731_v22  ;;  %v2248_v43 = vrot.slane %v8841_v57, 4  ;;  %v2235_v12 = vsel %vm954_vm1, %v2234_v25, %v8783_v19 }
 0x2e7   : > { %v758_v14 = vpop.permute.xlu2 %757  ;;  %v2212_v36 = vrot.slane %v738_v10, 4 }
 0x2e8   : > { %12048 = vst [vmem:[#allocation241_spill] sm:$0xff] %v8853_v13  ;;  %v4014_v53 = vrot.slane %v758_v14, 4 }
 0x2e9   : > { %v2213_v40 = vsel %vm954_vm1, %v750_v3, %v2212_v36  ;;  %v4039_v36 = vsel %vm954_vm1, %v4038_v8, %v3989_v26  ;;  %v2249_v3 = vsel %vm954_vm1, %v8853_v13, %v2248_v43  ;;  %v2224_v26 = vrot.slane %v8835_v60, 4 }
 0x2ea   : > { %v8874_v19 = vperm.slane %v2213_v40, %v6731_v22  ;;  %v8892_v40 = vperm.slane %v2235_v12, %v6797_v2  ;;  %v2245_v12 = vperm.slane %v8802_v18, %v6797_v2 }
 0x2ec   : > { %871 = vrot.lane.b32.xlu1 %v7719_v9, %s12044_s27  ;;  %877 = vrot.lane.b32.xlu0 %v7719_v9, %s12047_s28  ;;  %12050 = vst [vmem:[#allocation243_spill] sm:$0xff] %v8874_v19 }
 0x2ed   : > { %865 = vrot.lane.b32.xlu2 %v7719_v9, %s12043_s26  ;;  %12054 = vst [vmem:[#allocation245_spill] sm:$0xff] %v8892_v40 }
 0x2ee   : > { %v746_v54 = vpop.permute.xlu1 %745  ;;  %v752_v4 = vpop.permute.xlu0 %751 }
 0x2ef   : > { %v4016_v31 = vrot.slane %v746_v54, 4  ;;  %v8856_v61 = vpop.permute.xlu2 %767  ;;  %v4002_v47 = vrot.slane %v752_v4, 4  ;;  %v4005_v38 = vsel %vm954_vm1, %v752_v4, %v4004_v7  ;;  %v4015_v57 = vsel %vm954_vm1, %v4014_v53, %v746_v54 }
 0x2f0   : > { %v4013_v21 = vperm.slane %v4005_v38, %v6731_v22  ;;  %v2211_v38 = vsel %vm954_vm1, %v2210_v58, %v738_v10  ;;  %v8895_v10 = vperm.slane %v4039_v36, %v6797_v2 }
 0x2f1   : > { %v4017_v44 = vsel %vm954_vm1, %v758_v14, %v4016_v31  ;;  %v4003_v63 = vsel %vm954_vm1, %v4002_v47, %v8769_v1  ;;  %v4037_v14 = vperm.slane %v4029_v23, %v6797_v2  ;;  %v8880_v1 = vperm.slane %v4015_v57, %v6731_v22 }
 0x2f2   : > { %v4025_v28 = vperm.slane %v4017_v44, %v6731_v22  ;;  %v8869_v17 = vperm.slane %v4003_v63, %v6731_v22  ;;  %v4064_v7 = vrot.slane %v4013_v21, 4  ;;  %12055 = vst [vmem:[#allocation246_spill] sm:$0xff] %v8895_v10  ;;  %v2217_v57 = vperm.slane %v2211_v38, %v6731_v22 }
 0x2f3   : > { %12051 = vst [vmem:[#allocation244_spill] sm:$0xff] %v8880_v1  ;;  %v4049_v44 = vperm.slane %v8827_v11, %v6797_v2  ;;  %v4080_v38 = vrot.slane %v4037_v14, 4  ;;  %v4084_v18 = vrot.slane %v8895_v10, 4 }
 0x2f4   : > { %12049 = vst [vmem:[#allocation242_spill] sm:$0xff] %v8869_v17  ;;  %v4062_v25 = vrot.slane %v4025_v28, 4  ;;  %v4052_v63 = vrot.slane %v8869_v17, 4  ;;  %881 = vrot.lane.b32.xlu1 %v7682_v52, %s12052_s30  ;;  %887 = vrot.lane.b32.xlu0 %v7682_v52, %s12053_s4  ;;  %v4065_v58 = vsel %vm954_vm1, %v4025_v28, %v4064_v7  ;;  %v8901_v28 = vperm.slane %v2249_v3, %v6797_v2 }
 0x2f5   : > { %875 = vrot.lane.b32.xlu2 %v7682_v52, %s12047_s28  ;;  %v4073_v23 = vperm.slane %v4065_v58, %v6797_v2  ;;  %v2260_v58 = vrot.slane %v2217_v57, 4 }
 0x2f6   : > { %v4063_v43 = vsel %vm954_vm1, %v4062_v25, %v4013_v21  ;;  %v756_v8 = vpop.permute.xlu1 %755  ;;  %v762_v54 = vpop.permute.xlu0 %761  ;;  %12056 = vst [vmem:[#allocation247_spill] sm:$0xff] %v8901_v28  ;;  %v4053_v4 = vsel %vm954_vm1, %v8880_v1, %v4052_v63  ;;  %v2272_v21 = vrot.slane %v8874_v19, 4 }
 0x2f7   : > { %v2222_v53 = vrot.slane %v756_v8, 4  ;;  %v2225_v31 = vsel %vm954_vm1, %v756_v8, %v2224_v26  ;;  %v8906_v47 = vpop.permute.xlu2 %775  ;;  %v4061_v36 = vperm.slane %v4053_v4, %v6797_v2  ;;  %v8920_v25 = vperm.slane %v4063_v43, %v6797_v2 }
 0x2f8   : > { %v8914_v7 = vperm.slane %v2225_v31, %v6731_v22  ;;  %v4086_v63 = vrot.slane %v4073_v23, 4 }
 0x2f9   : > { %v2223_v3 = vsel %vm954_vm1, %v2222_v53, %v8835_v60  ;;  %12058 = vst [vmem:[#allocation249_spill] sm:$0xff] %v8920_v25  ;;  %v8927_v8 = vsel %vm954_vm1, %v4061_v36, %v4080_v38  ;;  %v2296_v60 = vrot.slane %v8901_v28, 4  ;;  %v4078_v53 = vrot.slane %v4061_v36, 4 }
 0x2fa   : > { %12057 = vst [vmem:[#allocation248_spill] sm:$0xff] %v8914_v7  ;;  %v2229_v11 = vperm.slane %v2223_v3, %v6731_v22  ;;  %v2273_v26 = vsel %vm954_vm1, %v8914_v7, %v2272_v21  ;;  %v8934_v43 = vsel %vm954_vm1, %v4086_v63, %v4049_v44  ;;  %v8943_v38 = vsel %vm954_vm1, %v8920_v25, %v4084_v18 }
 0x2fb   : > { %12059 = vst [vmem:[#allocation250_spill] sm:$0xff] %v8927_v8  ;;  %v8930_v4 = vperm.slane %v2273_v26, %v6797_v2  ;;  %v4088_v3 = vrot.slane %v4049_v44, 4 }
 0x2fc   : > { %12061 = vst [vmem:[#allocation252_spill] sm:$0xff] %v8934_v43  ;;  %v2258_v31 = vrot.slane %v2229_v11, 4  ;;  %889 = vrot.lane.b32.xlu1 %v7719_v9, %s12053_s4  ;;  %895 = vrot.lane.b32.xlu0 %v7719_v9, %s12062_s12  ;;  %v2261_v21 = vsel %vm954_vm1, %v2229_v11, %v2260_v58  ;;  %v2288_v58 = vrot.slane %v2245_v12, 4  ;;  %v8956_v11 = vsel %vm954_vm1, %v4078_v53, %v4037_v14 }
 0x2fd   : > { %12060 = vst [vmem:[#allocation251_spill] sm:$0xff] %v8930_v4  ;;  %883 = vrot.lane.b32.xlu2 %v7719_v9, %s12052_s30  ;;  %v2269_v36 = vperm.slane %v2261_v21, %v6797_v2  ;;  %v8950_v63 = vsel %vm954_vm1, %v8930_v4, %v2296_v60  ;;  %v8959_v44 = vsel %vm954_vm1, %v4073_v23, %v4088_v3  ;;  %v2284_v60 = vrot.slane %v8892_v40, 4 }
 0x2fe   : > { %12063 = vst [vmem:[#allocation253_spill] sm:$0xff] %v8943_v38  ;;  %v764_v26 = vpop.permute.xlu1 %763  ;;  %v8952_v43 = vpop.permute.xlu0 %769  ;;  %v2259_v10 = vsel %vm954_vm1, %v2258_v31, %v2217_v57  ;;  %v2300_v23 = vrot.slane %v762_v54, 4 }
 0x2ff   : > { %12064 = vst [vmem:[#allocation254_spill] sm:$0xff] %v8950_v63  ;;  %v8961_v18 = vpop.permute.xlu2 %785  ;;  %v8964_v21 = vperm.slane %v2259_v10, %v6797_v2  ;;  %v2286_v38 = vrot.slane %v2269_v36, 4  ;;  %v8968_v25 = vsel %vm954_vm1, %v2269_v36, %v2288_v58  ;;  %v2312_v10 = vrot.slane %v8856_v61, 4 }
 0x300   : > { %12065 = vst [vmem:[#allocation255_spill] sm:$0xff] %v8956_v11 }
 0x301   : > { %12066 = vst [vmem:[#allocation256_spill] sm:$0xff] %v8959_v44  ;;  %v8972_v57 = vsel %vm954_vm1, %v8964_v21, %v2284_v60  ;;  %v8975_v14 = vsel %vm954_vm1, %v2286_v38, %v2245_v12  ;;  %v4090_v44 = vrot.slane %v8906_v47, 4 }
 0x302   : > { %12067 = vst [vmem:[#allocation257_spill] sm:$0xff] %v8968_v25 }
 0x303   : > { %12068 = vst [vmem:[#allocation258_spill] sm:$0xff] %v8972_v57 }
 0x304   : > { %12069 = vst [vmem:[#allocation259_spill] sm:$0xff] %v8975_v14  ;;  %899 = vrot.lane.b32.xlu1 %v7682_v52, %s12070_s14  ;;  %905 = vrot.lane.b32.xlu0 %v7682_v52, %s12071_s15 }
 0x305   : > { %893 = vrot.lane.b32.xlu2 %v7682_v52, %s12062_s12 }
 0x306   : > { %v774_v53 = vpop.permute.xlu1 %773  ;;  %v780_v31 = vpop.permute.xlu0 %779 }
 0x307   : > { %v2298_v3 = vrot.slane %v774_v53, 4  ;;  %v2301_v36 = vsel %vm954_vm1, %v774_v53, %v2300_v23  ;;  %v8985_v58 = vpop.permute.xlu2 %793  ;;  %v2310_v12 = vrot.slane %v780_v31, 4  ;;  %v2313_v38 = vsel %vm954_vm1, %v780_v31, %v2312_v10 }
 0x308   : > { %v8989_v60 = vperm.slane %v2301_v36, %v6731_v22  ;;  %v9000_v53 = vperm.slane %v2313_v38, %v6731_v22  ;;  %v4091_v10 = vsel %vm954_vm1, %v4090_v44, %v764_v26 }
 0x309   : > { %v2299_v11 = vsel %vm954_vm1, %v2298_v3, %v762_v54  ;;  %v2311_v8 = vsel %vm954_vm1, %v2310_v12, %v8856_v61  ;;  %v9016_v61 = vperm.slane %v4091_v10, %v6731_v22 }
 0x30a   : > { %12072 = vst [vmem:[#allocation260_spill] sm:$0xff] %v8989_v60  ;;  %v8996_v63 = vperm.slane %v2299_v11, %v6731_v22  ;;  %v2360_v23 = vrot.slane %v8989_v60, 4  ;;  %v9005_v36 = vperm.slane %v2311_v8, %v6731_v22 }
 0x30b   : > { %12074 = vst [vmem:[#allocation262_spill] sm:$0xff] %v9000_v53  ;;  %v4140_v17 = vrot.slane %v9016_v61, 4 }
 0x30c   : > { %12073 = vst [vmem:[#allocation261_spill] sm:$0xff] %v8996_v63  ;;  %v2348_v31 = vrot.slane %v8996_v63, 4  ;;  %v2361_v54 = vsel %vm954_vm1, %v9000_v53, %v2360_v23  ;;  %907 = vrot.lane.b32.xlu1 %v7719_v9, %s12071_s15  ;;  %913 = vrot.lane.b32.xlu0 %v7719_v9, %s12075_s16  ;;  %v4092_v23 = vrot.slane %v764_v26, 4  ;;  %v4104_v53 = vrot.slane %v8952_v43, 4 }
 0x30d   : > { %901 = vrot.lane.b32.xlu2 %v7719_v9, %s12070_s14 }
 0x30e   : > { %v782_v11 = vpop.permute.xlu1 %781  ;;  %v788_v44 = vpop.permute.xlu0 %787  ;;  %v2349_v8 = vsel %vm954_vm1, %v9005_v36, %v2348_v31  ;;  %v2324_v31 = vrot.slane %v8961_v18, 4  ;;  %v4093_v26 = vsel %vm954_vm1, %v8906_v47, %v4092_v23 }
 0x30f   : > { %v4102_v3 = vrot.slane %v782_v11, 4  ;;  %v804_v12 = vpop.permute.xlu2 %803 }
 0x310   : > { %v2334_v4 = vrot.slane %v804_v12, 4 }
 0x311   : > { %v4103_v38 = vsel %vm954_vm1, %v4102_v3, %v8952_v43  ;;  %v6523_v3 = vmov 0   ;;  %v4105_v43 = vsel %vm954_vm1, %v782_v11, %v4104_v53  ;;  %v4116_v53 = vrot.slane %v788_v44, 4 }
 0x312   : > { %v4109_v1 = vperm.slane %v4103_v38, %v6731_v22  ;;  %6368 = vset.pattern.permute.xlu0 %v6523_v3  ;;  %6366 = vset.pattern.permute.xlu1 %v6523_v3  ;;  %v4128_v11 = vrot.slane %v8985_v58, 4 }
 0x313   : > { %6367 = vset.pattern.permute.xlu2 %v6523_v3  ;;  %v9048_v3 = vperm.slane %v4093_v26, %v6731_v22 }
 0x314   : > { %917 = vrot.lane.b32.xlu1 %v7682_v52, %s12076_s17  ;;  %923 = vrot.lane.b32.xlu0 %v7682_v52, %s12077_s19  ;;  %v9029_v10 = vsel %vm954_vm1, %v4109_v1, %v4140_v17  ;;  %v4138_v26 = vrot.slane %v4109_v1, 4 }
 0x315   : > { %911 = vrot.lane.b32.xlu2 %v7682_v52, %s12075_s16  ;;  %12079 = vst [vmem:[#allocation264_spill] sm:$0xff] %v9048_v3 }
 0x316   : > { %v792_v38 = vpop.permute.xlu1 %791  ;;  %v798_v28 = vpop.permute.xlu0 %797 }
 0x317   : > { %v2336_v19 = vrot.slane %v792_v38, 4  ;;  %v9036_v7 = vpop.permute.xlu2 %811  ;;  %v2322_v17 = vrot.slane %v798_v28, 4  ;;  %v2325_v13 = vsel %vm954_vm1, %v798_v28, %v2324_v31  ;;  %v2335_v25 = vsel %vm954_vm1, %v2334_v4, %v792_v38 }
 0x318   : > { %v9040_v60 = vperm.slane %v2325_v13, %v6731_v22  ;;  %v9059_v4 = vperm.slane %v2335_v25, %v6731_v22  ;;  %v1026_v31 = vrot.slane %v6870_v0, 4  ;;  %v4152_v25 = vrot.slane %v9048_v3, 4 }
 0x319   : > { %v2337_v47 = vsel %vm954_vm1, %v804_v12, %v2336_v19  ;;  %v2323_v23 = vsel %vm954_vm1, %v2322_v17, %v8961_v18  ;;  %v2357_v18 = vperm.slane %v2349_v8, %v6797_v2  ;;  %v2369_v8 = vperm.slane %v2361_v54, %v6797_v2 }
 0x31a   : > { %12078 = vst [vmem:[#allocation263_spill] sm:$0xff] %v9040_v60  ;;  %v9051_v57 = vperm.slane %v2337_v47, %v6731_v22  ;;  %v9054_v28 = vperm.slane %v2323_v23, %v6731_v22  ;;  %v2384_v13 = vrot.slane %v9040_v60, 4  ;;  %v9078_v23 = vperm.slane %v4105_v43, %v6731_v22 }
 0x31b   : > { %v2400_v14 = vrot.slane %v2357_v18, 4 }
 0x31c   : > { %12080 = vst [vmem:[#allocation265_spill] sm:$0xff] %v9051_v57  ;;  %v2372_v19 = vrot.slane %v9054_v28, 4  ;;  %925 = vrot.lane.b32.xlu1 %v7719_v9, %s12077_s19  ;;  %931 = vrot.lane.b32.xlu0 %v7719_v9, %s12081_s3  ;;  %v2385_v12 = vsel %vm954_vm1, %v9051_v57, %v2384_v13 }
 0x31d   : > { %919 = vrot.lane.b32.xlu2 %v7719_v9, %s12076_s17  ;;  %12082 = vst [vmem:[#allocation266_spill] sm:$0xff] %v9078_v23  ;;  %v2393_v63 = vperm.slane %v2385_v12, %v6797_v2 }
 0x31e   : > { %v800_v38 = vpop.permute.xlu1 %799  ;;  %v806_v17 = vpop.permute.xlu0 %805  ;;  %v2373_v47 = vsel %vm954_vm1, %v9059_v4, %v2372_v19 }
 0x31f   : > { %v4114_v0 = vrot.slane %v800_v38, 4  ;;  %v4117_v1 = vsel %vm954_vm1, %v800_v38, %v4116_v53  ;;  %v9081_v13 = vpop.permute.xlu2 %821  ;;  %v4126_v60 = vrot.slane %v806_v17, 4  ;;  %v4129_v57 = vsel %vm954_vm1, %v806_v17, %v4128_v11 }
 0x320   : > { %v9084_v3 = vperm.slane %v4117_v1, %v6731_v22  ;;  %v2381_v43 = vperm.slane %v2373_v47, %v6797_v2  ;;  %v4139_v53 = vsel %vm954_vm1, %v4138_v26, %v9016_v61  ;;  %v2408_v11 = vrot.slane %v2369_v8, 4 }
 0x321   : > { %v4115_v19 = vsel %vm954_vm1, %v4114_v0, %v788_v44  ;;  %v4127_v54 = vsel %vm954_vm1, %v4126_v60, %v8985_v58  ;;  %v9098_v17 = vperm.slane %v4129_v57, %v6731_v22  ;;  %v4153_v58 = vsel %vm954_vm1, %v9078_v23, %v4152_v25 }
 0x322   : > { %12083 = vst [vmem:[#allocation267_spill] sm:$0xff] %v9084_v3  ;;  %v4121_v38 = vperm.slane %v4115_v19, %v6731_v22  ;;  %v4176_v1 = vrot.slane %v9084_v3, 4  ;;  %v4133_v40 = vperm.slane %v4127_v54, %v6731_v22  ;;  %v2398_v12 = vrot.slane %v2381_v43, 4 }
 0x323   : > { %12084 = vst [vmem:[#allocation268_spill] sm:$0xff] %v9098_v17  ;;  %v9101_v44 = vsel %vm954_vm1, %v2381_v43, %v2400_v14  ;;  %v9110_v61 = vsel %vm954_vm1, %v2393_v63, %v2408_v11  ;;  %v9113_v57 = vperm.slane %v4139_v53, %v6797_v2  ;;  %v2406_v25 = vrot.slane %v2393_v63, 4 }
 0x324   : > { %v4164_v60 = vrot.slane %v4121_v38, 4  ;;  %v4162_v47 = vrot.slane %v4133_v40, 4  ;;  %935 = vrot.lane.b32.xlu1 %v7682_v52, %s6521_s2  ;;  %941 = vrot.lane.b32.xlu0 %v7682_v52, %s6520_s29  ;;  %v4177_v14 = vsel %vm954_vm1, %v9098_v17, %v4176_v1  ;;  %v9120_v26 = vsel %vm954_vm1, %v2398_v12, %v2357_v18 }
 0x325   : > { %929 = vrot.lane.b32.xlu2 %v7682_v52, %s12081_s3  ;;  %v4149_v0 = vperm.slane %v9029_v10, %v6797_v2  ;;  %v9129_v11 = vperm.slane %v4153_v58, %v6797_v2  ;;  %v1027_v18 = vsel %vm954_vm1, %v1026_v31, %v6836_v42  ;;  %v9136_v63 = vsel %vm954_vm1, %v2406_v25, %v2369_v8 }
 0x326   : > { %v810_v19 = vpop.permute.xlu1 %809  ;;  %v9124_v54 = vpop.permute.xlu0 %815  ;;  %v4163_v43 = vsel %vm954_vm1, %v4162_v47, %v4121_v38  ;;  %v4165_v53 = vsel %vm954_vm1, %v4133_v40, %v4164_v60  ;;  %v4188_v12 = vrot.slane %v9113_v57, 4  ;;  %v9143_v38 = vperm.slane %v4177_v14, %v6797_v2 }
 0x327   : > { %12085 = vst [vmem:[#allocation269_spill] sm:$0xff] %v9129_v11  ;;  %v9131_v1 = vpop.permute.xlu2 %829  ;;  %v9139_v10 = vperm.slane %v4163_v43, %v6797_v2  ;;  %v4173_v40 = vperm.slane %v4165_v53, %v6797_v2  ;;  %v4192_v58 = vrot.slane %v4149_v0, 4  ;;  %v9147_v60 = vperm.slane %v1027_v18, %v6797_v2 }
 0x328   : > { %12086 = vst [vmem:[#allocation270_spill] sm:$0xff] %v9143_v38  ;;  %v4200_v31 = vrot.slane %v9129_v11, 4  ;;  %v1362_v8 = vrot.slane %v7431_v33, 4  ;;  %v1002_v14 = vrot.slane %v6751_v34, 4  ;;  %v4204_v53 = vrot.slane %v9036_v7, 4 }
 0x329   : > { %v9151_v42 = vsel %vm954_vm1, %v9139_v10, %v4188_v12  ;;  %v4190_v47 = vrot.slane %v4173_v40, 4  ;;  %v9156_v25 = vsel %vm954_vm1, %v4173_v40, %v4192_v58  ;;  %v2412_v18 = vrot.slane %v810_v19, 4 }
 0x32a   : > { %12087 = vst [vmem:[#allocation271_spill] sm:$0xff] %v9151_v42  ;;  %v9165_v43 = vsel %vm954_vm1, %v9143_v38, %v4200_v31  ;;  %v1003_v40 = vsel %vm954_vm1, %v1002_v14, %v6747_v32  ;;  %v1050_v58 = vrot.slane %v9147_v60, 4  ;;  %v2410_v38 = vrot.slane %v9081_v13, 4 }
 0x32b   : > { %12088 = vst [vmem:[#allocation272_spill] sm:$0xff] %v9156_v25  ;;  %v9171_v33 = vsel %vm954_vm1, %v4190_v47, %v4149_v0  ;;  %v1363_v0 = vsel %vm954_vm1, %v1362_v8, %v7397_v27  ;;  %v2413_v32 = vsel %vm954_vm1, %v9081_v13, %v2412_v18  ;;  %v9197_v3 = vperm.slane %v1003_v40, %v6797_v2 }
 0x32c   : > { %943 = vrot.lane.b32.xlu1 %v7719_v9, %s6520_s29  ;;  %949 = vrot.lane.b32.xlu0 %v7719_v9, %s6522_s6  ;;  %12089 = vst [vmem:[#allocation273_spill] sm:$0xff] %v9165_v43  ;;  %v1698_v8 = vrot.slane %v8002_v51, 4  ;;  %v2411_v13 = vsel %vm954_vm1, %v2410_v38, %v810_v19  ;;  %v2424_v51 = vrot.slane %v9124_v54, 4 }
 0x32d   : > { %937 = vrot.lane.b32.xlu2 %v7719_v9, %s6521_s2  ;;  %12090 = vst [vmem:[#allocation274_spill] sm:$0xff] %v9171_v33  ;;  %v1274_v9 = vrot.slane %v7227_v48, 4  ;;  %v1051_v18 = vsel %vm954_vm1, %v1050_v58, %v9197_v3  ;;  %v9225_v19 = vperm.slane %v2411_v13, %v6731_v22 }
 0x32e   : > { %v9173_v34 = vpop.permute.xlu1 %817  ;;  %v9175_v12 = vpop.permute.xlu0 %823 }
 0x32f   : > { %v4216_v31 = vrot.slane %v9173_v34, 4  ;;  %v9181_v43 = vpop.permute.xlu2 %839  ;;  %v4205_v11 = vsel %vm954_vm1, %v9175_v12, %v4204_v53  ;;  %v1338_v53 = vrot.slane %v7301_v37, 4  ;;  %v1275_v40 = vsel %vm954_vm1, %v1274_v9, %v7199_v16 }
 0x330   : > { %v9189_v47 = vperm.slane %v4205_v11, %v6731_v22  ;;  %v9205_v11 = vperm.slane %v1363_v0, %v6797_v2  ;;  %v9214_v37 = vperm.slane %v2413_v32, %v6731_v22  ;;  %v2034_v0 = vrot.slane %v8510_v46, 4 }
 0x331   : > { %v4217_v14 = vsel %vm954_vm1, %v9131_v1, %v4216_v31  ;;  %v1339_v58 = vsel %vm954_vm1, %v1338_v53, %v7290_v35  ;;  %v1674_v35 = vrot.slane %v7872_v15, 4  ;;  %v2010_v15 = vrot.slane %v8461_v50, 4 }
 0x332   : > { %12091 = vst [vmem:[#allocation275_spill] sm:$0xff] %v9189_v47  ;;  %v9201_v48 = vperm.slane %v4217_v14, %v6731_v22  ;;  %v4264_v27 = vrot.slane %v9189_v47, 4  ;;  %v1386_v9 = vrot.slane %v9205_v11, 4  ;;  %v2472_v13 = vrot.slane %v9214_v37, 4 }
 0x333   : > { %v1498_v50 = vrot.slane %v7563_v55, 4  ;;  %v1946_v55 = vrot.slane %v8420_v59, 4 }
 0x334   : > { %12092 = vst [vmem:[#allocation276_spill] sm:$0xff] %v9201_v48  ;;  %4795 = vperm.xlu1 %6366, %v1051_v18   ;;  %4801 = vperm.xlu0 %6368, %v1275_v40   ;;  %v9218_v31 = vsel %vm954_vm1, %v9201_v48, %v4264_v27  ;;  %v1834_v27 = vrot.slane %v8131_v56, 4  ;;  %v1162_v40 = vrot.slane %v7002_v62, 4  ;;  %v2035_v56 = vsel %vm954_vm1, %v2034_v0, %v8505_v49 }
 0x335   : > { %947 = vrot.lane.b32.xlu2 %v7682_v52, %s6522_s6  ;;  %v1699_v52 = vsel %vm954_vm1, %v1698_v8, %v7968_v45  ;;  %v2460_v45 = vrot.slane %v9225_v19, 4  ;;  %v9268_v0 = vperm.slane %v2035_v56, %v6797_v2  ;;  %v1499_v56 = vsel %vm954_vm1, %v1498_v50, %v7547_v41  ;;  %s6241_s6 = sshll.u32 %s12631_s9, 5 }
 0x336   : > { %v828_v16 = vpop.permute.xlu1 %827  ;;  %v9227_v38 = vpop.permute.xlu0 %833  ;;  %v1163_v49 = vsel %vm954_vm1, %v1162_v40, %v6986_v39  ;;  %s10926_s2 = scalar_lea.vmem %s11495_s1, %s6241_s6 }
 0x337   : > { %v2422_v32 = vrot.slane %v828_v16, 4  ;;  %v2425_v14 = vsel %vm954_vm1, %v828_v16, %v2424_v51  ;;  %v9233_v46 = vpop.permute.xlu2 %847  ;;  %v9247_v51 = vperm.slane %v1339_v58, %v6797_v2  ;;  %v9254_v16 = vperm.slane %v1699_v52, %v6797_v2 }
 0x338   : > { %v9240_v18 = vperm.slane %v2425_v14, %v6731_v22  ;;  %v1835_v58 = vsel %vm954_vm1, %v1834_v27, %v8117_v20  ;;  %v1610_v14 = vrot.slane %v7799_v29, 4  ;;  %v2370_v20 = vrot.slane %v9059_v4, 4 }
 0x339   : > { %v2423_v53 = vsel %vm954_vm1, %v2422_v32, %v9124_v54  ;;  %v1387_v54 = vsel %vm954_vm1, %v1386_v9, %v9247_v51  ;;  %v1675_v9 = vsel %vm954_vm1, %v1674_v35, %v7861_v30  ;;  %v1722_v52 = vrot.slane %v9254_v16, 4 }
 0x33a   : > { %v2429_v8 = vperm.slane %v2423_v53, %v6731_v22  ;;  %v9258_v62 = vsel %vm954_vm1, %v9240_v18, %v2472_v13  ;;  %v4202_v13 = vrot.slane %v9175_v12, 4  ;;  %v2170_v53 = vrot.slane %v8716_v24, 4 }
 0x33b   : > { %v2011_v29 = vsel %vm954_vm1, %v2010_v15, %v8452_v6  ;;  %v9289_v30 = vperm.slane %v1675_v9, %v6797_v2  ;;  %v2058_v4 = vrot.slane %v9268_v0, 4  ;;  %v2282_v35 = vrot.slane %v8964_v21, 4 }
 0x33c   : > { %4804 = vperm.xlu1 %6366, %v1387_v54   ;;  %4816 = vperm.xlu0 %6368, %v1835_v58   ;;  %v9271_v32 = vsel %vm954_vm1, %v2429_v8, %v2460_v45  ;;  %v1611_v12 = vsel %vm954_vm1, %v1610_v14, %v7772_v5  ;;  %v2458_v45 = vrot.slane %v2429_v8, 4  ;;  %v9300_v24 = vperm.slane %v2011_v29, %v6797_v2  ;;  %v12093_v54 = vld [vmem:[#allocation220_spill] sm:$0xff]  ;;  %v12094_v58 = vld [vmem:[#allocation181_spill] sm:$0xff] }
 0x33d   : > { %4798 = vperm.xlu2 %6367, %v1163_v49   ;;  %v1723_v59 = vsel %vm954_vm1, %v1722_v52, %v9289_v30  ;;  %v2371_v6 = vsel %vm954_vm1, %v2370_v20, %v9054_v28  ;;  %v4214_v15 = vrot.slane %v9131_v1, 4  ;;  %v4203_v21 = vsel %vm954_vm1, %v4202_v13, %v9036_v7  ;;  %v12095_v1 = vld [vmem:[#allocation245_spill] sm:$0xff] }
 0x33e   : > { %v836_v27 = vpop.permute.xlu1 %835  ;;  %v9278_v39 = vpop.permute.xlu0 %841  ;;  %v2171_v41 = vsel %vm954_vm1, %v2170_v53, %v12093_v54  ;;  %v1947_v5 = vsel %vm954_vm1, %v1946_v55, %v12094_v58  ;;  %v2346_v8 = vrot.slane %v9005_v36, 4  ;;  %v2470_v49 = vrot.slane %v9240_v18, 4 }
 0x33f   : > { %v9282_v40 = vpop.permute.xlu2 %857  ;;  %v9315_v28 = vsel %vm954_vm1, %v2058_v4, %v9300_v24  ;;  %v9319_v50 = vsel %vm954_vm1, %v2282_v35, %v12095_v1  ;;  %v4215_v7 = vsel %vm954_vm1, %v4214_v15, %v9173_v34  ;;  %v2448_v14 = vrot.slane %v9181_v43, 4 }
 0x340   : > { %v2436_v9 = vrot.slane %v9227_v38, 4  ;;  %v9326_v18 = vperm.slane %v2371_v6, %v6797_v2  ;;  %v9329_v20 = vperm.slane %v4203_v21, %v6731_v22  ;;  %v4226_v52 = vrot.slane %v9233_v46, 4 }
 0x341   : > { %v4228_v13 = vrot.slane %v836_v27, 4  ;;  %v2459_v29 = vsel %vm954_vm1, %v2458_v45, %v9225_v19  ;;  %v9339_v6 = vperm.slane %v4215_v7, %v6731_v22  ;;  %v2471_v54 = vsel %vm954_vm1, %v2470_v49, %v9214_v37 }
 0x342   : > { %12096 = vst [vmem:[#allocation220_spill] sm:$0xff] %v9329_v20  ;;  %v4227_v19 = vsel %vm954_vm1, %v4226_v52, %v836_v27  ;;  %v2465_v58 = vperm.slane %v2459_v29, %v6797_v2  ;;  %v2469_v27 = vperm.slane %v9271_v32, %v6797_v2 }
 0x343   : > { %v4229_v37 = vsel %vm954_vm1, %v9233_v46, %v4228_v13  ;;  %v9364_v29 = vperm.slane %v4227_v19, %v6731_v22  ;;  %v2481_v46 = vperm.slane %v9258_v62, %v6797_v2 }
 0x344   : > { %4810 = vperm.xlu1 %6366, %v1611_v12   ;;  %4825 = vperm.xlu0 %6368, %v2171_v41   ;;  %v9371_v13 = vperm.slane %v4229_v37, %v6731_v22 }
 0x345   : > { %4807 = vperm.xlu2 %6367, %v1499_v56   ;;  %12097 = vst [vmem:[#allocation181_spill] sm:$0xff] %v9364_v29 }
 0x346   : > { %v846_v53 = vpop.permute.xlu1 %845  ;;  %v852_v55 = vpop.permute.xlu0 %851  ;;  %12098 = vst [vmem:[#allocation245_spill] sm:$0xff] %v9371_v13 }
 0x347   : > { %v2434_v34 = vrot.slane %v846_v53, 4  ;;  %v2437_v4 = vsel %vm954_vm1, %v846_v53, %v2436_v9  ;;  %v9335_v35 = vpop.permute.xlu2 %865  ;;  %v2446_v56 = vrot.slane %v852_v55, 4  ;;  %v2449_v12 = vsel %vm954_vm1, %v852_v55, %v2448_v14 }
 0x348   : > { %v2445_v15 = vperm.slane %v2437_v4, %v6731_v22  ;;  %v2457_v21 = vperm.slane %v2449_v12, %v6731_v22  ;;  %v4252_v53 = vrot.slane %v9329_v20, 4  ;;  %v2508_v12 = vrot.slane %v2465_v58, 4 }
 0x349   : > { %v2435_v45 = vsel %vm954_vm1, %v2434_v34, %v9227_v38  ;;  %v2447_v41 = vsel %vm954_vm1, %v2446_v56, %v9181_v43  ;;  %v9359_v38 = vperm.slane %v2471_v54, %v6797_v2  ;;  %v4240_v34 = vrot.slane %v9278_v39, 4 }
 0x34a   : > { %v2441_v1 = vperm.slane %v2435_v45, %v6731_v22  ;;  %v2496_v7 = vrot.slane %v2445_v15, 4  ;;  %v2453_v14 = vperm.slane %v2447_v41, %v6731_v22  ;;  %v2494_v9 = vrot.slane %v2457_v21, 4 }
 0x34c   : > { %v2484_v43 = vrot.slane %v2441_v1, 4  ;;  %v2482_v49 = vrot.slane %v2453_v14, 4  ;;  %v2497_v52 = vsel %vm954_vm1, %v2457_v21, %v2496_v7  ;;  %4819 = vperm.xlu1 %6366, %v1947_v5   ;;  %v2495_v55 = vsel %vm954_vm1, %v2494_v9, %v2445_v15 }
 0x34d   : > { %4813 = vperm.xlu2 %6367, %v1723_v59   ;;  %v2505_v32 = vperm.slane %v2497_v52, %v6797_v2  ;;  %v9382_v19 = vperm.slane %v2495_v55, %v6797_v2  ;;  %v2512_v7 = vrot.slane %v2469_v27, 4 }
 0x34e   : > { %v854_v4 = vpop.permute.xlu1 %853  ;;  %v9373_v56 = vpop.permute.xlu0 %859  ;;  %v2483_v5 = vsel %vm954_vm1, %v2482_v49, %v2441_v1  ;;  %v2485_v15 = vsel %vm954_vm1, %v2453_v14, %v2484_v43  ;;  %v2516_v1 = vrot.slane %v9359_v38, 4 }
 0x34f   : > { %v4238_v21 = vrot.slane %v854_v4, 4  ;;  %v4241_v54 = vsel %vm954_vm1, %v854_v4, %v4240_v34  ;;  %v9378_v59 = vpop.permute.xlu2 %875  ;;  %v2489_v62 = vperm.slane %v2483_v5, %v6797_v2  ;;  %v2493_v41 = vperm.slane %v2485_v15, %v6797_v2 }
 0x350   : > { %v9385_v45 = vperm.slane %v4241_v54, %v6731_v22  ;;  %v2518_v43 = vrot.slane %v2505_v32, 4  ;;  %v2520_v34 = vrot.slane %v2481_v46, 4  ;;  %v4288_v4 = vrot.slane %v9371_v13, 4 }
 0x351   : > { %v4239_v14 = vsel %vm954_vm1, %v4238_v21, %v9278_v39  ;;  %v2506_v9 = vrot.slane %v2489_v62, 4  ;;  %v9392_v37 = vsel %vm954_vm1, %v2489_v62, %v2508_v12  ;;  %v9398_v52 = vsel %vm954_vm1, %v2493_v41, %v2512_v7 }
 0x352   : > { %12099 = vst [vmem:[#allocation277_spill] sm:$0xff] %v9385_v45  ;;  %v9395_v49 = vperm.slane %v4239_v14, %v6731_v22  ;;  %v2510_v55 = vrot.slane %v2493_v41, 4  ;;  %v9403_v15 = vsel %vm954_vm1, %v2518_v43, %v2481_v46  ;;  %v9407_v39 = vsel %vm954_vm1, %v9382_v19, %v2516_v1 }
 0x353   : > { %v2507_v5 = vsel %vm954_vm1, %v2506_v9, %v2465_v58  ;;  %v4276_v12 = vrot.slane %v9364_v29, 4  ;;  %v9415_v54 = vsel %vm954_vm1, %v2505_v32, %v2520_v34  ;;  %v4253_v58 = vsel %vm954_vm1, %v9339_v6, %v4252_v53  ;;  %v12100_v32 = vld [vmem:[#allocation261_spill] sm:$0xff] }
 0x354   : > { %4828 = vperm.xlu1 %6366, %v9319_v50   ;;  %4834 = vperm.xlu0 %6368, %v2507_v5   ;;  %v9412_v21 = vsel %vm954_vm1, %v2510_v55, %v2469_v27  ;;  %v4289_v46 = vsel %vm954_vm1, %v9385_v45, %v4288_v4  ;;  %v2534_v7 = vrot.slane %v9378_v59, 4  ;;  %v2347_v53 = vsel %vm954_vm1, %v2346_v8, %v12100_v32 }
 0x355   : > { %4822 = vperm.xlu2 %6367, %v9315_v28   ;;  %v4277_v50 = vsel %vm954_vm1, %v9395_v49, %v4276_v12  ;;  %v9432_v28 = vperm.slane %v4253_v58, %v6797_v2  ;;  %v2394_v14 = vrot.slane %v9326_v18, 4  ;;  %v4273_v9 = vperm.slane %v9218_v31, %v6797_v2 }
 0x356   : > { %v864_v62 = vpop.permute.xlu1 %863  ;;  %v870_v41 = vpop.permute.xlu0 %869  ;;  %v1052_v34 = vrot.slane %v9197_v3, 4  ;;  %v9442_v4 = vperm.slane %v4277_v50, %v6797_v2  ;;  %v9448_v8 = vperm.slane %v2347_v53, %v6797_v2  ;;  %v4297_v5 = vperm.slane %v4289_v46, %v6797_v2 }
 0x357   : > { %v9425_v27 = vpop.permute.xlu2 %883  ;;  %v2522_v1 = vrot.slane %v870_v41, 4  ;;  %12101 = vst [vmem:[#allocation261_spill] sm:$0xff] %v9432_v28  ;;  %v2535_v43 = vsel %vm954_vm1, %v2534_v7, %v864_v62  ;;  %v4304_v12 = vrot.slane %v9432_v28, 4  ;;  %v4312_v7 = vrot.slane %v4273_v9, 4 }
 0x358   : > { %12102 = vst [vmem:[#allocation278_spill] sm:$0xff] %v9442_v4  ;;  %v1053_v31 = vsel %vm954_vm1, %v9147_v60, %v1052_v34  ;;  %v9455_v58 = vperm.slane %v2535_v43, %v6731_v22  ;;  %v2395_v50 = vsel %vm954_vm1, %v2394_v14, %v9448_v8  ;;  %v4316_v32 = vrot.slane %v9373_v56, 4 }
 0x359   : > { %v2523_v55 = vsel %vm954_vm1, %v2522_v1, %v9282_v40  ;;  %v4328_v1 = vrot.slane %v9335_v35, 4  ;;  %v9464_v60 = vsel %vm954_vm1, %v9442_v4, %v4304_v12 }
 0x35a   : > { %v9445_v36 = vperm.slane %v2523_v55, %v6731_v22  ;;  %12103 = vst [vmem:[#allocation279_spill] sm:$0xff] %v9464_v60  ;;  %v9471_v55 = vsel %vm954_vm1, %v4297_v5, %v4312_v7  ;;  %v1388_v60 = vrot.slane %v9247_v51, 4  ;;  %v2524_v51 = vrot.slane %v9282_v40, 4 }
 0x35b   : > { %12104 = vst [vmem:[#allocation280_spill] sm:$0xff] %v9471_v55 }
 0x35c   : > { %v2572_v3 = vrot.slane %v9445_v36, 4  ;;  %4843 = vperm.xlu0 %6368, %v1053_v31  }
 0x35d   : > { %4831 = vperm.xlu2 %6367, %v2395_v50  }
 0x35e   : > { %v872_v46 = vpop.permute.xlu1 %871  ;;  %v878_v53 = vpop.permute.xlu0 %877  ;;  %v9468_v43 = vsel %vm954_vm1, %v9455_v58, %v2572_v3 }
 0x35f   : > { %v4314_v14 = vrot.slane %v872_v46, 4  ;;  %v4317_v34 = vsel %vm954_vm1, %v872_v46, %v4316_v32  ;;  %v894_v31 = vpop.permute.xlu2 %893  ;;  %v4326_v17 = vrot.slane %v878_v53, 4  ;;  %v4329_v50 = vsel %vm954_vm1, %v878_v53, %v4328_v1 }
 0x360   : > { %v9476_v23 = vperm.slane %v4317_v34, %v6731_v22  ;;  %v4337_v46 = vperm.slane %v4329_v50, %v6731_v22  ;;  %v1389_v1 = vsel %vm954_vm1, %v9205_v11, %v1388_v60  ;;  %v4310_v53 = vrot.slane %v4297_v5, 4 }
 0x361   : > { %v4315_v12 = vsel %vm954_vm1, %v4314_v14, %v9373_v56  ;;  %v4327_v3 = vsel %vm954_vm1, %v4326_v17, %v9335_v35  ;;  %v2536_v5 = vrot.slane %v864_v62, 4  ;;  %v2525_v60 = vsel %vm954_vm1, %v870_v41, %v2524_v51 }
 0x362   : > { %v9484_v7 = vperm.slane %v4315_v12, %v6731_v22  ;;  %v4376_v32 = vrot.slane %v9476_v23, 4  ;;  %v9492_v56 = vperm.slane %v4327_v3, %v6731_v22  ;;  %v9499_v35 = vsel %vm954_vm1, %v4310_v53, %v4273_v9 }
 0x363   : > { %12105 = vst [vmem:[#allocation281_spill] sm:$0xff] %v9499_v35  ;;  %v1724_v3 = vrot.slane %v9289_v30, 4  ;;  %v2537_v40 = vsel %vm954_vm1, %v9378_v59, %v2536_v5  ;;  %v2060_v53 = vrot.slane %v9300_v24, 4  ;;  %v4340_v62 = vrot.slane %v9425_v27, 4 }
 0x364   : > { %v4364_v34 = vrot.slane %v9484_v7, 4  ;;  %4852 = vperm.xlu0 %6368, %v1389_v1   ;;  %v9495_v17 = vsel %vm954_vm1, %v4337_v46, %v4376_v32  ;;  %v9508_v32 = vperm.slane %v2525_v60, %v6731_v22  ;;  %v9517_v41 = vperm.slane %v2537_v40, %v6731_v22 }
 0x365   : > { %v1725_v9 = vsel %vm954_vm1, %v9254_v16, %v1724_v3  ;;  %v2570_v30 = vrot.slane %v9455_v58, 4  ;;  %v2061_v59 = vsel %vm954_vm1, %v9268_v0, %v2060_v53  ;;  %v2546_v35 = vrot.slane %v894_v31, 4 }
 0x366   : > { %v882_v14 = vpop.permute.xlu1 %881  ;;  %v9501_v50 = vpop.permute.xlu0 %887  ;;  %v4365_v11 = vsel %vm954_vm1, %v9492_v56, %v4364_v34  ;;  %v2584_v34 = vrot.slane %v9508_v32, 4  ;;  %v2396_v58 = vrot.slane %v9448_v8, 4  ;;  %v4374_v47 = vrot.slane %v4337_v46, 4 }
 0x367   : > { %v902_v12 = vpop.permute.xlu2 %901  ;;  %v2548_v1 = vrot.slane %v882_v14, 4  ;;  %v2571_v46 = vsel %vm954_vm1, %v2570_v30, %v9445_v36 }
 0x368   : > { %v4350_v5 = vrot.slane %v902_v12, 4 }
 0x369   : > { %v2549_v40 = vsel %vm954_vm1, %v894_v31, %v2548_v1  ;;  %v2397_v31 = vsel %vm954_vm1, %v9326_v18, %v2396_v58  ;;  %v2547_v1 = vsel %vm954_vm1, %v2546_v35, %v882_v14  ;;  %v2560_v35 = vrot.slane %v9501_v50, 4 }
 0x36a   : > { %v9541_v8 = vperm.slane %v2549_v40, %v6731_v22  ;;  %v4373_v14 = vperm.slane %v4365_v11, %v6797_v2  ;;  %v2553_v30 = vperm.slane %v2547_v1, %v6731_v22 }
 0x36c   : > { %4861 = vperm.xlu0 %6368, %v1725_v9   ;;  %v2608_v40 = vrot.slane %v9541_v8, 4  ;;  %v4416_v1 = vrot.slane %v4373_v14, 4 }
 0x36e   : > { %v890_v51 = vpop.permute.xlu1 %889  ;;  %v896_v60 = vpop.permute.xlu0 %895 }
 0x36f   : > { %v4352_v16 = vrot.slane %v890_v51, 4  ;;  %v9523_v3 = vpop.permute.xlu2 %911  ;;  %v4338_v9 = vrot.slane %v896_v60, 4  ;;  %v4341_v24 = vsel %vm954_vm1, %v896_v60, %v4340_v62  ;;  %v4351_v48 = vsel %vm954_vm1, %v4350_v5, %v890_v51 }
 0x370   : > { %v4349_v55 = vperm.slane %v4341_v24, %v6731_v22  ;;  %v4375_v60 = vsel %vm954_vm1, %v4374_v47, %v9476_v23  ;;  %v2577_v5 = vperm.slane %v2571_v46, %v6797_v2  ;;  %v2581_v24 = vperm.slane %v9468_v43, %v6797_v2 }
 0x371   : > { %v4353_v13 = vsel %vm954_vm1, %v902_v12, %v4352_v16  ;;  %v4339_v0 = vsel %vm954_vm1, %v4338_v9, %v9425_v27  ;;  %v2585_v27 = vsel %vm954_vm1, %v9517_v41, %v2584_v34 }
 0x372   : > { %v4361_v53 = vperm.slane %v4353_v13, %v6731_v22  ;;  %v9535_v45 = vperm.slane %v4339_v0, %v6731_v22  ;;  %v4400_v62 = vrot.slane %v4349_v55, 4  ;;  %v9548_v13 = vperm.slane %v4351_v48, %v6731_v22 }
 0x373   : > { %v9577_v0 = vperm.slane %v4375_v60, %v6797_v2 }
 0x374   : > { %v4398_v12 = vrot.slane %v4361_v53, 4  ;;  %v4388_v51 = vrot.slane %v9535_v45, 4  ;;  %4870 = vperm.xlu0 %6368, %v2061_v59   ;;  %v4401_v18 = vsel %vm954_vm1, %v4361_v53, %v4400_v62  ;;  %v9562_v59 = vperm.slane %v2585_v27, %v6797_v2 }
 0x375   : > { %v4409_v36 = vperm.slane %v4401_v18, %v6797_v2  ;;  %12106 = vst [vmem:[#allocation282_spill] sm:$0xff] %v9577_v0  ;;  %v4385_v53 = vperm.slane %v9495_v17, %v6797_v2  ;;  %v2596_v27 = vrot.slane %v2553_v30, 4 }
 0x376   : > { %v900_v34 = vpop.permute.xlu1 %899  ;;  %v9558_v48 = vpop.permute.xlu0 %905  ;;  %v4389_v16 = vsel %vm954_vm1, %v9548_v13, %v4388_v51  ;;  %v4399_v11 = vsel %vm954_vm1, %v4398_v12, %v4349_v55  ;;  %v2632_v17 = vrot.slane %v9562_v59, 4 }
 0x377   : > { %v2558_v9 = vrot.slane %v900_v34, 4  ;;  %v2561_v23 = vsel %vm954_vm1, %v900_v34, %v2560_v35  ;;  %v9568_v47 = vpop.permute.xlu2 %919  ;;  %v4397_v62 = vperm.slane %v4389_v16, %v6797_v2  ;;  %v4422_v46 = vrot.slane %v4409_v36, 4 }
 0x378   : > { %v9574_v58 = vperm.slane %v2561_v23, %v6731_v22  ;;  %v9588_v51 = vperm.slane %v4399_v11, %v6797_v2 }
 0x379   : > { %v2559_v55 = vsel %vm954_vm1, %v2558_v9, %v9501_v50  ;;  %v9595_v50 = vsel %vm954_vm1, %v4397_v62, %v4416_v1  ;;  %v4414_v35 = vrot.slane %v4397_v62, 4  ;;  %v9599_v16 = vsel %vm954_vm1, %v4422_v46, %v4385_v53 }
 0x37a   : > { %v2565_v43 = vperm.slane %v2559_v55, %v6731_v22  ;;  %v2609_v12 = vsel %vm954_vm1, %v9574_v58, %v2608_v40  ;;  %12107 = vst [vmem:[#allocation283_spill] sm:$0xff] %v9588_v51  ;;  %v4420_v9 = vrot.slane %v9577_v0, 4 }
 0x37b   : > { %v9591_v18 = vperm.slane %v2609_v12, %v6797_v2  ;;  %12108 = vst [vmem:[#allocation284_spill] sm:$0xff] %v9595_v50  ;;  %v2624_v12 = vrot.slane %v2581_v24, 4 }
 0x37c   : > { %v2594_v60 = vrot.slane %v2565_v43, 4  ;;  %4879 = vperm.xlu0 %6368, %v2397_v31   ;;  %v2597_v34 = vsel %vm954_vm1, %v2565_v43, %v2596_v27  ;;  %12109 = vst [vmem:[#allocation285_spill] sm:$0xff] %v9599_v16  ;;  %v9611_v31 = vsel %vm954_vm1, %v4414_v35, %v4373_v14  ;;  %v9615_v1 = vsel %vm954_vm1, %v9588_v51, %v4420_v9 }
 0x37d   : > { %v2605_v11 = vperm.slane %v2597_v34, %v6797_v2  ;;  %v9605_v23 = vsel %vm954_vm1, %v9591_v18, %v2632_v17  ;;  %12110 = vst [vmem:[#allocation286_spill] sm:$0xff] %v9611_v31  ;;  %v2620_v43 = vrot.slane %v2577_v5, 4  ;;  %v2648_v9 = vrot.slane %v9523_v3, 4 }
 0x37e   : > { %v908_v40 = vpop.permute.xlu1 %907  ;;  %v9607_v55 = vpop.permute.xlu0 %913  ;;  %v2595_v62 = vsel %vm954_vm1, %v2594_v60, %v2553_v30  ;;  %12111 = vst [vmem:[#allocation287_spill] sm:$0xff] %v9615_v1  ;;  %v4424_v30 = vrot.slane %v4385_v53, 4 }
 0x37f   : > { %v930_v46 = vpop.permute.xlu2 %929  ;;  %v2601_v27 = vperm.slane %v2595_v62, %v6797_v2  ;;  %v2622_v34 = vrot.slane %v2605_v11, 4  ;;  %v9622_v0 = vsel %vm954_vm1, %v2605_v11, %v2624_v12  ;;  %v2636_v62 = vrot.slane %v9558_v48, 4 }
 0x380   : > { %v9629_v60 = vsel %vm954_vm1, %v4409_v36, %v4424_v30  ;;  %v4426_v36 = vrot.slane %v9568_v47, 4 }
 0x381   : > { %v2618_v17 = vrot.slane %v2601_v27, 4  ;;  %v9619_v16 = vsel %vm954_vm1, %v2601_v27, %v2620_v43  ;;  %v9625_v14 = vsel %vm954_vm1, %v2622_v34, %v2581_v24  ;;  %12112 = vst [vmem:[#allocation288_spill] sm:$0xff] %v9629_v60 }
 0x383   : > { %v2619_v35 = vsel %vm954_vm1, %v2618_v17, %v2577_v5 }
 0x384   : > { %4837 = vperm.xlu1 %6366, %v2619_v35   ;;  %v4427_v35 = vsel %vm954_vm1, %v4426_v36, %v908_v40 }
 0x386   : > { %v918_v1 = vpop.permute.xlu1 %917  ;;  %v924_v27 = vpop.permute.xlu0 %923 }
 0x387   : > { %v2637_v43 = vsel %vm954_vm1, %v918_v1, %v2636_v62  ;;  %v2646_v11 = vrot.slane %v924_v27, 4  ;;  %v2649_v53 = vsel %vm954_vm1, %v924_v27, %v2648_v9  ;;  %v9638_v12 = vpop.permute.xlu2 %937  ;;  %v2634_v5 = vrot.slane %v918_v1, 4  ;;  %v12113_v62 = vld [vmem:[#allocation35_spill] sm:$0xff] }
 0x388   : > { %v9636_v24 = vperm.slane %v2637_v43, %v6731_v22  ;;  %v9643_v17 = vperm.slane %v2649_v53, %v6731_v22  ;;  %v9657_v53 = vperm.slane %v4427_v35, %v6731_v22 }
 0x389   : > { %v2647_v30 = vsel %vm954_vm1, %v2646_v11, %v9523_v3  ;;  %v2635_v27 = vsel %vm954_vm1, %v2634_v5, %v9558_v48  ;;  %v4428_v48 = vrot.slane %v908_v40, 4  ;;  %v12114_v5 = vld [vmem:[#allocation97_spill] sm:$0xff] }
 0x38a   : > { %v2696_v34 = vrot.slane %v9636_v24, 4  ;;  %v2653_v1 = vperm.slane %v2647_v30, %v6731_v22  ;;  %v2641_v3 = vperm.slane %v2635_v27, %v6731_v22  ;;  %v4476_v25 = vrot.slane %v9657_v53, 4 }
 0x38b   : > { %v2660_v30 = vrot.slane %v930_v46, 4  ;;  %v4429_v40 = vsel %vm954_vm1, %v9568_v47, %v4428_v48  ;;  %v4440_v48 = vrot.slane %v9607_v55, 4 }
 0x38c   : > { %v9650_v9 = vsel %vm954_vm1, %v9643_v17, %v2696_v34  ;;  %4846 = vperm.xlu1 %6366, %v12113_v62   ;;  %v2682_v36 = vrot.slane %v2653_v1, 4  ;;  %v2684_v31 = vrot.slane %v2641_v3, 4 }
 0x38e   : > { %v926_v43 = vpop.permute.xlu1 %925  ;;  %v932_v60 = vpop.permute.xlu0 %931  ;;  %v2683_v27 = vsel %vm954_vm1, %v2682_v36, %v2641_v3 }
 0x38f   : > { %v4438_v51 = vrot.slane %v926_v43, 4  ;;  %v948_v62 = vpop.permute.xlu2 %947  ;;  %v2689_v3 = vperm.slane %v2683_v27, %v6797_v2 }
 0x390   : > { %v2670_v50 = vrot.slane %v948_v62, 4 }
 0x391   : > { %v4439_v11 = vsel %vm954_vm1, %v4438_v51, %v9607_v55  ;;  %v2732_v55 = vrot.slane %v2689_v3, 4 }
 0x392   : > { %v4445_v34 = vperm.slane %v4439_v11, %v6731_v22 }
 0x394   : > { %4855 = vperm.xlu1 %6366, %v12114_v5   ;;  %v4477_v35 = vsel %vm954_vm1, %v4445_v34, %v4476_v25 }
 0x396   : > { %v936_v28 = vpop.permute.xlu1 %935  ;;  %v942_v42 = vpop.permute.xlu0 %941 }
 0x397   : > { %v2671_v51 = vsel %vm954_vm1, %v2670_v50, %v936_v28  ;;  %v2672_v33 = vrot.slane %v936_v28, 4  ;;  %v2658_v4 = vrot.slane %v942_v42, 4  ;;  %v2661_v11 = vsel %vm954_vm1, %v942_v42, %v2660_v30 }
 0x398   : > { %v2677_v5 = vperm.slane %v2671_v51, %v6731_v22  ;;  %v9673_v29 = vperm.slane %v2661_v11, %v6731_v22  ;;  %v2685_v50 = vsel %vm954_vm1, %v2653_v1, %v2684_v31  ;;  %v12115_v51 = vld [vmem:[#allocation158_spill] sm:$0xff]  ;;  %v9691_v31 = vperm.slane %v4429_v40, %v6731_v22 }
 0x399   : > { %v2673_v25 = vsel %vm954_vm1, %v948_v62, %v2672_v33  ;;  %v2659_v20 = vsel %vm954_vm1, %v2658_v4, %v930_v46  ;;  %v9688_v4 = vperm.slane %v2685_v50, %v6797_v2  ;;  %v4441_v46 = vsel %vm954_vm1, %v926_v43, %v4440_v48 }
 0x39a   : > { %v9680_v28 = vperm.slane %v2673_v25, %v6731_v22  ;;  %v2706_v42 = vrot.slane %v2677_v5, 4  ;;  %v2665_v36 = vperm.slane %v2659_v20, %v6731_v22  ;;  %v2720_v47 = vrot.slane %v9673_v29, 4  ;;  %12116 = vst [vmem:[#allocation35_spill] sm:$0xff] %v9691_v31 }
 0x39b   : > { %v4452_v1 = vrot.slane %v932_v60, 4  ;;  %v4474_v62 = vrot.slane %v4445_v34, 4  ;;  %v4464_v50 = vrot.slane %v9638_v12, 4  ;;  %v9701_v43 = vperm.slane %v4441_v46, %v6731_v22 }
 0x39c   : > { %v2708_v30 = vrot.slane %v2665_v36, 4  ;;  %4864 = vperm.xlu1 %6366, %v12115_v51   ;;  %v2707_v33 = vsel %vm954_vm1, %v2706_v42, %v2665_v36  ;;  %v2721_v42 = vsel %vm954_vm1, %v9680_v28, %v2720_v47 }
 0x39d   : > { %v2713_v20 = vperm.slane %v2707_v33, %v6797_v2  ;;  %12117 = vst [vmem:[#allocation97_spill] sm:$0xff] %v9701_v43  ;;  %v2736_v33 = vrot.slane %v9688_v4, 4 }
 0x39e   : > { %v944_v27 = vpop.permute.xlu1 %943  ;;  %v950_v11 = vpop.permute.xlu0 %949  ;;  %v2709_v25 = vsel %vm954_vm1, %v2677_v5, %v2708_v30 }
 0x39f   : > { %v4450_v36 = vrot.slane %v944_v27, 4  ;;  %v4453_v40 = vsel %vm954_vm1, %v944_v27, %v4452_v1  ;;  %v4462_v51 = vrot.slane %v950_v11, 4  ;;  %v2733_v34 = vsel %vm954_vm1, %v2713_v20, %v2732_v55 }
 0x3a0   : > { %v9704_v48 = vperm.slane %v4453_v40, %v6731_v22  ;;  %4888 = vperm.xlu0 %6368, %v2733_v34   ;;  %v2730_v30 = vrot.slane %v2713_v20, 4  ;;  %v9712_v1 = vperm.slane %v2709_v25, %v6797_v2  ;;  %v2705_v40 = vperm.slane %v9650_v9, %v6797_v2  ;;  %v12119_v34 = vld [vmem:[#allocation226_spill] sm:$0xff] }
 0x3a1   : > { %v4451_v5 = vsel %vm954_vm1, %v4450_v36, %v932_v60  ;;  %v4463_v47 = vsel %vm954_vm1, %v4462_v51, %v9638_v12  ;;  %v4475_v55 = vsel %vm954_vm1, %v4474_v62, %v9657_v53  ;;  %v4488_v60 = vrot.slane %v9691_v31, 4 }
 0x3a2   : > { %12118 = vst [vmem:[#allocation158_spill] sm:$0xff] %v9704_v48  ;;  %v4457_v46 = vperm.slane %v4451_v5, %v6731_v22  ;;  %v4469_v27 = vperm.slane %v4463_v47, %v6731_v22  ;;  %v2731_v36 = vsel %vm954_vm1, %v2730_v30, %v2689_v3  ;;  %v9724_v12 = vsel %vm954_vm1, %v9712_v1, %v2736_v33 }
 0x3a3   : > { %v4465_v25 = vsel %vm954_vm1, %v950_v11, %v4464_v50  ;;  %4840 = vperm.xlu2 %6367, %v2731_v36   ;;  %v4512_v9 = vrot.slane %v9704_v48, 4  ;;  %v9730_v5 = vperm.slane %v4475_v55, %v6797_v2  ;;  %v4485_v53 = vperm.slane %v4477_v35, %v6797_v2  ;;  %v12154_v48 = vld [vmem:[#allocation228_spill] sm:$0xff] }
 0x3a4   : > { %v4500_v20 = vrot.slane %v4457_v46, 4  ;;  %v4498_v51 = vrot.slane %v4469_v27, 4  ;;  %4873 = vperm.xlu1 %6366, %v12119_v34   ;;  %v4489_v3 = vsel %vm954_vm1, %v9701_v43, %v4488_v60  ;;  %v2729_v62 = vperm.slane %v2721_v42, %v6797_v2  ;;  %v12122_v60 = vld [vmem:[#allocation62_spill] sm:$0xff]  ;;  %v12162_v43 = vld [vmem:[#allocation81_spill] sm:$0xff] }
 0x3a5   : > { %v2744_v33 = vrot.slane %v2705_v40, 4  ;;  %v9739_v50 = vperm.slane %v4465_v25, %v6731_v22  ;;  %v9748_v35 = vperm.slane %v4489_v3, %v6797_v2  ;;  %v4524_v22 = vrot.slane %v9730_v5, 4  ;;  %v12125_v3 = vld [vmem:[#allocation59_spill] sm:$0xff] }
 0x3a6   : > { %v4499_v47 = vsel %vm954_vm1, %v4498_v51, %v4457_v46  ;;  %v4501_v11 = vsel %vm954_vm1, %v4469_v27, %v4500_v20  ;;  %v2742_v55 = vrot.slane %v2729_v62, 4  ;;  %v4528_v27 = vrot.slane %v4485_v53, 4 }
 0x3a7   : > { %12120 = vst [vmem:[#allocation226_spill] sm:$0xff] %v9739_v50  ;;  %v9742_v30 = vsel %vm954_vm1, %v2729_v62, %v2744_v33  ;;  %v9745_v36 = vperm.slane %v4499_v47, %v6797_v2  ;;  %v4513_v42 = vsel %vm954_vm1, %v9739_v50, %v4512_v9  ;;  %v4509_v46 = vperm.slane %v4501_v11, %v6797_v2  ;;  %v12129_v47 = vld [vmem:[#allocation124_spill] sm:$0xff]  ;;  %v12130_v11 = vld [vmem:[#allocation121_spill] sm:$0xff] }
 0x3a8   : > { %12121 = vst [vmem:[#allocation289_spill] sm:$0xff] %v9748_v35  ;;  %4897 = vperm.xlu0 %6368, %v12122_v60   ;;  %v9756_v20 = vsel %vm954_vm1, %v2742_v55, %v2705_v40  ;;  %v9768_v9 = vperm.slane %v4513_v42, %v6797_v2  ;;  %v4536_v62 = vrot.slane %v9748_v35, 4  ;;  %v12131_v55 = vld [vmem:[#allocation27_spill] sm:$0xff]  ;;  %v12134_v42 = vld [vmem:[#allocation89_spill] sm:$0xff] }
 0x3a9   : > { %v4526_v25 = vrot.slane %v4509_v46, 4  ;;  %v9760_v51 = vsel %vm954_vm1, %v9745_v36, %v4524_v22  ;;  %v9763_v34 = vsel %vm954_vm1, %v4509_v46, %v4528_v27  ;;  %v12132_v60 = vld [vmem:[#allocation195_spill] sm:$0xff]  ;;  %v9784_v46 = vpop.permute.xlu0 %4801  ;;  %v12136_v22 = vld [vmem:[#allocation258_spill] sm:$0xff]  ;;  %v12152_v35 = vld [vmem:[#allocation61_spill] sm:$0xff] }
 0x3aa   : > { %12123 = vst [vmem:[#allocation62_spill] sm:$0xff] %v9760_v51  ;;  %v9776_v33 = vsel %vm954_vm1, %v9768_v9, %v4536_v62  ;;  %v12137_v27 = vld [vmem:[#allocation151_spill] sm:$0xff] }
 0x3ab   : > { %12124 = vst [vmem:[#allocation290_spill] sm:$0xff] %v9763_v34  ;;  %4849 = vperm.xlu2 %6367, %v12125_v3   ;;  %v9772_v40 = vsel %vm954_vm1, %v4526_v25, %v4485_v53  ;;  %v12135_v53 = vld [vmem:[#allocation259_spill] sm:$0xff]  ;;  %v9789_v25 = vpop.permute.xlu1 %4795  ;;  %v12163_v34 = vld [vmem:[#allocation8_spill] sm:$0xff] }
 0x3ac   : > { %4882 = vperm.xlu1 %6366, %v9392_v37   ;;  %12126 = vst [vmem:[#allocation59_spill] sm:$0xff] %v9768_v9  ;;  %v12133_v37 = vld [vmem:[#allocation194_spill] sm:$0xff]  ;;  %v12139_v62 = vld [vmem:[#allocation207_spill] sm:$0xff] }
 0x3ad   : > { %12127 = vst [vmem:[#allocation291_spill] sm:$0xff] %v9772_v40 }
 0x3ae   : > { %12128 = vst [vmem:[#allocation292_spill] sm:$0xff] %v9776_v33  ;;  %v12151_v33 = vld [vmem:[#allocation164_spill] sm:$0xff] }
 0x3b0   : > { %4906 = vperm.xlu0 %6368, %v12129_v47   ;;  %v9796_v47 = vpop.permute.xlu2 %4798 }
 0x3b1   : > { %v9791_v3 = vpop.permute.xlu0 %4816 }
 0x3b2   : > { %12138 = vst [vmem:[#allocation124_spill] sm:$0xff] %v9791_v3  ;;  %v12184_v3 = vld [vmem:[#allocation38_spill] sm:$0xff] }
 0x3b3   : > { %4858 = vperm.xlu2 %6367, %v12130_v11   ;;  %v9798_v11 = vpop.permute.xlu1 %4804 }
 0x3b4   : > { %4891 = vperm.xlu1 %6366, %v12131_v55  }
 0x3b8   : > { %4915 = vperm.xlu0 %6368, %v12132_v60   ;;  %v12141_v60 = vld [vmem:[#allocation37_spill] sm:$0xff] }
 0x3b9   : > { %v9800_v55 = vpop.permute.xlu0 %4825 }
 0x3ba   : > { %12140 = vst [vmem:[#allocation121_spill] sm:$0xff] %v9800_v55 }
 0x3bb   : > { %4867 = vperm.xlu2 %6367, %v12133_v37   ;;  %v12142_v37 = vld [vmem:[#allocation41_spill] sm:$0xff] }
 0x3bc   : > { %4900 = vperm.xlu1 %6366, %v12134_v42   ;;  %v2734_v42 = vrot.slane %v9712_v1, 4 }
 0x3c0   : > { %4924 = vperm.xlu0 %6368, %v12135_v53   ;;  %v9806_v53 = vpop.permute.xlu2 %4807 }
 0x3c1   : > { %12143 = vst [vmem:[#allocation27_spill] sm:$0xff] %v9806_v53 }
 0x3c3   : > { %4876 = vperm.xlu2 %6367, %v12136_v22   ;;  %v9811_v22 = vpop.permute.xlu1 %4810 }
 0x3c4   : > { %4909 = vperm.xlu1 %6366, %v12137_v27   ;;  %12146 = vst [vmem:[#allocation194_spill] sm:$0xff] %v9811_v22  ;;  %v2735_v27 = vsel %vm954_vm1, %v2734_v42, %v9688_v4  ;;  %v12156_v42 = vld [vmem:[#allocation231_spill] sm:$0xff]  ;;  %v12214_v22 = vld [vmem:[#allocation117_spill] sm:$0xff] }
 0x3c8   : > { %4933 = vperm.xlu0 %6368, %v9625_v14   ;;  %v9808_v14 = vpop.permute.xlu0 %4834 }
 0x3c9   : > { %12144 = vst [vmem:[#allocation195_spill] sm:$0xff] %v9808_v14 }
 0x3cb   : > { %4885 = vperm.xlu2 %6367, %v9619_v16   ;;  %v12145_v16 = vld [vmem:[#allocation99_spill] sm:$0xff]  ;;  %v9821_v1 = vpop.permute.xlu1 %4819 }
 0x3cc   : > { %4918 = vperm.xlu1 %6366, %v12139_v62   ;;  %v12147_v62 = vld [vmem:[#allocation103_spill] sm:$0xff]  ;;  %12150 = vst [vmem:[#allocation259_spill] sm:$0xff] %v9821_v1 }
 0x3d0   : > { %4942 = vperm.xlu0 %6368, %v12141_v60   ;;  %v12148_v60 = vld [vmem:[#allocation160_spill] sm:$0xff] }
 0x3d3   : > { %4894 = vperm.xlu2 %6367, %v12142_v37   ;;  %v9817_v37 = vpop.permute.xlu2 %4813  ;;  %v9835_v50 = vpop.permute.xlu1 %4828 }
 0x3d4   : > { %4927 = vperm.xlu1 %6366, %v9120_v26   ;;  %12149 = vst [vmem:[#allocation89_spill] sm:$0xff] %v9817_v37  ;;  %v9819_v26 = vpop.permute.xlu0 %4843 }
 0x3d5   : > { %12160 = vst [vmem:[#allocation207_spill] sm:$0xff] %v9835_v50 }
 0x3d8   : > { %4951 = vperm.xlu0 %6368, %v12145_v16   ;;  %v12153_v16 = vld [vmem:[#allocation19_spill] sm:$0xff] }
 0x3d9   : > { %v1038_v9 = vrot.slane %v12153_v16, 4 }
 0x3db   : > { %4903 = vperm.xlu2 %6367, %v12147_v62   ;;  %v9827_v4 = vpop.permute.xlu2 %4822 }
 0x3dc   : > { %4936 = vperm.xlu1 %6366, %v2735_v27   ;;  %12155 = vst [vmem:[#allocation258_spill] sm:$0xff] %v9827_v4  ;;  %v12157_v27 = vld [vmem:[#allocation123_spill] sm:$0xff]  ;;  %v9831_v62 = vpop.permute.xlu0 %4852 }
 0x3dd   : > { %12158 = vst [vmem:[#allocation151_spill] sm:$0xff] %v9831_v62 }
 0x3e0   : > { %4960 = vperm.xlu0 %6368, %v12148_v60   ;;  %v12159_v60 = vld [vmem:[#allocation16_spill] sm:$0xff] }
 0x3e1   : > { %v1039_v31 = vsel %vm954_vm1, %v1038_v9, %v12159_v60  ;;  %v12165_v60 = vld [vmem:[#allocation78_spill] sm:$0xff] }
 0x3e3   : > { %4912 = vperm.xlu2 %6367, %v12151_v33   ;;  %v9838_v33 = vperm.slane %v1039_v31, %v6797_v2  ;;  %v9850_v31 = vpop.permute.xlu2 %4831 }
 0x3e4   : > { %4945 = vperm.xlu1 %6366, %v12152_v35   ;;  %v12161_v35 = vld [vmem:[#allocation9_spill] sm:$0xff]  ;;  %12166 = vst [vmem:[#allocation37_spill] sm:$0xff] %v9850_v31  ;;  %v9858_v14 = vpop.permute.xlu0 %4861  ;;  %v12174_v31 = vld [vmem:[#allocation140_spill] sm:$0xff] }
 0x3e5   : > { %v1014_v16 = vrot.slane %v12161_v35, 4  ;;  %v1058_v9 = vrot.slane %v9838_v33, 4  ;;  %12169 = vst [vmem:[#allocation99_spill] sm:$0xff] %v9858_v14 }
 0x3e8   : > { %4969 = vperm.xlu0 %6368, %v12154_v48   ;;  %v1374_v48 = vrot.slane %v12162_v43, 4 }
 0x3ea   : > { %v1375_v51 = vsel %vm954_vm1, %v1374_v48, %v12165_v60  ;;  %v12171_v48 = vld [vmem:[#allocation64_spill] sm:$0xff] }
 0x3eb   : > { %4921 = vperm.xlu2 %6367, %v12156_v42   ;;  %v1015_v42 = vsel %vm954_vm1, %v1014_v16, %v12163_v34  ;;  %v9863_v34 = vperm.slane %v1375_v51, %v6797_v2  ;;  %v12170_v16 = vld [vmem:[#allocation143_spill] sm:$0xff] }
 0x3ec   : > { %4954 = vperm.xlu1 %6366, %v12157_v27   ;;  %v12164_v27 = vld [vmem:[#allocation193_spill] sm:$0xff]  ;;  %v9855_v43 = vperm.slane %v1015_v42, %v6797_v2  ;;  %v9887_v4 = vpop.permute.xlu0 %4870 }
 0x3ed   : > { %v12173_v42 = vld [vmem:[#allocation257_spill] sm:$0xff]  ;;  %12178 = vst [vmem:[#allocation160_spill] sm:$0xff] %v9887_v4 }
 0x3f0   : > { %4978 = vperm.xlu0 %6368, %v9398_v52   ;;  %v12168_v52 = vld [vmem:[#allocation67_spill] sm:$0xff] }
 0x3f1   : > { %v1350_v35 = vrot.slane %v12168_v52, 4  ;;  %v1394_v52 = vrot.slane %v9863_v34, 4 }
 0x3f3   : > { %4930 = vperm.xlu2 %6367, %v9412_v21   ;;  %v1059_v21 = vsel %vm954_vm1, %v1058_v9, %v9855_v43  ;;  %v1351_v60 = vsel %vm954_vm1, %v1350_v35, %v12171_v48  ;;  %v12177_v48 = vld [vmem:[#allocation200_spill] sm:$0xff] }
 0x3f4   : > { %4963 = vperm.xlu1 %6366, %v12164_v27   ;;  %v1710_v27 = vrot.slane %v12170_v16, 4  ;;  %v9878_v51 = vperm.slane %v1351_v60, %v6797_v2 }
 0x3f6   : > { %v9852_v40 = vpop.permute.xlu1 %4837  ;;  %v1711_v55 = vsel %vm954_vm1, %v1710_v27, %v12174_v31  ;;  %v1395_v35 = vsel %vm954_vm1, %v1394_v52, %v9878_v51  ;;  %v12179_v31 = vld [vmem:[#allocation126_spill] sm:$0xff] }
 0x3f7   : > { %12167 = vst [vmem:[#allocation41_spill] sm:$0xff] %v9852_v40  ;;  %v12172_v40 = vld [vmem:[#allocation26_spill] sm:$0xff] }
 0x3f8   : > { %4987 = vperm.xlu0 %6368, %v1059_v21   ;;  %v12176_v21 = vld [vmem:[#allocation129_spill] sm:$0xff] }
 0x3f9   : > { %v1686_v16 = vrot.slane %v12176_v21, 4  ;;  %v12181_v21 = vld [vmem:[#allocation198_spill] sm:$0xff] }
 0x3fb   : > { %4939 = vperm.xlu2 %6367, %v12172_v40   ;;  %v9884_v40 = vperm.slane %v1711_v55, %v6797_v2  ;;  %v1687_v27 = vsel %vm954_vm1, %v1686_v16, %v12179_v31  ;;  %v1170_v16 = vrot.slane %v12184_v3, 4  ;;  %v12185_v31 = vld [vmem:[#allocation265_spill] sm:$0xff] }
 0x3fc   : > { %4972 = vperm.xlu1 %6366, %v12173_v42   ;;  %v2046_v42 = vrot.slane %v12177_v48, 4  ;;  %v9901_v48 = vperm.slane %v1687_v27, %v6797_v2  ;;  %v2382_v1 = vrot.slane %v12185_v31, 4  ;;  %v12188_v27 = vld [vmem:[#allocation196_spill] sm:$0xff] }
 0x3fd   : > { %v9873_v50 = vpop.permute.xlu2 %4840  ;;  %v1730_v60 = vrot.slane %v9884_v40, 4 }
 0x3fe   : > { %12175 = vst [vmem:[#allocation103_spill] sm:$0xff] %v9873_v50  ;;  %v9875_v9 = vpop.permute.xlu1 %4846  ;;  %v12180_v50 = vld [vmem:[#allocation88_spill] sm:$0xff]  ;;  %v2047_v52 = vsel %vm954_vm1, %v2046_v42, %v12181_v21  ;;  %v9911_v42 = vpop.permute.xlu0 %4879  ;;  %v12187_v21 = vld [vmem:[#allocation33_spill] sm:$0xff] }
 0x3ff   : > { %12186 = vst [vmem:[#allocation61_spill] sm:$0xff] %v9911_v42  ;;  %v1171_v37 = vsel %vm954_vm1, %v1170_v16, %v12187_v21  ;;  %v12193_v42 = vld [vmem:[#allocation262_spill] sm:$0xff]  ;;  %v12194_v21 = vld [vmem:[#allocation100_spill] sm:$0xff] }
 0x400   : > { %4996 = vperm.xlu0 %6368, %v1395_v35   ;;  %v12183_v35 = vld [vmem:[#allocation197_spill] sm:$0xff]  ;;  %v2358_v16 = vrot.slane %v12193_v42, 4  ;;  %v1506_v53 = vrot.slane %v12194_v21, 4  ;;  %v12198_v42 = vld [vmem:[#allocation204_spill] sm:$0xff] }
 0x401   : > { %v2022_v4 = vrot.slane %v12183_v35, 4  ;;  %v12189_v35 = vld [vmem:[#allocation150_spill] sm:$0xff] }
 0x403   : > { %4948 = vperm.xlu2 %6367, %v12180_v50   ;;  %v1731_v50 = vsel %vm954_vm1, %v1730_v60, %v9901_v48  ;;  %v12190_v60 = vld [vmem:[#allocation263_spill] sm:$0xff] }
 0x404   : > { %4981 = vperm.xlu1 %6366, %v9622_v0   ;;  %v9908_v0 = vperm.slane %v2047_v52, %v6797_v2  ;;  %v2383_v52 = vsel %vm954_vm1, %v2382_v1, %v12190_v60 }
 0x405   : > { %v9896_v14 = vpop.permute.xlu2 %4849 }
 0x406   : > { %v9898_v55 = vpop.permute.xlu1 %4855  ;;  %v2066_v3 = vrot.slane %v9908_v0, 4 }
 0x407   : > { %12182 = vst [vmem:[#allocation164_spill] sm:$0xff] %v9898_v55  ;;  %v2023_v55 = vsel %vm954_vm1, %v2022_v4, %v12188_v27  ;;  %v2718_v27 = vrot.slane %v9680_v28, 4 }
 0x408   : > { %5005 = vperm.xlu0 %6368, %v1731_v50   ;;  %v9926_v50 = vperm.slane %v2023_v55, %v6797_v2  ;;  %v12197_v55 = vld [vmem:[#allocation260_spill] sm:$0xff] }
 0x40a   : > { %v2067_v4 = vsel %vm954_vm1, %v2066_v3, %v9926_v50  ;;  %v2719_v3 = vsel %vm954_vm1, %v2718_v27, %v9673_v29 }
 0x40b   : > { %4957 = vperm.xlu2 %6367, %v12189_v35   ;;  %v12196_v35 = vld [vmem:[#allocation95_spill] sm:$0xff] }
 0x40c   : > { %4990 = vperm.xlu1 %6366, %v1171_v37   ;;  %v9933_v37 = vperm.slane %v2383_v52, %v6797_v2  ;;  %v1507_v60 = vsel %vm954_vm1, %v1506_v53, %v12196_v35  ;;  %v2694_v53 = vrot.slane %v9643_v17, 4  ;;  %v12201_v35 = vld [vmem:[#allocation161_spill] sm:$0xff]  ;;  %v12205_v17 = vld [vmem:[#allocation55_spill] sm:$0xff] }
 0x40d   : > { %v9921_v62 = vpop.permute.xlu2 %4858 }
 0x40e   : > { %12191 = vst [vmem:[#allocation19_spill] sm:$0xff] %v9921_v62  ;;  %v9923_v31 = vpop.permute.xlu1 %4864  ;;  %v2402_v21 = vrot.slane %v9933_v37, 4 }
 0x40f   : > { %12192 = vst [vmem:[#allocation228_spill] sm:$0xff] %v9923_v31  ;;  %v2359_v31 = vsel %vm954_vm1, %v2358_v16, %v12197_v55  ;;  %v12202_v55 = vld [vmem:[#allocation53_spill] sm:$0xff] }
 0x410   : > { %5014 = vperm.xlu0 %6368, %v2067_v4   ;;  %v9951_v4 = vperm.slane %v2359_v31, %v6797_v2  ;;  %v1238_v29 = vrot.slane %v12202_v55, 4  ;;  %v2695_v31 = vsel %vm954_vm1, %v2694_v53, %v9636_v24  ;;  %v12208_v55 = vld [vmem:[#allocation223_spill] sm:$0xff]  ;;  %v12210_v53 = vld [vmem:[#allocation54_spill] sm:$0xff] }
 0x412   : > { %v9936_v1 = vpop.permute.xlu0 %4888  ;;  %v2403_v16 = vsel %vm954_vm1, %v2402_v21, %v9951_v4 }
 0x413   : > { %12195 = vst [vmem:[#allocation231_spill] sm:$0xff] %v9936_v1  ;;  %4966 = vperm.xlu2 %6367, %v12198_v42   ;;  %v1842_v1 = vrot.slane %v12201_v35, 4  ;;  %v12204_v42 = vld [vmem:[#allocation156_spill] sm:$0xff] }
 0x414   : > { %4999 = vperm.xlu1 %6366, %v1507_v60   ;;  %v9958_v60 = vperm.slane %v2719_v3, %v6797_v2 }
 0x415   : > { %v9946_v52 = vpop.permute.xlu2 %4867 }
 0x416   : > { %12199 = vst [vmem:[#allocation123_spill] sm:$0xff] %v9946_v52  ;;  %v9948_v28 = vpop.permute.xlu1 %4873  ;;  %v1262_v52 = vrot.slane %v12205_v17, 4  ;;  %v2738_v21 = vrot.slane %v9958_v60, 4  ;;  %v12211_v17 = vld [vmem:[#allocation115_spill] sm:$0xff] }
 0x417   : > { %12200 = vst [vmem:[#allocation16_spill] sm:$0xff] %v9948_v28  ;;  %v1843_v28 = vsel %vm954_vm1, %v1842_v1, %v12204_v42  ;;  %v12209_v1 = vld [vmem:[#allocation52_spill] sm:$0xff] }
 0x418   : > { %5023 = vperm.xlu0 %6368, %v2403_v16   ;;  %v9975_v16 = vperm.slane %v2695_v31, %v6797_v2  ;;  %v1239_v42 = vsel %vm954_vm1, %v1238_v29, %v12209_v1  ;;  %v12213_v31 = vld [vmem:[#allocation221_spill] sm:$0xff]  ;;  %v1598_v29 = vrot.slane %v12214_v22, 4 }
 0x419   : > { %v12219_v22 = vld [vmem:[#allocation177_spill] sm:$0xff] }
 0x41a   : > { %v9961_v27 = vpop.permute.xlu0 %4897  ;;  %v2739_v24 = vsel %vm954_vm1, %v2738_v21, %v9975_v16 }
 0x41b   : > { %12203 = vst [vmem:[#allocation9_spill] sm:$0xff] %v9961_v27  ;;  %4975 = vperm.xlu2 %6367, %v9101_v44   ;;  %v2178_v27 = vrot.slane %v12208_v55, 4  ;;  %v1263_v44 = vsel %vm954_vm1, %v1262_v52, %v12210_v53  ;;  %v12217_v53 = vld [vmem:[#allocation114_spill] sm:$0xff] }
 0x41c   : > { %5008 = vperm.xlu1 %6366, %v1843_v28   ;;  %v1245_v28 = vperm.slane %v1239_v42, %v6797_v2  ;;  %v1269_v55 = vperm.slane %v1263_v44, %v6797_v2 }
 0x41d   : > { %v9970_v3 = vpop.permute.xlu2 %4876  ;;  %v2179_v62 = vsel %vm954_vm1, %v2178_v27, %v12213_v31  ;;  %v12218_v31 = vld [vmem:[#allocation116_spill] sm:$0xff] }
 0x41e   : > { %12206 = vst [vmem:[#allocation81_spill] sm:$0xff] %v9970_v3  ;;  %v9972_v35 = vpop.permute.xlu1 %4882  ;;  %v1574_v3 = vrot.slane %v12211_v17, 4  ;;  %v1284_v1 = vrot.slane %v1245_v28, 4  ;;  %v1282_v42 = vrot.slane %v1269_v55, 4  ;;  %v1599_v44 = vsel %vm954_vm1, %v1598_v29, %v12218_v31  ;;  %v12222_v31 = vld [vmem:[#allocation179_spill] sm:$0xff] }
 0x41f   : > { %12207 = vst [vmem:[#allocation8_spill] sm:$0xff] %v9972_v35 }
 0x420   : > { %5032 = vperm.xlu0 %6368, %v2739_v24   ;;  %v2514_v24 = vrot.slane %v9382_v19, 4  ;;  %v1575_v17 = vsel %vm954_vm1, %v1574_v3, %v12217_v53  ;;  %v1285_v27 = vsel %vm954_vm1, %v1269_v55, %v1284_v1  ;;  %v12220_v3 = vld [vmem:[#allocation184_spill] sm:$0xff] }
 0x421   : > { %v1934_v53 = vrot.slane %v12220_v3, 4 }
 0x422   : > { %v9986_v35 = vpop.permute.xlu0 %4906  ;;  %v2515_v19 = vsel %vm954_vm1, %v2514_v24, %v9359_v38  ;;  %v1060_v24 = vrot.slane %v9855_v43, 4 }
 0x423   : > { %12212 = vst [vmem:[#allocation193_spill] sm:$0xff] %v9986_v35  ;;  %4984 = vperm.xlu2 %6367, %v9724_v12   ;;  %v1581_v12 = vperm.slane %v1575_v17, %v6797_v2  ;;  %v12221_v17 = vld [vmem:[#allocation175_spill] sm:$0xff]  ;;  %v1935_v38 = vsel %vm954_vm1, %v1934_v53, %v12222_v31 }
 0x424   : > { %5017 = vperm.xlu1 %6366, %v2179_v62   ;;  %v1910_v62 = vrot.slane %v12219_v22, 4 }
 0x425   : > { %v9993_v21 = vpop.permute.xlu2 %4885  ;;  %v1620_v1 = vrot.slane %v1581_v12, 4 }
 0x426   : > { %12215 = vst [vmem:[#allocation78_spill] sm:$0xff] %v9993_v21  ;;  %v9995_v52 = vpop.permute.xlu1 %4891  ;;  %v1283_v21 = vsel %vm954_vm1, %v1282_v42, %v1245_v28 }
 0x427   : > { %12216 = vst [vmem:[#allocation67_spill] sm:$0xff] %v9995_v52  ;;  %v1605_v52 = vperm.slane %v1599_v44, %v6797_v2  ;;  %v12223_v44 = vld [vmem:[#allocation241_spill] sm:$0xff] }
 0x428   : > { %5041 = vperm.xlu0 %6368, %v1285_v27   ;;  %v1911_v27 = vsel %vm954_vm1, %v1910_v62, %v12221_v17  ;;  %v2246_v22 = vrot.slane %v12223_v44, 4  ;;  %v1061_v62 = vsel %vm954_vm1, %v9838_v33, %v1060_v24  ;;  %v1941_v17 = vperm.slane %v1935_v38, %v6797_v2  ;;  %v12226_v44 = vld [vmem:[#allocation243_spill] sm:$0xff] }
 0x429   : > { %v1618_v28 = vrot.slane %v1605_v52, 4  ;;  %v1621_v42 = vsel %vm954_vm1, %v1605_v52, %v1620_v1  ;;  %v12224_v52 = vld [vmem:[#allocation248_spill] sm:$0xff]  ;;  %v1396_v38 = vrot.slane %v9878_v51, 4 }
 0x42a   : > { %v10006_v35 = vpop.permute.xlu0 %4915  ;;  %v2270_v1 = vrot.slane %v12224_v52, 4 }
 0x42b   : > { %4993 = vperm.xlu2 %6367, %v1283_v21   ;;  %v1917_v21 = vperm.slane %v1911_v27, %v6797_v2 }
 0x42c   : > { %5026 = vperm.xlu1 %6366, %v2515_v19   ;;  %v1619_v19 = vsel %vm954_vm1, %v1618_v28, %v1581_v12  ;;  %v1954_v12 = vrot.slane %v1941_v17, 4  ;;  %v2271_v33 = vsel %vm954_vm1, %v2270_v1, %v12226_v44 }
 0x42d   : > { %v10012_v55 = vpop.permute.xlu2 %4894  ;;  %v1956_v27 = vrot.slane %v1917_v21, 4 }
 0x42e   : > { %v10014_v29 = vpop.permute.xlu1 %4900 }
 0x42f   : > { %v1957_v28 = vsel %vm954_vm1, %v1941_v17, %v1956_v27  ;;  %v2606_v17 = vrot.slane %v9574_v58, 4 }
 0x430   : > { %5050 = vperm.xlu0 %6368, %v1621_v42   ;;  %v12225_v42 = vld [vmem:[#allocation240_spill] sm:$0xff] }
 0x431   : > { %v2247_v31 = vsel %vm954_vm1, %v2246_v22, %v12225_v42  ;;  %v1397_v22 = vsel %vm954_vm1, %v9863_v34, %v1396_v38  ;;  %v2277_v42 = vperm.slane %v2271_v33, %v6797_v2  ;;  %v2607_v34 = vsel %vm954_vm1, %v2606_v17, %v9541_v8 }
 0x432   : > { %v10025_v3 = vpop.permute.xlu0 %4924  ;;  %v2253_v24 = vperm.slane %v2247_v31, %v6797_v2 }
 0x433   : > { %5002 = vperm.xlu2 %6367, %v1619_v19   ;;  %v2582_v19 = vrot.slane %v9517_v41, 4 }
 0x434   : > { %5035 = vperm.xlu1 %6366, %v1061_v62   ;;  %v1955_v62 = vsel %vm954_vm1, %v1954_v12, %v1917_v21  ;;  %v2292_v27 = vrot.slane %v2253_v24, 4  ;;  %v2290_v21 = vrot.slane %v2277_v42, 4  ;;  %v1732_v12 = vrot.slane %v9901_v48, 4 }
 0x435   : > { %v10031_v53 = vpop.permute.xlu2 %4903  ;;  %v2583_v41 = vsel %vm954_vm1, %v2582_v19, %v9508_v32  ;;  %v2613_v32 = vperm.slane %v2607_v34, %v6797_v2  ;;  %v12233_v34 = vld [vmem:[#allocation42_spill] sm:$0xff] }
 0x436   : > { %v10033_v43 = vpop.permute.xlu1 %4909  ;;  %v2293_v31 = vsel %vm954_vm1, %v2277_v42, %v2292_v27  ;;  %v2589_v58 = vperm.slane %v2583_v41, %v6797_v2  ;;  %v1733_v33 = vsel %vm954_vm1, %v9884_v40, %v1732_v12  ;;  %v12231_v41 = vld [vmem:[#allocation44_spill] sm:$0xff] }
 0x438   : > { %5059 = vperm.xlu0 %6368, %v1957_v28   ;;  %v2291_v28 = vsel %vm954_vm1, %v2290_v21, %v2253_v24  ;;  %v2628_v8 = vrot.slane %v2589_v58, 4  ;;  %v2068_v24 = vrot.slane %v9926_v50, 4  ;;  %v2404_v21 = vrot.slane %v9951_v4, 4 }
 0x43a   : > { %v10044_v52 = vpop.permute.xlu0 %4933  ;;  %v2629_v48 = vsel %vm954_vm1, %v2613_v32, %v2628_v8  ;;  %v2069_v40 = vsel %vm954_vm1, %v9908_v0, %v2068_v24  ;;  %v2405_v50 = vsel %vm954_vm1, %v9933_v37, %v2404_v21  ;;  %v12238_v24 = vld [vmem:[#allocation166_spill] sm:$0xff] }
 0x43b   : > { %12227 = vst [vmem:[#allocation143_spill] sm:$0xff] %v10044_v52  ;;  %5011 = vperm.xlu2 %6367, %v1955_v62   ;;  %v2626_v62 = vrot.slane %v2613_v32, 4  ;;  %v12236_v32 = vld [vmem:[#allocation104_spill] sm:$0xff]  ;;  %v12329_v52 = vld [vmem:[#allocation206_spill] sm:$0xff] }
 0x43c   : > { %5044 = vperm.xlu1 %6366, %v1397_v22  }
 0x43d   : > { %v10050_v1 = vpop.permute.xlu2 %4912  ;;  %v2627_v22 = vsel %vm954_vm1, %v2626_v62, %v2589_v58  ;;  %v12234_v58 = vld [vmem:[#allocation106_spill] sm:$0xff] }
 0x43e   : > { %v10052_v51 = vpop.permute.xlu1 %4918  ;;  %v12237_v62 = vld [vmem:[#allocation58_spill] sm:$0xff] }
 0x440   : > { %5068 = vperm.xlu0 %6368, %v2293_v31  }
 0x442   : > { %v10062_v44 = vpop.permute.xlu0 %4942 }
 0x443   : > { %5020 = vperm.xlu2 %6367, %v2291_v28   ;;  %v2740_v28 = vrot.slane %v9975_v16, 4 }
 0x444   : > { %5053 = vperm.xlu1 %6366, %v1733_v33  }
 0x445   : > { %v10067_v38 = vpop.permute.xlu2 %4921  ;;  %v2741_v4 = vsel %vm954_vm1, %v9958_v60, %v2740_v28 }
 0x446   : > { %v10069_v19 = vpop.permute.xlu1 %4927 }
 0x447   : > { %12228 = vst [vmem:[#allocation64_spill] sm:$0xff] %v10069_v19 }
 0x448   : > { %5077 = vperm.xlu0 %6368, %v2629_v48   ;;  %v1286_v48 = vrot.slane %v12237_v62, 4  ;;  %v12247_v62 = vld [vmem:[#allocation230_spill] sm:$0xff] }
 0x44a   : > { %v10074_v42 = vpop.permute.xlu0 %4951 }
 0x44b   : > { %5029 = vperm.xlu2 %6367, %v2627_v22  }
 0x44c   : > { %5062 = vperm.xlu1 %6366, %v2069_v40   ;;  %v12240_v40 = vld [vmem:[#allocation56_spill] sm:$0xff] }
 0x44d   : > { %v10078_v17 = vpop.permute.xlu2 %4930  ;;  %v1287_v16 = vsel %vm954_vm1, %v1286_v48, %v12240_v40  ;;  %v12250_v40 = vld [vmem:[#allocation187_spill] sm:$0xff] }
 0x44e   : > { %12229 = vst [vmem:[#allocation26_spill] sm:$0xff] %v10078_v17  ;;  %v10080_v27 = vpop.permute.xlu1 %4936 }
 0x44f   : > { %12230 = vst [vmem:[#allocation257_spill] sm:$0xff] %v10080_v27 }
 0x450   : > { %5086 = vperm.xlu0 %6368, %v12231_v41   ;;  %v12241_v41 = vld [vmem:[#allocation165_spill] sm:$0xff] }
 0x452   : > { %v10084_v31 = vpop.permute.xlu0 %4960 }
 0x453   : > { %12232 = vst [vmem:[#allocation140_spill] sm:$0xff] %v10084_v31  ;;  %5038 = vperm.xlu2 %6367, %v12233_v34  }
 0x454   : > { %5071 = vperm.xlu1 %6366, %v2405_v50   ;;  %v12243_v50 = vld [vmem:[#allocation120_spill] sm:$0xff] }
 0x455   : > { %v10089_v12 = vpop.permute.xlu2 %4939  ;;  %v1622_v34 = vrot.slane %v12243_v50, 4  ;;  %v12252_v50 = vld [vmem:[#allocation183_spill] sm:$0xff] }
 0x456   : > { %v10091_v0 = vpop.permute.xlu1 %4945 }
 0x458   : > { %5095 = vperm.xlu0 %6368, %v12234_v58   ;;  %v12244_v58 = vld [vmem:[#allocation229_spill] sm:$0xff] }
 0x45a   : > { %v10095_v33 = vpop.permute.xlu0 %4969 }
 0x45b   : > { %12235 = vst [vmem:[#allocation129_spill] sm:$0xff] %v10095_v33  ;;  %5047 = vperm.xlu2 %6367, %v12236_v32  }
 0x45c   : > { %5080 = vperm.xlu1 %6366, %v2741_v4   ;;  %v12246_v4 = vld [vmem:[#allocation118_spill] sm:$0xff] }
 0x45d   : > { %v10100_v37 = vpop.permute.xlu2 %4948  ;;  %v1623_v32 = vsel %vm954_vm1, %v1622_v34, %v12246_v4 }
 0x45e   : > { %v10102_v8 = vpop.permute.xlu1 %4954 }
 0x460   : > { %5104 = vperm.xlu0 %6368, %v12238_v24  }
 0x462   : > { %v10106_v22 = vpop.permute.xlu0 %4978 }
 0x463   : > { %12239 = vst [vmem:[#allocation200_spill] sm:$0xff] %v10106_v22  ;;  %5056 = vperm.xlu2 %6367, %v12241_v41   ;;  %v12256_v22 = vld [vmem:[#allocation24_spill] sm:$0xff] }
 0x464   : > { %5089 = vperm.xlu1 %6366, %v1287_v16   ;;  %v1958_v16 = vrot.slane %v12250_v40, 4  ;;  %v12258_v40 = vld [vmem:[#allocation247_spill] sm:$0xff] }
 0x465   : > { %v10111_v60 = vpop.permute.xlu2 %4957 }
 0x466   : > { %v10113_v21 = vpop.permute.xlu1 %4963 }
 0x467   : > { %12242 = vst [vmem:[#allocation126_spill] sm:$0xff] %v10113_v21 }
 0x468   : > { %5113 = vperm.xlu0 %6368, %v12244_v58   ;;  %v1959_v58 = vsel %vm954_vm1, %v1958_v16, %v12252_v50  ;;  %v2630_v50 = vrot.slane %v9591_v18, 4  ;;  %v12268_v18 = vld [vmem:[#allocation40_spill] sm:$0xff] }
 0x46a   : > { %v10117_v28 = vpop.permute.xlu0 %4987 }
 0x46b   : > { %12245 = vst [vmem:[#allocation88_spill] sm:$0xff] %v10117_v28  ;;  %5065 = vperm.xlu2 %6367, %v12247_v62   ;;  %v12335_v28 = vld [vmem:[#allocation98_spill] sm:$0xff] }
 0x46c   : > { %5098 = vperm.xlu1 %6366, %v1623_v32   ;;  %v12255_v32 = vld [vmem:[#allocation251_spill] sm:$0xff] }
 0x46d   : > { %v10122_v48 = vpop.permute.xlu2 %4966  ;;  %v2294_v62 = vrot.slane %v12255_v32, 4  ;;  %v12263_v32 = vld [vmem:[#allocation90_spill] sm:$0xff] }
 0x46e   : > { %12248 = vst [vmem:[#allocation198_spill] sm:$0xff] %v10122_v48  ;;  %v10124_v24 = vpop.permute.xlu1 %4972 }
 0x46f   : > { %12249 = vst [vmem:[#allocation197_spill] sm:$0xff] %v10124_v24  ;;  %v12259_v24 = vld [vmem:[#allocation28_spill] sm:$0xff] }
 0x470   : > { %5122 = vperm.xlu0 %6368, %v9403_v15   ;;  %v2295_v15 = vsel %vm954_vm1, %v2294_v62, %v12258_v40  ;;  %v12265_v40 = vld [vmem:[#allocation148_spill] sm:$0xff] }
 0x472   : > { %v10128_v41 = vpop.permute.xlu0 %4996 }
 0x473   : > { %12251 = vst [vmem:[#allocation38_spill] sm:$0xff] %v10128_v41  ;;  %5074 = vperm.xlu2 %6367, %v9407_v39  }
 0x474   : > { %5107 = vperm.xlu1 %6366, %v1959_v58   ;;  %v12261_v58 = vld [vmem:[#allocation86_spill] sm:$0xff] }
 0x475   : > { %v10133_v34 = vpop.permute.xlu2 %4975 }
 0x476   : > { %12253 = vst [vmem:[#allocation265_spill] sm:$0xff] %v10133_v34  ;;  %v10135_v4 = vpop.permute.xlu1 %4981 }
 0x477   : > { %12254 = vst [vmem:[#allocation33_spill] sm:$0xff] %v10135_v4 }
 0x478   : > { %5131 = vperm.xlu0 %6368, %v12256_v22   ;;  %v2631_v22 = vsel %vm954_vm1, %v2630_v50, %v9562_v59  ;;  %v12271_v59 = vld [vmem:[#allocation205_spill] sm:$0xff] }
 0x47a   : > { %v10139_v27 = vpop.permute.xlu0 %5005 }
 0x47b   : > { %12257 = vst [vmem:[#allocation196_spill] sm:$0xff] %v10139_v27  ;;  %5083 = vperm.xlu2 %6367, %v12259_v24  }
 0x47c   : > { %5116 = vperm.xlu1 %6366, %v2295_v15  }
 0x47d   : > { %v10144_v16 = vpop.permute.xlu2 %4984 }
 0x47e   : > { %12260 = vst [vmem:[#allocation150_spill] sm:$0xff] %v10144_v16  ;;  %v10146_v39 = vpop.permute.xlu1 %4990  ;;  %v12267_v16 = vld [vmem:[#allocation152_spill] sm:$0xff] }
 0x480   : > { %5140 = vperm.xlu0 %6368, %v12261_v58  }
 0x482   : > { %v10150_v4 = vpop.permute.xlu0 %5014 }
 0x483   : > { %12262 = vst [vmem:[#allocation263_spill] sm:$0xff] %v10150_v4  ;;  %5092 = vperm.xlu2 %6367, %v12263_v32   ;;  %v12274_v32 = vld [vmem:[#allocation102_spill] sm:$0xff] }
 0x484   : > { %5125 = vperm.xlu1 %6366, %v2631_v22   ;;  %v12273_v22 = vld [vmem:[#allocation209_spill] sm:$0xff] }
 0x485   : > { %v10155_v62 = vpop.permute.xlu2 %4993 }
 0x486   : > { %v10157_v24 = vpop.permute.xlu1 %4999 }
 0x487   : > { %12264 = vst [vmem:[#allocation262_spill] sm:$0xff] %v10157_v24  ;;  %v12298_v24 = vld [vmem:[#allocation17_spill] sm:$0xff] }
 0x488   : > { %5149 = vperm.xlu0 %6368, %v12265_v40  }
 0x48a   : > { %v10160_v15 = vpop.permute.xlu0 %5023 }
 0x48b   : > { %12266 = vst [vmem:[#allocation100_spill] sm:$0xff] %v10160_v15  ;;  %5101 = vperm.xlu2 %6367, %v12267_v16   ;;  %v12277_v15 = vld [vmem:[#allocation60_spill] sm:$0xff] }
 0x48c   : > { %5134 = vperm.xlu1 %6366, %v12268_v18   ;;  %v3042_v16 = vrot.slane %v12277_v15, 4  ;;  %v12284_v15 = vld [vmem:[#allocation122_spill] sm:$0xff] }
 0x48d   : > { %v10164_v58 = vpop.permute.xlu2 %5002 }
 0x48e   : > { %12269 = vst [vmem:[#allocation95_spill] sm:$0xff] %v10164_v58  ;;  %v10166_v4 = vpop.permute.xlu1 %5008 }
 0x48f   : > { %12270 = vst [vmem:[#allocation260_spill] sm:$0xff] %v10166_v4  ;;  %v12279_v4 = vld [vmem:[#allocation162_spill] sm:$0xff] }
 0x490   : > { %5158 = vperm.xlu0 %6368, %v12271_v59   ;;  %v12280_v59 = vld [vmem:[#allocation57_spill] sm:$0xff] }
 0x492   : > { %v10169_v50 = vpop.permute.xlu0 %5032 }
 0x493   : > { %12272 = vst [vmem:[#allocation204_spill] sm:$0xff] %v10169_v50  ;;  %5110 = vperm.xlu2 %6367, %v12273_v22   ;;  %v3043_v50 = vsel %vm954_vm1, %v3042_v16, %v12280_v59  ;;  %v12287_v16 = vld [vmem:[#allocation232_spill] sm:$0xff] }
 0x494   : > { %5143 = vperm.xlu1 %6366, %v12274_v32  }
 0x495   : > { %v10173_v27 = vpop.permute.xlu2 %5011 }
 0x496   : > { %12275 = vst [vmem:[#allocation161_spill] sm:$0xff] %v10173_v27  ;;  %v10175_v40 = vpop.permute.xlu1 %5017  ;;  %v12283_v27 = vld [vmem:[#allocation51_spill] sm:$0xff] }
 0x497   : > { %12276 = vst [vmem:[#allocation53_spill] sm:$0xff] %v10175_v40  ;;  %v3018_v34 = vrot.slane %v12283_v27, 4  ;;  %v10191_v40 = vperm.slane %v3043_v50, %v6797_v2 }
 0x498   : > { %5167 = vperm.xlu0 %6368, %v9110_v61   ;;  %v3378_v61 = vrot.slane %v12284_v15, 4  ;;  %v12290_v15 = vld [vmem:[#allocation113_spill] sm:$0xff] }
 0x499   : > { %v3066_v59 = vrot.slane %v10191_v40, 4 }
 0x49a   : > { %v10179_v18 = vpop.permute.xlu0 %5041 }
 0x49b   : > { %12278 = vst [vmem:[#allocation156_spill] sm:$0xff] %v10179_v18  ;;  %5119 = vperm.xlu2 %6367, %v9136_v63   ;;  %v12286_v63 = vld [vmem:[#allocation50_spill] sm:$0xff] }
 0x49c   : > { %5152 = vperm.xlu1 %6366, %v12279_v4   ;;  %v3019_v4 = vsel %vm954_vm1, %v3018_v34, %v12286_v63  ;;  %v12291_v63 = vld [vmem:[#allocation180_spill] sm:$0xff] }
 0x49d   : > { %v10185_v22 = vpop.permute.xlu2 %5020 }
 0x49e   : > { %12281 = vst [vmem:[#allocation55_spill] sm:$0xff] %v10185_v22  ;;  %v10187_v32 = vpop.permute.xlu1 %5026 }
 0x49f   : > { %12282 = vst [vmem:[#allocation223_spill] sm:$0xff] %v10187_v32  ;;  %v12288_v32 = vld [vmem:[#allocation119_spill] sm:$0xff] }
 0x4a0   : > { %5176 = vperm.xlu0 %6368, %v9742_v30   ;;  %v3379_v27 = vsel %vm954_vm1, %v3378_v61, %v12288_v32  ;;  %v10209_v30 = vperm.slane %v3019_v4, %v6797_v2  ;;  %v12293_v32 = vld [vmem:[#allocation112_spill] sm:$0xff] }
 0x4a2   : > { %v10195_v17 = vpop.permute.xlu0 %5050  ;;  %v3067_v34 = vsel %vm954_vm1, %v3066_v59, %v10209_v30 }
 0x4a3   : > { %12285 = vst [vmem:[#allocation52_spill] sm:$0xff] %v10195_v17  ;;  %5128 = vperm.xlu2 %6367, %v9756_v20   ;;  %v3354_v17 = vrot.slane %v12290_v15, 4  ;;  %v10215_v20 = vperm.slane %v3379_v27, %v6797_v2  ;;  %v12295_v15 = vld [vmem:[#allocation178_spill] sm:$0xff] }
 0x4a4   : > { %5161 = vperm.xlu1 %6366, %v12287_v16   ;;  %v3714_v16 = vrot.slane %v12291_v63, 4  ;;  %v12297_v63 = vld [vmem:[#allocation173_spill] sm:$0xff] }
 0x4a5   : > { %v10204_v50 = vpop.permute.xlu2 %5029  ;;  %v3355_v61 = vsel %vm954_vm1, %v3354_v17, %v12293_v32  ;;  %v3402_v4 = vrot.slane %v10215_v20, 4  ;;  %v2842_v17 = vrot.slane %v12298_v24, 4  ;;  %v12299_v32 = vld [vmem:[#allocation244_spill] sm:$0xff] }
 0x4a6   : > { %12289 = vst [vmem:[#allocation54_spill] sm:$0xff] %v10204_v50  ;;  %v10206_v22 = vpop.permute.xlu1 %5035  ;;  %v12294_v50 = vld [vmem:[#allocation63_spill] sm:$0xff]  ;;  %v3715_v59 = vsel %vm954_vm1, %v3714_v16, %v12295_v15  ;;  %v4050_v41 = vrot.slane %v12299_v32, 4  ;;  %v12301_v15 = vld [vmem:[#allocation14_spill] sm:$0xff] }
 0x4a8   : > { %5185 = vperm.xlu0 %6368, %v3067_v34   ;;  %v10232_v34 = vperm.slane %v3355_v61, %v6797_v2  ;;  %v12302_v61 = vld [vmem:[#allocation171_spill] sm:$0xff] }
 0x4aa   : > { %v10218_v33 = vpop.permute.xlu0 %5059 }
 0x4ab   : > { %12292 = vst [vmem:[#allocation115_spill] sm:$0xff] %v10218_v33  ;;  %5137 = vperm.xlu2 %6367, %v12294_v50   ;;  %v3690_v33 = vrot.slane %v12297_v63, 4  ;;  %v3403_v50 = vsel %vm954_vm1, %v3402_v4, %v10232_v34  ;;  %v12303_v63 = vld [vmem:[#allocation125_spill] sm:$0xff]  ;;  %v12304_v4 = vld [vmem:[#allocation242_spill] sm:$0xff] }
 0x4ac   : > { %5170 = vperm.xlu1 %6366, %v9415_v54   ;;  %v10239_v54 = vperm.slane %v3715_v59, %v6797_v2  ;;  %v4051_v59 = vsel %vm954_vm1, %v4050_v41, %v12304_v4 }
 0x4ad   : > { %v10227_v58 = vpop.permute.xlu2 %5038  ;;  %v3691_v19 = vsel %vm954_vm1, %v3690_v33, %v12302_v61  ;;  %v4386_v61 = vrot.slane %v9548_v13, 4 }
 0x4ae   : > { %v10229_v27 = vpop.permute.xlu1 %5044  ;;  %v3738_v24 = vrot.slane %v10239_v54, 4 }
 0x4af   : > { %12296 = vst [vmem:[#allocation221_spill] sm:$0xff] %v10229_v27  ;;  %v2843_v27 = vsel %vm954_vm1, %v2842_v17, %v12301_v15  ;;  %v12308_v15 = vld [vmem:[#allocation79_spill] sm:$0xff] }
 0x4b0   : > { %5194 = vperm.xlu0 %6368, %v3403_v50   ;;  %v10257_v50 = vperm.slane %v3691_v19, %v6797_v2  ;;  %v3178_v48 = vrot.slane %v12308_v15, 4  ;;  %v12311_v19 = vld [vmem:[#allocation237_spill] sm:$0xff] }
 0x4b2   : > { %v10242_v16 = vpop.permute.xlu0 %5068  ;;  %v3739_v33 = vsel %vm954_vm1, %v3738_v24, %v10257_v50  ;;  %v4387_v24 = vsel %vm954_vm1, %v4386_v61, %v9535_v45 }
 0x4b3   : > { %12300 = vst [vmem:[#allocation117_spill] sm:$0xff] %v10242_v16  ;;  %5146 = vperm.xlu2 %6367, %v12303_v63   ;;  %v12307_v16 = vld [vmem:[#allocation238_spill] sm:$0xff]  ;;  %v12310_v63 = vld [vmem:[#allocation76_spill] sm:$0xff] }
 0x4b4   : > { %5179 = vperm.xlu1 %6366, %v2843_v27   ;;  %v4026_v17 = vrot.slane %v12307_v16, 4  ;;  %v10264_v27 = vperm.slane %v4051_v59, %v6797_v2  ;;  %v3179_v4 = vsel %vm954_vm1, %v3178_v48, %v12310_v63  ;;  %v12312_v16 = vld [vmem:[#allocation190_spill] sm:$0xff]  ;;  %v4362_v48 = vrot.slane %v9492_v56, 4  ;;  %v12315_v63 = vld [vmem:[#allocation141_spill] sm:$0xff]  ;;  %v12319_v56 = vld [vmem:[#allocation39_spill] sm:$0xff] }
 0x4b5   : > { %v10252_v18 = vpop.permute.xlu2 %5047 }
 0x4b6   : > { %12305 = vst [vmem:[#allocation114_spill] sm:$0xff] %v10252_v18  ;;  %v10254_v32 = vpop.permute.xlu1 %5053  ;;  %v4074_v15 = vrot.slane %v10264_v27, 4 }
 0x4b7   : > { %12306 = vst [vmem:[#allocation116_spill] sm:$0xff] %v10254_v32  ;;  %v4027_v32 = vsel %vm954_vm1, %v4026_v17, %v12311_v19  ;;  %v12316_v19 = vld [vmem:[#allocation32_spill] sm:$0xff] }
 0x4b8   : > { %5203 = vperm.xlu0 %6368, %v3739_v33   ;;  %v10282_v33 = vperm.slane %v4027_v32, %v6797_v2  ;;  %v2906_v45 = vrot.slane %v12316_v19, 4  ;;  %v4363_v32 = vsel %vm954_vm1, %v4362_v48, %v9484_v7  ;;  %v12325_v48 = vld [vmem:[#allocation36_spill] sm:$0xff] }
 0x4b9   : > { %v10306_v19 = vperm.slane %v4363_v32, %v6797_v2 }
 0x4ba   : > { %v10267_v41 = vpop.permute.xlu0 %5077  ;;  %v4075_v17 = vsel %vm954_vm1, %v4074_v15, %v10282_v33 }
 0x4bb   : > { %12309 = vst [vmem:[#allocation177_spill] sm:$0xff] %v10267_v41  ;;  %5155 = vperm.xlu2 %6367, %v12312_v16   ;;  %v3514_v41 = vrot.slane %v12315_v63, 4  ;;  %v12318_v16 = vld [vmem:[#allocation138_spill] sm:$0xff] }
 0x4bc   : > { %5188 = vperm.xlu1 %6366, %v3179_v4   ;;  %v10289_v4 = vperm.slane %v4387_v24, %v6797_v2  ;;  %v12320_v63 = vld [vmem:[#allocation254_spill] sm:$0xff] }
 0x4bd   : > { %v10277_v59 = vpop.permute.xlu2 %5056 }
 0x4be   : > { %12313 = vst [vmem:[#allocation184_spill] sm:$0xff] %v10277_v59  ;;  %v10279_v13 = vpop.permute.xlu1 %5062  ;;  %v2930_v59 = vrot.slane %v12319_v56, 4  ;;  %v4410_v15 = vrot.slane %v10289_v4, 4  ;;  %v12326_v56 = vld [vmem:[#allocation94_spill] sm:$0xff] }
 0x4bf   : > { %12314 = vst [vmem:[#allocation175_spill] sm:$0xff] %v10279_v13  ;;  %v3515_v13 = vsel %vm954_vm1, %v3514_v41, %v12318_v16  ;;  %v12324_v41 = vld [vmem:[#allocation31_spill] sm:$0xff] }
 0x4c0   : > { %5212 = vperm.xlu0 %6368, %v4075_v17   ;;  %v2907_v16 = vsel %vm954_vm1, %v2906_v45, %v12324_v41  ;;  %v4411_v7 = vsel %vm954_vm1, %v4410_v15, %v10306_v19  ;;  %v12330_v15 = vld [vmem:[#allocation157_spill] sm:$0xff] }
 0x4c1   : > { %v3578_v41 = vrot.slane %v12330_v15, 4  ;;  %v12336_v15 = vld [vmem:[#allocation155_spill] sm:$0xff] }
 0x4c2   : > { %v10292_v61 = vpop.permute.xlu0 %5086 }
 0x4c3   : > { %12317 = vst [vmem:[#allocation179_spill] sm:$0xff] %v10292_v61  ;;  %5164 = vperm.xlu2 %6367, %v12320_v63   ;;  %v12323_v61 = vld [vmem:[#allocation210_spill] sm:$0xff]  ;;  %v3242_v63 = vrot.slane %v12326_v56, 4 }
 0x4c4   : > { %5197 = vperm.xlu1 %6366, %v3515_v13   ;;  %v3850_v18 = vrot.slane %v12323_v61, 4  ;;  %v2931_v13 = vsel %vm954_vm1, %v2930_v59, %v12325_v48  ;;  %v12331_v59 = vld [vmem:[#allocation93_spill] sm:$0xff] }
 0x4c5   : > { %v10301_v24 = vpop.permute.xlu2 %5065  ;;  %v2937_v45 = vperm.slane %v2931_v13, %v6797_v2  ;;  %v3243_v48 = vsel %vm954_vm1, %v3242_v63, %v12331_v59  ;;  %v4186_v13 = vrot.slane %v9139_v10, 4  ;;  %v3579_v59 = vsel %vm954_vm1, %v3578_v41, %v12336_v15 }
 0x4c6   : > { %12321 = vst [vmem:[#allocation241_spill] sm:$0xff] %v10301_v24  ;;  %v10303_v17 = vpop.permute.xlu1 %5071  ;;  %v12327_v24 = vld [vmem:[#allocation101_spill] sm:$0xff]  ;;  %v3851_v61 = vsel %vm954_vm1, %v3850_v18, %v12329_v52  ;;  %v3068_v41 = vrot.slane %v10209_v30, 4 }
 0x4c7   : > { %12322 = vst [vmem:[#allocation248_spill] sm:$0xff] %v10303_v17  ;;  %v3266_v21 = vrot.slane %v12327_v24, 4  ;;  %v2913_v17 = vperm.slane %v2907_v16, %v6797_v2  ;;  %v2954_v18 = vrot.slane %v2937_v45, 4  ;;  %v4187_v10 = vsel %vm954_vm1, %v4186_v13, %v9113_v57 }
 0x4c8   : > { %5221 = vperm.xlu0 %6368, %v4411_v7   ;;  %v12332_v7 = vld [vmem:[#allocation163_spill] sm:$0xff] }
 0x4c9   : > { %v3602_v56 = vrot.slane %v12332_v7, 4  ;;  %v3267_v52 = vsel %vm954_vm1, %v3266_v21, %v12335_v28  ;;  %v12337_v7 = vld [vmem:[#allocation159_spill] sm:$0xff]  ;;  %v2955_v21 = vsel %vm954_vm1, %v2954_v18, %v2913_v17 }
 0x4ca   : > { %v10318_v32 = vpop.permute.xlu0 %5095  ;;  %v3273_v63 = vperm.slane %v3267_v52, %v6797_v2  ;;  %v3585_v52 = vperm.slane %v3579_v59, %v6797_v2  ;;  %v12345_v59 = vld [vmem:[#allocation43_spill] sm:$0xff] }
 0x4cb   : > { %12328 = vst [vmem:[#allocation240_spill] sm:$0xff] %v10318_v32  ;;  %5173 = vperm.xlu2 %6367, %v9605_v23   ;;  %v2956_v32 = vrot.slane %v2913_v17, 4  ;;  %v12342_v17 = vld [vmem:[#allocation7_spill] sm:$0xff] }
 0x4cc   : > { %5206 = vperm.xlu1 %6366, %v3851_v61   ;;  %v3249_v61 = vperm.slane %v3243_v48, %v6797_v2  ;;  %v10354_v18 = vadd.s32 4294967288, %v12342_v17 }
 0x4cd   : > { %v10328_v24 = vpop.permute.xlu2 %5074  ;;  %v2957_v23 = vsel %vm954_vm1, %v2937_v45, %v2956_v32  ;;  %v12340_v32 = vld [vmem:[#allocation219_spill] sm:$0xff] }
 0x4ce   : > { %12333 = vst [vmem:[#allocation243_spill] sm:$0xff] %v10328_v24  ;;  %v10330_v16 = vpop.permute.xlu1 %5080  ;;  %v12338_v24 = vld [vmem:[#allocation46_spill] sm:$0xff]  ;;  %v3914_v45 = vrot.slane %v12340_v32, 4  ;;  %v3292_v48 = vrot.slane %v3249_v61, 4  ;;  %v10371_v32 = vadd.s32 4294967280, %v12342_v17 }
 0x4cf   : > { %12334 = vst [vmem:[#allocation44_spill] sm:$0xff] %v10330_v16  ;;  %v3603_v16 = vsel %vm954_vm1, %v3602_v56, %v12337_v7  ;;  %v2958_v31 = vrot.slane %v12338_v24, 4  ;;  %v12341_v24 = vld [vmem:[#allocation108_spill] sm:$0xff] }
 0x4d0   : > { %5230 = vperm.xlu0 %6368, %v2957_v23   ;;  %v3290_v23 = vrot.slane %v3273_v63, 4  ;;  %v3609_v56 = vperm.slane %v3603_v16, %v6797_v2  ;;  %v3294_v15 = vrot.slane %v12341_v24, 4  ;;  %v3293_v13 = vsel %vm954_vm1, %v3273_v63, %v3292_v48  ;;  %v12347_v16 = vld [vmem:[#allocation227_spill] sm:$0xff] }
 0x4d1   : > { %v10367_v30 = vsel %vm954_vm1, %v2958_v31, %v12345_v59  ;;  %v4522_v24 = vrot.slane %v9745_v36, 4  ;;  %v5562_v63 = vperm.slane %v9789_v25, %v12342_v17  ;;  %v10378_v48 = vadd.s32 4294967272, %v12342_v17 }
 0x4d2   : > { %v10344_v28 = vpop.permute.xlu0 %5104  ;;  %12346 = vst [vmem:[#allocation58_spill] sm:$0xff] %v10367_v30  ;;  %v3291_v59 = vsel %vm954_vm1, %v3290_v23, %v3249_v61  ;;  %v12349_v30 = vld [vmem:[#allocation105_spill] sm:$0xff] }
 0x4d3   : > { %12339 = vst [vmem:[#allocation42_spill] sm:$0xff] %v10344_v28  ;;  %5182 = vperm.xlu2 %6367, %v2955_v21   ;;  %v10363_v21 = vsel %vm954_vm1, %v10191_v40, %v3068_v41  ;;  %v3404_v28 = vrot.slane %v10232_v34, 4  ;;  %v3628_v40 = vrot.slane %v3585_v52, 4  ;;  %v12348_v41 = vld [vmem:[#allocation218_spill] sm:$0xff]  ;;  %v10385_v36 = vsel %vm954_vm1, %v3294_v15, %v12349_v30 }
 0x4d4   : > { %5215 = vperm.xlu1 %6366, %v4187_v10   ;;  %v3938_v10 = vrot.slane %v12347_v16, 4  ;;  %v3915_v31 = vsel %vm954_vm1, %v3914_v45, %v12348_v41  ;;  %v3626_v16 = vrot.slane %v3609_v56, 4  ;;  %v5564_v34 = vperm.slane %v9796_v47, %v10354_v18  ;;  %v12352_v47 = vld [vmem:[#allocation224_spill] sm:$0xff]  ;;  %v12353_v41 = vld [vmem:[#allocation167_spill] sm:$0xff] }
 0x4d5   : > { %v10356_v7 = vpop.permute.xlu2 %5083  ;;  %v3629_v25 = vsel %vm954_vm1, %v3609_v56, %v3628_v40  ;;  %v4523_v23 = vsel %vm954_vm1, %v4522_v24, %v9730_v5  ;;  %v10402_v15 = vperm.slane %v3915_v31, %v6797_v2  ;;  %v5624_v5 = vperm.slane %v9875_v9, %v10354_v18 }
 0x4d6   : > { %12343 = vst [vmem:[#allocation106_spill] sm:$0xff] %v10356_v7  ;;  %v10358_v57 = vpop.permute.xlu1 %5089  ;;  %v12350_v7 = vld [vmem:[#allocation168_spill] sm:$0xff]  ;;  %v3939_v56 = vsel %vm954_vm1, %v3938_v10, %v12352_v47  ;;  %v5566_v30 = vsel %vm5565_vm2, %v5564_v34, %v5562_v63  ;;  %v4250_v10 = vrot.slane %v9339_v6, 4  ;;  %v5626_v24 = vperm.slane %v9896_v14, %v10371_v32 }
 0x4d7   : > { %12344 = vst [vmem:[#allocation104_spill] sm:$0xff] %v10358_v57  ;;  %v10392_v57 = vsel %vm954_vm1, %v10215_v20, %v3404_v28  ;;  %v3630_v45 = vrot.slane %v12350_v7, 4  ;;  %v5572_v20 = vperm.slane %v9798_v11, %v10378_v48  ;;  %v10410_v28 = vadd.s32 4294967256, %v12342_v17 }
 0x4d8   : > { %5239 = vperm.xlu0 %6368, %v3293_v13   ;;  %v5568_v13 = vperm.slane %v9784_v46, %v10371_v32  ;;  %v10413_v46 = vadd.s32 4294967264, %v12342_v17  ;;  %v3627_v7 = vsel %vm954_vm1, %v3626_v16, %v3585_v52  ;;  %v3945_v40 = vperm.slane %v3939_v56, %v6797_v2  ;;  %v12355_v16 = vld [vmem:[#allocation194_spill] sm:$0xff]  ;;  %v12357_v56 = vld [vmem:[#allocation220_spill] sm:$0xff] }
 0x4d9   : > { %v10428_v31 = vsel %vm954_vm1, %v3630_v45, %v12353_v41  ;;  %v5623_v6 = vperm.slane %v9819_v26, %v12342_v17  ;;  %v3740_v52 = vrot.slane %v10257_v50, 4  ;;  %v5580_v34 = vperm.slane %v12355_v16, %v10410_v28  ;;  %v12356_v45 = vld [vmem:[#allocation27_spill] sm:$0xff] }
 0x4da   : > { %v10397_v61 = vpop.permute.xlu0 %5113  ;;  %12354 = vst [vmem:[#allocation56_spill] sm:$0xff] %v10428_v31  ;;  %v5570_v9 = vsel %vm5569_vm3, %v5568_v13, %v5566_v30  ;;  %v5576_v47 = vperm.slane %v12356_v45, %v10413_v46  ;;  %v3962_v50 = vrot.slane %v3945_v40, 4  ;;  %v4251_v30 = vsel %vm954_vm1, %v4250_v10, %v12357_v56  ;;  %v12359_v45 = vld [vmem:[#allocation151_spill] sm:$0xff] }
 0x4db   : > { %12351 = vst [vmem:[#allocation166_spill] sm:$0xff] %v10397_v61  ;;  %5191 = vperm.xlu2 %6367, %v3291_v59   ;;  %v4274_v59 = vrot.slane %v9395_v49, 4  ;;  %v5574_v14 = vsel %vm5573_vm4, %v5572_v20, %v5570_v9  ;;  %v10442_v49 = vadd.s32 4294967248, %v12342_v17  ;;  %v5625_v13 = vsel %vm5565_vm2, %v5624_v5, %v5623_v6  ;;  %v12358_v20 = vld [vmem:[#allocation234_spill] sm:$0xff]  ;;  %v12361_v5 = vld [vmem:[#allocation181_spill] sm:$0xff]  ;;  %v12362_v6 = vld [vmem:[#allocation164_spill] sm:$0xff] }
 0x4dc   : > { %5224 = vperm.xlu1 %6366, %v4523_v23   ;;  %v3964_v23 = vrot.slane %v10402_v15, 4  ;;  %v5627_v26 = vsel %vm5569_vm3, %v5626_v24, %v5625_v13  ;;  %v3966_v41 = vrot.slane %v12358_v20, 4  ;;  %v5578_v9 = vsel %vm5577_vm5, %v5576_v47, %v5574_v14  ;;  %v12363_v47 = vld [vmem:[#allocation89_spill] sm:$0xff]  ;;  %v12364_v20 = vld [vmem:[#allocation19_spill] sm:$0xff] }
 0x4dd   : > { %v10421_v11 = vpop.permute.xlu2 %5092  ;;  %v10451_v16 = vadd.s32 4294967232, %v12342_v17  ;;  %v5628_v31 = vperm.slane %v12359_v45, %v10378_v48  ;;  %v10460_v24 = vadd.s32 4294967240, %v12342_v17  ;;  %v5582_v10 = vsel %vm5581_vm6, %v5580_v34, %v5578_v9  ;;  %v12365_v9 = vld [vmem:[#allocation233_spill] sm:$0xff] }
 0x4de   : > { %v10423_v63 = vpop.permute.xlu1 %5098  ;;  %v5630_v14 = vperm.slane %v12362_v6, %v10413_v46  ;;  %v5584_v13 = vperm.slane %v12363_v47, %v10442_v49  ;;  %v4257_v45 = vperm.slane %v4251_v30, %v6797_v2  ;;  %v3965_v34 = vsel %vm954_vm1, %v3945_v40, %v3964_v23  ;;  %v12367_v6 = vld [vmem:[#allocation259_spill] sm:$0xff]  ;;  %v12368_v40 = vld [vmem:[#allocation124_spill] sm:$0xff] }
 0x4df   : > { %v5629_v56 = vsel %vm5573_vm4, %v5628_v31, %v5627_v26  ;;  %v10484_v31 = vsel %vm954_vm1, %v3966_v41, %v12365_v9  ;;  %v10487_v26 = vadd.s32 4294967224, %v12342_v17  ;;  %v5592_v47 = vperm.slane %v12367_v6, %v10451_v16 }
 0x4e0   : > { %5248 = vperm.xlu0 %6368, %v3629_v25   ;;  %v4275_v25 = vsel %vm954_vm1, %v4274_v59, %v12361_v5  ;;  %v5632_v59 = vperm.slane %v12364_v20, %v10410_v28  ;;  %12366 = vst [vmem:[#allocation120_spill] sm:$0xff] %v10484_v31  ;;  %v5586_v30 = vsel %vm11767_vm7, %v5584_v13, %v5582_v10  ;;  %v10498_v41 = vadd.s32 4294967216, %v12342_v17 }
 0x4e1   : > { %v5588_v23 = vperm.slane %v12368_v40, %v10460_v24  ;;  %v3963_v10 = vsel %vm954_vm1, %v3962_v50, %v10402_v15  ;;  %v4300_v13 = vrot.slane %v4257_v45, 4  ;;  %v10505_v9 = vadd.s32 4294967208, %v12342_v17  ;;  %v12371_v40 = vld [vmem:[#allocation258_spill] sm:$0xff]  ;;  %v12372_v15 = vld [vmem:[#allocation228_spill] sm:$0xff] }
 0x4e2   : > { %v10455_v61 = vpop.permute.xlu0 %5122  ;;  %v5636_v50 = vperm.slane %v12372_v15, %v10460_v24 }
 0x4e3   : > { %12360 = vst [vmem:[#allocation165_spill] sm:$0xff] %v10455_v61  ;;  %5200 = vperm.xlu2 %6367, %v3627_v7   ;;  %v4281_v7 = vperm.slane %v4275_v25, %v6797_v2  ;;  %v5590_v20 = vsel %vm11772_vm8, %v5588_v23, %v5586_v30  ;;  %v5596_v2 = vperm.slane %v12371_v40, %v10487_v26  ;;  %v12373_v23 = vld [vmem:[#allocation123_spill] sm:$0xff]  ;;  %v10524_v40 = vadd.s32 4294967200, %v12342_v17 }
 0x4e4   : > { %5233 = vperm.xlu1 %6366, %v10363_v21   ;;  %v10480_v21 = vsel %vm954_vm1, %v10239_v54, %v3740_v52  ;;  %v5631_v54 = vsel %vm5577_vm5, %v5630_v14, %v5629_v56  ;;  %v5655_v52 = vperm.slane %v10012_v55, %v10354_v18  ;;  %v12369_v14 = vld [vmem:[#allocation99_spill] sm:$0xff] }
 0x4e5   : > { %v10472_v5 = vpop.permute.xlu2 %5101  ;;  %v5633_v25 = vsel %vm5581_vm6, %v5632_v59, %v5631_v54  ;;  %v5634_v56 = vperm.slane %v12369_v14, %v10442_v49  ;;  %v12370_v55 = vld [vmem:[#allocation67_spill] sm:$0xff]  ;;  %v5594_v59 = vsel %vm11768_vm9, %v5592_v47, %v5590_v20  ;;  %v5638_v54 = vperm.slane %v12373_v23, %v10451_v16  ;;  %v12374_v47 = vld [vmem:[#allocation9_spill] sm:$0xff] }
 0x4e6   : > { %v10474_v61 = vpop.permute.xlu1 %5107  ;;  %v5654_v6 = vperm.slane %v12370_v55, %v12342_v17  ;;  %v4298_v55 = vrot.slane %v4281_v7, 4  ;;  %v5657_v20 = vperm.slane %v12374_v47, %v10371_v32  ;;  %v4301_v15 = vsel %vm954_vm1, %v4281_v7, %v4300_v13 }
 0x4e7   : > { %v5635_v30 = vsel %vm11767_vm7, %v5634_v56, %v5633_v25  ;;  %v5598_v25 = vsel %vm11771_vm10, %v5596_v2, %v5594_v59  ;;  %v12375_v56 = vld [vmem:[#allocation207_spill] sm:$0xff]  ;;  %v5661_v2 = vperm.slane %v10031_v53, %v10413_v46  ;;  %v10545_v13 = vadd.s32 4294967192, %v12342_v17 }
 0x4e8   : > { %5257 = vperm.xlu0 %6368, %v3965_v34   ;;  %v5656_v14 = vsel %vm5565_vm2, %v5655_v52, %v5654_v6  ;;  %v5604_v23 = vperm.slane %v12375_v56, %v10505_v9  ;;  %v5659_v52 = vperm.slane %v10014_v29, %v10378_v48  ;;  %v12377_v6 = vld [vmem:[#allocation121_spill] sm:$0xff]  ;;  %v5637_v47 = vsel %vm11772_vm8, %v5636_v50, %v5635_v30  ;;  %v12379_v30 = vld [vmem:[#allocation160_spill] sm:$0xff] }
 0x4e9   : > { %v5600_v31 = vperm.slane %v12377_v6, %v10498_v41  ;;  %v5658_v7 = vsel %vm5569_vm3, %v5657_v20, %v5656_v14  ;;  %v5639_v59 = vsel %vm11768_vm9, %v5638_v54, %v5637_v47  ;;  %v5685_v29 = vperm.slane %v10089_v12, %v12342_v17  ;;  %v12380_v20 = vld [vmem:[#allocation16_spill] sm:$0xff] }
 0x4ea   : > { %v10516_v34 = vpop.permute.xlu0 %5131  ;;  %v4299_v56 = vsel %vm954_vm1, %v4298_v55, %v4257_v45  ;;  %v5640_v14 = vperm.slane %v12379_v30, %v10487_v26  ;;  %v5642_v54 = vperm.slane %v12380_v20, %v10498_v41  ;;  %v5660_v47 = vsel %vm5573_vm4, %v5659_v52, %v5658_v7  ;;  %v12381_v55 = vld [vmem:[#allocation81_spill] sm:$0xff]  ;;  %v12383_v30 = vld [vmem:[#allocation195_spill] sm:$0xff] }
 0x4eb   : > { %5209 = vperm.xlu2 %6367, %v3963_v10   ;;  %v5602_v50 = vsel %vm11770_vm11, %v5600_v31, %v5598_v25  ;;  %v5686_v12 = vperm.slane %v10062_v44, %v10354_v18  ;;  %v5644_v31 = vperm.slane %v12381_v55, %v10505_v9  ;;  %v5662_v25 = vsel %vm5577_vm5, %v5661_v2, %v5660_v47  ;;  %v12382_v52 = vld [vmem:[#allocation193_spill] sm:$0xff] }
 0x4ec   : > { %5242 = vperm.xlu1 %6366, %v10392_v57   ;;  %v5606_v53 = vsel %vm11769_vm12, %v5604_v23, %v5602_v50  ;;  %v5641_v45 = vsel %vm11771_vm10, %v5640_v14, %v5639_v59  ;;  %v10571_v23 = vadd.s32 4294967184, %v12342_v17  ;;  %v5663_v7 = vperm.slane %v12382_v52, %v10410_v28  ;;  %v12384_v47 = vld [vmem:[#allocation61_spill] sm:$0xff]  ;;  %v12387_v52 = vld [vmem:[#allocation8_spill] sm:$0xff] }
 0x4ed   : > { %v10534_v57 = vpop.permute.xlu2 %5110  ;;  %v5687_v44 = vsel %vm5565_vm2, %v5686_v12, %v5685_v29  ;;  %v5690_v59 = vperm.slane %v10100_v37, %v10378_v48  ;;  %v4076_v50 = vrot.slane %v10282_v33, 4  ;;  %v5612_v14 = vperm.slane %v12383_v30, %v10545_v13 }
 0x4ee   : > { %v10536_v10 = vpop.permute.xlu1 %5116  ;;  %v5643_v20 = vsel %vm11770_vm11, %v5642_v54, %v5641_v45  ;;  %v5664_v29 = vsel %vm5581_vm6, %v5663_v7, %v5662_v25  ;;  %v5667_v37 = vperm.slane %v10050_v1, %v10460_v24  ;;  %v5646_v12 = vperm.slane %v12384_v47, %v10524_v40  ;;  %v12385_v1 = vld [vmem:[#allocation41_spill] sm:$0xff]  ;;  %v12391_v47 = vld [vmem:[#allocation231_spill] sm:$0xff] }
 0x4ef   : > { %12376 = vst [vmem:[#allocation229_spill] sm:$0xff] %v10536_v10  ;;  %v12378_v10 = vld [vmem:[#allocation37_spill] sm:$0xff]  ;;  %v4077_v33 = vsel %vm954_vm1, %v10264_v27, %v4076_v50  ;;  %v5616_v45 = vperm.slane %v12385_v1, %v10571_v23  ;;  %v5692_v27 = vperm.slane %v10074_v42, %v10413_v46  ;;  %v5648_v7 = vperm.slane %v12387_v52, %v10545_v13 }
 0x4f0   : > { %v5608_v6 = vperm.slane %v12378_v10, %v10524_v40  ;;  %5266 = vperm.xlu0 %6368, %v4301_v15   ;;  %v5688_v15 = vperm.slane %v10091_v0, %v10371_v32  ;;  %v5665_v0 = vperm.slane %v10033_v43, %v10442_v49  ;;  %v5696_v30 = vperm.slane %v10111_v60, %v10442_v49 }
 0x4f1   : > { %v5673_v60 = vperm.slane %v10067_v38, %v10498_v41 }
 0x4f2   : > { %v10568_v10 = vpop.permute.xlu0 %5140  ;;  %v5610_v2 = vsel %vm5609_vm13, %v5608_v6, %v5606_v53  ;;  %v5645_v6 = vsel %vm11769_vm12, %v5644_v31, %v5643_v20  ;;  %v5689_v43 = vsel %vm5569_vm3, %v5688_v15, %v5687_v44  ;;  %v4412_v53 = vrot.slane %v10306_v19, 4  ;;  %v12386_v19 = vld [vmem:[#allocation23_spill] sm:$0xff] }
 0x4f3   : > { %5218 = vperm.xlu2 %6367, %v4299_v56   ;;  %v5614_v54 = vsel %vm5613_vm14, %v5612_v14, %v5610_v2  ;;  %v5691_v55 = vsel %vm5573_vm4, %v5690_v59, %v5689_v43  ;;  %v10605_v31 = vadd.s32 4294967176, %v12342_v17  ;;  %v5666_v25 = vsel %vm11767_vm7, %v5665_v0, %v5664_v29  ;;  %v12388_v2 = vld [vmem:[#allocation78_spill] sm:$0xff] }
 0x4f4   : > { %5251 = vperm.xlu1 %6366, %v10480_v21   ;;  %v5647_v15 = vsel %vm5609_vm13, %v5646_v12, %v5645_v6  ;;  %v5668_v44 = vsel %vm11772_vm8, %v5667_v37, %v5666_v25  ;;  %v5694_v59 = vperm.slane %v10102_v8, %v10410_v28  ;;  %v5650_v50 = vperm.slane %v12388_v2, %v10571_v23  ;;  %v12389_v8 = vld [vmem:[#allocation20_spill] sm:$0xff] }
 0x4f5   : > { %v10589_v56 = vpop.permute.xlu2 %5119  ;;  %v5669_v0 = vperm.slane %v10006_v35, %v10451_v16  ;;  %v5693_v42 = vsel %vm5577_vm5, %v5692_v27, %v5691_v55  ;;  %v10627_v20 = vsel %vm5617_vm15, %v5616_v45, %v5614_v54  ;;  %v5671_v29 = vperm.slane %v10052_v51, %v10487_v26  ;;  %v12390_v35 = vld [vmem:[#allocation103_spill] sm:$0xff]  ;;  %v12392_v27 = vld [vmem:[#allocation140_spill] sm:$0xff] }
 0x4f6   : > { %v10591_v21 = vpop.permute.xlu1 %5125  ;;  %v4413_v37 = vsel %vm954_vm1, %v10289_v4, %v4412_v53  ;;  %v5748_v54 = vperm.slane %v10227_v58, %v10354_v18  ;;  %v5652_v51 = vperm.slane %v12391_v47, %v10605_v31  ;;  %v5649_v12 = vsel %vm5613_vm14, %v5648_v7, %v5647_v15  ;;  %v12393_v15 = vld [vmem:[#allocation88_spill] sm:$0xff]  ;;  %v12394_v7 = vld [vmem:[#allocation143_spill] sm:$0xff] }
 0x4f7   : > { %v5670_v43 = vsel %vm11768_vm9, %v5669_v0, %v5668_v44  ;;  %v5717_v4 = vperm.slane %v10146_v39, %v10354_v18  ;;  %v10652_v45 = vsel %vm5617_vm15, %v5650_v50, %v5649_v12  ;;  %v5719_v58 = vperm.slane %v10155_v62, %v10371_v32  ;;  %v12395_v62 = vld [vmem:[#allocation126_spill] sm:$0xff]  ;;  %v12396_v50 = vld [vmem:[#allocation85_spill] sm:$0xff] }
 0x4f8   : > { %5275 = vperm.xlu0 %6368, %v12386_v19   ;;  %v5747_v55 = vperm.slane %v10206_v22, %v12342_v17  ;;  %v5675_v25 = vperm.slane %v10025_v3, %v10505_v9  ;;  %v5672_v39 = vsel %vm11771_vm10, %v5671_v29, %v5670_v43  ;;  %v5698_v19 = vperm.slane %v12392_v27, %v10460_v24  ;;  %v12397_v0 = vld [vmem:[#allocation198_spill] sm:$0xff]  ;;  %v12398_v29 = vld [vmem:[#allocation156_spill] sm:$0xff] }
 0x4f9   : > { %v5716_v52 = vperm.slane %v12393_v15, %v12342_v17  ;;  %v5681_v44 = vperm.slane %v12394_v7, %v10571_v23  ;;  %v5700_v2 = vperm.slane %v12395_v62, %v10451_v16  ;;  %v12399_v43 = vld [vmem:[#allocation64_spill] sm:$0xff]  ;;  %v12402_v27 = vld [vmem:[#allocation38_spill] sm:$0xff] }
 0x4fa   : > { %v10624_v14 = vpop.permute.xlu0 %5149  ;;  %v5749_v22 = vsel %vm5565_vm2, %v5748_v54, %v5747_v55  ;;  %v12401_v55 = vld [vmem:[#allocation106_spill] sm:$0xff] }
 0x4fb   : > { %5227 = vperm.xlu2 %6367, %v12389_v8   ;;  %v5750_v8 = vperm.slane %v12398_v29, %v10371_v32  ;;  %v12403_v15 = vld [vmem:[#allocation114_spill] sm:$0xff]  ;;  %v12406_v29 = vld [vmem:[#allocation179_spill] sm:$0xff] }
 0x4fc   : > { %5260 = vperm.xlu1 %6366, %v4077_v33   ;;  %v5695_v33 = vsel %vm5581_vm6, %v5694_v59, %v5693_v42  ;;  %v5674_v59 = vsel %vm11770_vm11, %v5673_v60, %v5672_v39  ;;  %v5702_v42 = vperm.slane %v12397_v0, %v10487_v26  ;;  %v5677_v60 = vperm.slane %v12399_v43, %v10524_v40  ;;  %v12404_v62 = vld [vmem:[#allocation82_spill] sm:$0xff] }
 0x4fd   : > { %v10647_v53 = vpop.permute.xlu2 %5128  ;;  %v5697_v38 = vsel %vm11767_vm7, %v5696_v30, %v5695_v33  ;;  %v5718_v30 = vsel %vm5565_vm2, %v5717_v4, %v5716_v52  ;;  %v12400_v33 = vld [vmem:[#allocation221_spill] sm:$0xff]  ;;  %v5778_v39 = vperm.slane %v12401_v55, %v12342_v17  ;;  %v5751_v4 = vsel %vm5569_vm3, %v5750_v8, %v5749_v22  ;;  %v12405_v0 = vld [vmem:[#allocation262_spill] sm:$0xff]  ;;  %v12407_v8 = vld [vmem:[#allocation95_spill] sm:$0xff] }
 0x4fe   : > { %v10649_v1 = vpop.permute.xlu1 %5134  ;;  %v5699_v3 = vsel %vm11772_vm8, %v5698_v19, %v5697_v38  ;;  %v5720_v12 = vsel %vm5569_vm3, %v5719_v58, %v5718_v30  ;;  %v5752_v54 = vperm.slane %v12400_v33, %v10378_v48  ;;  %v5721_v19 = vperm.slane %v12402_v27, %v10378_v48  ;;  %v12408_v27 = vld [vmem:[#allocation104_spill] sm:$0xff] }
 0x4ff   : > { %v5754_v52 = vperm.slane %v12403_v15, %v10413_v46  ;;  %v5676_v58 = vsel %vm11769_vm12, %v5675_v25, %v5674_v59  ;;  %v5723_v30 = vperm.slane %v12405_v0, %v10413_v46  ;;  %v5779_v43 = vperm.slane %v12406_v29, %v10354_v18  ;;  %v12409_v59 = vld [vmem:[#allocation129_spill] sm:$0xff] }
 0x500   : > { %5284 = vperm.xlu0 %6368, %v12396_v50   ;;  %v5701_v50 = vsel %vm11768_vm9, %v5700_v2, %v5699_v3  ;;  %v5722_v22 = vsel %vm5573_vm4, %v5721_v19, %v5720_v12  ;;  %v5725_v55 = vperm.slane %v12407_v8, %v10410_v28  ;;  %v5704_v2 = vperm.slane %v12409_v59, %v10498_v41  ;;  %v12410_v12 = vld [vmem:[#allocation26_spill] sm:$0xff]  ;;  %v12414_v59 = vld [vmem:[#allocation265_spill] sm:$0xff] }
 0x501   : > { %v5703_v33 = vsel %vm11771_vm10, %v5702_v42, %v5701_v50  ;;  %v5753_v3 = vsel %vm5573_vm4, %v5752_v54, %v5751_v4  ;;  %v5783_v42 = vperm.slane %v10421_v11, %v10378_v48  ;;  %v5679_v19 = vperm.slane %v12410_v12, %v10545_v13  ;;  %v12411_v50 = vld [vmem:[#allocation197_spill] sm:$0xff] }
 0x502   : > { %v10686_v38 = vpop.permute.xlu0 %5158  ;;  %v5706_v0 = vperm.slane %v12411_v50, %v10505_v9  ;;  %v5755_v29 = vsel %vm5577_vm5, %v5754_v52, %v5753_v3  ;;  %v5810_v8 = vperm.slane %v10649_v1, %v10354_v18  ;;  %v5724_v54 = vsel %vm5577_vm5, %v5723_v30, %v5722_v22 }
 0x503   : > { %5236 = vperm.xlu2 %6367, %v12404_v62   ;;  %v5780_v62 = vsel %vm5565_vm2, %v5779_v43, %v5778_v39  ;;  %v12412_v39 = vld [vmem:[#allocation52_spill] sm:$0xff]  ;;  %v12413_v43 = vld [vmem:[#allocation147_spill] sm:$0xff]  ;;  %v5708_v12 = vperm.slane %v12414_v59, %v10524_v40  ;;  %v5726_v50 = vsel %vm5581_vm6, %v5725_v55, %v5724_v54  ;;  %v5809_v1 = vperm.slane %v10516_v34, %v12342_v17  ;;  %v12420_v59 = vld [vmem:[#allocation58_spill] sm:$0xff] }
 0x504   : > { %5269 = vperm.xlu1 %6366, %v4413_v37   ;;  %v5781_v37 = vperm.slane %v12408_v27, %v10371_v32  ;;  %v5705_v27 = vsel %vm11770_vm11, %v5704_v2, %v5703_v33  ;;  %v5756_v4 = vperm.slane %v12412_v39, %v10410_v28  ;;  %v12415_v33 = vld [vmem:[#allocation196_spill] sm:$0xff] }
 0x505   : > { %v5138_v15 = vpop.permute.xlu2 %5137  ;;  %v5727_v30 = vperm.slane %v12415_v33, %v10442_v49  ;;  %v12416_v2 = vld [vmem:[#allocation116_spill] sm:$0xff]  ;;  %v5811_v34 = vsel %vm5565_vm2, %v5810_v8, %v5809_v1  ;;  %v5789_v1 = vperm.slane %v10472_v5, %v10442_v49 }
 0x506   : > { %v5144_v25 = vpop.permute.xlu1 %5143  ;;  %v5812_v11 = vperm.slane %v5138_v15, %v10371_v32  ;;  %v5782_v52 = vsel %vm5569_vm3, %v5781_v37, %v5780_v62  ;;  %v5757_v22 = vsel %vm5581_vm6, %v5756_v4, %v5755_v29  ;;  %v5758_v15 = vperm.slane %v12416_v2, %v10442_v49  ;;  %v12418_v37 = vld [vmem:[#allocation240_spill] sm:$0xff]  ;;  %v12421_v29 = vld [vmem:[#allocation278_spill] sm:$0xff] }
 0x507   : > { %v5784_v3 = vsel %vm5573_vm4, %v5783_v42, %v5782_v52  ;;  %v5785_v62 = vperm.slane %v12418_v37, %v10413_v46  ;;  %v12419_v54 = vld [vmem:[#allocation144_spill] sm:$0xff]  ;;  %v5728_v33 = vsel %vm11767_vm7, %v5727_v30, %v5726_v50  ;;  %v5787_v2 = vperm.slane %v10423_v63, %v10410_v28  ;;  %v12423_v37 = vld [vmem:[#allocation161_spill] sm:$0xff] }
 0x508   : > { %5293 = vperm.xlu0 %6368, %v12413_v43   ;;  %v12417_v43 = vld [vmem:[#allocation184_spill] sm:$0xff]  ;;  %v5731_v6 = vperm.slane %v12423_v37, %v10451_v16 }
 0x509   : > { %v5760_v55 = vperm.slane %v12417_v43, %v10460_v24  ;;  %v12422_v42 = vld [vmem:[#allocation260_spill] sm:$0xff]  ;;  %v5813_v43 = vsel %vm5569_vm3, %v5812_v11, %v5811_v34  ;;  %v5786_v8 = vsel %vm5577_vm5, %v5785_v62, %v5784_v3  ;;  %v5759_v11 = vsel %vm11767_vm7, %v5758_v15, %v5757_v22  ;;  %v12426_v22 = vld [vmem:[#allocation215_spill] sm:$0xff] }
 0x50a   : > { %v10737_v39 = vpop.permute.xlu0 %5167  ;;  %v5729_v52 = vperm.slane %v12422_v42, %v10460_v24  ;;  %v12424_v42 = vld [vmem:[#allocation257_spill] sm:$0xff]  ;;  %v5816_v34 = vperm.slane %v5144_v25, %v10413_v46  ;;  %v5788_v63 = vsel %vm5581_vm6, %v5787_v2, %v5786_v8 }
 0x50b   : > { %5245 = vperm.xlu2 %6367, %v12419_v54   ;;  %v5814_v54 = vperm.slane %v10568_v10, %v10378_v48  ;;  %v5761_v3 = vsel %vm11772_vm8, %v5760_v55, %v5759_v11  ;;  %v5707_v10 = vsel %vm11769_vm12, %v5706_v0, %v5705_v27  ;;  %v12428_v27 = vld [vmem:[#allocation175_spill] sm:$0xff] }
 0x50c   : > { %5278 = vperm.xlu1 %6366, %v12420_v59   ;;  %v5678_v59 = vsel %vm5609_vm13, %v5677_v60, %v5676_v58  ;;  %v5730_v4 = vsel %vm11772_vm8, %v5729_v52, %v5728_v33  ;;  %v12425_v60 = vld [vmem:[#allocation115_spill] sm:$0xff]  ;;  %v5709_v25 = vsel %vm5609_vm13, %v5708_v12, %v5707_v10  ;;  %v5764_v33 = vperm.slane %v12428_v27, %v10487_v26  ;;  %v12429_v52 = vld [vmem:[#allocation42_spill] sm:$0xff]  ;;  %v12430_v12 = vld [vmem:[#allocation241_spill] sm:$0xff] }
 0x50d   : > { %v5147_v50 = vpop.permute.xlu2 %5146  ;;  %v5680_v37 = vsel %vm5613_vm14, %v5679_v19, %v5678_v59  ;;  %v5815_v5 = vsel %vm5573_vm4, %v5814_v54, %v5813_v43  ;;  %v5762_v58 = vperm.slane %v12425_v60, %v10451_v16  ;;  %v12427_v19 = vld [vmem:[#allocation263_spill] sm:$0xff]  ;;  %v5732_v55 = vsel %vm11768_vm9, %v5731_v6, %v5730_v4  ;;  %v12432_v59 = vld [vmem:[#allocation53_spill] sm:$0xff] }
 0x50e   : > { %v5153_v30 = vpop.permute.xlu1 %5152  ;;  %v5818_v62 = vperm.slane %v5147_v50, %v10410_v28  ;;  %v5733_v15 = vperm.slane %v12427_v19, %v10487_v26  ;;  %v5790_v43 = vsel %vm11767_vm7, %v5789_v1, %v5788_v63  ;;  %v5791_v54 = vperm.slane %v12429_v52, %v10460_v24  ;;  %v12431_v1 = vld [vmem:[#allocation212_spill] sm:$0xff]  ;;  %v12434_v10 = vld [vmem:[#allocation55_spill] sm:$0xff] }
 0x50f   : > { %v5763_v0 = vsel %vm11768_vm9, %v5762_v58, %v5761_v3  ;;  %v5817_v2 = vsel %vm5577_vm5, %v5816_v34, %v5815_v5  ;;  %v5766_v50 = vperm.slane %v12430_v12, %v10498_v41  ;;  %v5793_v6 = vperm.slane %v10474_v61, %v10451_v16  ;;  %v12433_v5 = vld [vmem:[#allocation200_spill] sm:$0xff] }
 0x510   : > { %5302 = vperm.xlu0 %6368, %v12426_v22   ;;  %v5819_v4 = vsel %vm5581_vm6, %v5818_v62, %v5817_v2  ;;  %v5735_v63 = vperm.slane %v12432_v59, %v10498_v41  ;;  %v5792_v11 = vsel %vm11772_vm8, %v5791_v54, %v5790_v43  ;;  %v5795_v34 = vperm.slane %v10534_v57, %v10487_v26  ;;  %v12436_v54 = vld [vmem:[#allocation100_spill] sm:$0xff]  ;;  %v12438_v2 = vld [vmem:[#allocation274_spill] sm:$0xff] }
 0x511   : > { %v5820_v3 = vperm.slane %v10624_v14, %v10442_v49  ;;  %v5710_v61 = vperm.slane %v12433_v5, %v10545_v13  ;;  %v5734_v62 = vsel %vm11771_vm10, %v5733_v15, %v5732_v55  ;;  %v5737_v60 = vperm.slane %v12434_v10, %v10505_v9  ;;  %v12435_v55 = vld [vmem:[#allocation33_spill] sm:$0xff]  ;;  %v12439_v12 = vld [vmem:[#allocation248_spill] sm:$0xff] }
 0x512   : > { %v10786_v8 = vpop.permute.xlu0 %5176  ;;  %v5682_v57 = vsel %vm5617_vm15, %v5681_v44, %v5680_v37  ;;  %v5765_v19 = vsel %vm11771_vm10, %v5764_v33, %v5763_v0  ;;  %v5712_v27 = vperm.slane %v12435_v55, %v10571_v23  ;;  %v5794_v52 = vsel %vm11768_vm9, %v5793_v6, %v5792_v11  ;;  %v12437_v37 = vld [vmem:[#allocation117_spill] sm:$0xff] }
 0x513   : > { %5254 = vperm.xlu2 %6367, %v12431_v1   ;;  %v5821_v14 = vsel %vm11767_vm7, %v5820_v3, %v5819_v4  ;;  %v5711_v15 = vsel %vm5613_vm14, %v5710_v61, %v5709_v25  ;;  %v5739_v7 = vperm.slane %v12436_v54, %v10524_v40  ;;  %v5736_v44 = vsel %vm11770_vm11, %v5735_v63, %v5734_v62  ;;  %v12441_v63 = vld [vmem:[#allocation243_spill] sm:$0xff]  ;;  %v12442_v3 = vld [vmem:[#allocation229_spill] sm:$0xff] }
 0x514   : > { %5287 = vperm.xlu1 %6366, %v10385_v36   ;;  %v5822_v36 = vperm.slane %v5153_v30, %v10460_v24  ;;  %v5767_v30 = vsel %vm11770_vm11, %v5766_v50, %v5765_v19  ;;  %v5768_v0 = vperm.slane %v12437_v37, %v10505_v9  ;;  %v5796_v33 = vsel %vm11771_vm10, %v5795_v34, %v5794_v52  ;;  %v12440_v50 = vld [vmem:[#allocation166_spill] sm:$0xff] }
 0x515   : > { %v5156_v58 = vpop.permute.xlu2 %5155  ;;  %v5738_v25 = vsel %vm11769_vm12, %v5737_v60, %v5736_v44  ;;  %v5770_v4 = vperm.slane %v12439_v12, %v10524_v40  ;;  %v5797_v6 = vperm.slane %v12440_v50, %v10498_v41  ;;  %v5772_v11 = vperm.slane %v12441_v63, %v10545_v13  ;;  %v12447_v52 = vld [vmem:[#allocation54_spill] sm:$0xff]  ;;  %v12453_v63 = vld [vmem:[#allocation44_spill] sm:$0xff] }
 0x516   : > { %v5162_v22 = vpop.permute.xlu1 %5161  ;;  %v5824_v43 = vperm.slane %v5156_v58, %v10451_v16  ;;  %v5823_v1 = vsel %vm11772_vm8, %v5822_v36, %v5821_v14  ;;  %v5769_v59 = vsel %vm11769_vm12, %v5768_v0, %v5767_v30  ;;  %v5799_v34 = vperm.slane %v12442_v3, %v10505_v9  ;;  %v12443_v36 = vld [vmem:[#allocation271_spill] sm:$0xff]  ;;  %v12444_v58 = vld [vmem:[#allocation56_spill] sm:$0xff] }
 0x517   : > { %vm6088_vm7 = vcmask 1041409   ;;  %v5798_v62 = vsel %vm11770_vm11, %v5797_v6, %v5796_v33  ;;  %v5801_v10 = vperm.slane %v10589_v56, %v10524_v40  ;;  %v5826_v60 = vperm.slane %v10686_v38, %v10487_v26  ;;  %v12445_v14 = vld [vmem:[#allocation223_spill] sm:$0xff]  ;;  %v12449_v0 = vld [vmem:[#allocation204_spill] sm:$0xff] }
 0x518   : > { %5311 = vperm.xlu0 %6368, %v12438_v2   ;;  %v5825_v5 = vsel %vm11768_vm9, %v5824_v43, %v5823_v1  ;;  %v5653_v19 = vsel %vm5621_vm0, %v5652_v51, %v10652_v45  ;;  %vm11773_vm9 = vcmask 1042434   ;;  %v5741_v43 = vperm.slane %v12445_v14, %v10545_v13  ;;  %v12452_v1 = vld [vmem:[#allocation291_spill] sm:$0xff] }
 0x519   : > { %v5828_v55 = vperm.slane %v5162_v22, %v10498_v41  ;;  %v12446_v56 = vperm.slane %v12424_v42, %v10605_v31  ;;  %v5740_v30 = vsel %vm5609_vm13, %v5739_v7, %v5738_v25  ;;  %v5743_v54 = vperm.slane %v12447_v52, %v10571_v23 }
 0x51a   : > { %v10839_v61 = vpop.permute.xlu0 %5185  ;;  %v5827_v47 = vsel %vm11771_vm10, %v5826_v60, %v5825_v5  ;;  %v5713_v45 = vsel %vm5617_vm15, %v5712_v27, %v5711_v15  ;;  %v5771_v37 = vsel %vm5609_vm13, %v5770_v4, %v5769_v59  ;;  %v5800_v42 = vsel %vm11769_vm12, %v5799_v34, %v5798_v62  ;;  %v12450_v27 = vld [vmem:[#allocation177_spill] sm:$0xff] }
 0x51b   : > { %5263 = vperm.xlu2 %6367, %v12443_v36   ;;  %v5684_v38 = vsel %vm5621_vm0, %v12446_v56, %v5682_v57  ;;  %v12448_v57 = vld [vmem:[#allocation150_spill] sm:$0xff]  ;;  %v5745_v33 = vperm.slane %v12449_v0, %v10605_v31  ;;  %v5773_v2 = vsel %vm5613_vm14, %v5772_v11, %v5771_v37  ;;  %v5802_v25 = vsel %vm5609_vm13, %v5801_v10, %v5800_v42  ;;  %v12451_v4 = vld [vmem:[#allocation165_spill] sm:$0xff]  ;;  %v12456_v56 = vld [vmem:[#allocation120_spill] sm:$0xff] }
 0x51c   : > { %5296 = vperm.xlu1 %6366, %v12444_v58   ;;  %v5714_v7 = vperm.slane %v12448_v57, %v10605_v31  ;;  %v5742_v15 = vsel %vm5613_vm14, %v5741_v43, %v5740_v30  ;;  %v5774_v12 = vperm.slane %v12450_v27, %v10571_v23  ;;  %v5803_v50 = vperm.slane %v12451_v4, %v10545_v13  ;;  %v12457_v57 = vld [vmem:[#allocation66_spill] sm:$0xff]  ;;  %v12460_v27 = vld [vmem:[#allocation69_spill] sm:$0xff] }
 0x51d   : > { %v5165_v44 = vpop.permute.xlu2 %5164  ;;  %v5829_v6 = vsel %vm11770_vm11, %v5828_v55, %v5827_v47  ;;  %v5744_v59 = vsel %vm5617_vm15, %v5743_v54, %v5742_v15  ;;  %v5776_v3 = vperm.slane %v12453_v63, %v10605_v31  ;;  %v5805_v11 = vperm.slane %v10591_v21, %v10571_v23  ;;  %v12455_v55 = vld [vmem:[#allocation62_spill] sm:$0xff] }
 0x51e   : > { %v5171_v51 = vpop.permute.xlu1 %5170  ;;  %v5830_v22 = vperm.slane %v5165_v44, %v10505_v9  ;;  %v5775_v5 = vsel %vm5617_vm15, %v5774_v12, %v5773_v2  ;;  %v5804_v62 = vsel %vm5613_vm14, %v5803_v50, %v5802_v25  ;;  %v5807_v10 = vperm.slane %v10647_v53, %v10605_v31  ;;  %v12458_v2 = vld [vmem:[#allocation261_spill] sm:$0xff] }
 0x51f   : > { %v5832_v60 = vperm.slane %v10737_v39, %v10524_v40  ;;  %v12454_v21 = vperm.slane %v12390_v35, %v10605_v31  ;;  %v5715_v14 = vsel %vm5621_vm0, %v5714_v7, %v5713_v45  ;;  %v5834_v43 = vperm.slane %v5171_v51, %v10545_v13 }
 0x520   : > { %5320 = vperm.xlu0 %6368, %v12452_v1   ;;  %v5831_v34 = vsel %vm11769_vm12, %v5830_v22, %v5829_v6  ;;  %vm6092_vm12 = vcmask 1043459   ;;  %v5746_v39 = vsel %vm5621_vm0, %v5745_v33, %v5744_v59  ;;  %vm6094_vm11 = vcmask 1044484  }
 0x521   : > { %v5622_v58 = vsel %vm5621_vm0, %v12454_v21, %v10627_v20  ;;  %v5833_v30 = vsel %vm5609_vm13, %v5832_v60, %v5831_v34  ;;  %vm11776_vm10 = vcmask 1045509   ;;  %v5777_v20 = vsel %vm5621_vm0, %v5776_v3, %v5775_v5  ;;  %v12462_v5 = vld [vmem:[#allocation131_spill] sm:$0xff] }
 0x522   : > { %v5195_v36 = vpop.permute.xlu0 %5194  ;;  %v6089_v53 = vsel %vm6088_vm7, %v5653_v19, %v5622_v58  ;;  %v5806_v52 = vsel %vm5617_vm15, %v5805_v11, %v5804_v62  ;;  %vm11775_vm8 = vcmask 1046534   ;;  %v5835_v37 = vsel %vm5613_vm14, %v5834_v43, %v5833_v30  ;;  %v12463_v62 = vld [vmem:[#allocation22_spill] sm:$0xff]  ;;  %v12467_v30 = vld [vmem:[#allocation84_spill] sm:$0xff] }
 0x523   : > { %5272 = vperm.xlu2 %6367, %v12455_v55   ;;  %v6091_v35 = vsel %vm11773_vm9, %v5684_v38, %v6089_v53  ;;  %v5808_v19 = vsel %vm5621_vm0, %v5807_v10, %v5806_v52  ;;  %v5838_v38 = vperm.slane %v10786_v8, %v10605_v31  ;;  %vm11774_vm9 = vcmask 1047559   ;;  %v12464_v43 = vld [vmem:[#allocation186_spill] sm:$0xff] }
 0x524   : > { %5305 = vperm.xlu1 %6366, %v12456_v56   ;;  %v6093_v44 = vsel %vm6092_vm12, %v5715_v14, %v6091_v35  ;;  %v12459_v25 = vrot.slane %v12421_v29, 4  ;;  %v5843_v59 = vperm.slane %v10839_v61, %v10371_v32  ;;  %v12461_v29 = vld [vmem:[#allocation128_spill] sm:$0xff]  ;;  %v5849_v61 = vperm.slane %v5195_v36, %v10410_v28 }
 0x525   : > { %v5174_v54 = vpop.permute.xlu2 %5173  ;;  %v6095_v45 = vsel %vm6094_vm11, %v5746_v39, %v6093_v44  ;;  %v12466_v39 = vld [vmem:[#allocation191_spill] sm:$0xff] }
 0x526   : > { %v5180_v47 = vpop.permute.xlu1 %5179  ;;  %v5836_v51 = vperm.slane %v5174_v54, %v10571_v23  ;;  %v6097_v42 = vsel %vm11776_vm10, %v5777_v20, %v6095_v45  ;;  %v4303_v15 = vsel %vm954_vm1, %v12459_v25, %v12458_v2  ;;  %vm12472_vm10 = vcmask 654912  }
 0x527   : > { %v6099_v7 = vsel %vm11775_vm8, %v5808_v19, %v6097_v42  ;;  %v5840_v50 = vperm.slane %v5180_v47, %v12342_v17  ;;  %v12468_v47 = vld [vmem:[#allocation45_spill] sm:$0xff]  ;;  %vm12469_vm8 = vcmask 523712   ;;  %v12473_v42 = vld [vmem:[#allocation255_spill] sm:$0xff] }
 0x528   : > { %v5837_v22 = vsel %vm5617_vm15, %v5836_v51, %v5835_v37  ;;  %5329 = vperm.xlu0 %6368, %v12457_v57   ;;  %v2942_v44 = vrot.slane %v12468_v47, 4  ;;  %v12470_v51 = vld [vmem:[#allocation250_spill] sm:$0xff] }
 0x529   : > { %v5839_v0 = vsel %vm5621_vm0, %v5838_v38, %v5837_v22  ;;  %v12474_v22 = vld [vmem:[#allocation146_spill] sm:$0xff] }
 0x52a   : > { %v6101_v8 = vsel %vm11774_vm9, %v5839_v0, %v6099_v7  ;;  %v5204_v33 = vpop.permute.xlu0 %5203  ;;  %vm12465_vm9 = vcmask 458112   ;;  %v12475_v57 = vld [vmem:[#allocation34_spill] sm:$0xff] }
 0x52b   : > { %6111 = vst [vmem:[%s10926_s2] sm:$0xff] %v6101_v8  ;;  %5281 = vperm.xlu2 %6367, %v12460_v27   ;;  %v5855_v36 = vperm.slane %v5204_v33, %v10451_v16  ;;  %v2943_v7 = vsel %vm954_vm1, %v2942_v44, %v12475_v57  ;;  %v12476_v33 = vld [vmem:[#allocation30_spill] sm:$0xff] }
 0x52c   : > { %5314 = vperm.xlu1 %6366, %v4303_v15   ;;  %v2918_v2 = vrot.slane %v12476_v33, 4  ;;  %v12492_v33 = vld [vmem:[#allocation154_spill] sm:$0xff] }
 0x52d   : > { %v5183_v12 = vpop.permute.xlu2 %5182 }
 0x52e   : > { %v5189_v4 = vpop.permute.xlu1 %5188  ;;  %v5841_v6 = vperm.slane %v5183_v12, %v10354_v18  ;;  %v12477_v12 = vld [vmem:[#allocation11_spill] sm:$0xff] }
 0x52f   : > { %v5845_v1 = vperm.slane %v5189_v4, %v10378_v48  ;;  %v10976_v4 = vperm.slane %v2943_v7, %v12477_v12 }
 0x530   : > { %v5842_v63 = vsel %vm5565_vm2, %v5841_v6, %v5840_v50  ;;  %5338 = vperm.xlu0 %6368, %v12461_v29   ;;  %v12478_v50 = vld [vmem:[#allocation107_spill] sm:$0xff] }
 0x531   : > { %v5844_v3 = vsel %vm5569_vm3, %v5843_v59, %v5842_v63  ;;  %v3278_v6 = vrot.slane %v12478_v50, 4  ;;  %v12480_v59 = vld [vmem:[#allocation284_spill] sm:$0xff] }
 0x532   : > { %v5846_v11 = vsel %vm5573_vm4, %v5845_v1, %v5844_v3  ;;  %v5213_v34 = vpop.permute.xlu0 %5212 }
 0x533   : > { %5290 = vperm.xlu2 %6367, %v12462_v5   ;;  %v5861_v27 = vperm.slane %v5213_v34, %v10505_v9  ;;  %v12484_v34 = vld [vmem:[#allocation213_spill] sm:$0xff] }
 0x534   : > { %5323 = vperm.xlu1 %6366, %v12463_v62   ;;  %v12483_v62 = vld [vmem:[#allocation286_spill] sm:$0xff] }
 0x535   : > { %v5192_v10 = vpop.permute.xlu2 %5191 }
 0x536   : > { %v5198_v60 = vpop.permute.xlu1 %5197  ;;  %v5847_v21 = vperm.slane %v5192_v10, %v10413_v46  ;;  %v2962_v10 = vrot.slane %v10976_v4, 4 }
 0x537   : > { %v5851_v58 = vperm.slane %v5198_v60, %v10442_v49  ;;  %v12485_v60 = vld [vmem:[#allocation96_spill] sm:$0xff] }
 0x538   : > { %v5848_v14 = vsel %vm5577_vm5, %v5847_v21, %v5846_v11  ;;  %5347 = vperm.xlu0 %6368, %v12464_v43   ;;  %v12482_v11 = vld [vmem:[#allocation29_spill] sm:$0xff]  ;;  %v3279_v21 = vsel %vm954_vm1, %v3278_v6, %v12485_v60  ;;  %v12486_v43 = vld [vmem:[#allocation92_spill] sm:$0xff]  ;;  %v12497_v60 = vld [vmem:[#allocation222_spill] sm:$0xff] }
 0x539   : > { %v5850_v55 = vsel %vm5581_vm6, %v5849_v61, %v5848_v14  ;;  %v2919_v5 = vsel %vm954_vm1, %v2918_v2, %v12482_v11  ;;  %v3590_v2 = vrot.slane %v12492_v33, 4  ;;  %v12503_v33 = vld [vmem:[#allocation170_spill] sm:$0xff] }
 0x53a   : > { %v5852_v56 = vsel %vm12465_vm9, %v5851_v58, %v5850_v55  ;;  %v5222_v53 = vpop.permute.xlu0 %5221  ;;  %vm12471_vm9 = vcmask 589312   ;;  %v10991_v14 = vperm.slane %v2919_v5, %v12477_v12  ;;  %v3254_v55 = vrot.slane %v12486_v43, 4 }
 0x53b   : > { %5299 = vperm.xlu2 %6367, %v12466_v39  }
 0x53c   : > { %5332 = vperm.xlu1 %6366, %v12467_v30   ;;  %v5867_v30 = vperm.slane %v5222_v53, %v10571_v23 }
 0x53d   : > { %v5201_v35 = vpop.permute.xlu2 %5200 }
 0x53e   : > { %v5207_v20 = vpop.permute.xlu1 %5206  ;;  %v5853_v52 = vperm.slane %v5201_v35, %v10460_v24  ;;  %v2963_v35 = vsel %vm954_vm1, %v2962_v10, %v10991_v14 }
 0x53f   : > { %v5857_v54 = vperm.slane %v5207_v20, %v10487_v26  ;;  %v11000_v20 = vperm.slane %v3279_v21, %v12477_v12 }
 0x540   : > { %v5854_v19 = vsel %vm12469_vm8, %v5853_v52, %v5852_v56  ;;  %5356 = vperm.xlu0 %6368, %v12470_v51   ;;  %vm12479_vm8 = vcmask 720512   ;;  %v12487_v52 = vld [vmem:[#allocation172_spill] sm:$0xff]  ;;  %v12488_v51 = vld [vmem:[#allocation91_spill] sm:$0xff] }
 0x541   : > { %v5856_v45 = vsel %vm12471_vm9, %v5855_v36, %v5854_v19  ;;  %v3255_v53 = vsel %vm954_vm1, %v3254_v55, %v12488_v51  ;;  %v12498_v55 = vld [vmem:[#allocation217_spill] sm:$0xff]  ;;  %vm12507_vm9 = vcmask 458112  }
 0x542   : > { %v5858_v38 = vsel %vm12472_vm10, %v5857_v54, %v5856_v45  ;;  %v5231_v37 = vpop.permute.xlu0 %5230  ;;  %vm12481_vm10 = vcmask 786112   ;;  %v3614_v54 = vrot.slane %v12487_v52, 4  ;;  %v12489_v45 = vld [vmem:[#allocation47_spill] sm:$0xff]  ;;  %v12500_v51 = vld [vmem:[#allocation277_spill] sm:$0xff] }
 0x543   : > { %5308 = vperm.xlu2 %6367, %v12473_v42   ;;  %v3298_v42 = vrot.slane %v11000_v20, 4 }
 0x544   : > { %5341 = vperm.xlu1 %6366, %v12474_v22   ;;  %v12491_v22 = vld [vmem:[#allocation169_spill] sm:$0xff] }
 0x545   : > { %v5210_v0 = vpop.permute.xlu2 %5209  ;;  %v3615_v57 = vsel %vm954_vm1, %v3614_v54, %v12491_v22 }
 0x546   : > { %v5216_v8 = vpop.permute.xlu1 %5215  ;;  %v5859_v25 = vperm.slane %v5210_v0, %v10498_v41  ;;  %v11025_v6 = vperm.slane %v3615_v57, %v12477_v12  ;;  %v12501_v57 = vld [vmem:[#allocation65_spill] sm:$0xff] }
 0x547   : > { %v5863_v15 = vperm.slane %v5216_v8, %v10524_v40  ;;  %v11016_v8 = vperm.slane %v3255_v53, %v12477_v12  ;;  %v4286_v53 = vrot.slane %v12500_v51, 4  ;;  %v12514_v51 = vld [vmem:[#allocation235_spill] sm:$0xff] }
 0x548   : > { %v5860_v1 = vsel %vm12479_vm8, %v5859_v25, %v5858_v38  ;;  %5365 = vperm.xlu0 %6368, %v12480_v59   ;;  %v12490_v38 = vld [vmem:[#allocation272_spill] sm:$0xff]  ;;  %v5872_v25 = vperm.slane %v5231_v37, %v10354_v18  ;;  %v12494_v37 = vld [vmem:[#allocation153_spill] sm:$0xff]  ;;  %v3634_v10 = vrot.slane %v11025_v6, 4  ;;  %vm12509_vm8 = vcmask 523712  }
 0x549   : > { %v5862_v63 = vsel %vm12481_vm10, %v5861_v27, %v5860_v1  ;;  %v3299_v50 = vsel %vm954_vm1, %v3298_v42, %v11016_v8  ;;  %v12493_v1 = vld [vmem:[#allocation225_spill] sm:$0xff]  ;;  %v3591_v5 = vsel %vm954_vm1, %v3590_v2, %v12494_v37  ;;  %vm12511_vm10 = vcmask 589312  }
 0x54a   : > { %v5864_v29 = vsel %vm5609_vm13, %v5863_v15, %v5862_v63  ;;  %v5240_v3 = vpop.permute.xlu0 %5239  ;;  %v3950_v59 = vrot.slane %v12493_v1, 4  ;;  %v11040_v43 = vperm.slane %v3591_v5, %v12477_v12  ;;  %v12506_v5 = vld [vmem:[#allocation130_spill] sm:$0xff] }
 0x54b   : > { %5317 = vperm.xlu2 %6367, %v12483_v62   ;;  %v12495_v62 = vld [vmem:[#allocation109_spill] sm:$0xff]  ;;  %v5878_v54 = vperm.slane %v5240_v3, %v10413_v46 }
 0x54c   : > { %5350 = vperm.xlu1 %6366, %v12484_v34   ;;  %v12496_v34 = vld [vmem:[#allocation290_spill] sm:$0xff]  ;;  %v3951_v21 = vsel %vm954_vm1, %v3950_v59, %v12497_v60  ;;  %v12505_v59 = vld [vmem:[#allocation276_spill] sm:$0xff] }
 0x54d   : > { %v5219_v58 = vpop.permute.xlu2 %5218 }
 0x54e   : > { %v5225_v61 = vpop.permute.xlu1 %5224  ;;  %v5865_v56 = vperm.slane %v5219_v58, %v10545_v13 }
 0x54f   : > { %v5869_v39 = vperm.slane %v5225_v61, %v10605_v31 }
 0x550   : > { %v5866_v36 = vsel %vm5613_vm14, %v5865_v56, %v5864_v29  ;;  %5374 = vperm.xlu0 %6368, %v2963_v35   ;;  %v3926_v56 = vrot.slane %v12498_v55, 4  ;;  %v12499_v35 = vld [vmem:[#allocation68_spill] sm:$0xff] }
 0x551   : > { %v5868_v47 = vsel %vm5617_vm15, %v5867_v30, %v5866_v36  ;;  %v3074_v52 = vrot.slane %v12499_v35, 4  ;;  %v3635_v36 = vsel %vm954_vm1, %v3634_v10, %v11040_v43 }
 0x552   : > { %v11006_v44 = vsel %vm5621_vm0, %v5869_v39, %v5868_v47  ;;  %v5249_v19 = vpop.permute.xlu0 %5248  ;;  %v11050_v47 = vperm.slane %v3951_v21, %v12477_v12 }
 0x553   : > { %5326 = vperm.xlu2 %6367, %v12489_v45   ;;  %v3075_v3 = vsel %vm954_vm1, %v3074_v52, %v12501_v57  ;;  %v12515_v57 = vld [vmem:[#allocation10_spill] sm:$0xff] }
 0x554   : > { %5359 = vperm.xlu1 %6366, %v12490_v38   ;;  %v3970_v2 = vrot.slane %v11050_v47, 4 }
 0x555   : > { %v5228_v7 = vpop.permute.xlu2 %5227 }
 0x556   : > { %v5234_v0 = vpop.permute.xlu1 %5233  ;;  %v5871_v15 = vperm.slane %v5228_v7, %v12342_v17  ;;  %v12502_v7 = vld [vmem:[#allocation216_spill] sm:$0xff] }
 0x557   : > { %v5874_v27 = vperm.slane %v5234_v0, %v10371_v32  ;;  %v3927_v0 = vsel %vm954_vm1, %v3926_v56, %v12502_v7  ;;  %v12510_v56 = vld [vmem:[#allocation15_spill] sm:$0xff] }
 0x558   : > { %v5873_v63 = vsel %vm5565_vm2, %v5872_v25, %v5871_v15  ;;  %5383 = vperm.xlu0 %6368, %v3299_v50   ;;  %v12504_v25 = vld [vmem:[#allocation245_spill] sm:$0xff]  ;;  %v11067_v1 = vperm.slane %v3927_v0, %v12477_v12 }
 0x559   : > { %v5875_v29 = vsel %vm5569_vm3, %v5874_v27, %v5873_v63  ;;  %v4287_v15 = vsel %vm954_vm1, %v4286_v53, %v12504_v25  ;;  %v4262_v63 = vrot.slane %v12505_v59, 4  ;;  %v12517_v25 = vld [vmem:[#allocation12_spill] sm:$0xff] }
 0x55a   : > { %v11030_v11 = vpop.permute.xlu0 %5257  ;;  %v3971_v10 = vsel %vm954_vm1, %v3970_v2, %v11067_v1  ;;  %v11077_v60 = vperm.slane %v4287_v15, %v12477_v12 }
 0x55b   : > { %5335 = vperm.xlu2 %6367, %v12495_v62   ;;  %v3410_v62 = vrot.slane %v12506_v5, 4 }
 0x55c   : > { %5368 = vperm.xlu1 %6366, %v12496_v34   ;;  %v5884_v34 = vperm.slane %v5249_v19, %v10460_v24  ;;  %v12512_v19 = vld [vmem:[#allocation127_spill] sm:$0xff]  ;;  %v4306_v53 = vrot.slane %v11077_v60, 4 }
 0x55d   : > { %v5237_v58 = vpop.permute.xlu2 %5236  ;;  %v3411_v52 = vsel %vm954_vm1, %v3410_v62, %v12512_v19 }
 0x55e   : > { %v5243_v61 = vpop.permute.xlu1 %5242  ;;  %v5876_v39 = vperm.slane %v5237_v58, %v10378_v48  ;;  %v12508_v58 = vld [vmem:[#allocation13_spill] sm:$0xff] }
 0x55f   : > { %v5880_v30 = vperm.slane %v5243_v61, %v10410_v28  ;;  %v2806_v61 = vrot.slane %v12508_v58, 4 }
 0x560   : > { %v5877_v45 = vsel %vm5573_vm4, %v5876_v39, %v5875_v29  ;;  %5392 = vperm.xlu0 %6368, %v3635_v36   ;;  %v2830_v39 = vrot.slane %v12510_v56, 4 }
 0x561   : > { %v5879_v38 = vsel %vm5577_vm5, %v5878_v54, %v5877_v45  ;;  %v12513_v54 = vld [vmem:[#allocation275_spill] sm:$0xff] }
 0x562   : > { %v5881_v42 = vsel %vm5581_vm6, %v5880_v30, %v5879_v38  ;;  %v11056_v22 = vpop.permute.xlu0 %5266  ;;  %v4263_v36 = vsel %vm954_vm1, %v4262_v63, %v12513_v54  ;;  %v2831_v15 = vsel %vm954_vm1, %v2830_v39, %v12517_v25  ;;  %v12519_v63 = vld [vmem:[#allocation75_spill] sm:$0xff] }
 0x563   : > { %5344 = vperm.xlu2 %6367, %v12503_v33   ;;  %v12516_v33 = vld [vmem:[#allocation185_spill] sm:$0xff]  ;;  %v2837_v62 = vperm.slane %v2831_v15, %v12477_v12 }
 0x564   : > { %5377 = vperm.xlu1 %6366, %v3075_v3   ;;  %v2807_v3 = vsel %vm954_vm1, %v2806_v61, %v12515_v57  ;;  %v3746_v2 = vrot.slane %v12516_v33, 4  ;;  %v12528_v33 = vld [vmem:[#allocation137_spill] sm:$0xff] }
 0x565   : > { %v5246_v27 = vpop.permute.xlu2 %5245  ;;  %v2813_v5 = vperm.slane %v2807_v3, %v12477_v12  ;;  %v2850_v19 = vrot.slane %v2837_v62, 4  ;;  %v5896_v3 = vperm.slane %v11056_v22, %v10545_v13  ;;  %v12529_v22 = vld [vmem:[#allocation246_spill] sm:$0xff] }
 0x566   : > { %v5252_v50 = vpop.permute.xlu1 %5251  ;;  %v5882_v29 = vperm.slane %v5246_v27, %v10442_v49  ;;  %v5890_v27 = vperm.slane %v11030_v11, %v10498_v41  ;;  %v12523_v11 = vld [vmem:[#allocation182_spill] sm:$0xff] }
 0x567   : > { %v5886_v37 = vperm.slane %v5252_v50, %v10451_v16  ;;  %v3747_v61 = vsel %vm954_vm1, %v3746_v2, %v12523_v11  ;;  %v3478_v2 = vrot.slane %v12528_v33, 4 }
 0x568   : > { %v5883_v21 = vsel %vm12507_vm9, %v5882_v29, %v5881_v42  ;;  %5401 = vperm.xlu0 %6368, %v3971_v10   ;;  %v11093_v42 = vperm.slane %v4263_v36, %v12477_v12  ;;  %vm12518_vm9 = vcmask 654912   ;;  %v3142_v29 = vrot.slane %v12519_v63, 4 }
 0x569   : > { %v5885_v55 = vsel %vm12509_vm8, %v5884_v34, %v5883_v21  ;;  %vm12520_vm8 = vcmask 720512   ;;  %v12521_v34 = vld [vmem:[#allocation77_spill] sm:$0xff] }
 0x56a   : > { %v5887_v30 = vsel %vm12511_vm10, %v5886_v37, %v5885_v55  ;;  %v11084_v35 = vpop.permute.xlu0 %5275  ;;  %v4307_v50 = vsel %vm954_vm1, %v4306_v53, %v11093_v42  ;;  %v3166_v10 = vrot.slane %v12521_v34, 4  ;;  %vm12522_vm10 = vcmask 786112   ;;  %v12524_v55 = vld [vmem:[#allocation279_spill] sm:$0xff]  ;;  %v12526_v53 = vld [vmem:[#allocation249_spill] sm:$0xff] }
 0x56b   : > { %5353 = vperm.xlu2 %6367, %v12514_v51  }
 0x56c   : > { %5386 = vperm.xlu1 %6366, %v3411_v52   ;;  %v12525_v52 = vld [vmem:[#allocation73_spill] sm:$0xff] }
 0x56d   : > { %v5255_v45 = vpop.permute.xlu2 %5254  ;;  %v3143_v54 = vsel %vm954_vm1, %v3142_v29, %v12525_v52 }
 0x56e   : > { %v5261_v38 = vpop.permute.xlu1 %5260  ;;  %v5888_v7 = vperm.slane %v5255_v45, %v10487_v26  ;;  %v4082_v45 = vrot.slane %v12526_v53, 4  ;;  %v3149_v15 = vperm.slane %v3143_v54, %v12477_v12  ;;  %v12533_v54 = vld [vmem:[#allocation136_spill] sm:$0xff] }
 0x56f   : > { %v5892_v0 = vperm.slane %v5261_v38, %v10505_v9  ;;  %v12527_v38 = vld [vmem:[#allocation74_spill] sm:$0xff] }
 0x570   : > { %v5889_v59 = vsel %vm12518_vm9, %v5888_v7, %v5887_v30  ;;  %5410 = vperm.xlu0 %6368, %v4307_v50   ;;  %v2852_v30 = vrot.slane %v2813_v5, 4  ;;  %v3167_v57 = vsel %vm954_vm1, %v3166_v10, %v12527_v38  ;;  %v4083_v29 = vsel %vm954_vm1, %v4082_v45, %v12529_v22  ;;  %v12534_v38 = vld [vmem:[#allocation201_spill] sm:$0xff] }
 0x571   : > { %v5891_v37 = vsel %vm12520_vm8, %v5890_v27, %v5889_v59  ;;  %v3173_v27 = vperm.slane %v3167_v57, %v12477_v12  ;;  %v2851_v59 = vsel %vm954_vm1, %v2850_v19, %v2813_v5  ;;  %v3814_v57 = vrot.slane %v12534_v38, 4 }
 0x572   : > { %v5893_v21 = vsel %vm12522_vm10, %v5892_v0, %v5891_v37  ;;  %v11113_v58 = vpop.permute.xlu0 %5284  ;;  %v2853_v7 = vsel %vm954_vm1, %v2837_v62, %v2852_v30  ;;  %v12530_v37 = vld [vmem:[#allocation139_spill] sm:$0xff]  ;;  %vm12545_vm9 = vcmask 523712   ;;  %vm12549_vm8 = vcmask 589312  }
 0x573   : > { %5362 = vperm.xlu2 %6367, %v12524_v55   ;;  %v3502_v62 = vrot.slane %v12530_v37, 4  ;;  %v3186_v11 = vrot.slane %v3173_v27, 4  ;;  %v12532_v30 = vld [vmem:[#allocation283_spill] sm:$0xff]  ;;  %vm12550_vm10 = vcmask 654912  }
 0x574   : > { %5395 = vperm.xlu1 %6366, %v3747_v61   ;;  %v12531_v61 = vld [vmem:[#allocation135_spill] sm:$0xff]  ;;  %v4418_v19 = vrot.slane %v12532_v30, 4  ;;  %v12539_v30 = vld [vmem:[#allocation266_spill] sm:$0xff] }
 0x575   : > { %v5264_v56 = vpop.permute.xlu2 %5263  ;;  %v3479_v55 = vsel %vm954_vm1, %v3478_v2, %v12531_v61 }
 0x576   : > { %v5270_v39 = vpop.permute.xlu1 %5269  ;;  %v5894_v36 = vperm.slane %v5264_v56, %v10524_v40  ;;  %v5902_v56 = vperm.slane %v11084_v35, %v12342_v17  ;;  %v3485_v35 = vperm.slane %v3479_v55, %v12477_v12 }
 0x577   : > { %v5898_v51 = vperm.slane %v5270_v39, %v10571_v23 }
 0x578   : > { %v5895_v0 = vsel %vm5609_vm13, %v5894_v36, %v5893_v21  ;;  %5419 = vperm.xlu0 %6368, %v2853_v7   ;;  %v3188_v21 = vrot.slane %v3149_v15, 4  ;;  %v3503_v36 = vsel %vm954_vm1, %v3502_v62, %v12533_v54 }
 0x579   : > { %v5897_v25 = vsel %vm5613_vm14, %v5896_v3, %v5895_v0  ;;  %v3187_v3 = vsel %vm954_vm1, %v3186_v11, %v3149_v15  ;;  %v12535_v0 = vld [vmem:[#allocation282_spill] sm:$0xff]  ;;  %v3509_v2 = vperm.slane %v3503_v36, %v12477_v12  ;;  %v12537_v15 = vld [vmem:[#allocation199_spill] sm:$0xff]  ;;  %v12540_v36 = vld [vmem:[#allocation268_spill] sm:$0xff] }
 0x57a   : > { %v5899_v50 = vsel %vm5617_vm15, %v5898_v51, %v5897_v25  ;;  %v11135_v63 = vpop.permute.xlu0 %5293  ;;  %v3189_v52 = vsel %vm954_vm1, %v3173_v27, %v3188_v21  ;;  %v4419_v33 = vsel %vm954_vm1, %v4418_v19, %v12535_v0  ;;  %v12536_v25 = vld [vmem:[#allocation203_spill] sm:$0xff]  ;;  %v3815_v62 = vsel %vm954_vm1, %v3814_v57, %v12537_v15  ;;  %v12538_v11 = vld [vmem:[#allocation202_spill] sm:$0xff]  ;;  %v12544_v15 = vld [vmem:[#allocation97_spill] sm:$0xff] }
 0x57b   : > { %5371 = vperm.xlu2 %6367, %v2851_v59   ;;  %v3838_v27 = vrot.slane %v12536_v25, 4  ;;  %v3524_v59 = vrot.slane %v3485_v35, 4  ;;  %v3522_v37 = vrot.slane %v3509_v2, 4  ;;  %v2964_v21 = vrot.slane %v10991_v14, 4 }
 0x57c   : > { %5404 = vperm.xlu1 %6366, %v4083_v29   ;;  %v4150_v19 = vrot.slane %v12539_v30, 4 }
 0x57d   : > { %v5273_v34 = vpop.permute.xlu2 %5272  ;;  %v3839_v61 = vsel %vm954_vm1, %v3838_v27, %v12538_v11  ;;  %v3300_v27 = vrot.slane %v11016_v8, 4 }
 0x57e   : > { %v5279_v10 = vpop.permute.xlu1 %5278  ;;  %v5900_v5 = vperm.slane %v5273_v34, %v10605_v31  ;;  %v5907_v34 = vperm.slane %v11113_v58, %v10378_v48  ;;  %v3845_v54 = vperm.slane %v3839_v61, %v12477_v12 }
 0x57f   : > { %v5903_v39 = vperm.slane %v5279_v10, %v10354_v18  ;;  %v3525_v10 = vsel %vm954_vm1, %v3509_v2, %v3524_v59 }
 0x580   : > { %v5901_v51 = vsel %vm5621_vm0, %v5900_v5, %v5899_v50  ;;  %5428 = vperm.xlu0 %6368, %v3189_v52   ;;  %v2965_v5 = vsel %vm954_vm1, %v10976_v4, %v2964_v21  ;;  %v3523_v52 = vsel %vm954_vm1, %v3522_v37, %v3485_v35  ;;  %v3858_v0 = vrot.slane %v3845_v54, 4  ;;  %v12546_v21 = vld [vmem:[#allocation226_spill] sm:$0xff] }
 0x581   : > { %v5904_v53 = vsel %vm5565_vm2, %v5903_v39, %v5902_v56  ;;  %v11154_v45 = vsel %vm6088_vm7, %v5901_v51, %v11006_v44  ;;  %v3821_v39 = vperm.slane %v3815_v62, %v12477_v12  ;;  %v4174_v51 = vrot.slane %v12540_v36, 4 }
 0x582   : > { %v11159_v7 = vpop.permute.xlu0 %5302  ;;  %v5913_v35 = vperm.slane %v11135_v63, %v10442_v49  ;;  %vm12543_vm7 = vcmask 458112   ;;  %v4486_v62 = vrot.slane %v12544_v15, 4  ;;  %v4510_v11 = vrot.slane %v12546_v21, 4  ;;  %v12553_v21 = vld [vmem:[#allocation71_spill] sm:$0xff] }
 0x583   : > { %5380 = vperm.xlu2 %6367, %v3187_v3   ;;  %v3860_v57 = vrot.slane %v3821_v39, 4 }
 0x584   : > { %5413 = vperm.xlu1 %6366, %v4419_v33   ;;  %v12541_v33 = vld [vmem:[#allocation264_spill] sm:$0xff] }
 0x585   : > { %v5282_v50 = vpop.permute.xlu2 %5281  ;;  %v4151_v2 = vsel %vm954_vm1, %v4150_v19, %v12541_v33  ;;  %v3861_v25 = vsel %vm954_vm1, %v3845_v54, %v3860_v57  ;;  %v12547_v19 = vld [vmem:[#allocation35_spill] sm:$0xff]  ;;  %v12548_v54 = vld [vmem:[#allocation158_spill] sm:$0xff] }
 0x586   : > { %v5288_v44 = vpop.permute.xlu1 %5287  ;;  %v5905_v22 = vperm.slane %v5282_v50, %v10371_v32  ;;  %v12542_v50 = vld [vmem:[#allocation267_spill] sm:$0xff]  ;;  %v4157_v37 = vperm.slane %v4151_v2, %v12477_v12  ;;  %v4511_v36 = vsel %vm954_vm1, %v4510_v11, %v12548_v54  ;;  %v4308_v11 = vrot.slane %v11093_v42, 4  ;;  %v12557_v54 = vld [vmem:[#allocation133_spill] sm:$0xff] }
 0x587   : > { %v5909_v29 = vperm.slane %v5288_v44, %v10413_v46  ;;  %v4175_v44 = vsel %vm954_vm1, %v4174_v51, %v12542_v50  ;;  %v4517_v33 = vperm.slane %v4511_v36, %v12477_v12 }
 0x588   : > { %v5906_v55 = vsel %vm5569_vm3, %v5905_v22, %v5904_v53  ;;  %5437 = vperm.xlu0 %6368, %v3525_v10   ;;  %v4181_v10 = vperm.slane %v4175_v44, %v12477_v12 }
 0x589   : > { %v5908_v56 = vsel %vm5573_vm4, %v5907_v34, %v5906_v55  ;;  %v3859_v34 = vsel %vm954_vm1, %v3858_v0, %v3821_v39  ;;  %v5919_v39 = vperm.slane %v11159_v7, %v10487_v26  ;;  %v4530_v50 = vrot.slane %v4517_v33, 4 }
 0x58a   : > { %v5910_v58 = vsel %vm5577_vm5, %v5909_v29, %v5908_v56  ;;  %v11183_v14 = vpop.permute.xlu0 %5311  ;;  %v3301_v29 = vsel %vm954_vm1, %v11000_v20, %v3300_v27  ;;  %v4196_v56 = vrot.slane %v4157_v37, 4  ;;  %v4194_v30 = vrot.slane %v4181_v10, 4 }
 0x58b   : > { %5389 = vperm.xlu2 %6367, %v3523_v52   ;;  %v5925_v44 = vperm.slane %v11183_v14, %v10524_v40 }
 0x58c   : > { %5422 = vperm.xlu1 %6366, %v2965_v5   ;;  %v4197_v52 = vsel %vm954_vm1, %v4181_v10, %v4196_v56 }
 0x58d   : > { %v5291_v53 = vpop.permute.xlu2 %5290 }
 0x58e   : > { %v5297_v38 = vpop.permute.xlu1 %5296  ;;  %v5911_v4 = vperm.slane %v5291_v53, %v10410_v28  ;;  %v3636_v53 = vrot.slane %v11040_v43, 4 }
 0x58f   : > { %v5915_v3 = vperm.slane %v5297_v38, %v10460_v24 }
 0x590   : > { %v5912_v59 = vsel %vm5581_vm6, %v5911_v4, %v5910_v58  ;;  %5446 = vperm.xlu0 %6368, %v3861_v25   ;;  %v4487_v58 = vsel %vm954_vm1, %v4486_v62, %v12547_v19  ;;  %v3637_v7 = vsel %vm954_vm1, %v11025_v6, %v3636_v53  ;;  %v12558_v53 = vld [vmem:[#allocation18_spill] sm:$0xff] }
 0x591   : > { %v5914_v22 = vsel %vm12543_vm7, %v5913_v35, %v5912_v59  ;;  %v4493_v57 = vperm.slane %v4487_v58, %v12477_v12  ;;  %vm12551_vm7 = vcmask 720512   ;;  %v3972_v12 = vrot.slane %v11067_v1, 4  ;;  %v12556_v58 = vld [vmem:[#allocation21_spill] sm:$0xff] }
 0x592   : > { %v5916_v63 = vsel %vm12545_vm9, %v5915_v3, %v5914_v22  ;;  %v5321_v8 = vpop.permute.xlu0 %5320  ;;  %v4195_v3 = vsel %vm954_vm1, %v4194_v30, %v4157_v37  ;;  %vm12552_vm9 = vcmask 786112  }
 0x593   : > { %5398 = vperm.xlu2 %6367, %v3859_v34   ;;  %v4532_v25 = vrot.slane %v4493_v57, 4  ;;  %v4531_v37 = vsel %vm954_vm1, %v4530_v50, %v4493_v57  ;;  %v3973_v62 = vsel %vm954_vm1, %v11050_v47, %v3972_v12  ;;  %v5931_v10 = vperm.slane %v5321_v8, %v10605_v31  ;;  %v12559_v57 = vld [vmem:[#allocation132_spill] sm:$0xff]  ;;  %v12564_v12 = vld [vmem:[#allocation189_spill] sm:$0xff] }
 0x594   : > { %5431 = vperm.xlu1 %6366, %v3301_v29   ;;  %v4309_v47 = vsel %vm954_vm1, %v11077_v60, %v4308_v11 }
 0x595   : > { %v5300_v61 = vpop.permute.xlu2 %5299  ;;  %v4533_v59 = vsel %vm954_vm1, %v4517_v33, %v4532_v25  ;;  %v12560_v33 = vld [vmem:[#allocation83_spill] sm:$0xff] }
 0x596   : > { %v5306_v55 = vpop.permute.xlu1 %5305  ;;  %v5917_v20 = vperm.slane %v5300_v61, %v10451_v16 }
 0x597   : > { %v5921_v5 = vperm.slane %v5306_v55, %v10498_v41 }
 0x598   : > { %v5918_v51 = vsel %vm12549_vm8, %v5917_v20, %v5916_v63  ;;  %5455 = vperm.xlu0 %6368, %v4197_v52   ;;  %vm12554_vm8 = vcmask 1042434   ;;  %v12555_v20 = vld [vmem:[#allocation70_spill] sm:$0xff] }
 0x599   : > { %v5920_v38 = vsel %vm12550_vm10, %v5919_v39, %v5918_v51  ;;  %v2854_v39 = vrot.slane %v12556_v58, 4  ;;  %vm12562_vm10 = vcmask 458112  }
 0x59a   : > { %v5922_v4 = vsel %vm12551_vm7, %v5921_v5, %v5920_v38  ;;  %v5330_v0 = vpop.permute.xlu0 %5329  ;;  %vm12566_vm7 = vcmask 523712  }
 0x59b   : > { %5407 = vperm.xlu2 %6367, %v4195_v3   ;;  %v5936_v52 = vperm.slane %v5330_v0, %v10371_v32  ;;  %v2855_v38 = vsel %vm954_vm1, %v2854_v39, %v12558_v53 }
 0x59c   : > { %5440 = vperm.xlu1 %6366, %v3637_v7  }
 0x59d   : > { %v5309_v2 = vpop.permute.xlu2 %5308 }
 0x59e   : > { %v5315_v35 = vpop.permute.xlu1 %5314  ;;  %v5923_v43 = vperm.slane %v5309_v2, %v10505_v9  ;;  %v3190_v2 = vrot.slane %v12560_v33, 4 }
 0x59f   : > { %v5927_v27 = vperm.slane %v5315_v35, %v10545_v13 }
 0x5a0   : > { %v5924_v22 = vsel %vm12552_vm9, %v5923_v43, %v5922_v4  ;;  %5464 = vperm.xlu0 %6368, %v4533_v59   ;;  %v12561_v43 = vld [vmem:[#allocation188_spill] sm:$0xff]  ;;  %vm12568_vm9 = vcmask 589312  }
 0x5a1   : > { %v5926_v6 = vsel %vm5609_vm13, %v5925_v44, %v5924_v22  ;;  %v12563_v59 = vld [vmem:[#allocation80_spill] sm:$0xff] }
 0x5a2   : > { %v5928_v29 = vsel %vm5613_vm14, %v5927_v27, %v5926_v6  ;;  %v5339_v15 = vpop.permute.xlu0 %5338  ;;  %v3191_v22 = vsel %vm954_vm1, %v3190_v2, %v12563_v59 }
 0x5a3   : > { %5416 = vperm.xlu2 %6367, %v4531_v37   ;;  %v5942_v35 = vperm.slane %v5339_v15, %v10410_v28 }
 0x5a4   : > { %5449 = vperm.xlu1 %6366, %v3973_v62   ;;  %v12565_v62 = vld [vmem:[#allocation145_spill] sm:$0xff] }
 0x5a5   : > { %v5318_v14 = vpop.permute.xlu2 %5317 }
 0x5a6   : > { %v5324_v63 = vpop.permute.xlu1 %5323  ;;  %v5929_v34 = vperm.slane %v5318_v14, %v10571_v23  ;;  %v3526_v14 = vrot.slane %v12565_v62, 4  ;;  %v12582_v62 = vld [vmem:[#allocation59_spill] sm:$0xff] }
 0x5a7   : > { %v5933_v30 = vperm.slane %v5324_v63, %v12342_v17 }
 0x5a8   : > { %v5930_v1 = vsel %vm5617_vm15, %v5929_v34, %v5928_v29  ;;  %5473 = vperm.xlu0 %6368, %v12553_v21  }
 0x5a9   : > { %v5932_v61 = vsel %vm5621_vm0, %v5931_v10, %v5930_v1  ;;  %v12567_v10 = vld [vmem:[#allocation252_spill] sm:$0xff] }
 0x5aa   : > { %v5348_v55 = vpop.permute.xlu0 %5347  ;;  %v11247_v56 = vsel %vm12554_vm8, %v5932_v61, %v11154_v45  ;;  %vm12569_vm8 = vcmask 654912   ;;  %v12570_v61 = vld [vmem:[#allocation142_spill] sm:$0xff] }
 0x5ab   : > { %5425 = vperm.xlu2 %6367, %v12555_v20   ;;  %v5948_v63 = vperm.slane %v5348_v55, %v10451_v16  ;;  %v12571_v20 = vld [vmem:[#allocation253_spill] sm:$0xff] }
 0x5ac   : > { %5458 = vperm.xlu1 %6366, %v4309_v47   ;;  %v3527_v47 = vsel %vm954_vm1, %v3526_v14, %v12570_v61  ;;  %v4534_v14 = vrot.slane %v12582_v62, 4  ;;  %v12585_v61 = vld [vmem:[#allocation111_spill] sm:$0xff] }
 0x5ad   : > { %v5327_v8 = vpop.permute.xlu2 %5326 }
 0x5ae   : > { %v5333_v5 = vpop.permute.xlu1 %5332  ;;  %v5934_v19 = vperm.slane %v5327_v8, %v10354_v18 }
 0x5af   : > { %v5938_v42 = vperm.slane %v5333_v5, %v10378_v48 }
 0x5b0   : > { %v5935_v60 = vsel %vm5565_vm2, %v5934_v19, %v5933_v30  ;;  %5482 = vperm.xlu0 %6368, %v12557_v54   ;;  %v12572_v19 = vld [vmem:[#allocation211_spill] sm:$0xff] }
 0x5b1   : > { %v5937_v45 = vsel %vm5569_vm3, %v5936_v52, %v5935_v60  ;;  %v12574_v52 = vld [vmem:[#allocation285_spill] sm:$0xff] }
 0x5b2   : > { %v5939_v36 = vsel %vm5573_vm4, %v5938_v42, %v5937_v45  ;;  %v5357_v51 = vpop.permute.xlu0 %5356  ;;  %v3862_v42 = vrot.slane %v12572_v19, 4 }
 0x5b3   : > { %5434 = vperm.xlu2 %6367, %v12559_v57   ;;  %v5954_v58 = vperm.slane %v5357_v51, %v10505_v9 }
 0x5b4   : > { %5467 = vperm.xlu1 %6366, %v2855_v38   ;;  %v12577_v38 = vld [vmem:[#allocation287_spill] sm:$0xff] }
 0x5b5   : > { %v5336_v4 = vpop.permute.xlu2 %5335 }
 0x5b6   : > { %v5342_v3 = vpop.permute.xlu1 %5341  ;;  %v5940_v7 = vperm.slane %v5336_v4, %v10413_v46 }
 0x5b7   : > { %v5944_v0 = vperm.slane %v5342_v3, %v10442_v49 }
 0x5b8   : > { %v5941_v25 = vsel %vm5577_vm5, %v5940_v7, %v5939_v36  ;;  %5491 = vperm.xlu0 %6368, %v12561_v43   ;;  %v12576_v36 = vld [vmem:[#allocation208_spill] sm:$0xff]  ;;  %v12578_v7 = vld [vmem:[#allocation270_spill] sm:$0xff] }
 0x5b9   : > { %v5943_v27 = vsel %vm5581_vm6, %v5942_v35, %v5941_v25  ;;  %v3863_v53 = vsel %vm954_vm1, %v3862_v42, %v12576_v36  ;;  %v12579_v35 = vld [vmem:[#allocation48_spill] sm:$0xff] }
 0x5ba   : > { %v5945_v50 = vsel %vm12562_vm10, %v5944_v0, %v5943_v27  ;;  %v5366_v44 = vpop.permute.xlu0 %5365  ;;  %vm12573_vm10 = vcmask 720512   ;;  %v4198_v0 = vrot.slane %v12578_v7, 4  ;;  %v12592_v7 = vld [vmem:[#allocation239_spill] sm:$0xff] }
 0x5bb   : > { %5443 = vperm.xlu2 %6367, %v12564_v12   ;;  %v5960_v33 = vperm.slane %v5366_v44, %v10571_v23  ;;  %v12581_v12 = vld [vmem:[#allocation49_spill] sm:$0xff] }
 0x5bc   : > { %5476 = vperm.xlu1 %6366, %v3191_v22  }
 0x5bd   : > { %v5345_v6 = vpop.permute.xlu2 %5344 }
 0x5be   : > { %v5351_v29 = vpop.permute.xlu1 %5350  ;;  %v5946_v37 = vperm.slane %v5345_v6, %v10460_v24 }
 0x5bf   : > { %v5950_v15 = vperm.slane %v5351_v29, %v10487_v26 }
 0x5c0   : > { %v5947_v34 = vsel %vm12566_vm7, %v5946_v37, %v5945_v50  ;;  %5500 = vperm.xlu0 %6368, %v12567_v10   ;;  %vm12575_vm7 = vcmask 786112   ;;  %v12580_v50 = vld [vmem:[#allocation269_spill] sm:$0xff] }
 0x5c1   : > { %v5949_v1 = vsel %vm12568_vm9, %v5948_v63, %v5947_v34  ;;  %v4199_v59 = vsel %vm954_vm1, %v4198_v0, %v12580_v50  ;;  %v12583_v34 = vld [vmem:[#allocation110_spill] sm:$0xff]  ;;  %v12594_v50 = vld [vmem:[#allocation280_spill] sm:$0xff] }
 0x5c2   : > { %v5951_v21 = vsel %vm12569_vm8, %v5950_v15, %v5949_v1  ;;  %v5375_v11 = vpop.permute.xlu0 %5374  ;;  %v12584_v1 = vld [vmem:[#allocation289_spill] sm:$0xff]  ;;  %v12593_v0 = vld [vmem:[#allocation134_spill] sm:$0xff] }
 0x5c3   : > { %5452 = vperm.xlu2 %6367, %v12571_v20   ;;  %v5965_v29 = vperm.slane %v5375_v11, %v10354_v18 }
 0x5c4   : > { %5485 = vperm.xlu1 %6366, %v3527_v47  }
 0x5c5   : > { %v5354_v8 = vpop.permute.xlu2 %5353 }
 0x5c6   : > { %v5360_v5 = vpop.permute.xlu1 %5359  ;;  %v5952_v30 = vperm.slane %v5354_v8, %v10498_v41 }
 0x5c7   : > { %v5956_v55 = vperm.slane %v5360_v5, %v10524_v40 }
 0x5c8   : > { %v5953_v39 = vsel %vm12573_vm10, %v5952_v30, %v5951_v21  ;;  %5509 = vperm.xlu0 %6368, %v12574_v52   ;;  %v4535_v21 = vsel %vm954_vm1, %v4534_v14, %v12584_v1  ;;  %v12588_v52 = vld [vmem:[#allocation72_spill] sm:$0xff]  ;;  %vm12589_vm1 = vcmask 458112  }
 0x5c9   : > { %v5955_v60 = vsel %vm12575_vm7, %v5954_v58, %v5953_v39  ;;  %v12587_v39 = vld [vmem:[#allocation176_spill] sm:$0xff] }
 0x5ca   : > { %v5957_v54 = vsel %vm5609_vm13, %v5956_v55, %v5955_v60  ;;  %v5384_v45 = vpop.permute.xlu0 %5383  ;;  %v12586_v55 = vld [vmem:[#allocation174_spill] sm:$0xff] }
 0x5cb   : > { %5461 = vperm.xlu2 %6367, %v12577_v38   ;;  %v5971_v5 = vperm.slane %v5384_v45, %v10413_v46 }
 0x5cc   : > { %5494 = vperm.xlu1 %6366, %v3863_v53  }
 0x5cd   : > { %v5363_v57 = vpop.permute.xlu2 %5362 }
 0x5ce   : > { %v5369_v4 = vpop.permute.xlu1 %5368  ;;  %v5958_v3 = vperm.slane %v5363_v57, %v10545_v13  ;;  %v12590_v57 = vld [vmem:[#allocation236_spill] sm:$0xff] }
 0x5cf   : > { %v5962_v51 = vperm.slane %v5369_v4, %v10605_v31 }
 0x5d0   : > { %v5959_v2 = vsel %vm5613_vm14, %v5958_v3, %v5957_v54  ;;  %5518 = vperm.xlu0 %6368, %v12579_v35  }
 0x5d1   : > { %v5961_v25 = vsel %vm5617_vm15, %v5960_v33, %v5959_v2 }
 0x5d2   : > { %v5963_v43 = vsel %vm5621_vm0, %v5962_v51, %v5961_v25  ;;  %v5393_v27 = vpop.permute.xlu0 %5392 }
 0x5d3   : > { %v11307_v22 = vsel %vm6092_vm12, %v5963_v43, %v11247_v56  ;;  %5470 = vperm.xlu2 %6367, %v12581_v12   ;;  %v5977_v45 = vperm.slane %v5393_v27, %v10460_v24  ;;  %vm12591_vm12 = vcmask 523712  }
 0x5d4   : > { %5503 = vperm.xlu1 %6366, %v4199_v59  }
 0x5d5   : > { %v5372_v44 = vpop.permute.xlu2 %5371 }
 0x5d6   : > { %v5378_v6 = vpop.permute.xlu1 %5377  ;;  %v5964_v37 = vperm.slane %v5372_v44, %v12342_v17 }
 0x5d7   : > { %v5967_v15 = vperm.slane %v5378_v6, %v10371_v32  ;;  %v12595_v6 = vld [vmem:[#allocation281_spill] sm:$0xff] }
 0x5d8   : > { %v5966_v63 = vsel %vm5565_vm2, %v5965_v29, %v5964_v37  ;;  %5527 = vperm.xlu0 %6368, %v12583_v34   ;;  %v12596_v29 = vld [vmem:[#allocation192_spill] sm:$0xff] }
 0x5d9   : > { %v5968_v56 = vsel %vm5569_vm3, %v5967_v15, %v5966_v63 }
 0x5da   : > { %v5402_v10 = vpop.permute.xlu0 %5401 }
 0x5db   : > { %5479 = vperm.xlu2 %6367, %v12585_v61   ;;  %v5983_v43 = vperm.slane %v5402_v10, %v10498_v41  ;;  %v12598_v61 = vld [vmem:[#allocation25_spill] sm:$0xff] }
 0x5dc   : > { %5512 = vperm.xlu1 %6366, %v4535_v21  }
 0x5dd   : > { %v5381_v11 = vpop.permute.xlu2 %5380 }
 0x5de   : > { %v5387_v47 = vpop.permute.xlu1 %5386  ;;  %v5969_v20 = vperm.slane %v5381_v11, %v10378_v48  ;;  %v12599_v11 = vld [vmem:[#allocation256_spill] sm:$0xff] }
 0x5df   : > { %v5973_v8 = vperm.slane %v5387_v47, %v10410_v28 }
 0x5e0   : > { %v5970_v30 = vsel %vm5573_vm4, %v5969_v20, %v5968_v56  ;;  %5536 = vperm.xlu0 %6368, %v12586_v55   ;;  %v6371_v56 = vld [vmem:[%s6595_s5 + $0x8] sm:$0xff] }
 0x5e1   : > { %v5972_v19 = vsel %vm5577_vm5, %v5971_v5, %v5970_v30 }
 0x5e2   : > { %v5974_v42 = vsel %vm5581_vm6, %v5973_v8, %v5972_v19  ;;  %v5411_v58 = vpop.permute.xlu0 %5410 }
 0x5e3   : > { %5488 = vperm.xlu2 %6367, %v12587_v39   ;;  %v5989_v63 = vperm.slane %v5411_v58, %v10545_v13  ;;  %v12600_v39 = vld [vmem:[#allocation87_spill] sm:$0xff] }
 0x5e4   : > { %5521 = vperm.xlu1 %6366, %v12588_v52   ;;  %v12601_v52 = vld [vmem:[#allocation288_spill] sm:$0xff] }
 0x5e5   : > { %v5390_v60 = vpop.permute.xlu2 %5389 }
 0x5e6   : > { %v5396_v54 = vpop.permute.xlu1 %5395  ;;  %v5975_v36 = vperm.slane %v5390_v60, %v10442_v49 }
 0x5e7   : > { %v5979_v53 = vperm.slane %v5396_v54, %v10451_v16 }
 0x5e8   : > { %v5976_v38 = vsel %vm12589_vm1, %v5975_v36, %v5974_v42  ;;  %5545 = vperm.xlu0 %6368, %v12590_v57  }
 0x5e9   : > { %v5978_v4 = vsel %vm12591_vm12, %v5977_v45, %v5976_v38 }
 0x5ea   : > { %v5980_v3 = vsel %vm12568_vm9, %v5979_v53, %v5978_v4  ;;  %v5420_v51 = vpop.permute.xlu0 %5419 }
 0x5eb   : > { %5497 = vperm.xlu2 %6367, %v12592_v7   ;;  %v5995_v8 = vperm.slane %v5420_v51, %v12342_v17  ;;  %v6372_v51 = vld [vmem:[%s6595_s5 + $0x18] sm:$0xff] }
 0x5ec   : > { %5530 = vperm.xlu1 %6366, %v12593_v0  }
 0x5ed   : > { %v5399_v33 = vpop.permute.xlu2 %5398 }
 0x5ee   : > { %v5405_v2 = vpop.permute.xlu1 %5404  ;;  %v5981_v35 = vperm.slane %v5399_v33, %v10487_v26 }
 0x5ef   : > { %v5985_v25 = vperm.slane %v5405_v2, %v10505_v9 }
 0x5f0   : > { %v5982_v27 = vsel %vm12569_vm8, %v5981_v35, %v5980_v3  ;;  %5554 = vperm.xlu0 %6368, %v12594_v50   ;;  %v12602_v3 = vld [vmem:[#allocation149_spill] sm:$0xff] }
 0x5f1   : > { %v5984_v59 = vsel %vm12573_vm10, %v5983_v43, %v5982_v27 }
 0x5f2   : > { %v5986_v12 = vsel %vm12575_vm7, %v5985_v25, %v5984_v59  ;;  %v5429_v44 = vpop.permute.xlu0 %5428  ;;  %v12605_v59 = vld [vmem:[#allocation214_spill] sm:$0xff] }
 0x5f3   : > { %5506 = vperm.xlu2 %6367, %v12595_v6   ;;  %v6000_v45 = vperm.slane %v5429_v44, %v10378_v48 }
 0x5f4   : > { %5539 = vperm.xlu1 %6366, %v12596_v29  }
 0x5f5   : > { %v5408_v37 = vpop.permute.xlu2 %5407 }
 0x5f6   : > { %v5414_v15 = vpop.permute.xlu1 %5413  ;;  %v5987_v62 = vperm.slane %v5408_v37, %v10524_v40 }
 0x5f7   : > { %v5991_v14 = vperm.slane %v5414_v15, %v10571_v23 }
 0x5f8   : > { %v5988_v34 = vsel %vm5609_vm13, %v5987_v62, %v5986_v12  ;;  %6118 = vrot.lane.b32.xlu0 %v6371_v56, %s12597_s20 }
 0x5f9   : > { %v5990_v10 = vsel %vm5613_vm14, %v5989_v63, %v5988_v34  ;;  %v12609_v34 = vld [vmem:[#allocation273_spill] sm:$0xff] }
 0x5fa   : > { %v5992_v1 = vsel %vm5617_vm15, %v5991_v14, %v5990_v10  ;;  %v5438_v21 = vpop.permute.xlu0 %5437 }
 0x5fb   : > { %5515 = vperm.xlu2 %6367, %v12598_v61   ;;  %v6006_v35 = vperm.slane %v5438_v21, %v10442_v49 }
 0x5fc   : > { %5548 = vperm.xlu1 %6366, %v12599_v11  }
 0x5fd   : > { %v5417_v47 = vpop.permute.xlu2 %5416 }
 0x5fe   : > { %v5423_v20 = vpop.permute.xlu1 %5422  ;;  %v5993_v5 = vperm.slane %v5417_v47, %v10605_v31 }
 0x5ff   : > { %v5996_v30 = vperm.slane %v5423_v20, %v10354_v18 }
 0x600   : > { %v5994_v55 = vsel %vm5621_vm0, %v5993_v5, %v5992_v1  ;;  %v12611_v5 = vld [vmem:[#allocation292_spill] sm:$0xff] }
 0x601   : > { %v5997_v19 = vsel %vm5565_vm2, %v5996_v30, %v5995_v8  ;;  %v6105_v42 = vsel %vm6094_vm11, %v5994_v55, %v11307_v22  ;;  %vm12603_vm11 = vmmov %vm12589_vm1 }
 0x602   : > { %v5447_v58 = vpop.permute.xlu0 %5446  ;;  %vm12604_vm1 = vmmov %vm12591_vm12 }
 0x603   : > { %5524 = vperm.xlu2 %6367, %v12600_v39   ;;  %v6012_v37 = vperm.slane %v5447_v58, %v10487_v26  ;;  %vm12606_vm12 = vmmov %vm12568_vm9 }
 0x604   : > { %5557 = vperm.xlu1 %6366, %v12601_v52   ;;  %vm12607_vm9 = vmmov %vm12569_vm8 }
 0x605   : > { %v5426_v60 = vpop.permute.xlu2 %5425  ;;  %vm12608_vm8 = vmmov %vm12573_vm10 }
 0x606   : > { %v5432_v54 = vpop.permute.xlu1 %5431  ;;  %v5998_v36 = vperm.slane %v5426_v60, %v10371_v32  ;;  %vm12610_vm10 = vmmov %vm12575_vm7  ;;  %vm12612_vm7 = vcmask 1045509  }
 0x607   : > { %v6002_v53 = vperm.slane %v5432_v54, %v10413_v46 }
 0x608   : > { %v5999_v38 = vsel %vm5569_vm3, %v5998_v36, %v5997_v19 }
 0x609   : > { %v6001_v57 = vsel %vm5573_vm4, %v6000_v45, %v5999_v38 }
 0x60a   : > { %v6003_v4 = vsel %vm5577_vm5, %v6002_v53, %v6001_v57  ;;  %v5456_v22 = vpop.permute.xlu0 %5455 }
 0x60b   : > { %5533 = vperm.xlu2 %6367, %v12602_v3   ;;  %v6018_v61 = vperm.slane %v5456_v22, %v10524_v40 }
 0x60c   : > { %6120 = vrot.lane.b32.xlu1 %v6372_v51, %s12597_s20 }
 0x60d   : > { %v5435_v7 = vpop.permute.xlu2 %5434 }
 0x60e   : > { %v5441_v0 = vpop.permute.xlu1 %5440  ;;  %v6004_v33 = vperm.slane %v5435_v7, %v10410_v28 }
 0x60f   : > { %v6008_v2 = vperm.slane %v5441_v0, %v10460_v24 }
 0x610   : > { %v6005_v25 = vsel %vm5581_vm6, %v6004_v33, %v6003_v4 }
 0x611   : > { %v6007_v43 = vsel %vm12603_vm11, %v6006_v35, %v6005_v25 }
 0x612   : > { %v6009_v27 = vsel %vm12604_vm1, %v6008_v2, %v6007_v43  ;;  %v5465_v50 = vpop.permute.xlu0 %5464 }
 0x613   : > { %5542 = vperm.xlu2 %6367, %v12605_v59   ;;  %v6024_v58 = vperm.slane %v5465_v50, %v10605_v31 }
 0x615   : > { %v5444_v12 = vpop.permute.xlu2 %5443 }
 0x616   : > { %v5450_v44 = vpop.permute.xlu1 %5449  ;;  %v6010_v6 = vperm.slane %v5444_v12, %v10451_v16 }
 0x617   : > { %v6014_v29 = vperm.slane %v5450_v44, %v10498_v41 }
 0x618   : > { %v6011_v15 = vsel %vm12606_vm12, %v6010_v6, %v6009_v27 }
 0x619   : > { %v6013_v62 = vsel %vm12607_vm9, %v6012_v37, %v6011_v15 }
 0x61a   : > { %v6015_v14 = vsel %vm12608_vm8, %v6014_v29, %v6013_v62  ;;  %v5474_v63 = vpop.permute.xlu0 %5473 }
 0x61b   : > { %5551 = vperm.xlu2 %6367, %v12609_v34   ;;  %v6029_v4 = vperm.slane %v5474_v63, %v10371_v32 }
 0x61d   : > { %v5453_v56 = vpop.permute.xlu2 %5452 }
 0x61e   : > { %v5459_v10 = vpop.permute.xlu1 %5458  ;;  %v6016_v1 = vperm.slane %v5453_v56, %v10505_v9 }
 0x61f   : > { %v6020_v21 = vperm.slane %v5459_v10, %v10545_v13 }
 0x620   : > { %v6017_v11 = vsel %vm12610_vm10, %v6016_v1, %v6015_v14 }
 0x621   : > { %v6019_v47 = vsel %vm5609_vm13, %v6018_v61, %v6017_v11 }
 0x622   : > { %v6021_v20 = vsel %vm5613_vm14, %v6020_v21, %v6019_v47  ;;  %v5483_v8 = vpop.permute.xlu0 %5482 }
 0x623   : > { %5560 = vperm.xlu2 %6367, %v12611_v5   ;;  %v6035_v2 = vperm.slane %v5483_v8, %v10410_v28 }
 0x625   : > { %v5462_v30 = vpop.permute.xlu2 %5461 }
 0x626   : > { %v5468_v55 = vpop.permute.xlu1 %5467  ;;  %v6022_v19 = vperm.slane %v5462_v30, %v10571_v23 }
 0x627   : > { %v6026_v45 = vperm.slane %v5468_v55, %v12342_v17 }
 0x628   : > { %v6023_v39 = vsel %vm5617_vm15, %v6022_v19, %v6021_v20 }
 0x629   : > { %v6025_v52 = vsel %vm5621_vm0, %v6024_v58, %v6023_v39 }
 0x62a   : > { %v5492_v60 = vpop.permute.xlu0 %5491  ;;  %v6106_v54 = vsel %vm12612_vm7, %v6025_v52, %v6105_v42  ;;  %vm12613_vm7 = vcmask 1046534  }
 0x62b   : > { %v6041_v44 = vperm.slane %v5492_v60, %v10451_v16 }
 0x62d   : > { %v5471_v36 = vpop.permute.xlu2 %5470 }
 0x62e   : > { %v5477_v53 = vpop.permute.xlu1 %5476  ;;  %v6027_v38 = vperm.slane %v5471_v36, %v10354_v18 }
 0x62f   : > { %v6031_v57 = vperm.slane %v5477_v53, %v10378_v48 }
 0x630   : > { %v6028_v22 = vsel %vm5565_vm2, %v6027_v38, %v6026_v45 }
 0x631   : > { %v6030_v3 = vsel %vm5569_vm3, %v6029_v4, %v6028_v22 }
 0x632   : > { %v6032_v51 = vsel %vm5573_vm4, %v6031_v57, %v6030_v3  ;;  %v5501_v7 = vpop.permute.xlu0 %5500 }
 0x633   : > { %v6047_v56 = vperm.slane %v5501_v7, %v10505_v9 }
 0x635   : > { %v5480_v0 = vpop.permute.xlu2 %5479 }
 0x636   : > { %v5486_v33 = vpop.permute.xlu1 %5485  ;;  %v6033_v42 = vperm.slane %v5480_v0, %v10413_v46 }
 0x637   : > { %v6037_v27 = vperm.slane %v5486_v33, %v10442_v49  ;;  %v12614_v33 = vld [vmem:[#allocation5_spill] sm:$0xff] }
 0x638   : > { %v6034_v35 = vsel %vm5577_vm5, %v6033_v42, %v6032_v51 }
 0x639   : > { %v6036_v25 = vsel %vm5581_vm6, %v6035_v2, %v6034_v35 }
 0x63a   : > { %v5510_v43 = vpop.permute.xlu0 %5509  ;;  %v6038_v6 = vsel %vm12603_vm11, %v6037_v27, %v6036_v25  ;;  %vm6113_vm11 = vcmask 7168  }
 0x63b   : > { %v6053_v30 = vperm.slane %v5510_v43, %v10571_v23  ;;  %6114 = vst.msk [vmem:[%s10926_s2] sm:$0xff] %vm6113_vm11, %v12614_v33 }
 0x63d   : > { %v5489_v50 = vpop.permute.xlu2 %5488 }
 0x63e   : > { %v5495_v59 = vpop.permute.xlu1 %5494  ;;  %v6039_v12 = vperm.slane %v5489_v50, %v10460_v24 }
 0x63f   : > { %v6043_v62 = vperm.slane %v5495_v59, %v10487_v26 }
 0x640   : > { %v6040_v29 = vsel %vm12604_vm1, %v6039_v12, %v6038_v6 }
 0x641   : > { %v6042_v37 = vsel %vm12606_vm12, %v6041_v44, %v6040_v29 }
 0x642   : > { %v5519_v15 = vpop.permute.xlu0 %5518  ;;  %v6044_v10 = vsel %vm12607_vm9, %v6043_v62, %v6042_v37 }
 0x643   : > { %v6058_v22 = vperm.slane %v5519_v15, %v10354_v18 }
 0x645   : > { %v5498_v14 = vpop.permute.xlu2 %5497 }
 0x646   : > { %v5504_v63 = vpop.permute.xlu1 %5503  ;;  %v6045_v34 = vperm.slane %v5498_v14, %v10498_v41 }
 0x647   : > { %v6049_v11 = vperm.slane %v5504_v63, %v10524_v40 }
 0x648   : > { %v6046_v1 = vsel %vm12608_vm8, %v6045_v34, %v6044_v10 }
 0x649   : > { %v6048_v21 = vsel %vm12610_vm10, %v6047_v56, %v6046_v1 }
 0x64a   : > { %v5528_v61 = vpop.permute.xlu0 %5527  ;;  %v6050_v55 = vsel %vm5609_vm13, %v6049_v11, %v6048_v21 }
 0x64b   : > { %v6064_v42 = vperm.slane %v5528_v61, %v10413_v46  ;;  %v12622_v61 = vld [vmem:[#allocation6_spill] sm:$0xff] }
 0x64d   : > { %v5507_v47 = vpop.permute.xlu2 %5506 }
 0x64e   : > { %v5513_v20 = vpop.permute.xlu1 %5512  ;;  %v6051_v8 = vperm.slane %v5507_v47, %v10545_v13 }
 0x64f   : > { %v6055_v5 = vperm.slane %v5513_v20, %v10605_v31 }
 0x650   : > { %v6052_v19 = vsel %vm5613_vm14, %v6051_v8, %v6050_v55 }
 0x651   : > { %v6054_v58 = vsel %vm5617_vm15, %v6053_v30, %v6052_v19 }
 0x652   : > { %v6056_v39 = vsel %vm5621_vm0, %v6055_v5, %v6054_v58  ;;  %v5537_v52 = vpop.permute.xlu0 %5536 }
 0x653   : > { %v6107_v60 = vsel %vm12613_vm7, %v6056_v39, %v6106_v54  ;;  %v6070_v50 = vperm.slane %v5537_v52, %v10460_v24 }
 0x655   : > { %v5516_v36 = vpop.permute.xlu2 %5515 }
 0x656   : > { %v5522_v53 = vpop.permute.xlu1 %5521  ;;  %v6057_v38 = vperm.slane %v5516_v36, %v12342_v17 }
 0x657   : > { %v6060_v3 = vperm.slane %v5522_v53, %v10371_v32 }
 0x658   : > { %v6059_v51 = vsel %vm5565_vm2, %v6058_v22, %v6057_v38  ;;  %vm12615_vm2 = vcmask 458112  }
 0x659   : > { %v6061_v54 = vsel %vm5569_vm3, %v6060_v3, %v6059_v51  ;;  %vm12616_vm3 = vmmov %vm12604_vm1 }
 0x65a   : > { %v5546_v45 = vpop.permute.xlu0 %5545  ;;  %vm12620_vm1 = vmmov %vm12610_vm10 }
 0x65b   : > { %v6076_v29 = vperm.slane %v5546_v45, %v10498_v41 }
 0x65d   : > { %v5525_v57 = vpop.permute.xlu2 %5524 }
 0x65e   : > { %v5531_v4 = vpop.permute.xlu1 %5530  ;;  %v6062_v7 = vperm.slane %v5525_v57, %v10378_v48 }
 0x65f   : > { %v6066_v32 = vperm.slane %v5531_v4, %v10410_v28 }
 0x660   : > { %v6063_v17 = vsel %vm5573_vm4, %v6062_v7, %v6061_v54  ;;  %vm12617_vm4 = vmmov %vm12606_vm12  ;;  %vm12621_vm12 = vcmask 1047559  }
 0x661   : > { %v6065_v35 = vsel %vm5577_vm5, %v6064_v42, %v6063_v17  ;;  %vm12618_vm5 = vmmov %vm12607_vm9 }
 0x662   : > { %v5555_v0 = vpop.permute.xlu0 %5554  ;;  %v6067_v48 = vsel %vm5581_vm6, %v6066_v32, %v6065_v35  ;;  %vm12619_vm6 = vmmov %vm12608_vm8 }
 0x663   : > { %v6082_v63 = vperm.slane %v5555_v0, %v10545_v13 }
 0x665   : > { %v5534_v2 = vpop.permute.xlu2 %5533 }
 0x666   : > { %v5540_v18 = vpop.permute.xlu1 %5539  ;;  %v6068_v25 = vperm.slane %v5534_v2, %v10442_v49 }
 0x667   : > { %v6072_v59 = vperm.slane %v5540_v18, %v10451_v16 }
 0x668   : > { %v6069_v27 = vsel %vm12615_vm2, %v6068_v25, %v6067_v48 }
 0x669   : > { %v6071_v44 = vsel %vm12616_vm3, %v6070_v50, %v6069_v27 }
 0x66a   : > { %v6119_v43 = vpop.permute.xlu0 %6118  ;;  %v6073_v6 = vsel %vm12617_vm4, %v6072_v59, %v6071_v44 }
 0x66b   : > { %6124 = vst.msk [vmem:[%s10926_s2 + $0x8] sm:$0xff] %vm6113_vm11, %v6119_v43 }
 0x66d   : > { %v5543_v46 = vpop.permute.xlu2 %5542 }
 0x66e   : > { %v5549_v12 = vpop.permute.xlu1 %5548  ;;  %v6074_v28 = vperm.slane %v5543_v46, %v10487_v26 }
 0x66f   : > { %v6078_v37 = vperm.slane %v5549_v12, %v10505_v9 }
 0x670   : > { %v6075_v49 = vsel %vm12618_vm5, %v6074_v28, %v6073_v6 }
 0x671   : > { %v6077_v15 = vsel %vm12619_vm6, %v6076_v29, %v6075_v49 }
 0x672   : > { %v6079_v14 = vsel %vm12620_vm1, %v6078_v37, %v6077_v15 }
 0x675   : > { %v5552_v24 = vpop.permute.xlu2 %5551 }
 0x676   : > { %v5558_v16 = vpop.permute.xlu1 %5557  ;;  %v6080_v62 = vperm.slane %v5552_v24, %v10524_v40 }
 0x677   : > { %v6084_v34 = vperm.slane %v5558_v16, %v10571_v23 }
 0x678   : > { %v6081_v26 = vsel %vm5609_vm13, %v6080_v62, %v6079_v14 }
 0x679   : > { %v6083_v41 = vsel %vm5613_vm14, %v6082_v63, %v6081_v26 }
 0x67a   : > { %v6085_v1 = vsel %vm5617_vm15, %v6084_v34, %v6083_v41 }
 0x67d   : > { %v5561_v56 = vpop.permute.xlu2 %5560 }
 0x67e   : > { %v6121_v9 = vpop.permute.xlu1 %6120  ;;  %v6086_v10 = vperm.slane %v5561_v56, %v10605_v31 }
 0x67f   : > { %6125 = vst.msk [vmem:[%s10926_s2 + $0x18] sm:$0xff] %vm6113_vm11, %v6121_v9 }
 0x680   : > { %v6087_v40 = vsel %vm5621_vm0, %v6086_v10, %v6085_v1 }
 0x681   : > { %v6108_v21 = vsel %vm12621_vm12, %v6087_v40, %v6107_v60 }
 0x682   : > { %6112 = vst [vmem:[%s10926_s2 + $0x10] sm:$0xff] %v6108_v21 }
 0x683   : > { %6115 = vst.msk [vmem:[%s10926_s2 + $0x10] sm:$0xff] %vm6113_vm11, %v12622_v61 }
 0x684 PF: > { %s14_s11 = sadd.s32 1, %s6453_s11   ;;  %s12623_s6 = smov %s6437_s7 }
 0x685   : > { %p11_p0 = scmp.ge.s32.totalorder %s14_s11, 4   ;;  %s12624_s7 = smov %s6441_s8 }
 0x686   : > { %s12625_s8 = smov %s6583_s18  ;;  %s12626_s9 = smov %s6449_s10 }
 0x687   : > { %s12627_s10 = smov %s12629_s13  ;;  %13 = sbr.rel (!%p11_p0) target bundleno = 4 (0x4), region = 64 }
 0x68c   :  { %6158 = vsyncpa [#allocation3], 1 }
 0x68d   :  { %6160 = vsyncpa [#allocation3 + $0x1], 1 }

</bundles_post_ra>
